<compile_context>
chip_gen: v6e
topology: v6e:2x2x1
jax: 0.10.0
libtpu: 0.0.40
codegen_flags: <defaults>
</compile_context>

<pallas_src>
import functools
import math

import jax
import jax.numpy as jnp
import numpy as np
from jax.experimental import pallas as pl
from jax.experimental.pallas import tpu as pltpu

KSIZE = 5   # conv kernel size from the PyTorch module
PAD = 2     # conv padding from the PyTorch module


def _round_up(x, m):
    return (x + m - 1) // m * m


# ---------------------------------------------------------------------------
# Fused Conv2d(k=5, s=1, p=2) + bias + ReLU + MaxPool2d(2) kernel.
#
# Activation layout: (B, H, W*C) -- spatial rows in sublanes, (column, channel)
# interleaved (channel-minor) in lanes.  The conv is a single MXU dot per pool
# parity: the contraction dim enumerates the 5 row taps of the zero-padded row
# (K = 5*(W+4)*Cin) against a banded weight whose N dim enumerates
# (output column, output channel).  Column taps live inside the band, so no
# per-tap accumulation is needed.  The 2x2 pool is fused: even/odd output
# columns come from the two banded weights (w-pool = elementwise max of the two
# dot results) and adjacent rows are paired before the store (h-pool).
# ---------------------------------------------------------------------------
def _conv_relu_pool_kernel(x_ref, we_ref, wo_ref, b_ref, o_ref,
                           xpad_ref, lhs_ref, *, H, W, Cin, K, P):
    BB = x_ref.shape[0]                # images per batch block
    HP = H + 2 * P                     # zero-padded rows per image
    HT = _round_up(H, 8)               # dot-M rows per image (sublane aligned)
    WPC = (W + 2 * P) * Cin            # zero-padded row width in lanes
    WIN = W * Cin                      # real row width in lanes
    NO = o_ref.shape[-1]               # (W//2) * Cout output lanes

    # ---- fused halo pad: zero the scratch, copy each image into the interior.
    xpad_ref[...] = jnp.zeros(xpad_ref.shape, xpad_ref.dtype)
    for b in range(BB):
        xpad_ref[b * HP + P: b * HP + P + H,
                 P * Cin: P * Cin + WIN] = x_ref[b]

    # ---- fold the 5 row taps into the contraction dim:
    #      lhs[(b, h), dy*WPC + j] = xpad[b, h + dy, j]
    # (rows H..HT-1 per image stay zero and are dropped after pooling)
    lhs_ref[...] = jnp.zeros(lhs_ref.shape, lhs_ref.dtype)
    for b in range(BB):
        for dy in range(K):
            lhs_ref[b * HT: b * HT + H,
                    dy * WPC: (dy + 1) * WPC] = (
                xpad_ref[b * HP + dy: b * HP + dy + H, :])

    # ---- one MXU dot per pool parity (even / odd output columns).
    lhs = lhs_ref[...]
    y_even = jnp.dot(lhs, we_ref[...], preferred_element_type=jnp.float32)
    y_odd = jnp.dot(lhs, wo_ref[...], preferred_element_type=jnp.float32)
    # column (w) pooling + bias + ReLU, all in VMEM.
    y = jnp.maximum(jnp.maximum(y_even, y_odd) + b_ref[...], 0.0)

    # ---- row (h) pooling: pair adjacent valid rows; padded rows never stored.
    y = y.reshape(BB, HT, NO)          # HT % 8 == 0 -> tile-aligned reshape
    for hp in range(H // 2):
        o_ref[:, hp, :] = jnp.maximum(y[:, 2 * hp, :], y[:, 2 * hp + 1, :])


def conv_relu_pool(x, we, wo, bias, *, H, W, Cin, Cout, K=KSIZE, P=PAD):
    """x: (B, H, W*Cin). Returns (B, H//2, (W//2)*Cout) in the same layout."""
    B = x.shape[0]
    assert x.shape == (B, H, W * Cin)
    BB = B if B <= 32 else math.gcd(B, 32)      # batch block (divides B)
    HP, HT = H + 2 * P, _round_up(H, 8)
    WPC = (W + 2 * P) * Cin
    NO = (W // 2) * Cout

    kernel = functools.partial(_conv_relu_pool_kernel,
                               H=H, W=W, Cin=Cin, K=K, P=P)
    return pl.pallas_call(
        kernel,
        out_shape=jax.ShapeDtypeStruct((B, H // 2, NO), jnp.float32),
        grid=(B // BB,),
        in_specs=[
            pl.BlockSpec((BB, H, W * Cin), lambda i: (i, 0, 0)),
            pl.BlockSpec((K * WPC, NO), lambda i: (0, 0)),
            pl.BlockSpec((K * WPC, NO), lambda i: (0, 0)),
            pl.BlockSpec((1, NO), lambda i: (0, 0)),
        ],
        out_specs=pl.BlockSpec((BB, H // 2, NO), lambda i: (i, 0, 0)),
        scratch_shapes=[
            pltpu.VMEM((BB * HP, WPC), jnp.float32),       # padded images
            pltpu.VMEM((BB * HT, K * WPC), jnp.float32),   # banded lhs
        ],
        compiler_params=pltpu.CompilerParams(
            dimension_semantics=("parallel",),   # shard batch blocks over TCs
        ),
    )(x, we, wo, bias)


# ---------------------------------------------------------------------------
# Fully-connected layer: (M, K) @ (K, 128) + bias.
# ---------------------------------------------------------------------------
def _linear_kernel(x_ref, w_ref, b_ref, o_ref):
    o_ref[...] = (jnp.dot(x_ref[...], w_ref[...],
                          preferred_element_type=jnp.float32) + b_ref[...])


def linear(x, w, bias):
    M, Kd = x.shape
    K2, N = w.shape
    assert Kd == K2
    tm = 256 if M % 256 == 0 else M
    return pl.pallas_call(
        _linear_kernel,
        out_shape=jax.ShapeDtypeStruct((M, N), jnp.float32),
        grid=(M // tm,),
        in_specs=[
            pl.BlockSpec((tm, Kd), lambda i: (i, 0)),
            pl.BlockSpec((Kd, N), lambda i: (0, 0)),
            pl.BlockSpec((1, N), lambda i: (0, 0)),
        ],
        out_specs=pl.BlockSpec((tm, N), lambda i: (i, 0)),
        compiler_params=pltpu.CompilerParams(
            dimension_semantics=("parallel",),
        ),
    )(x, w, bias)


# ---------------------------------------------------------------------------
# Parameters (PyTorch layout) + one-time packing into the kernel layouts.
# ---------------------------------------------------------------------------
def init_params(key):
    k1, k2, k3, k4, k5, k6 = jax.random.split(key, 6)
    return {
        "w1": jax.random.normal(k1, (16, 1, 5, 5), jnp.float32) * 0.1,
        "b1": jax.random.normal(k2, (16,), jnp.float32) * 0.1,
        "w2": jax.random.normal(k3, (32, 16, 5, 5), jnp.float32) * 0.05,
        "b2": jax.random.normal(k4, (32,), jnp.float32) * 0.05,
        "w3": jax.random.normal(k5, (10, 32 * 7 * 7), jnp.float32) * 0.02,
        "b3": jax.random.normal(k6, (10,), jnp.float32) * 0.02,
    }


def _pack_band(wt, W, K=KSIZE, P=PAD):
    """Torch conv weight (Cout, Cin, K, K) -> two banded matrices of shape
    (K*(W+2P)*Cin, (W//2)*Cout) producing the even / odd output columns."""
    wt = np.asarray(wt, np.float32)
    Cout, Cin = wt.shape[0], wt.shape[1]
    WPC = (W + 2 * P) * Cin
    WO = W // 2
    bands = [np.zeros((K * WPC, WO * Cout), np.float32) for _ in range(2)]
    cin_idx = np.arange(Cin)
    cout_idx = np.arange(Cout)
    for dy in range(K):
        for dx in range(K):
            blk = wt[:, :, dy, dx].T                    # (Cin, Cout)
            for wp in range(WO):
                for parity in range(2):
                    w = 2 * wp + parity                 # output column
                    rows = dy * WPC + (w + dx) * Cin + cin_idx
                    cols = wp * Cout + cout_idx
                    bands[parity][np.ix_(rows, cols)] = blk
    return jnp.asarray(bands[0]), jnp.asarray(bands[1])


def pack_params(params):
    """One-time (outside jit) repacking: banded conv weights, column-tiled
    biases, HWC-major FC weight with the 10 outputs zero-padded to 128 lanes.
    Zero padding keeps the math exact."""
    w1e, w1o = _pack_band(params["w1"], W=28)           # (160, 224) each
    w2e, w2o = _pack_band(params["w2"], W=14)           # (1440, 224) each
    b1 = jnp.tile(jnp.asarray(params["b1"], jnp.float32), 14).reshape(1, 224)
    b2 = jnp.tile(jnp.asarray(params["b2"], jnp.float32), 7).reshape(1, 224)
    # FC weight: torch columns are (c, h, w); reorder rows to the kernel's
    # HWC-major feature layout so the flatten into the FC is free.
    w3 = np.asarray(params["w3"], np.float32)           # (10, 1568)
    w3 = w3.reshape(10, 32, 7, 7).transpose(2, 3, 1, 0).reshape(7 * 7 * 32, 10)
    w3 = np.pad(w3, ((0, 0), (0, 128 - 10)))
    b3 = np.pad(np.asarray(params["b3"], np.float32), (0, 128 - 10)).reshape(1, 128)
    return {"w1e": w1e, "w1o": w1o, "b1": b1,
            "w2e": w2e, "w2o": w2o, "b2": b2,
            "w3": jnp.asarray(w3), "b3": jnp.asarray(b3)}


# ---------------------------------------------------------------------------
# Forward pass (jitted): NCHW in, (logits, torch-order flattened features) out.
# ---------------------------------------------------------------------------
def cnn_forward(packed, x_nchw):
    B = x_nchw.shape[0]
    x = x_nchw.reshape(B, 28, 28)                       # Cin=1 -> (B, H, W*Cin)
    y1 = conv_relu_pool(x, packed["w1e"], packed["w1o"], packed["b1"],
                        H=28, W=28, Cin=1, Cout=16)     # (B, 14, 224) == NHWC (B,14,14,16)
    y2 = conv_relu_pool(y1, packed["w2e"], packed["w2o"], packed["b2"],
                        H=14, W=14, Cin=16, Cout=32)    # (B, 7, 224)  == NHWC (B,7,7,32)
    feats_hwc = y2.reshape(B, 7 * 7 * 32)               # contiguous (free) reshape
    logits = linear(feats_hwc, packed["w3"], packed["b3"])[:, :10]
    # torch's x.view(B, -1) is channel-major; this transpose is only for the
    # returned feature tensor -- the logits above never touch it.
    feat = jnp.transpose(y2.reshape(B, 7, 7, 32), (0, 3, 1, 2)).reshape(B, 32 * 7 * 7)
    return logits, feat


# ---------------------------------------------------------------------------
# Pure-JAX reference (numerical check of the fused kernels).
# ---------------------------------------------------------------------------
def cnn_reference(params, x):
    def conv(z, w, b):
        y = jax.lax.conv_general_dilated(
            z, w, window_strides=(1, 1), padding=((2, 2), (2, 2)),
            dimension_numbers=("NCHW", "OIHW", "NCHW"))
        return jax.nn.relu(y + b[None, :, None, None])

    def pool(z):
        return jax.lax.reduce_window(z, -jnp.inf, jax.lax.max,
                                     (1, 1, 2, 2), (1, 1, 2, 2), "VALID")

    y = pool(conv(x, params["w1"], params["b1"]))
    y = pool(conv(y, params["w2"], params["b2"]))
    flat = y.reshape(y.shape[0], -1)
    return flat @ params["w3"].T + params["b3"], flat


if __name__ == "__main__":
    key = jax.random.PRNGKey(0)
    pkey, xkey = jax.random.split(key)
    params = init_params(pkey)
    packed = pack_params(params)                        # outside the jitted hot path
    x = jax.random.normal(xkey, (2, 1, 28, 28), jnp.float32)   # B=2, MNIST-sized

    fwd = jax.jit(cnn_forward)
    logits, feat = fwd(packed, x)
    jax.block_until_ready((logits, feat))

    assert logits.shape == (2, 10) and logits.dtype == jnp.float32
    assert feat.shape == (2, 32 * 7 * 7) and feat.dtype == jnp.float32

    ref_logits, ref_feat = cnn_reference(params, x)
    assert jnp.allclose(logits, ref_logits, atol=1e-3, rtol=1e-3), \
        float(jnp.max(jnp.abs(logits - ref_logits)))
    assert jnp.allclose(feat, ref_feat, atol=1e-3, rtol=1e-3), \
        float(jnp.max(jnp.abs(feat - ref_feat)))

    print("KERNEL_OK")
</pallas_src>

<mosaic_0001>
module attributes {stable_mosaic.version = 11 : i64} {
  func.func @_conv_relu_pool_kernel(%arg0: i32, %arg1: memref<2x28x28xf32, #tpu.memory_space<vmem>>, %arg2: memref<160x224xf32, #tpu.memory_space<vmem>>, %arg3: memref<160x224xf32, #tpu.memory_space<vmem>>, %arg4: memref<1x224xf32, #tpu.memory_space<vmem>>, %arg5: memref<2x14x224xf32, #tpu.memory_space<vmem>>, %arg6: memref<64x32xf32, #tpu.memory_space<vmem>>, %arg7: memref<64x160xf32, #tpu.memory_space<vmem>>) attributes {dimension_semantics = [#tpu.dimension_semantics<parallel>], iteration_bounds = array<i64: 1>, scalar_prefetch = 0 : i64, scratch_operands = 2 : i64, tpu.core_type = #tpu.core_type<tc>, window_params = [{transform_indices = @transform_0, window_bounds = array<i64: 2, 28, 28>}, {pipeline_mode = #tpu.pipeline_mode<synchronous>, transform_indices = @transform_1, window_bounds = array<i64: 160, 224>}, {pipeline_mode = #tpu.pipeline_mode<synchronous>, transform_indices = @transform_2, window_bounds = array<i64: 160, 224>}, {pipeline_mode = #tpu.pipeline_mode<synchronous>, transform_indices = @transform_3, window_bounds = array<i64: 1, 224>}, {transform_indices = @transform_4, window_bounds = array<i64: 2, 14, 224>}]} {
    %cst = arith.constant 0.000000e+00 : f32
    %0 = vector.broadcast %cst : f32 to vector<64x32xf32>
    %c0 = arith.constant 0 : index
    %c0_0 = arith.constant 0 : index
    %1 = vector.load %arg6[%c0, %c0_0] : memref<64x32xf32, #tpu.memory_space<vmem>>, vector<64x32xf32>
    tpu.vector_store %arg6[%c0, %c0_0], %0 {strides = array<i32>} : memref<64x32xf32, #tpu.memory_space<vmem>>, vector<64x32xf32>,
    %c0_1 = arith.constant 0 : index
    %c0_2 = arith.constant 0 : index
    %c0_3 = arith.constant 0 : index
    %2 = vector.load %arg1[%c0_1, %c0_2, %c0_3] : memref<2x28x28xf32, #tpu.memory_space<vmem>>, vector<1x28x28xf32>
    %3 = vector.shape_cast %2 : vector<1x28x28xf32> to vector<28x28xf32>
    %c2 = arith.constant 2 : index
    %c2_4 = arith.constant 2 : index
    %4 = vector.load %arg6[%c2, %c2_4] : memref<64x32xf32, #tpu.memory_space<vmem>>, vector<28x28xf32>
    tpu.vector_store %arg6[%c2, %c2_4], %3 {strides = array<i32>} : memref<64x32xf32, #tpu.memory_space<vmem>>, vector<28x28xf32>,
    %c1 = arith.constant 1 : index
    %c0_5 = arith.constant 0 : index
    %c0_6 = arith.constant 0 : index
    %5 = vector.load %arg1[%c1, %c0_5, %c0_6] : memref<2x28x28xf32, #tpu.memory_space<vmem>>, vector<1x28x28xf32>
    %6 = vector.shape_cast %5 : vector<1x28x28xf32> to vector<28x28xf32>
    %c34 = arith.constant 34 : index
    %c2_7 = arith.constant 2 : index
    %7 = vector.load %arg6[%c34, %c2_7] : memref<64x32xf32, #tpu.memory_space<vmem>>, vector<28x28xf32>
    tpu.vector_store %arg6[%c34, %c2_7], %6 {strides = array<i32>} : memref<64x32xf32, #tpu.memory_space<vmem>>, vector<28x28xf32>,
    %cst_8 = arith.constant 0.000000e+00 : f32
    %8 = vector.broadcast %cst_8 : f32 to vector<64x160xf32>
    %c0_9 = arith.constant 0 : index
    %c0_10 = arith.constant 0 : index
    %9 = vector.load %arg7[%c0_9, %c0_10] : memref<64x160xf32, #tpu.memory_space<vmem>>, vector<64x160xf32>
    tpu.vector_store %arg7[%c0_9, %c0_10], %8 {strides = array<i32>} : memref<64x160xf32, #tpu.memory_space<vmem>>, vector<64x160xf32>,
    %c0_11 = arith.constant 0 : index
    %c0_12 = arith.constant 0 : index
    %10 = vector.load %arg6[%c0_11, %c0_12] : memref<64x32xf32, #tpu.memory_space<vmem>>, vector<28x32xf32>
    %c0_13 = arith.constant 0 : index
    %c0_14 = arith.constant 0 : index
    %11 = vector.load %arg7[%c0_13, %c0_14] : memref<64x160xf32, #tpu.memory_space<vmem>>, vector<28x32xf32>
    tpu.vector_store %arg7[%c0_13, %c0_14], %10 {strides = array<i32>} : memref<64x160xf32, #tpu.memory_space<vmem>>, vector<28x32xf32>,
    %c1_15 = arith.constant 1 : index
    %c0_16 = arith.constant 0 : index
    %12 = vector.load %arg6[%c1_15, %c0_16] : memref<64x32xf32, #tpu.memory_space<vmem>>, vector<28x32xf32>
    %c0_17 = arith.constant 0 : index
    %c32 = arith.constant 32 : index
    %13 = vector.load %arg7[%c0_17, %c32] : memref<64x160xf32, #tpu.memory_space<vmem>>, vector<28x32xf32>
    tpu.vector_store %arg7[%c0_17, %c32], %12 {strides = array<i32>} : memref<64x160xf32, #tpu.memory_space<vmem>>, vector<28x32xf32>,
    %c2_18 = arith.constant 2 : index
    %c0_19 = arith.constant 0 : index
    %14 = vector.load %arg6[%c2_18, %c0_19] : memref<64x32xf32, #tpu.memory_space<vmem>>, vector<28x32xf32>
    %c0_20 = arith.constant 0 : index
    %c64 = arith.constant 64 : index
    %15 = vector.load %arg7[%c0_20, %c64] : memref<64x160xf32, #tpu.memory_space<vmem>>, vector<28x32xf32>
    tpu.vector_store %arg7[%c0_20, %c64], %14 {strides = array<i32>} : memref<64x160xf32, #tpu.memory_space<vmem>>, vector<28x32xf32>,
    %c3 = arith.constant 3 : index
    %c0_21 = arith.constant 0 : index
    %16 = vector.load %arg6[%c3, %c0_21] : memref<64x32xf32, #tpu.memory_space<vmem>>, vector<28x32xf32>
    %c0_22 = arith.constant 0 : index
    %c96 = arith.constant 96 : index
    %17 = vector.load %arg7[%c0_22, %c96] : memref<64x160xf32, #tpu.memory_space<vmem>>, vector<28x32xf32>
    tpu.vector_store %arg7[%c0_22, %c96], %16 {strides = array<i32>} : memref<64x160xf32, #tpu.memory_space<vmem>>, vector<28x32xf32>,
    %c4 = arith.constant 4 : index
    %c0_23 = arith.constant 0 : index
    %18 = vector.load %arg6[%c4, %c0_23] : memref<64x32xf32, #tpu.memory_space<vmem>>, vector<28x32xf32>
    %c0_24 = arith.constant 0 : index
    %c128 = arith.constant 128 : index
    %19 = vector.load %arg7[%c0_24, %c128] : memref<64x160xf32, #tpu.memory_space<vmem>>, vector<28x32xf32>
    tpu.vector_store %arg7[%c0_24, %c128], %18 {strides = array<i32>} : memref<64x160xf32, #tpu.memory_space<vmem>>, vector<28x32xf32>,
    %c32_25 = arith.constant 32 : index
    %c0_26 = arith.constant 0 : index
    %20 = vector.load %arg6[%c32_25, %c0_26] : memref<64x32xf32, #tpu.memory_space<vmem>>, vector<28x32xf32>
    %c32_27 = arith.constant 32 : index
    %c0_28 = arith.constant 0 : index
    %21 = vector.load %arg7[%c32_27, %c0_28] : memref<64x160xf32, #tpu.memory_space<vmem>>, vector<28x32xf32>
    tpu.vector_store %arg7[%c32_27, %c0_28], %20 {strides = array<i32>} : memref<64x160xf32, #tpu.memory_space<vmem>>, vector<28x32xf32>,
    %c33 = arith.constant 33 : index
    %c0_29 = arith.constant 0 : index
    %22 = vector.load %arg6[%c33, %c0_29] : memref<64x32xf32, #tpu.memory_space<vmem>>, vector<28x32xf32>
    %c32_30 = arith.constant 32 : index
    %c32_31 = arith.constant 32 : index
    %23 = vector.load %arg7[%c32_30, %c32_31] : memref<64x160xf32, #tpu.memory_space<vmem>>, vector<28x32xf32>
    tpu.vector_store %arg7[%c32_30, %c32_31], %22 {strides = array<i32>} : memref<64x160xf32, #tpu.memory_space<vmem>>, vector<28x32xf32>,
    %c34_32 = arith.constant 34 : index
    %c0_33 = arith.constant 0 : index
    %24 = vector.load %arg6[%c34_32, %c0_33] : memref<64x32xf32, #tpu.memory_space<vmem>>, vector<28x32xf32>
    %c32_34 = arith.constant 32 : index
    %c64_35 = arith.constant 64 : index
    %25 = vector.load %arg7[%c32_34, %c64_35] : memref<64x160xf32, #tpu.memory_space<vmem>>, vector<28x32xf32>
    tpu.vector_store %arg7[%c32_34, %c64_35], %24 {strides = array<i32>} : memref<64x160xf32, #tpu.memory_space<vmem>>, vector<28x32xf32>,
    %c35 = arith.constant 35 : index
    %c0_36 = arith.constant 0 : index
    %26 = vector.load %arg6[%c35, %c0_36] : memref<64x32xf32, #tpu.memory_space<vmem>>, vector<28x32xf32>
    %c32_37 = arith.constant 32 : index
    %c96_38 = arith.constant 96 : index
    %27 = vector.load %arg7[%c32_37, %c96_38] : memref<64x160xf32, #tpu.memory_space<vmem>>, vector<28x32xf32>
    tpu.vector_store %arg7[%c32_37, %c96_38], %26 {strides = array<i32>} : memref<64x160xf32, #tpu.memory_space<vmem>>, vector<28x32xf32>,
    %c36 = arith.constant 36 : index
    %c0_39 = arith.constant 0 : index
    %28 = vector.load %arg6[%c36, %c0_39] : memref<64x32xf32, #tpu.memory_space<vmem>>, vector<28x32xf32>
    %c32_40 = arith.constant 32 : index
    %c128_41 = arith.constant 128 : index
    %29 = vector.load %arg7[%c32_40, %c128_41] : memref<64x160xf32, #tpu.memory_space<vmem>>, vector<28x32xf32>
    tpu.vector_store %arg7[%c32_40, %c128_41], %28 {strides = array<i32>} : memref<64x160xf32, #tpu.memory_space<vmem>>, vector<28x32xf32>,
    %c0_42 = arith.constant 0 : index
    %c0_43 = arith.constant 0 : index
    %30 = vector.load %arg7[%c0_42, %c0_43] : memref<64x160xf32, #tpu.memory_space<vmem>>, vector<64x160xf32>
    %c0_44 = arith.constant 0 : index
    %c0_45 = arith.constant 0 : index
    %31 = vector.load %arg2[%c0_44, %c0_45] : memref<160x224xf32, #tpu.memory_space<vmem>>, vector<160x224xf32>
    %cst_46 = arith.constant dense<0.000000e+00> : vector<64x224xf32>
    %32 = tpu.matmul %30, %31, %cst_46 {dimension_numbers = #tpu.dot_dimension_numbers<[1], [0], [0], [1], [0, 0, 1, 1], [], []>} : vector<64x160xf32>, vector<160x224xf32>, vector<64x224xf32> -> vector<64x224xf32>
    %c0_47 = arith.constant 0 : index
    %c0_48 = arith.constant 0 : index
    %33 = vector.load %arg3[%c0_47, %c0_48] : memref<160x224xf32, #tpu.memory_space<vmem>>, vector<160x224xf32>
    %cst_49 = arith.constant dense<0.000000e+00> : vector<64x224xf32>
    %34 = tpu.matmul %30, %33, %cst_49 {dimension_numbers = #tpu.dot_dimension_numbers<[1], [0], [0], [1], [0, 0, 1, 1], [], []>} : vector<64x160xf32>, vector<160x224xf32>, vector<64x224xf32> -> vector<64x224xf32>
    %35 = arith.maximumf %32, %34 : vector<64x224xf32>
    %c0_50 = arith.constant 0 : index
    %c0_51 = arith.constant 0 : index
    %36 = vector.load %arg4[%c0_50, %c0_51] : memref<1x224xf32, #tpu.memory_space<vmem>>, vector<1x224xf32>
    %37 = vector.broadcast %36 : vector<1x224xf32> to vector<64x224xf32>
    %38 = arith.addf %35, %37 : vector<64x224xf32>
    %cst_52 = arith.constant 0.000000e+00 : f32
    %39 = vector.broadcast %cst_52 : f32 to vector<64x224xf32>
    %40 = arith.maximumf %38, %39 : vector<64x224xf32>
    %41 = vector.shape_cast %40 : vector<64x224xf32> to vector<2x32x224xf32>
    %42 = vector.extract_strided_slice %41 {offsets = [0, 0, 0], sizes = [2, 1, 224], strides = [1, 1, 1]} : vector<2x32x224xf32> to vector<2x1x224xf32>
    %43 = vector.shape_cast %42 : vector<2x1x224xf32> to vector<2x224xf32>
    %44 = vector.extract_strided_slice %41 {offsets = [0, 1, 0], sizes = [2, 1, 224], strides = [1, 1, 1]} : vector<2x32x224xf32> to vector<2x1x224xf32>
    %45 = vector.shape_cast %44 : vector<2x1x224xf32> to vector<2x224xf32>
    %46 = arith.maximumf %43, %45 : vector<2x224xf32>
    %c0_53 = arith.constant 0 : index
    %c0_54 = arith.constant 0 : index
    %c0_55 = arith.constant 0 : index
    %47 = vector.load %arg5[%c0_53, %c0_54, %c0_55] : memref<2x14x224xf32, #tpu.memory_space<vmem>>, vector<2x1x224xf32>
    %48 = vector.shape_cast %47 : vector<2x1x224xf32> to vector<2x224xf32>
    %49 = vector.shape_cast %46 : vector<2x224xf32> to vector<2x1x224xf32>
    tpu.vector_store %arg5[%c0_53, %c0_54, %c0_55], %49 {strides = array<i32>} : memref<2x14x224xf32, #tpu.memory_space<vmem>>, vector<2x1x224xf32>,
    %50 = vector.extract_strided_slice %41 {offsets = [0, 2, 0], sizes = [2, 1, 224], strides = [1, 1, 1]} : vector<2x32x224xf32> to vector<2x1x224xf32>
    %51 = vector.shape_cast %50 : vector<2x1x224xf32> to vector<2x224xf32>
    %52 = vector.extract_strided_slice %41 {offsets = [0, 3, 0], sizes = [2, 1, 224], strides = [1, 1, 1]} : vector<2x32x224xf32> to vector<2x1x224xf32>
    %53 = vector.shape_cast %52 : vector<2x1x224xf32> to vector<2x224xf32>
    %54 = arith.maximumf %51, %53 : vector<2x224xf32>
    %c0_56 = arith.constant 0 : index
    %c1_57 = arith.constant 1 : index
    %c0_58 = arith.constant 0 : index
    %55 = vector.load %arg5[%c0_56, %c1_57, %c0_58] : memref<2x14x224xf32, #tpu.memory_space<vmem>>, vector<2x1x224xf32>
    %56 = vector.shape_cast %55 : vector<2x1x224xf32> to vector<2x224xf32>
    %57 = vector.shape_cast %54 : vector<2x224xf32> to vector<2x1x224xf32>
    tpu.vector_store %arg5[%c0_56, %c1_57, %c0_58], %57 {strides = array<i32>} : memref<2x14x224xf32, #tpu.memory_space<vmem>>, vector<2x1x224xf32>,
    %58 = vector.extract_strided_slice %41 {offsets = [0, 4, 0], sizes = [2, 1, 224], strides = [1, 1, 1]} : vector<2x32x224xf32> to vector<2x1x224xf32>
    %59 = vector.shape_cast %58 : vector<2x1x224xf32> to vector<2x224xf32>
    %60 = vector.extract_strided_slice %41 {offsets = [0, 5, 0], sizes = [2, 1, 224], strides = [1, 1, 1]} : vector<2x32x224xf32> to vector<2x1x224xf32>
    %61 = vector.shape_cast %60 : vector<2x1x224xf32> to vector<2x224xf32>
    %62 = arith.maximumf %59, %61 : vector<2x224xf32>
    %c0_59 = arith.constant 0 : index
    %c2_60 = arith.constant 2 : index
    %c0_61 = arith.constant 0 : index
    %63 = vector.load %arg5[%c0_59, %c2_60, %c0_61] : memref<2x14x224xf32, #tpu.memory_space<vmem>>, vector<2x1x224xf32>
    %64 = vector.shape_cast %63 : vector<2x1x224xf32> to vector<2x224xf32>
    %65 = vector.shape_cast %62 : vector<2x224xf32> to vector<2x1x224xf32>
    tpu.vector_store %arg5[%c0_59, %c2_60, %c0_61], %65 {strides = array<i32>} : memref<2x14x224xf32, #tpu.memory_space<vmem>>, vector<2x1x224xf32>,
    %66 = vector.extract_strided_slice %41 {offsets = [0, 6, 0], sizes = [2, 1, 224], strides = [1, 1, 1]} : vector<2x32x224xf32> to vector<2x1x224xf32>
    %67 = vector.shape_cast %66 : vector<2x1x224xf32> to vector<2x224xf32>
    %68 = vector.extract_strided_slice %41 {offsets = [0, 7, 0], sizes = [2, 1, 224], strides = [1, 1, 1]} : vector<2x32x224xf32> to vector<2x1x224xf32>
    %69 = vector.shape_cast %68 : vector<2x1x224xf32> to vector<2x224xf32>
    %70 = arith.maximumf %67, %69 : vector<2x224xf32>
    %c0_62 = arith.constant 0 : index
    %c3_63 = arith.constant 3 : index
    %c0_64 = arith.constant 0 : index
    %71 = vector.load %arg5[%c0_62, %c3_63, %c0_64] : memref<2x14x224xf32, #tpu.memory_space<vmem>>, vector<2x1x224xf32>
    %72 = vector.shape_cast %71 : vector<2x1x224xf32> to vector<2x224xf32>
    %73 = vector.shape_cast %70 : vector<2x224xf32> to vector<2x1x224xf32>
    tpu.vector_store %arg5[%c0_62, %c3_63, %c0_64], %73 {strides = array<i32>} : memref<2x14x224xf32, #tpu.memory_space<vmem>>, vector<2x1x224xf32>,
    %74 = vector.extract_strided_slice %41 {offsets = [0, 8, 0], sizes = [2, 1, 224], strides = [1, 1, 1]} : vector<2x32x224xf32> to vector<2x1x224xf32>
    %75 = vector.shape_cast %74 : vector<2x1x224xf32> to vector<2x224xf32>
    %76 = vector.extract_strided_slice %41 {offsets = [0, 9, 0], sizes = [2, 1, 224], strides = [1, 1, 1]} : vector<2x32x224xf32> to vector<2x1x224xf32>
    %77 = vector.shape_cast %76 : vector<2x1x224xf32> to vector<2x224xf32>
    %78 = arith.maximumf %75, %77 : vector<2x224xf32>
    %c0_65 = arith.constant 0 : index
    %c4_66 = arith.constant 4 : index
    %c0_67 = arith.constant 0 : index
    %79 = vector.load %arg5[%c0_65, %c4_66, %c0_67] : memref<2x14x224xf32, #tpu.memory_space<vmem>>, vector<2x1x224xf32>
    %80 = vector.shape_cast %79 : vector<2x1x224xf32> to vector<2x224xf32>
    %81 = vector.shape_cast %78 : vector<2x224xf32> to vector<2x1x224xf32>
    tpu.vector_store %arg5[%c0_65, %c4_66, %c0_67], %81 {strides = array<i32>} : memref<2x14x224xf32, #tpu.memory_space<vmem>>, vector<2x1x224xf32>,
    %82 = vector.extract_strided_slice %41 {offsets = [0, 10, 0], sizes = [2, 1, 224], strides = [1, 1, 1]} : vector<2x32x224xf32> to vector<2x1x224xf32>
    %83 = vector.shape_cast %82 : vector<2x1x224xf32> to vector<2x224xf32>
    %84 = vector.extract_strided_slice %41 {offsets = [0, 11, 0], sizes = [2, 1, 224], strides = [1, 1, 1]} : vector<2x32x224xf32> to vector<2x1x224xf32>
    %85 = vector.shape_cast %84 : vector<2x1x224xf32> to vector<2x224xf32>
    %86 = arith.maximumf %83, %85 : vector<2x224xf32>
    %c0_68 = arith.constant 0 : index
    %c5 = arith.constant 5 : index
    %c0_69 = arith.constant 0 : index
    %87 = vector.load %arg5[%c0_68, %c5, %c0_69] : memref<2x14x224xf32, #tpu.memory_space<vmem>>, vector<2x1x224xf32>
    %88 = vector.shape_cast %87 : vector<2x1x224xf32> to vector<2x224xf32>
    %89 = vector.shape_cast %86 : vector<2x224xf32> to vector<2x1x224xf32>
    tpu.vector_store %arg5[%c0_68, %c5, %c0_69], %89 {strides = array<i32>} : memref<2x14x224xf32, #tpu.memory_space<vmem>>, vector<2x1x224xf32>,
    %90 = vector.extract_strided_slice %41 {offsets = [0, 12, 0], sizes = [2, 1, 224], strides = [1, 1, 1]} : vector<2x32x224xf32> to vector<2x1x224xf32>
    %91 = vector.shape_cast %90 : vector<2x1x224xf32> to vector<2x224xf32>
    %92 = vector.extract_strided_slice %41 {offsets = [0, 13, 0], sizes = [2, 1, 224], strides = [1, 1, 1]} : vector<2x32x224xf32> to vector<2x1x224xf32>
    %93 = vector.shape_cast %92 : vector<2x1x224xf32> to vector<2x224xf32>
    %94 = arith.maximumf %91, %93 : vector<2x224xf32>
    %c0_70 = arith.constant 0 : index
    %c6 = arith.constant 6 : index
    %c0_71 = arith.constant 0 : index
    %95 = vector.load %arg5[%c0_70, %c6, %c0_71] : memref<2x14x224xf32, #tpu.memory_space<vmem>>, vector<2x1x224xf32>
    %96 = vector.shape_cast %95 : vector<2x1x224xf32> to vector<2x224xf32>
    %97 = vector.shape_cast %94 : vector<2x224xf32> to vector<2x1x224xf32>
    tpu.vector_store %arg5[%c0_70, %c6, %c0_71], %97 {strides = array<i32>} : memref<2x14x224xf32, #tpu.memory_space<vmem>>, vector<2x1x224xf32>,
    %98 = vector.extract_strided_slice %41 {offsets = [0, 14, 0], sizes = [2, 1, 224], strides = [1, 1, 1]} : vector<2x32x224xf32> to vector<2x1x224xf32>
    %99 = vector.shape_cast %98 : vector<2x1x224xf32> to vector<2x224xf32>
    %100 = vector.extract_strided_slice %41 {offsets = [0, 15, 0], sizes = [2, 1, 224], strides = [1, 1, 1]} : vector<2x32x224xf32> to vector<2x1x224xf32>
    %101 = vector.shape_cast %100 : vector<2x1x224xf32> to vector<2x224xf32>
    %102 = arith.maximumf %99, %101 : vector<2x224xf32>
    %c0_72 = arith.constant 0 : index
    %c7 = arith.constant 7 : index
    %c0_73 = arith.constant 0 : index
    %103 = vector.load %arg5[%c0_72, %c7, %c0_73] : memref<2x14x224xf32, #tpu.memory_space<vmem>>, vector<2x1x224xf32>
    %104 = vector.shape_cast %103 : vector<2x1x224xf32> to vector<2x224xf32>
    %105 = vector.shape_cast %102 : vector<2x224xf32> to vector<2x1x224xf32>
    tpu.vector_store %arg5[%c0_72, %c7, %c0_73], %105 {strides = array<i32>} : memref<2x14x224xf32, #tpu.memory_space<vmem>>, vector<2x1x224xf32>,
    %106 = vector.extract_strided_slice %41 {offsets = [0, 16, 0], sizes = [2, 1, 224], strides = [1, 1, 1]} : vector<2x32x224xf32> to vector<2x1x224xf32>
    %107 = vector.shape_cast %106 : vector<2x1x224xf32> to vector<2x224xf32>
    %108 = vector.extract_strided_slice %41 {offsets = [0, 17, 0], sizes = [2, 1, 224], strides = [1, 1, 1]} : vector<2x32x224xf32> to vector<2x1x224xf32>
    %109 = vector.shape_cast %108 : vector<2x1x224xf32> to vector<2x224xf32>
    %110 = arith.maximumf %107, %109 : vector<2x224xf32>
    %c0_74 = arith.constant 0 : index
    %c8 = arith.constant 8 : index
    %c0_75 = arith.constant 0 : index
    %111 = vector.load %arg5[%c0_74, %c8, %c0_75] : memref<2x14x224xf32, #tpu.memory_space<vmem>>, vector<2x1x224xf32>
    %112 = vector.shape_cast %111 : vector<2x1x224xf32> to vector<2x224xf32>
    %113 = vector.shape_cast %110 : vector<2x224xf32> to vector<2x1x224xf32>
    tpu.vector_store %arg5[%c0_74, %c8, %c0_75], %113 {strides = array<i32>} : memref<2x14x224xf32, #tpu.memory_space<vmem>>, vector<2x1x224xf32>,
    %114 = vector.extract_strided_slice %41 {offsets = [0, 18, 0], sizes = [2, 1, 224], strides = [1, 1, 1]} : vector<2x32x224xf32> to vector<2x1x224xf32>
    %115 = vector.shape_cast %114 : vector<2x1x224xf32> to vector<2x224xf32>
    %116 = vector.extract_strided_slice %41 {offsets = [0, 19, 0], sizes = [2, 1, 224], strides = [1, 1, 1]} : vector<2x32x224xf32> to vector<2x1x224xf32>
    %117 = vector.shape_cast %116 : vector<2x1x224xf32> to vector<2x224xf32>
    %118 = arith.maximumf %115, %117 : vector<2x224xf32>
    %c0_76 = arith.constant 0 : index
    %c9 = arith.constant 9 : index
    %c0_77 = arith.constant 0 : index
    %119 = vector.load %arg5[%c0_76, %c9, %c0_77] : memref<2x14x224xf32, #tpu.memory_space<vmem>>, vector<2x1x224xf32>
    %120 = vector.shape_cast %119 : vector<2x1x224xf32> to vector<2x224xf32>
    %121 = vector.shape_cast %118 : vector<2x224xf32> to vector<2x1x224xf32>
    tpu.vector_store %arg5[%c0_76, %c9, %c0_77], %121 {strides = array<i32>} : memref<2x14x224xf32, #tpu.memory_space<vmem>>, vector<2x1x224xf32>,
    %122 = vector.extract_strided_slice %41 {offsets = [0, 20, 0], sizes = [2, 1, 224], strides = [1, 1, 1]} : vector<2x32x224xf32> to vector<2x1x224xf32>
    %123 = vector.shape_cast %122 : vector<2x1x224xf32> to vector<2x224xf32>
    %124 = vector.extract_strided_slice %41 {offsets = [0, 21, 0], sizes = [2, 1, 224], strides = [1, 1, 1]} : vector<2x32x224xf32> to vector<2x1x224xf32>
    %125 = vector.shape_cast %124 : vector<2x1x224xf32> to vector<2x224xf32>
    %126 = arith.maximumf %123, %125 : vector<2x224xf32>
    %c0_78 = arith.constant 0 : index
    %c10 = arith.constant 10 : index
    %c0_79 = arith.constant 0 : index
    %127 = vector.load %arg5[%c0_78, %c10, %c0_79] : memref<2x14x224xf32, #tpu.memory_space<vmem>>, vector<2x1x224xf32>
    %128 = vector.shape_cast %127 : vector<2x1x224xf32> to vector<2x224xf32>
    %129 = vector.shape_cast %126 : vector<2x224xf32> to vector<2x1x224xf32>
    tpu.vector_store %arg5[%c0_78, %c10, %c0_79], %129 {strides = array<i32>} : memref<2x14x224xf32, #tpu.memory_space<vmem>>, vector<2x1x224xf32>,
    %130 = vector.extract_strided_slice %41 {offsets = [0, 22, 0], sizes = [2, 1, 224], strides = [1, 1, 1]} : vector<2x32x224xf32> to vector<2x1x224xf32>
    %131 = vector.shape_cast %130 : vector<2x1x224xf32> to vector<2x224xf32>
    %132 = vector.extract_strided_slice %41 {offsets = [0, 23, 0], sizes = [2, 1, 224], strides = [1, 1, 1]} : vector<2x32x224xf32> to vector<2x1x224xf32>
    %133 = vector.shape_cast %132 : vector<2x1x224xf32> to vector<2x224xf32>
    %134 = arith.maximumf %131, %133 : vector<2x224xf32>
    %c0_80 = arith.constant 0 : index
    %c11 = arith.constant 11 : index
    %c0_81 = arith.constant 0 : index
    %135 = vector.load %arg5[%c0_80, %c11, %c0_81] : memref<2x14x224xf32, #tpu.memory_space<vmem>>, vector<2x1x224xf32>
    %136 = vector.shape_cast %135 : vector<2x1x224xf32> to vector<2x224xf32>
    %137 = vector.shape_cast %134 : vector<2x224xf32> to vector<2x1x224xf32>
    tpu.vector_store %arg5[%c0_80, %c11, %c0_81], %137 {strides = array<i32>} : memref<2x14x224xf32, #tpu.memory_space<vmem>>, vector<2x1x224xf32>,
    %138 = vector.extract_strided_slice %41 {offsets = [0, 24, 0], sizes = [2, 1, 224], strides = [1, 1, 1]} : vector<2x32x224xf32> to vector<2x1x224xf32>
    %139 = vector.shape_cast %138 : vector<2x1x224xf32> to vector<2x224xf32>
    %140 = vector.extract_strided_slice %41 {offsets = [0, 25, 0], sizes = [2, 1, 224], strides = [1, 1, 1]} : vector<2x32x224xf32> to vector<2x1x224xf32>
    %141 = vector.shape_cast %140 : vector<2x1x224xf32> to vector<2x224xf32>
    %142 = arith.maximumf %139, %141 : vector<2x224xf32>
    %c0_82 = arith.constant 0 : index
    %c12 = arith.constant 12 : index
    %c0_83 = arith.constant 0 : index
    %143 = vector.load %arg5[%c0_82, %c12, %c0_83] : memref<2x14x224xf32, #tpu.memory_space<vmem>>, vector<2x1x224xf32>
    %144 = vector.shape_cast %143 : vector<2x1x224xf32> to vector<2x224xf32>
    %145 = vector.shape_cast %142 : vector<2x224xf32> to vector<2x1x224xf32>
    tpu.vector_store %arg5[%c0_82, %c12, %c0_83], %145 {strides = array<i32>} : memref<2x14x224xf32, #tpu.memory_space<vmem>>, vector<2x1x224xf32>,
    %146 = vector.extract_strided_slice %41 {offsets = [0, 26, 0], sizes = [2, 1, 224], strides = [1, 1, 1]} : vector<2x32x224xf32> to vector<2x1x224xf32>
    %147 = vector.shape_cast %146 : vector<2x1x224xf32> to vector<2x224xf32>
    %148 = vector.extract_strided_slice %41 {offsets = [0, 27, 0], sizes = [2, 1, 224], strides = [1, 1, 1]} : vector<2x32x224xf32> to vector<2x1x224xf32>
    %149 = vector.shape_cast %148 : vector<2x1x224xf32> to vector<2x224xf32>
    %150 = arith.maximumf %147, %149 : vector<2x224xf32>
    %c0_84 = arith.constant 0 : index
    %c13 = arith.constant 13 : index
    %c0_85 = arith.constant 0 : index
    %151 = vector.load %arg5[%c0_84, %c13, %c0_85] : memref<2x14x224xf32, #tpu.memory_space<vmem>>, vector<2x1x224xf32>
    %152 = vector.shape_cast %151 : vector<2x1x224xf32> to vector<2x224xf32>
    %153 = vector.shape_cast %150 : vector<2x224xf32> to vector<2x1x224xf32>
    tpu.vector_store %arg5[%c0_84, %c13, %c0_85], %153 {strides = array<i32>} : memref<2x14x224xf32, #tpu.memory_space<vmem>>, vector<2x1x224xf32>,
    return
  }
  func.func @transform_0(%arg0: i32) -> (i32, i32, i32) {
    %c0_i32 = arith.constant 0 : i32
    %c0_i32_0 = arith.constant 0 : i32
    %c0_i32_1 = arith.constant 0 : i32
    return %arg0, %c0_i32, %c0_i32_0 : i32, i32, i32
  }
  func.func @transform_1(%arg0: i32) -> (i32, i32) {
    %c0_i32 = arith.constant 0 : i32
    %c0_i32_0 = arith.constant 0 : i32
    %c0_i32_1 = arith.constant 0 : i32
    return %c0_i32, %c0_i32_0 : i32, i32
  }
  func.func @transform_2(%arg0: i32) -> (i32, i32) {
    %c0_i32 = arith.constant 0 : i32
    %c0_i32_0 = arith.constant 0 : i32
    %c0_i32_1 = arith.constant 0 : i32
    return %c0_i32, %c0_i32_0 : i32, i32
  }
  func.func @transform_3(%arg0: i32) -> (i32, i32) {
    %c0_i32 = arith.constant 0 : i32
    %c0_i32_0 = arith.constant 0 : i32
    %c0_i32_1 = arith.constant 0 : i32
    return %c0_i32, %c0_i32_0 : i32, i32
  }
  func.func @transform_4(%arg0: i32) -> (i32, i32, i32) {
    %c0_i32 = arith.constant 0 : i32
    %c0_i32_0 = arith.constant 0 : i32
    %c0_i32_1 = arith.constant 0 : i32
    return %arg0, %c0_i32, %c0_i32_0 : i32, i32, i32
  }
}

module attributes {stable_mosaic.version = 11 : i64} {
  func.func @_conv_relu_pool_kernel(%arg0: i32, %arg1: memref<2x14x224xf32, #tpu.memory_space<vmem>>, %arg2: memref<1440x224xf32, #tpu.memory_space<vmem>>, %arg3: memref<1440x224xf32, #tpu.memory_space<vmem>>, %arg4: memref<1x224xf32, #tpu.memory_space<vmem>>, %arg5: memref<2x7x224xf32, #tpu.memory_space<vmem>>, %arg6: memref<36x288xf32, #tpu.memory_space<vmem>>, %arg7: memref<32x1440xf32, #tpu.memory_space<vmem>>) attributes {dimension_semantics = [#tpu.dimension_semantics<parallel>], iteration_bounds = array<i64: 1>, scalar_prefetch = 0 : i64, scratch_operands = 2 : i64, tpu.core_type = #tpu.core_type<tc>, window_params = [{transform_indices = @transform_0, window_bounds = array<i64: 2, 14, 224>}, {pipeline_mode = #tpu.pipeline_mode<synchronous>, transform_indices = @transform_1, window_bounds = array<i64: 1440, 224>}, {pipeline_mode = #tpu.pipeline_mode<synchronous>, transform_indices = @transform_2, window_bounds = array<i64: 1440, 224>}, {pipeline_mode = #tpu.pipeline_mode<synchronous>, transform_indices = @transform_3, window_bounds = array<i64: 1, 224>}, {transform_indices = @transform_4, window_bounds = array<i64: 2, 7, 224>}]} {
    %cst = arith.constant 0.000000e+00 : f32
    %0 = vector.broadcast %cst : f32 to vector<36x288xf32>
    %c0 = arith.constant 0 : index
    %c0_0 = arith.constant 0 : index
    %1 = vector.load %arg6[%c0, %c0_0] : memref<36x288xf32, #tpu.memory_space<vmem>>, vector<36x288xf32>
    tpu.vector_store %arg6[%c0, %c0_0], %0 {strides = array<i32>} : memref<36x288xf32, #tpu.memory_space<vmem>>, vector<36x288xf32>,
    %c0_1 = arith.constant 0 : index
    %c0_2 = arith.constant 0 : index
    %c0_3 = arith.constant 0 : index
    %2 = vector.load %arg1[%c0_1, %c0_2, %c0_3] : memref<2x14x224xf32, #tpu.memory_space<vmem>>, vector<1x14x224xf32>
    %3 = vector.shape_cast %2 : vector<1x14x224xf32> to vector<14x224xf32>
    %c2 = arith.constant 2 : index
    %c32 = arith.constant 32 : index
    %4 = vector.load %arg6[%c2, %c32] : memref<36x288xf32, #tpu.memory_space<vmem>>, vector<14x224xf32>
    tpu.vector_store %arg6[%c2, %c32], %3 {strides = array<i32>} : memref<36x288xf32, #tpu.memory_space<vmem>>, vector<14x224xf32>,
    %c1 = arith.constant 1 : index
    %c0_4 = arith.constant 0 : index
    %c0_5 = arith.constant 0 : index
    %5 = vector.load %arg1[%c1, %c0_4, %c0_5] : memref<2x14x224xf32, #tpu.memory_space<vmem>>, vector<1x14x224xf32>
    %6 = vector.shape_cast %5 : vector<1x14x224xf32> to vector<14x224xf32>
    %c20 = arith.constant 20 : index
    %c32_6 = arith.constant 32 : index
    %7 = vector.load %arg6[%c20, %c32_6] : memref<36x288xf32, #tpu.memory_space<vmem>>, vector<14x224xf32>
    tpu.vector_store %arg6[%c20, %c32_6], %6 {strides = array<i32>} : memref<36x288xf32, #tpu.memory_space<vmem>>, vector<14x224xf32>,
    %cst_7 = arith.constant 0.000000e+00 : f32
    %8 = vector.broadcast %cst_7 : f32 to vector<32x1440xf32>
    %c0_8 = arith.constant 0 : index
    %c0_9 = arith.constant 0 : index
    %9 = vector.load %arg7[%c0_8, %c0_9] : memref<32x1440xf32, #tpu.memory_space<vmem>>, vector<32x1440xf32>
    tpu.vector_store %arg7[%c0_8, %c0_9], %8 {strides = array<i32>} : memref<32x1440xf32, #tpu.memory_space<vmem>>, vector<32x1440xf32>,
    %c0_10 = arith.constant 0 : index
    %c0_11 = arith.constant 0 : index
    %10 = vector.load %arg6[%c0_10, %c0_11] : memref<36x288xf32, #tpu.memory_space<vmem>>, vector<14x288xf32>
    %c0_12 = arith.constant 0 : index
    %c0_13 = arith.constant 0 : index
    %11 = vector.load %arg7[%c0_12, %c0_13] : memref<32x1440xf32, #tpu.memory_space<vmem>>, vector<14x288xf32>
    tpu.vector_store %arg7[%c0_12, %c0_13], %10 {strides = array<i32>} : memref<32x1440xf32, #tpu.memory_space<vmem>>, vector<14x288xf32>,
    %c1_14 = arith.constant 1 : index
    %c0_15 = arith.constant 0 : index
    %12 = vector.load %arg6[%c1_14, %c0_15] : memref<36x288xf32, #tpu.memory_space<vmem>>, vector<14x288xf32>
    %c0_16 = arith.constant 0 : index
    %c288 = arith.constant 288 : index
    %13 = vector.load %arg7[%c0_16, %c288] : memref<32x1440xf32, #tpu.memory_space<vmem>>, vector<14x288xf32>
    tpu.vector_store %arg7[%c0_16, %c288], %12 {strides = array<i32>} : memref<32x1440xf32, #tpu.memory_space<vmem>>, vector<14x288xf32>,
    %c2_17 = arith.constant 2 : index
    %c0_18 = arith.constant 0 : index
    %14 = vector.load %arg6[%c2_17, %c0_18] : memref<36x288xf32, #tpu.memory_space<vmem>>, vector<14x288xf32>
    %c0_19 = arith.constant 0 : index
    %c576 = arith.constant 576 : index
    %15 = vector.load %arg7[%c0_19, %c576] : memref<32x1440xf32, #tpu.memory_space<vmem>>, vector<14x288xf32>
    tpu.vector_store %arg7[%c0_19, %c576], %14 {strides = array<i32>} : memref<32x1440xf32, #tpu.memory_space<vmem>>, vector<14x288xf32>,
    %c3 = arith.constant 3 : index
    %c0_20 = arith.constant 0 : index
    %16 = vector.load %arg6[%c3, %c0_20] : memref<36x288xf32, #tpu.memory_space<vmem>>, vector<14x288xf32>
    %c0_21 = arith.constant 0 : index
    %c864 = arith.constant 864 : index
    %17 = vector.load %arg7[%c0_21, %c864] : memref<32x1440xf32, #tpu.memory_space<vmem>>, vector<14x288xf32>
    tpu.vector_store %arg7[%c0_21, %c864], %16 {strides = array<i32>} : memref<32x1440xf32, #tpu.memory_space<vmem>>, vector<14x288xf32>,
    %c4 = arith.constant 4 : index
    %c0_22 = arith.constant 0 : index
    %18 = vector.load %arg6[%c4, %c0_22] : memref<36x288xf32, #tpu.memory_space<vmem>>, vector<14x288xf32>
    %c0_23 = arith.constant 0 : index
    %c1152 = arith.constant 1152 : index
    %19 = vector.load %arg7[%c0_23, %c1152] : memref<32x1440xf32, #tpu.memory_space<vmem>>, vector<14x288xf32>
    tpu.vector_store %arg7[%c0_23, %c1152], %18 {strides = array<i32>} : memref<32x1440xf32, #tpu.memory_space<vmem>>, vector<14x288xf32>,
    %c18 = arith.constant 18 : index
    %c0_24 = arith.constant 0 : index
    %20 = vector.load %arg6[%c18, %c0_24] : memref<36x288xf32, #tpu.memory_space<vmem>>, vector<14x288xf32>
    %c16 = arith.constant 16 : index
    %c0_25 = arith.constant 0 : index
    %21 = vector.load %arg7[%c16, %c0_25] : memref<32x1440xf32, #tpu.memory_space<vmem>>, vector<14x288xf32>
    tpu.vector_store %arg7[%c16, %c0_25], %20 {strides = array<i32>} : memref<32x1440xf32, #tpu.memory_space<vmem>>, vector<14x288xf32>,
    %c19 = arith.constant 19 : index
    %c0_26 = arith.constant 0 : index
    %22 = vector.load %arg6[%c19, %c0_26] : memref<36x288xf32, #tpu.memory_space<vmem>>, vector<14x288xf32>
    %c16_27 = arith.constant 16 : index
    %c288_28 = arith.constant 288 : index
    %23 = vector.load %arg7[%c16_27, %c288_28] : memref<32x1440xf32, #tpu.memory_space<vmem>>, vector<14x288xf32>
    tpu.vector_store %arg7[%c16_27, %c288_28], %22 {strides = array<i32>} : memref<32x1440xf32, #tpu.memory_space<vmem>>, vector<14x288xf32>,
    %c20_29 = arith.constant 20 : index
    %c0_30 = arith.constant 0 : index
    %24 = vector.load %arg6[%c20_29, %c0_30] : memref<36x288xf32, #tpu.memory_space<vmem>>, vector<14x288xf32>
    %c16_31 = arith.constant 16 : index
    %c576_32 = arith.constant 576 : index
    %25 = vector.load %arg7[%c16_31, %c576_32] : memref<32x1440xf32, #tpu.memory_space<vmem>>, vector<14x288xf32>
    tpu.vector_store %arg7[%c16_31, %c576_32], %24 {strides = array<i32>} : memref<32x1440xf32, #tpu.memory_space<vmem>>, vector<14x288xf32>,
    %c21 = arith.constant 21 : index
    %c0_33 = arith.constant 0 : index
    %26 = vector.load %arg6[%c21, %c0_33] : memref<36x288xf32, #tpu.memory_space<vmem>>, vector<14x288xf32>
    %c16_34 = arith.constant 16 : index
    %c864_35 = arith.constant 864 : index
    %27 = vector.load %arg7[%c16_34, %c864_35] : memref<32x1440xf32, #tpu.memory_space<vmem>>, vector<14x288xf32>
    tpu.vector_store %arg7[%c16_34, %c864_35], %26 {strides = array<i32>} : memref<32x1440xf32, #tpu.memory_space<vmem>>, vector<14x288xf32>,
    %c22 = arith.constant 22 : index
    %c0_36 = arith.constant 0 : index
    %28 = vector.load %arg6[%c22, %c0_36] : memref<36x288xf32, #tpu.memory_space<vmem>>, vector<14x288xf32>
    %c16_37 = arith.constant 16 : index
    %c1152_38 = arith.constant 1152 : index
    %29 = vector.load %arg7[%c16_37, %c1152_38] : memref<32x1440xf32, #tpu.memory_space<vmem>>, vector<14x288xf32>
    tpu.vector_store %arg7[%c16_37, %c1152_38], %28 {strides = array<i32>} : memref<32x1440xf32, #tpu.memory_space<vmem>>, vector<14x288xf32>,
    %c0_39 = arith.constant 0 : index
    %c0_40 = arith.constant 0 : index
    %30 = vector.load %arg7[%c0_39, %c0_40] : memref<32x1440xf32, #tpu.memory_space<vmem>>, vector<32x1440xf32>
    %c0_41 = arith.constant 0 : index
    %c0_42 = arith.constant 0 : index
    %31 = vector.load %arg2[%c0_41, %c0_42] : memref<1440x224xf32, #tpu.memory_space<vmem>>, vector<1440x224xf32>
    %cst_43 = arith.constant dense<0.000000e+00> : vector<32x224xf32>
    %32 = tpu.matmul %30, %31, %cst_43 {dimension_numbers = #tpu.dot_dimension_numbers<[1], [0], [0], [1], [0, 0, 1, 1], [], []>} : vector<32x1440xf32>, vector<1440x224xf32>, vector<32x224xf32> -> vector<32x224xf32>
    %c0_44 = arith.constant 0 : index
    %c0_45 = arith.constant 0 : index
    %33 = vector.load %arg3[%c0_44, %c0_45] : memref<1440x224xf32, #tpu.memory_space<vmem>>, vector<1440x224xf32>
    %cst_46 = arith.constant dense<0.000000e+00> : vector<32x224xf32>
    %34 = tpu.matmul %30, %33, %cst_46 {dimension_numbers = #tpu.dot_dimension_numbers<[1], [0], [0], [1], [0, 0, 1, 1], [], []>} : vector<32x1440xf32>, vector<1440x224xf32>, vector<32x224xf32> -> vector<32x224xf32>
    %35 = arith.maximumf %32, %34 : vector<32x224xf32>
    %c0_47 = arith.constant 0 : index
    %c0_48 = arith.constant 0 : index
    %36 = vector.load %arg4[%c0_47, %c0_48] : memref<1x224xf32, #tpu.memory_space<vmem>>, vector<1x224xf32>
    %37 = vector.broadcast %36 : vector<1x224xf32> to vector<32x224xf32>
    %38 = arith.addf %35, %37 : vector<32x224xf32>
    %cst_49 = arith.constant 0.000000e+00 : f32
    %39 = vector.broadcast %cst_49 : f32 to vector<32x224xf32>
    %40 = arith.maximumf %38, %39 : vector<32x224xf32>
    %41 = vector.shape_cast %40 : vector<32x224xf32> to vector<2x16x224xf32>
    %42 = vector.extract_strided_slice %41 {offsets = [0, 0, 0], sizes = [2, 1, 224], strides = [1, 1, 1]} : vector<2x16x224xf32> to vector<2x1x224xf32>
    %43 = vector.shape_cast %42 : vector<2x1x224xf32> to vector<2x224xf32>
    %44 = vector.extract_strided_slice %41 {offsets = [0, 1, 0], sizes = [2, 1, 224], strides = [1, 1, 1]} : vector<2x16x224xf32> to vector<2x1x224xf32>
    %45 = vector.shape_cast %44 : vector<2x1x224xf32> to vector<2x224xf32>
    %46 = arith.maximumf %43, %45 : vector<2x224xf32>
    %c0_50 = arith.constant 0 : index
    %c0_51 = arith.constant 0 : index
    %c0_52 = arith.constant 0 : index
    %47 = vector.load %arg5[%c0_50, %c0_51, %c0_52] : memref<2x7x224xf32, #tpu.memory_space<vmem>>, vector<2x1x224xf32>
    %48 = vector.shape_cast %47 : vector<2x1x224xf32> to vector<2x224xf32>
    %49 = vector.shape_cast %46 : vector<2x224xf32> to vector<2x1x224xf32>
    tpu.vector_store %arg5[%c0_50, %c0_51, %c0_52], %49 {strides = array<i32>} : memref<2x7x224xf32, #tpu.memory_space<vmem>>, vector<2x1x224xf32>,
    %50 = vector.extract_strided_slice %41 {offsets = [0, 2, 0], sizes = [2, 1, 224], strides = [1, 1, 1]} : vector<2x16x224xf32> to vector<2x1x224xf32>
    %51 = vector.shape_cast %50 : vector<2x1x224xf32> to vector<2x224xf32>
    %52 = vector.extract_strided_slice %41 {offsets = [0, 3, 0], sizes = [2, 1, 224], strides = [1, 1, 1]} : vector<2x16x224xf32> to vector<2x1x224xf32>
    %53 = vector.shape_cast %52 : vector<2x1x224xf32> to vector<2x224xf32>
    %54 = arith.maximumf %51, %53 : vector<2x224xf32>
    %c0_53 = arith.constant 0 : index
    %c1_54 = arith.constant 1 : index
    %c0_55 = arith.constant 0 : index
    %55 = vector.load %arg5[%c0_53, %c1_54, %c0_55] : memref<2x7x224xf32, #tpu.memory_space<vmem>>, vector<2x1x224xf32>
    %56 = vector.shape_cast %55 : vector<2x1x224xf32> to vector<2x224xf32>
    %57 = vector.shape_cast %54 : vector<2x224xf32> to vector<2x1x224xf32>
    tpu.vector_store %arg5[%c0_53, %c1_54, %c0_55], %57 {strides = array<i32>} : memref<2x7x224xf32, #tpu.memory_space<vmem>>, vector<2x1x224xf32>,
    %58 = vector.extract_strided_slice %41 {offsets = [0, 4, 0], sizes = [2, 1, 224], strides = [1, 1, 1]} : vector<2x16x224xf32> to vector<2x1x224xf32>
    %59 = vector.shape_cast %58 : vector<2x1x224xf32> to vector<2x224xf32>
    %60 = vector.extract_strided_slice %41 {offsets = [0, 5, 0], sizes = [2, 1, 224], strides = [1, 1, 1]} : vector<2x16x224xf32> to vector<2x1x224xf32>
    %61 = vector.shape_cast %60 : vector<2x1x224xf32> to vector<2x224xf32>
    %62 = arith.maximumf %59, %61 : vector<2x224xf32>
    %c0_56 = arith.constant 0 : index
    %c2_57 = arith.constant 2 : index
    %c0_58 = arith.constant 0 : index
    %63 = vector.load %arg5[%c0_56, %c2_57, %c0_58] : memref<2x7x224xf32, #tpu.memory_space<vmem>>, vector<2x1x224xf32>
    %64 = vector.shape_cast %63 : vector<2x1x224xf32> to vector<2x224xf32>
    %65 = vector.shape_cast %62 : vector<2x224xf32> to vector<2x1x224xf32>
    tpu.vector_store %arg5[%c0_56, %c2_57, %c0_58], %65 {strides = array<i32>} : memref<2x7x224xf32, #tpu.memory_space<vmem>>, vector<2x1x224xf32>,
    %66 = vector.extract_strided_slice %41 {offsets = [0, 6, 0], sizes = [2, 1, 224], strides = [1, 1, 1]} : vector<2x16x224xf32> to vector<2x1x224xf32>
    %67 = vector.shape_cast %66 : vector<2x1x224xf32> to vector<2x224xf32>
    %68 = vector.extract_strided_slice %41 {offsets = [0, 7, 0], sizes = [2, 1, 224], strides = [1, 1, 1]} : vector<2x16x224xf32> to vector<2x1x224xf32>
    %69 = vector.shape_cast %68 : vector<2x1x224xf32> to vector<2x224xf32>
    %70 = arith.maximumf %67, %69 : vector<2x224xf32>
    %c0_59 = arith.constant 0 : index
    %c3_60 = arith.constant 3 : index
    %c0_61 = arith.constant 0 : index
    %71 = vector.load %arg5[%c0_59, %c3_60, %c0_61] : memref<2x7x224xf32, #tpu.memory_space<vmem>>, vector<2x1x224xf32>
    %72 = vector.shape_cast %71 : vector<2x1x224xf32> to vector<2x224xf32>
    %73 = vector.shape_cast %70 : vector<2x224xf32> to vector<2x1x224xf32>
    tpu.vector_store %arg5[%c0_59, %c3_60, %c0_61], %73 {strides = array<i32>} : memref<2x7x224xf32, #tpu.memory_space<vmem>>, vector<2x1x224xf32>,
    %74 = vector.extract_strided_slice %41 {offsets = [0, 8, 0], sizes = [2, 1, 224], strides = [1, 1, 1]} : vector<2x16x224xf32> to vector<2x1x224xf32>
    %75 = vector.shape_cast %74 : vector<2x1x224xf32> to vector<2x224xf32>
    %76 = vector.extract_strided_slice %41 {offsets = [0, 9, 0], sizes = [2, 1, 224], strides = [1, 1, 1]} : vector<2x16x224xf32> to vector<2x1x224xf32>
    %77 = vector.shape_cast %76 : vector<2x1x224xf32> to vector<2x224xf32>
    %78 = arith.maximumf %75, %77 : vector<2x224xf32>
    %c0_62 = arith.constant 0 : index
    %c4_63 = arith.constant 4 : index
    %c0_64 = arith.constant 0 : index
    %79 = vector.load %arg5[%c0_62, %c4_63, %c0_64] : memref<2x7x224xf32, #tpu.memory_space<vmem>>, vector<2x1x224xf32>
    %80 = vector.shape_cast %79 : vector<2x1x224xf32> to vector<2x224xf32>
    %81 = vector.shape_cast %78 : vector<2x224xf32> to vector<2x1x224xf32>
    tpu.vector_store %arg5[%c0_62, %c4_63, %c0_64], %81 {strides = array<i32>} : memref<2x7x224xf32, #tpu.memory_space<vmem>>, vector<2x1x224xf32>,
    %82 = vector.extract_strided_slice %41 {offsets = [0, 10, 0], sizes = [2, 1, 224], strides = [1, 1, 1]} : vector<2x16x224xf32> to vector<2x1x224xf32>
    %83 = vector.shape_cast %82 : vector<2x1x224xf32> to vector<2x224xf32>
    %84 = vector.extract_strided_slice %41 {offsets = [0, 11, 0], sizes = [2, 1, 224], strides = [1, 1, 1]} : vector<2x16x224xf32> to vector<2x1x224xf32>
    %85 = vector.shape_cast %84 : vector<2x1x224xf32> to vector<2x224xf32>
    %86 = arith.maximumf %83, %85 : vector<2x224xf32>
    %c0_65 = arith.constant 0 : index
    %c5 = arith.constant 5 : index
    %c0_66 = arith.constant 0 : index
    %87 = vector.load %arg5[%c0_65, %c5, %c0_66] : memref<2x7x224xf32, #tpu.memory_space<vmem>>, vector<2x1x224xf32>
    %88 = vector.shape_cast %87 : vector<2x1x224xf32> to vector<2x224xf32>
    %89 = vector.shape_cast %86 : vector<2x224xf32> to vector<2x1x224xf32>
    tpu.vector_store %arg5[%c0_65, %c5, %c0_66], %89 {strides = array<i32>} : memref<2x7x224xf32, #tpu.memory_space<vmem>>, vector<2x1x224xf32>,
    %90 = vector.extract_strided_slice %41 {offsets = [0, 12, 0], sizes = [2, 1, 224], strides = [1, 1, 1]} : vector<2x16x224xf32> to vector<2x1x224xf32>
    %91 = vector.shape_cast %90 : vector<2x1x224xf32> to vector<2x224xf32>
    %92 = vector.extract_strided_slice %41 {offsets = [0, 13, 0], sizes = [2, 1, 224], strides = [1, 1, 1]} : vector<2x16x224xf32> to vector<2x1x224xf32>
    %93 = vector.shape_cast %92 : vector<2x1x224xf32> to vector<2x224xf32>
    %94 = arith.maximumf %91, %93 : vector<2x224xf32>
    %c0_67 = arith.constant 0 : index
    %c6 = arith.constant 6 : index
    %c0_68 = arith.constant 0 : index
    %95 = vector.load %arg5[%c0_67, %c6, %c0_68] : memref<2x7x224xf32, #tpu.memory_space<vmem>>, vector<2x1x224xf32>
    %96 = vector.shape_cast %95 : vector<2x1x224xf32> to vector<2x224xf32>
    %97 = vector.shape_cast %94 : vector<2x224xf32> to vector<2x1x224xf32>
    tpu.vector_store %arg5[%c0_67, %c6, %c0_68], %97 {strides = array<i32>} : memref<2x7x224xf32, #tpu.memory_space<vmem>>, vector<2x1x224xf32>,
    return
  }
  func.func @transform_0(%arg0: i32) -> (i32, i32, i32) {
    %c0_i32 = arith.constant 0 : i32
    %c0_i32_0 = arith.constant 0 : i32
    %c0_i32_1 = arith.constant 0 : i32
    return %arg0, %c0_i32, %c0_i32_0 : i32, i32, i32
  }
  func.func @transform_1(%arg0: i32) -> (i32, i32) {
    %c0_i32 = arith.constant 0 : i32
    %c0_i32_0 = arith.constant 0 : i32
    %c0_i32_1 = arith.constant 0 : i32
    return %c0_i32, %c0_i32_0 : i32, i32
  }
  func.func @transform_2(%arg0: i32) -> (i32, i32) {
    %c0_i32 = arith.constant 0 : i32
    %c0_i32_0 = arith.constant 0 : i32
    %c0_i32_1 = arith.constant 0 : i32
    return %c0_i32, %c0_i32_0 : i32, i32
  }
  func.func @transform_3(%arg0: i32) -> (i32, i32) {
    %c0_i32 = arith.constant 0 : i32
    %c0_i32_0 = arith.constant 0 : i32
    %c0_i32_1 = arith.constant 0 : i32
    return %c0_i32, %c0_i32_0 : i32, i32
  }
  func.func @transform_4(%arg0: i32) -> (i32, i32, i32) {
    %c0_i32 = arith.constant 0 : i32
    %c0_i32_0 = arith.constant 0 : i32
    %c0_i32_1 = arith.constant 0 : i32
    return %arg0, %c0_i32, %c0_i32_0 : i32, i32, i32
  }
}

module attributes {stable_mosaic.version = 11 : i64} {
  func.func @_linear_kernel(%arg0: i32, %arg1: memref<2x1568xf32, #tpu.memory_space<vmem>>, %arg2: memref<1568x128xf32, #tpu.memory_space<vmem>>, %arg3: memref<1x128xf32, #tpu.memory_space<vmem>>, %arg4: memref<2x128xf32, #tpu.memory_space<vmem>>) attributes {dimension_semantics = [#tpu.dimension_semantics<parallel>], iteration_bounds = array<i64: 1>, scalar_prefetch = 0 : i64, scratch_operands = 0 : i64, tpu.core_type = #tpu.core_type<tc>, window_params = [{transform_indices = @transform_0, window_bounds = array<i64: 2, 1568>}, {pipeline_mode = #tpu.pipeline_mode<synchronous>, transform_indices = @transform_1, window_bounds = array<i64: 1568, 128>}, {pipeline_mode = #tpu.pipeline_mode<synchronous>, transform_indices = @transform_2, window_bounds = array<i64: 1, 128>}, {transform_indices = @transform_3, window_bounds = array<i64: 2, 128>}]} {
    %c0 = arith.constant 0 : index
    %c0_0 = arith.constant 0 : index
    %0 = vector.load %arg1[%c0, %c0_0] : memref<2x1568xf32, #tpu.memory_space<vmem>>, vector<2x1568xf32>
    %c0_1 = arith.constant 0 : index
    %c0_2 = arith.constant 0 : index
    %1 = vector.load %arg2[%c0_1, %c0_2] : memref<1568x128xf32, #tpu.memory_space<vmem>>, vector<1568x128xf32>
    %cst = arith.constant dense<0.000000e+00> : vector<2x128xf32>
    %2 = tpu.matmul %0, %1, %cst {dimension_numbers = #tpu.dot_dimension_numbers<[1], [0], [0], [1], [0, 0, 1, 1], [], []>} : vector<2x1568xf32>, vector<1568x128xf32>, vector<2x128xf32> -> vector<2x128xf32>
    %c0_3 = arith.constant 0 : index
    %c0_4 = arith.constant 0 : index
    %3 = vector.load %arg3[%c0_3, %c0_4] : memref<1x128xf32, #tpu.memory_space<vmem>>, vector<1x128xf32>
    %4 = vector.broadcast %3 : vector<1x128xf32> to vector<2x128xf32>
    %5 = arith.addf %2, %4 : vector<2x128xf32>
    %c0_5 = arith.constant 0 : index
    %c0_6 = arith.constant 0 : index
    %6 = vector.load %arg4[%c0_5, %c0_6] : memref<2x128xf32, #tpu.memory_space<vmem>>, vector<2x128xf32>
    tpu.vector_store %arg4[%c0_5, %c0_6], %5 {strides = array<i32>} : memref<2x128xf32, #tpu.memory_space<vmem>>, vector<2x128xf32>,
    return
  }
  func.func @transform_0(%arg0: i32) -> (i32, i32) {
    %c0_i32 = arith.constant 0 : i32
    %c0_i32_0 = arith.constant 0 : i32
    return %arg0, %c0_i32 : i32, i32
  }
  func.func @transform_1(%arg0: i32) -> (i32, i32) {
    %c0_i32 = arith.constant 0 : i32
    %c0_i32_0 = arith.constant 0 : i32
    %c0_i32_1 = arith.constant 0 : i32
    return %c0_i32, %c0_i32_0 : i32, i32
  }
  func.func @transform_2(%arg0: i32) -> (i32, i32) {
    %c0_i32 = arith.constant 0 : i32
    %c0_i32_0 = arith.constant 0 : i32
    %c0_i32_1 = arith.constant 0 : i32
    return %c0_i32, %c0_i32_0 : i32, i32
  }
  func.func @transform_3(%arg0: i32) -> (i32, i32) {
    %c0_i32 = arith.constant 0 : i32
    %c0_i32_0 = arith.constant 0 : i32
    return %arg0, %c0_i32 : i32, i32
  }
}

</mosaic_0001>

<bundles_post_ra>
// kernel: cnn_forward.3
= control target key start
LH: loop header
LB: loop body
LE: loop exit
PB: predicated region body
PF: predicated region fallthrough
CT: control target
= control target key end

     0   :  { %9 = vsyncpa [#allocation5], 0  ;;  %s1635_s0 = inlined_call_operand.vmem [shape: f32[2,28,28], index: 0, kind: input, shape index: {}]   ;;  %s1636_s1 = inlined_call_operand.hbm [shape: f32[160,224], index: 1, kind: input, shape index: {}]   ;;  %s1637_s2 = inlined_call_operand.hbm [shape: f32[160,224], index: 2, kind: input, shape index: {}]   ;;  %s1638_s3 = inlined_call_operand.hbm [shape: f32[1,224], index: 3, kind: input, shape index: {}]   ;;  %s1639_s4 = inlined_call_operand.vmem [shape: f32[2,14,224], index: 4, kind: output, shape index: {}]  }
   0x1   :  { %10 = vsyncpa [#allocation7], 0  ;;  %s1268_s15 = smov [#allocation6]   ;;  %s1269_s17 = smov [#allocation4]  }
   0x2   :  { %s30_s16 = sshll.u32 %s1268_s15, 4  ;;  %s18_s18 = sshll.u32 %s1269_s17, 4  ;;  %s31_s16 = int_to_ptr.vmem [resolvable:$true] %s30_s16  ;;  %s19_s18 = int_to_ptr.vmem [resolvable:$true] %s18_s18 }
   0x3   :  { %s1212_s19 = scalar_lea.vmem %s31_s16, 5120  ;;  %p1217_p1 = scmp.lt.s32.totalorder %s31_s16, %s31_s16 }
   0x4   :  { %p1213_p0 = scmp.ne.s32.totalorder %s31_s16, %s1212_s19  ;;  %p1218_p2 = scmp.lt.s32.totalorder %s1212_s19, %s1212_s19 }
   0x6   :  { %p1219_p3 = por %p1218_p2, %p1217_p1 }
   0x8   :  { %p1220_p4 = pnand %p1219_p3, %p1213_p0 }
   0xa   :  { %1223 = shalt.err (!%p1220_p4)
}
   0xb   :  { %s1270_s20 = smov 256   ;;  %s1271_s21 = smov 16  }
   0xc   :  { %36 = dma.hbm_to_vmem [thread:$0]  %s1637_s2, 5120, %s31_s16, [#allocation7], %s1270_s20, %s1270_s20, %s1271_s21  }
   0xd   :  { %s1232_s24 = scalar_lea.vmem %s19_s18, 5120  ;;  %p1237_p6 = scmp.lt.s32.totalorder %s19_s18, %s19_s18 }
   0xe   :  { %p1233_p5 = scmp.ne.s32.totalorder %s19_s18, %s1232_s24  ;;  %p1238_p7 = scmp.lt.s32.totalorder %s1232_s24, %s1232_s24 }
  0x10   :  { %p1239_p8 = por %p1238_p7, %p1237_p6 }
  0x12   :  { %p1240_p9 = pnand %p1239_p8, %p1233_p5 }
  0x14   :  { %1243 = shalt.err (!%p1240_p9)
}
  0x15   :  { %24 = dma.hbm_to_vmem [thread:$0]  %s1636_s1, 5120, %s19_s18, [#allocation5], %s1270_s20, %s1270_s20, %s1271_s21  }
  0x16   :  { %s1272_s27 = smov [#allocation8]  }
  0x17   :  { %s43_s28 = sshll.u32 %s1272_s27, 4  ;;  %s44_s28 = int_to_ptr.vmem [resolvable:$true] %s43_s28 }
  0x18   :  { %s1252_s29 = scalar_lea.vmem %s44_s28, 32  ;;  %p1257_p11 = scmp.lt.s32.totalorder %s44_s28, %s44_s28 }
  0x19   :  { %p1253_p10 = scmp.ne.s32.totalorder %s44_s28, %s1252_s29  ;;  %p1258_p12 = scmp.lt.s32.totalorder %s1252_s29, %s1252_s29 }
  0x1b   :  { %p1259_p13 = por %p1258_p12, %p1257_p11 }
  0x1d   :  { %p1260_p0 = pnand %p1259_p13, %p1253_p10 }
  0x1f   :  { %1263 = shalt.err (!%p1260_p0)
}
  0x20   :  { %46 = dma.hbm_to_vmem [thread:$0]  %s1638_s3, 32, %s44_s28, [#allocation7]  }
  0x21   :  { %1264 = dma.done.wait [#allocation5], 5120  }
  0x22   :  { %1265 = vsyncadd [#allocation5], 4294962176 }
  0x23   :  { %1266 = dma.done.wait [#allocation7], 5152  }
  0x24   :  { %1267 = vsyncadd [#allocation7], 4294962144  ;;  %vm56_vm0 = vcmask 261120   ;;  %v1273_v0 = vmov 0.0   ;;  %v65_v1 = vld [vmem:[%s1635_s0] sm:$0xff]  ;;  %v67_v2 = vld [vmem:[%s1635_s0 + $0x10] sm:$0xff] }
  0x25   :  { %57 = vst.msk [vmem:[#allocation2] sm:$0xff] %vm56_vm0, %v1273_v0  ;;  %58 = vst.msk [vmem:[#allocation2 + $0x8] sm:$0xff] %vm56_vm0, %v1273_v0  ;;  %s1274_s7 = smov 2   ;;  %v66_v3 = vld [vmem:[%s1635_s0 + $0x8] sm:$0xff]  ;;  %v68_v4 = vld [vmem:[%s1635_s0 + $0x18] sm:$0xf] }
  0x26   :  { %59 = vst.msk [vmem:[#allocation2 + $0x10] sm:$0xff] %vm56_vm0, %v1273_v0  ;;  %60 = vst.msk [vmem:[#allocation2 + $0x18] sm:$0xff] %vm56_vm0, %v1273_v0  ;;  %73 = vrot.lane.b32.xlu0 %v65_v1, %s1274_s7  ;;  %77 = vrot.lane.b32.xlu1 %v67_v2, %s1274_s7  ;;  %v1147_v5 = vld [vmem:[%s1635_s0 + $0x28] sm:$0xff]  ;;  %v1146_v6 = vld [vmem:[%s1635_s0 + $0x20] sm:$0xff]  ;;  %vm85_vm1 = vcmask 244752   ;;  %vm89_vm2 = vcmask 240656  }
  0x27   :  { %61 = vst.msk [vmem:[#allocation2 + $0x20] sm:$0xff] %vm56_vm0, %v1273_v0  ;;  %62 = vst.msk [vmem:[#allocation2 + $0x28] sm:$0xff] %vm56_vm0, %v1273_v0  ;;  %v1148_v7 = vld [vmem:[%s1635_s0 + $0x30] sm:$0xff]  ;;  %v1149_v8 = vld [vmem:[%s1635_s0 + $0x38] sm:$0xf]  ;;  %s1275_s0 = smov 64  }
  0x28   :  { %63 = vst.msk [vmem:[#allocation2 + $0x30] sm:$0xff] %vm56_vm0, %v1273_v0  ;;  %64 = vst.msk [vmem:[#allocation2 + $0x38] sm:$0xff] %vm56_vm0, %v1273_v0  ;;  %v362_v9 = vld [vmem:[#allocation4 + $0xf8] sm:$0xff]  ;;  %v361_v11 = vld [vmem:[#allocation4 + $0xf0] sm:$0xff]  ;;  %s1276_s20 = smov 32   ;;  %s1277_s21 = smov 96  }
  0x29   :  { %116 = vst [vmem:[#allocation3] sm:$0xff] %v1273_v0  ;;  %117 = vst.msk [vmem:[#allocation3 + $0x8] sm:$0xff] %vm56_vm0, %v1273_v0  ;;  %v539_v10 = vld [vmem:[#allocation6 + $0xf8] sm:$0xff]  ;;  %395 = vmatprep.subr.mxu0 %v362_v9  ;;  %v538_v12 = vld [vmem:[#allocation6 + $0xf0] sm:$0xff]  ;;  %vm139_vm3 = vcmask 257024   ;;  %vm161_vm4 = vcmask 523520  }
  0x2a   :  { %118 = vst [vmem:[#allocation3 + $0x10] sm:$0xff] %v1273_v0  ;;  %119 = vst.msk [vmem:[#allocation3 + $0x18] sm:$0xff] %vm56_vm0, %v1273_v0  ;;  %75 = vrot.lane.b32.xlu0 %v66_v3, %s1274_s7  ;;  %79 = vrot.lane.b32.xlu1 %v68_v4, %s1274_s7  ;;  %v360_v13 = vld [vmem:[#allocation4 + $0xe8] sm:$0xff]  ;;  %v359_v15 = vld [vmem:[#allocation4 + $0xe0] sm:$0xff]  ;;  %vm187_vm5 = vcmask 785920   ;;  %vm213_vm6 = vcmask 1048320  }
  0x2b   :  { %120 = vst [vmem:[#allocation3 + $0x20] sm:$0xff] %v1273_v0  ;;  %121 = vst.msk [vmem:[#allocation3 + $0x28] sm:$0xff] %vm56_vm0, %v1273_v0  ;;  %548 = vmatprep.subr.mxu1 %v539_v10  ;;  %v537_v14 = vld [vmem:[#allocation6 + $0xe8] sm:$0xff]  ;;  %396 = vmatpush1.msra.mxu0 %v361_v11  ;;  %v536_v16 = vld [vmem:[#allocation6 + $0xe0] sm:$0xff]  ;;  %vm165_vm7 = vcmask 519424   ;;  %vm191_vm8 = vcmask 781824  }
  0x2c   :  { %122 = vst [vmem:[#allocation3 + $0x30] sm:$0xff] %v1273_v0  ;;  %123 = vst.msk [vmem:[#allocation3 + $0x38] sm:$0xff] %vm56_vm0, %v1273_v0  ;;  %549 = vmatpush1.msra.mxu1 %v538_v12  ;;  %v358_v17 = vld [vmem:[#allocation4 + $0xd8] sm:$0xff]  ;;  %397 = vmatprep.subr.mxu0 %v360_v13  ;;  %v357_v19 = vld [vmem:[#allocation4 + $0xd0] sm:$0xff]  ;;  %vm217_vm9 = vcmask 1044224  }
  0x2d   :  { %124 = vst [vmem:[#allocation3 + $0x40] sm:$0xff] %v1273_v0  ;;  %125 = vst.msk [vmem:[#allocation3 + $0x48] sm:$0xff] %vm56_vm0, %v1273_v0  ;;  %550 = vmatprep.subr.mxu1 %v537_v14  ;;  %v535_v18 = vld [vmem:[#allocation6 + $0xd8] sm:$0xff]  ;;  %v534_v20 = vld [vmem:[#allocation6 + $0xd0] sm:$0xff]  ;;  %398 = vmatpush1.msra.mxu0 %v359_v15 }
  0x2e   :  { %126 = vst [vmem:[#allocation3 + $0x50] sm:$0xff] %v1273_v0  ;;  %127 = vst.msk [vmem:[#allocation3 + $0x58] sm:$0xff] %vm56_vm0, %v1273_v0  ;;  %102 = vrot.lane.b32.xlu1 %v1147_v5, %s1274_s7  ;;  %100 = vrot.lane.b32.xlu0 %v1146_v6, %s1274_s7  ;;  %v356_v21 = vld [vmem:[#allocation4 + $0xc8] sm:$0xff]  ;;  %v355_v23 = vld [vmem:[#allocation4 + $0xc0] sm:$0xff] }
  0x2f   :  { %128 = vst [vmem:[#allocation3 + $0x60] sm:$0xff] %v1273_v0  ;;  %129 = vst.msk [vmem:[#allocation3 + $0x68] sm:$0xff] %vm56_vm0, %v1273_v0  ;;  %551 = vmatpush1.msra.mxu1 %v536_v16  ;;  %v533_v22 = vld [vmem:[#allocation6 + $0xc8] sm:$0xff]  ;;  %399 = vmatprep.subr.mxu0 %v358_v17  ;;  %v532_v24 = vld [vmem:[#allocation6 + $0xc0] sm:$0xff] }
  0x30   :  { %130 = vst [vmem:[#allocation3 + $0x70] sm:$0xff] %v1273_v0  ;;  %131 = vst.msk [vmem:[#allocation3 + $0x78] sm:$0xff] %vm56_vm0, %v1273_v0  ;;  %552 = vmatprep.subr.mxu1 %v535_v18  ;;  %400 = vmatpush1.msra.mxu0 %v357_v19  ;;  %v354_v25 = vld [vmem:[#allocation4 + $0xb8] sm:$0xff]  ;;  %v353_v27 = vld [vmem:[#allocation4 + $0xb0] sm:$0xff] }
  0x31   :  { %553 = vmatpush1.msra.mxu1 %v534_v20  ;;  %v531_v26 = vld [vmem:[#allocation6 + $0xb8] sm:$0xff]  ;;  %401 = vmatprep.subr.mxu0 %v356_v21  ;;  %v530_v28 = vld [vmem:[#allocation6 + $0xb0] sm:$0xff]  ;;  %v352_v29 = vld [vmem:[#allocation4 + $0xa8] sm:$0xff] }
  0x32   :  { %104 = vrot.lane.b32.xlu0 %v1148_v7, %s1274_s7  ;;  %106 = vrot.lane.b32.xlu1 %v1149_v8, %s1274_s7  ;;  %v529_v30 = vld [vmem:[#allocation6 + $0xa8] sm:$0xff]  ;;  %v351_v31 = vld [vmem:[#allocation4 + $0xa0] sm:$0xff]  ;;  %v350_v33 = vld [vmem:[#allocation4 + $0x98] sm:$0xff] }
  0x33   :  { %554 = vmatprep.subr.mxu1 %v533_v22  ;;  %402 = vmatpush1.msra.mxu0 %v355_v23  ;;  %v528_v32 = vld [vmem:[#allocation6 + $0xa0] sm:$0xff]  ;;  %v527_v34 = vld [vmem:[#allocation6 + $0x98] sm:$0xff]  ;;  %v349_v35 = vld [vmem:[#allocation4 + $0x90] sm:$0xff] }
  0x34   :  { %555 = vmatpush1.msra.mxu1 %v532_v24  ;;  %403 = vmatprep.subr.mxu0 %v354_v25  ;;  %v526_v36 = vld [vmem:[#allocation6 + $0x90] sm:$0xff]  ;;  %v348_v37 = vld [vmem:[#allocation4 + $0x88] sm:$0xff]  ;;  %v347_v39 = vld [vmem:[#allocation4 + $0x80] sm:$0xff] }
  0x35   :  { %556 = vmatprep.subr.mxu1 %v531_v26  ;;  %404 = vmatpush1.msra.mxu0 %v353_v27  ;;  %v525_v38 = vld [vmem:[#allocation6 + $0x88] sm:$0xff]  ;;  %v524_v40 = vld [vmem:[#allocation6 + $0x80] sm:$0xff]  ;;  %v346_v41 = vld [vmem:[#allocation4 + $0x78] sm:$0xff] }
  0x36   :  { %557 = vmatpush1.msra.mxu1 %v530_v28  ;;  %405 = vmatprep.subr.mxu0 %v352_v29  ;;  %v523_v42 = vld [vmem:[#allocation6 + $0x78] sm:$0xff]  ;;  %v345_v43 = vld [vmem:[#allocation4 + $0x70] sm:$0xff]  ;;  %v344_v45 = vld [vmem:[#allocation4 + $0x68] sm:$0xff] }
  0x37   :  { %558 = vmatprep.subr.mxu1 %v529_v30  ;;  %406 = vmatpush1.msra.mxu0 %v351_v31  ;;  %v522_v44 = vld [vmem:[#allocation6 + $0x70] sm:$0xff]  ;;  %v521_v46 = vld [vmem:[#allocation6 + $0x68] sm:$0xff]  ;;  %v343_v47 = vld [vmem:[#allocation4 + $0x60] sm:$0xff] }
  0x38   :  { %559 = vmatpush1.msra.mxu1 %v528_v32  ;;  %407 = vmatprep.subr.mxu0 %v350_v33  ;;  %v520_v48 = vld [vmem:[#allocation6 + $0x60] sm:$0xff]  ;;  %v342_v49 = vld [vmem:[#allocation4 + $0x58] sm:$0xff]  ;;  %v341_v51 = vld [vmem:[#allocation4 + $0x50] sm:$0xff] }
  0x39   :  { %560 = vmatprep.subr.mxu1 %v527_v34  ;;  %408 = vmatpush1.msra.mxu0 %v349_v35  ;;  %v519_v50 = vld [vmem:[#allocation6 + $0x58] sm:$0xff]  ;;  %v518_v52 = vld [vmem:[#allocation6 + $0x50] sm:$0xff]  ;;  %v340_v53 = vld [vmem:[#allocation4 + $0x48] sm:$0xff] }
  0x3a   :  { %561 = vmatpush1.msra.mxu1 %v526_v36  ;;  %409 = vmatprep.subr.mxu0 %v348_v37  ;;  %v517_v54 = vld [vmem:[#allocation6 + $0x48] sm:$0xff]  ;;  %v339_v55 = vld [vmem:[#allocation4 + $0x40] sm:$0xff]  ;;  %v338_v57 = vld [vmem:[#allocation4 + $0x38] sm:$0xff] }
  0x3b   :  { %562 = vmatprep.subr.mxu1 %v525_v38  ;;  %410 = vmatpush1.msra.mxu0 %v347_v39  ;;  %v516_v56 = vld [vmem:[#allocation6 + $0x40] sm:$0xff]  ;;  %v515_v58 = vld [vmem:[#allocation6 + $0x38] sm:$0xff]  ;;  %v337_v59 = vld [vmem:[#allocation4 + $0x30] sm:$0xff] }
  0x3c   :  { %563 = vmatpush1.msra.mxu1 %v524_v40  ;;  %411 = vmatprep.subr.mxu0 %v346_v41  ;;  %v514_v60 = vld [vmem:[#allocation6 + $0x30] sm:$0xff]  ;;  %v336_v61 = vld [vmem:[#allocation4 + $0x28] sm:$0xff]  ;;  %v335_v63 = vld [vmem:[#allocation4 + $0x20] sm:$0xff] }
  0x3d   :  { %564 = vmatprep.subr.mxu1 %v523_v42  ;;  %412 = vmatpush1.msra.mxu0 %v345_v43  ;;  %v513_v62 = vld [vmem:[#allocation6 + $0x28] sm:$0xff]  ;;  %v512_v0 = vld [vmem:[#allocation6 + $0x20] sm:$0xff]  ;;  %v334_v1 = vld [vmem:[#allocation4 + $0x18] sm:$0xff] }
  0x3e   :  { %565 = vmatpush1.msra.mxu1 %v522_v44  ;;  %413 = vmatprep.subr.mxu0 %v344_v45  ;;  %v511_v2 = vld [vmem:[#allocation6 + $0x18] sm:$0xff]  ;;  %v333_v3 = vld [vmem:[#allocation4 + $0x10] sm:$0xff]  ;;  %v332_v5 = vld [vmem:[#allocation4 + $0x8] sm:$0xff] }
  0x3f   :  { %566 = vmatprep.subr.mxu1 %v521_v46  ;;  %414 = vmatpush1.msra.mxu0 %v343_v47  ;;  %v510_v4 = vld [vmem:[#allocation6 + $0x10] sm:$0xff]  ;;  %v509_v6 = vld [vmem:[#allocation6 + $0x8] sm:$0xff]  ;;  %v331_v7 = vld [vmem:[#allocation4] sm:$0xff] }
  0x40   :  { %567 = vmatpush1.msra.mxu1 %v520_v48  ;;  %415 = vmatprep.subr.mxu0 %v342_v49  ;;  %v508_v8 = vld [vmem:[#allocation6] sm:$0xff]  ;;  %v370_v11 = vld [vmem:[#allocation4 + $0x138] sm:$0xff]  ;;  %v369_v13 = vld [vmem:[#allocation4 + $0x130] sm:$0xff] }
  0x41   :  { %568 = vmatprep.subr.mxu1 %v519_v50  ;;  %416 = vmatpush1.msra.mxu0 %v341_v51  ;;  %v547_v12 = vld [vmem:[#allocation6 + $0x138] sm:$0xff]  ;;  %v546_v14 = vld [vmem:[#allocation6 + $0x130] sm:$0xff]  ;;  %v368_v15 = vld [vmem:[#allocation4 + $0x128] sm:$0xff] }
  0x42   :  { %569 = vmatpush1.msra.mxu1 %v518_v52  ;;  %417 = vmatprep.subr.mxu0 %v340_v53  ;;  %v545_v16 = vld [vmem:[#allocation6 + $0x128] sm:$0xff]  ;;  %v367_v17 = vld [vmem:[#allocation4 + $0x120] sm:$0xff]  ;;  %v366_v21 = vld [vmem:[#allocation4 + $0x118] sm:$0xff] }
  0x43   :  { %570 = vmatprep.subr.mxu1 %v517_v54  ;;  %418 = vmatpush1.msra.mxu0 %v339_v55  ;;  %v544_v18 = vld [vmem:[#allocation6 + $0x120] sm:$0xff]  ;;  %v543_v22 = vld [vmem:[#allocation6 + $0x118] sm:$0xff]  ;;  %v365_v23 = vld [vmem:[#allocation4 + $0x110] sm:$0xff] }
  0x44   :  { %571 = vmatpush1.msra.mxu1 %v516_v56  ;;  %419 = vmatprep.subr.mxu0 %v338_v57  ;;  %v542_v24 = vld [vmem:[#allocation6 + $0x110] sm:$0xff]  ;;  %v364_v25 = vld [vmem:[#allocation4 + $0x108] sm:$0xff]  ;;  %v363_v32 = vld [vmem:[#allocation4 + $0x100] sm:$0xff] }
  0x45   :  { %572 = vmatprep.subr.mxu1 %v515_v58  ;;  %420 = vmatpush1.msra.mxu0 %v337_v59  ;;  %v541_v26 = vld [vmem:[#allocation6 + $0x108] sm:$0xff]  ;;  %v540_v33 = vld [vmem:[#allocation6 + $0x100] sm:$0xff] }
  0x46   :  { %573 = vmatpush1.msra.mxu1 %v514_v60  ;;  %421 = vmatprep.subr.mxu0 %v336_v61 }
  0x47   :  { %574 = vmatprep.subr.mxu1 %v513_v62  ;;  %422 = vmatpush1.msra.mxu0 %v335_v63 }
  0x48   :  { %575 = vmatpush1.msra.mxu1 %v512_v0  ;;  %423 = vmatprep.subr.mxu0 %v334_v1 }
  0x49   :  { %576 = vmatprep.subr.mxu1 %v511_v2  ;;  %424 = vmatpush1.msra.mxu0 %v333_v3 }
  0x4a   :  { %577 = vmatpush1.msra.mxu1 %v510_v4  ;;  %425 = vmatprep.subr.mxu0 %v332_v5 }
  0x4b   :  { %578 = vmatprep.subr.mxu1 %v509_v6  ;;  %426 = vmatpush1.msra.mxu0 %v331_v7 }
  0x4c   :  { %579 = vmatpush1.msra.mxu1 %v508_v8  ;;  %451 = vmatprep.subr.mxu0 %v370_v11 }
  0x4d   :  { %604 = vmatprep.subr.mxu1 %v547_v12  ;;  %452 = vmatpush2.msra.mxu0 %v369_v13 }
  0x4e   :  { %605 = vmatpush2.msra.mxu1 %v546_v14  ;;  %453 = vmatprep.subr.mxu0 %v368_v15 }
  0x4f   :  { %606 = vmatprep.subr.mxu1 %v545_v16  ;;  %454 = vmatpush2.msra.mxu0 %v367_v17 }
  0x50   :  { %607 = vmatpush2.msra.mxu1 %v544_v18  ;;  %455 = vmatprep.subr.mxu0 %v366_v21 }
  0x51   :  { %608 = vmatprep.subr.mxu1 %v543_v22  ;;  %456 = vmatpush2.msra.mxu0 %v365_v23 }
  0x52   :  { %609 = vmatpush2.msra.mxu1 %v542_v24  ;;  %457 = vmatprep.subr.mxu0 %v364_v25 }
  0x53   :  { %610 = vmatprep.subr.mxu1 %v541_v26  ;;  %458 = vmatpush2.msra.mxu0 %v363_v32 }
  0x54   :  { %611 = vmatpush2.msra.mxu1 %v540_v33 }
  0x98   :  { %v74_v9 = vpop.permute.xlu0 %73  ;;  %v78_v10 = vpop.permute.xlu1 %77 }
  0x99   :  { %86 = vst.msk [vmem:[#allocation2 + $0x2] sm:$0xff] %vm85_vm1, %v74_v9  ;;  %88 = vst.msk [vmem:[#allocation2 + $0x12] sm:$0xff] %vm85_vm1, %v78_v10 }
  0x9c   :  { %v76_v19 = vpop.permute.xlu0 %75  ;;  %v80_v20 = vpop.permute.xlu1 %79 }
  0x9d   :  { %87 = vst.msk [vmem:[#allocation2 + $0xa] sm:$0xff] %vm85_vm1, %v76_v19 }
  0x9e   :  { %90 = vst.msk [vmem:[#allocation2 + $0x1a] sm:$0xf] %vm89_vm2, %v80_v20 }
  0xa0   :  { %v167_v27 = vld [vmem:[#allocation2 + $0x2] sm:$0xff]  ;;  %v103_v29 = vpop.permute.xlu1 %102  ;;  %v101_v30 = vpop.permute.xlu0 %100  ;;  %v169_v50 = vld [vmem:[#allocation2 + $0x12] sm:$0xff] }
  0xa1   :  { %v141_v28 = vld [vmem:[#allocation2 + $0x1] sm:$0xff]  ;;  %175 = vrot.lane.b32.xlu1 %v167_v27, %s1275_s0  ;;  %113 = vst.msk [vmem:[#allocation2 + $0x2a] sm:$0xff] %vm85_vm1, %v103_v29  ;;  %112 = vst.msk [vmem:[#allocation2 + $0x22] sm:$0xff] %vm85_vm1, %v101_v30 }
  0xa2   :  { %149 = vrot.lane.b32.xlu0 %v141_v28, %s1276_s20  ;;  %v132_v31 = vld [vmem:[#allocation2] sm:$0xff] }
  0xa3   :  { %136 = vst.msk [vmem:[#allocation3] sm:$0xff] %vm56_vm0, %v132_v31 }
  0xa4   :  { %v220_v34 = vld [vmem:[#allocation2 + $0xc] sm:$0xff]  ;;  %v105_v37 = vpop.permute.xlu0 %104  ;;  %v107_v38 = vpop.permute.xlu1 %106  ;;  %v193_v39 = vld [vmem:[#allocation2 + $0x3] sm:$0xff] }
  0xa5   :  { %v221_v35 = vld [vmem:[#allocation2 + $0x14] sm:$0xff]  ;;  %v142_v36 = vld [vmem:[#allocation2 + $0x9] sm:$0xff]  ;;  %224 = vst.msk [vmem:[#allocation3 + $0x18] sm:$0xff] %vm56_vm0, %v220_v34  ;;  %v222_v47 = vld [vmem:[#allocation2 + $0x1c] sm:$0xf] }
  0xa6   :  { %225 = vst.msk [vmem:[#allocation3 + $0x28] sm:$0xff] %vm56_vm0, %v221_v35  ;;  %151 = vrot.lane.b32.xlu1 %v142_v36, %s1276_s20  ;;  %201 = vrot.lane.b32.xlu0 %v193_v39, %s1277_s21  ;;  %v219_v40 = vld [vmem:[#allocation2 + $0x4] sm:$0xff]  ;;  %v134_v45 = vld [vmem:[#allocation2 + $0x10] sm:$0xff]  ;;  %v135_v46 = vld [vmem:[#allocation2 + $0x18] sm:$0xf] }
  0xa7   :  { %114 = vst.msk [vmem:[#allocation2 + $0x32] sm:$0xff] %vm85_vm1, %v105_v37  ;;  %v194_v41 = vld [vmem:[#allocation2 + $0xb] sm:$0xff]  ;;  %v144_v56 = vld [vmem:[#allocation2 + $0x19] sm:$0xf] }
  0xa8   :  { %115 = vst.msk [vmem:[#allocation2 + $0x3a] sm:$0xf] %vm89_vm2, %v107_v38  ;;  %v307_v42 = vld [vmem:[#allocation2 + $0x24] sm:$0xff]  ;;  %v143_v53 = vld [vmem:[#allocation2 + $0x11] sm:$0xff]  ;;  %v196_v60 = vld [vmem:[#allocation2 + $0x1b] sm:$0xf] }
  0xa9   :  { %223 = vst.msk [vmem:[#allocation3 + $0x8] sm:$0xff] %vm56_vm0, %v219_v40  ;;  %v168_v43 = vld [vmem:[#allocation2 + $0xa] sm:$0xff]  ;;  %311 = vst.msk [vmem:[#allocation3 + $0x48] sm:$0xff] %vm56_vm0, %v307_v42  ;;  %v227_v48 = vld [vmem:[#allocation2 + $0x20] sm:$0xff] }
  0xaa   :  { %203 = vrot.lane.b32.xlu1 %v194_v41, %s1277_s21  ;;  %177 = vrot.lane.b32.xlu0 %v168_v43, %s1275_s0  ;;  %v133_v44 = vld [vmem:[#allocation2 + $0x8] sm:$0xff]  ;;  %138 = vst.msk [vmem:[#allocation3 + $0x20] sm:$0xff] %vm56_vm0, %v134_v45  ;;  %231 = vst.msk [vmem:[#allocation3 + $0x40] sm:$0xff] %vm56_vm0, %v227_v48  ;;  %v195_v58 = vld [vmem:[#allocation2 + $0x13] sm:$0xff] }
  0xab   :  { %137 = vst.msk [vmem:[#allocation3 + $0x10] sm:$0xff] %vm56_vm0, %v133_v44  ;;  %v228_v49 = vld [vmem:[#allocation2 + $0x28] sm:$0xff]  ;;  %v170_v61 = vld [vmem:[#allocation2 + $0x1a] sm:$0xf] }
  0xac   :  { %140 = vst.msk [vmem:[#allocation3 + $0x30] sm:$0xf] %vm139_vm3, %v135_v46  ;;  %226 = vst.msk [vmem:[#allocation3 + $0x38] sm:$0xf] %vm139_vm3, %v222_v47  ;;  %v259_v62 = vld [vmem:[#allocation2 + $0x22] sm:$0xff]  ;;  %v260_v3 = vld [vmem:[#allocation2 + $0x2a] sm:$0xff] }
  0xad   :  { %232 = vst.msk [vmem:[#allocation3 + $0x50] sm:$0xff] %vm56_vm0, %v228_v49  ;;  %v235_v63 = vld [vmem:[#allocation2 + $0x21] sm:$0xff]  ;;  %v236_v0 = vld [vmem:[#allocation2 + $0x29] sm:$0xff]  ;;  %v318_v19 = vld [vmem:[#allocation3 + $0x18] sm:$0xff]  ;;  %v679_v49 = vlaneseq }
  0xae   :  { %v308_v51 = vld [vmem:[#allocation2 + $0x2c] sm:$0xff]  ;;  %179 = vrot.lane.b32.xlu1 %v169_v50, %s1275_s0  ;;  %153 = vrot.lane.b32.xlu0 %v143_v53, %s1276_s20  ;;  %v283_v1 = vld [vmem:[#allocation2 + $0x23] sm:$0xff] }
  0xaf   :  { %v309_v52 = vld [vmem:[#allocation2 + $0x34] sm:$0xff]  ;;  %312 = vst.msk [vmem:[#allocation3 + $0x58] sm:$0xff] %vm56_vm0, %v308_v51  ;;  %v310_v55 = vld [vmem:[#allocation2 + $0x3c] sm:$0xf]  ;;  %v284_v2 = vld [vmem:[#allocation2 + $0x2b] sm:$0xff]  ;;  %v680_v50 = vshrl.u32 %v679_v49, 7 }
  0xb0   :  { %313 = vst.msk [vmem:[#allocation3 + $0x68] sm:$0xff] %vm56_vm0, %v309_v52  ;;  %v316_v54 = vld [vmem:[#allocation3 + $0x8] sm:$0xff]  ;;  %v229_v57 = vld [vmem:[#allocation2 + $0x30] sm:$0xff]  ;;  %v230_v59 = vld [vmem:[#allocation2 + $0x38] sm:$0xf]  ;;  %vm1454_vm10 = vcmp.lt.s32.totalorder %v679_v49, 224 }
  0xb1   :  { %1150 = vmatprep.mubr.msk.f32.mxu0 %vm56_vm0, %v316_v54  ;;  %1158 = vmatprep.mubr.msk.f32.mxu1 %vm56_vm0, %v316_v54  ;;  %314 = vst.msk [vmem:[#allocation3 + $0x78] sm:$0xf] %vm139_vm3, %v310_v55  ;;  %234 = vst.msk [vmem:[#allocation3 + $0x70] sm:$0xf] %vm139_vm3, %v230_v59  ;;  %v261_v4 = vld [vmem:[#allocation2 + $0x32] sm:$0xff]  ;;  %v320_v23 = vld [vmem:[#allocation3 + $0x28] sm:$0xff] }
  0xb2   :  { %155 = vrot.lane.b32.xlu1 %v144_v56, %s1276_s20  ;;  %233 = vst.msk [vmem:[#allocation3 + $0x60] sm:$0xff] %vm56_vm0, %v229_v57  ;;  %205 = vrot.lane.b32.xlu0 %v195_v58, %s1277_s21  ;;  %v237_v5 = vld [vmem:[#allocation2 + $0x31] sm:$0xff]  ;;  %v238_v6 = vld [vmem:[#allocation2 + $0x39] sm:$0xf]  ;;  %v324_v33 = vld [vmem:[#allocation3 + $0x48] sm:$0xff]  ;;  %v681_v51 = vsub.s32 0, %v680_v50 }
  0xb3   :  { %v285_v7 = vld [vmem:[#allocation2 + $0x33] sm:$0xff]  ;;  %v286_v8 = vld [vmem:[#allocation2 + $0x3b] sm:$0xf]  ;;  %v677_v52 = vld [vmem:[#allocation8] sm:$0x3]  ;;  %v685_v53 = vsub.s32 1, %v680_v50 }
  0xb4   :  { %v262_v9 = vld [vmem:[#allocation2 + $0x3a] sm:$0xf]  ;;  %v1441_v54 = vrot.slane %v677_v52, %v681_v51 }
  0xb5   :  { %v322_v29 = vld [vmem:[#allocation3 + $0x38] sm:$0xff]  ;;  %v1443_v58 = vrot.slane %v677_v52, %v685_v53 }
  0xb6   :  { %207 = vrot.lane.b32.xlu1 %v196_v60, %s1277_s21  ;;  %181 = vrot.lane.b32.xlu0 %v170_v61, %s1275_s0  ;;  %v326_v39 = vld [vmem:[#allocation3 + $0x58] sm:$0xff] }
  0xb7   :  { %v328_v43 = vld [vmem:[#allocation3 + $0x68] sm:$0xff] }
  0xb8   :  { %v330_v47 = vld [vmem:[#allocation3 + $0x78] sm:$0xff] }
  0xba   :  { %267 = vrot.lane.b32.xlu1 %v259_v62, %s1275_s0  ;;  %243 = vrot.lane.b32.xlu0 %v235_v63, %s1276_s20  ;;  %v1278_v62 = vmov 1966171168  }
  0xbb   :  { %v743_v63 = vunpack.c.l.s4 %v1278_v62 }
  0xbe   :  { %245 = vrot.lane.b32.xlu1 %v236_v0, %s1276_s20  ;;  %291 = vrot.lane.b32.xlu0 %v283_v1, %s1277_s21 }
  0xc2   :  { %293 = vrot.lane.b32.xlu1 %v284_v2, %s1277_s21  ;;  %269 = vrot.lane.b32.xlu0 %v260_v3, %s1275_s0 }
  0xc6   :  { %271 = vrot.lane.b32.xlu1 %v261_v4, %s1275_s0  ;;  %247 = vrot.lane.b32.xlu0 %v237_v5, %s1276_s20 }
  0xca   :  { %249 = vrot.lane.b32.xlu1 %v238_v6, %s1276_s20  ;;  %295 = vrot.lane.b32.xlu0 %v285_v7, %s1277_s21  ;;  %v744_v7 = vunpack.c.0.s8 %v743_v63 }
  0xce   :  { %297 = vrot.lane.b32.xlu1 %v286_v8, %s1277_s21  ;;  %273 = vrot.lane.b32.xlu0 %v262_v9, %s1275_s0 }
 0x113   :  { %v176_v10 = vpop.permute.xlu1 %175 }
 0x114   :  { %v150_v11 = vpop.permute.xlu0 %149 }
 0x115   :  { %162 = vst.msk [vmem:[#allocation3] sm:$0xff] %vm161_vm4, %v150_v11 }
 0x116   :  { %188 = vst.msk [vmem:[#allocation3] sm:$0xff] %vm187_vm5, %v176_v10 }
 0x118   :  { %v152_v12 = vpop.permute.xlu1 %151  ;;  %v202_v13 = vpop.permute.xlu0 %201 }
 0x119   :  { %163 = vst.msk [vmem:[#allocation3 + $0x10] sm:$0xff] %vm161_vm4, %v152_v12 }
 0x11a   :  { %214 = vst.msk [vmem:[#allocation3] sm:$0xff] %vm213_vm6, %v202_v13 }
 0x11c   :  { %v204_v14 = vpop.permute.xlu1 %203  ;;  %v178_v15 = vpop.permute.xlu0 %177 }
 0x11d   :  { %189 = vst.msk [vmem:[#allocation3 + $0x10] sm:$0xff] %vm187_vm5, %v178_v15 }
 0x11e   :  { %215 = vst.msk [vmem:[#allocation3 + $0x10] sm:$0xff] %vm213_vm6, %v204_v14 }
 0x120   :  { %v180_v16 = vpop.permute.xlu1 %179  ;;  %v154_v17 = vpop.permute.xlu0 %153 }
 0x121   :  { %v315_v18 = vld [vmem:[#allocation3] sm:$0xff]  ;;  %164 = vst.msk [vmem:[#allocation3 + $0x20] sm:$0xff] %vm161_vm4, %v154_v17  ;;  %v1449_v17 = vsub.s32 %v744_v7, %v680_v50 }
 0x122   :  { %460 = vmatmul.mubr.f32.vlgmr.msra.gmra.mxu0 %v315_v18  ;;  %613 = vmatmul.mubr.f32.vlgmr.msra.gmra.mxu1 %v315_v18  ;;  %190 = vst.msk [vmem:[#allocation3 + $0x20] sm:$0xff] %vm187_vm5, %v180_v16 }
 0x123   :  { %1151 = vmatprep.mubr.msk.f32.mxu0 %vm56_vm0, %v318_v19  ;;  %1159 = vmatprep.mubr.msk.f32.mxu1 %vm56_vm0, %v318_v19 }
 0x124   :  { %v156_v20 = vpop.permute.xlu1 %155  ;;  %v206_v21 = vpop.permute.xlu0 %205 }
 0x125   :  { %166 = vst.msk [vmem:[#allocation3 + $0x30] sm:$0xf] %vm165_vm7, %v156_v20  ;;  %v317_v22 = vld [vmem:[#allocation3 + $0x10] sm:$0xff] }
 0x126   :  { %216 = vst.msk [vmem:[#allocation3 + $0x20] sm:$0xff] %vm213_vm6, %v206_v21  ;;  %466 = vmatmul.mubr.f32.gmra.mxu0 %v317_v22  ;;  %619 = vmatmul.mubr.f32.gmra.mxu1 %v317_v22 }
 0x127   :  { %1152 = vmatprep.mubr.msk.f32.mxu0 %vm56_vm0, %v320_v23  ;;  %1160 = vmatprep.mubr.msk.f32.mxu1 %vm56_vm0, %v320_v23 }
 0x128   :  { %v208_v24 = vpop.permute.xlu1 %207  ;;  %v182_v25 = vpop.permute.xlu0 %181 }
 0x129   :  { %192 = vst.msk [vmem:[#allocation3 + $0x30] sm:$0xf] %vm191_vm8, %v182_v25 }
 0x12a   :  { %218 = vst.msk [vmem:[#allocation3 + $0x30] sm:$0xf] %vm217_vm9, %v208_v24 }
 0x12c   :  { %v268_v26 = vpop.permute.xlu1 %267  ;;  %v244_v27 = vpop.permute.xlu0 %243 }
 0x12d   :  { %v319_v28 = vld [vmem:[#allocation3 + $0x20] sm:$0xff]  ;;  %255 = vst.msk [vmem:[#allocation3 + $0x40] sm:$0xff] %vm161_vm4, %v244_v27 }
 0x12e   :  { %472 = vmatmul.mubr.f32.gmra.mxu0 %v319_v28  ;;  %625 = vmatmul.mubr.f32.gmra.mxu1 %v319_v28  ;;  %279 = vst.msk [vmem:[#allocation3 + $0x40] sm:$0xff] %vm187_vm5, %v268_v26 }
 0x12f   :  { %1153 = vmatprep.mubr.msk.f32.mxu0 %vm56_vm0, %v322_v29  ;;  %1161 = vmatprep.mubr.msk.f32.mxu1 %vm56_vm0, %v322_v29 }
 0x130   :  { %v246_v30 = vpop.permute.xlu1 %245  ;;  %v292_v31 = vpop.permute.xlu0 %291 }
 0x131   :  { %256 = vst.msk [vmem:[#allocation3 + $0x50] sm:$0xff] %vm161_vm4, %v246_v30  ;;  %v321_v32 = vld [vmem:[#allocation3 + $0x30] sm:$0xff] }
 0x132   :  { %303 = vst.msk [vmem:[#allocation3 + $0x40] sm:$0xff] %vm213_vm6, %v292_v31  ;;  %478 = vmatmul.mubr.f32.gmra.mxu0 %v321_v32  ;;  %631 = vmatmul.mubr.f32.gmra.mxu1 %v321_v32 }
 0x133   :  { %1154 = vmatprep.mubr.msk.f32.mxu0 %vm56_vm0, %v324_v33  ;;  %1162 = vmatprep.mubr.msk.f32.mxu1 %vm56_vm0, %v324_v33 }
 0x134   :  { %v294_v34 = vpop.permute.xlu1 %293  ;;  %v270_v35 = vpop.permute.xlu0 %269 }
 0x135   :  { %280 = vst.msk [vmem:[#allocation3 + $0x50] sm:$0xff] %vm187_vm5, %v270_v35 }
 0x136   :  { %304 = vst.msk [vmem:[#allocation3 + $0x50] sm:$0xff] %vm213_vm6, %v294_v34 }
 0x138   :  { %v272_v36 = vpop.permute.xlu1 %271  ;;  %v248_v37 = vpop.permute.xlu0 %247 }
 0x139   :  { %v323_v38 = vld [vmem:[#allocation3 + $0x40] sm:$0xff]  ;;  %257 = vst.msk [vmem:[#allocation3 + $0x60] sm:$0xff] %vm161_vm4, %v248_v37 }
 0x13a   :  { %484 = vmatmul.mubr.f32.gmra.mxu0 %v323_v38  ;;  %637 = vmatmul.mubr.f32.gmra.mxu1 %v323_v38  ;;  %281 = vst.msk [vmem:[#allocation3 + $0x60] sm:$0xff] %vm187_vm5, %v272_v36 }
 0x13b   :  { %1155 = vmatprep.mubr.msk.f32.mxu0 %vm56_vm0, %v326_v39  ;;  %1163 = vmatprep.mubr.msk.f32.mxu1 %vm56_vm0, %v326_v39 }
 0x13c   :  { %v250_v40 = vpop.permute.xlu1 %249  ;;  %v296_v41 = vpop.permute.xlu0 %295 }
 0x13d   :  { %258 = vst.msk [vmem:[#allocation3 + $0x70] sm:$0xf] %vm165_vm7, %v250_v40  ;;  %v325_v42 = vld [vmem:[#allocation3 + $0x50] sm:$0xff] }
 0x13e   :  { %305 = vst.msk [vmem:[#allocation3 + $0x60] sm:$0xff] %vm213_vm6, %v296_v41  ;;  %490 = vmatmul.mubr.f32.gmra.mxu0 %v325_v42  ;;  %643 = vmatmul.mubr.f32.gmra.mxu1 %v325_v42 }
 0x13f   :  { %1156 = vmatprep.mubr.msk.f32.mxu0 %vm56_vm0, %v328_v43  ;;  %1164 = vmatprep.mubr.msk.f32.mxu1 %vm56_vm0, %v328_v43 }
 0x140   :  { %v298_v44 = vpop.permute.xlu1 %297  ;;  %v274_v45 = vpop.permute.xlu0 %273 }
 0x141   :  { %282 = vst.msk [vmem:[#allocation3 + $0x70] sm:$0xf] %vm191_vm8, %v274_v45 }
 0x142   :  { %306 = vst.msk [vmem:[#allocation3 + $0x70] sm:$0xf] %vm217_vm9, %v298_v44 }
 0x145   :  { %v327_v46 = vld [vmem:[#allocation3 + $0x60] sm:$0xff] }
 0x146   :  { %496 = vmatmul.mubr.f32.gmra.mxu0 %v327_v46  ;;  %649 = vmatmul.mubr.f32.gmra.mxu1 %v327_v46 }
 0x147   :  { %1157 = vmatprep.mubr.msk.f32.mxu0 %vm56_vm0, %v330_v47  ;;  %1165 = vmatprep.mubr.msk.f32.mxu1 %vm56_vm0, %v330_v47 }
 0x149   :  { %v329_v48 = vld [vmem:[#allocation3 + $0x70] sm:$0xff] }
 0x14a   :  { %502 = vmatmul.mubr.f32.gmra.mxu0 %v329_v48  ;;  %655 = vmatmul.mubr.f32.gmra.mxu1 %v329_v48 }
 0x1e2   :  { %v461_v55 = vpop.f32.mrf.mxu0  ;;  %v614_v56 = vpop.f32.mrf.mxu1 }
 0x1e3   :  { %v661_v57 = vmax.f32 %v461_v55, %v614_v56 }
 0x1e4   :  { %v463_v59 = vpop.f32.mrf.mxu0  ;;  %v616_v60 = vpop.f32.mrf.mxu1 }
 0x1e5   :  { %v689_v61 = vadd.f32 %v1441_v54, %v661_v57  ;;  %v662_v0 = vmax.f32 %v463_v59, %v616_v60 }
 0x1e6   :  { %v467_v3 = vpop.f32.mrf.mxu0  ;;  %v620_v4 = vpop.f32.mrf.mxu1 }
 0x1e7   :  { %v705_v1 = vmax.f32 %v689_v61, 0.0  ;;  %v690_v2 = vadd.f32 %v1443_v58, %v662_v0  ;;  %v663_v5 = vmax.f32 %v467_v3, %v620_v4 }
 0x1e8   :  { %v469_v9 = vpop.f32.mrf.mxu0  ;;  %v622_v10 = vpop.f32.mrf.mxu1 }
 0x1e9   :  { %v725_v6 = vrot.slane %v705_v1, 1  ;;  %v706_v8 = vmax.f32 %v690_v2, 0.0  ;;  %v691_v11 = vadd.f32 %v1441_v54, %v663_v5  ;;  %v664_v12 = vmax.f32 %v469_v9, %v622_v10 }
 0x1eb   :  { %v726_v13 = vrot.slane %v706_v8, 1  ;;  %v707_v14 = vmax.f32 %v691_v11, 0.0  ;;  %v692_v15 = vadd.f32 %v1443_v58, %v664_v12  ;;  %v733_v16 = vmax.f32 %v705_v1, %v725_v6 }
 0x1ed   :  { %v734_v18 = vmax.f32 %v706_v8, %v726_v13  ;;  %v844_v19 = vrot.slane %v707_v14, 1  ;;  %v708_v20 = vmax.f32 %v692_v15, 0.0 }
 0x1ee   :  { %v473_v21 = vpop.f32.mrf.mxu0  ;;  %v626_v22 = vpop.f32.mrf.mxu1 }
 0x1ef   :  { %v741_v23 = vcombine.low %v733_v16, %v734_v18  ;;  %v792_v24 = vcombine.high %v733_v16, %v734_v18  ;;  %v665_v25 = vmax.f32 %v473_v21, %v626_v22  ;;  %v845_v26 = vrot.slane %v708_v20, 1 }
 0x1f0   :  { %v475_v27 = vpop.f32.mrf.mxu0  ;;  %v628_v28 = vpop.f32.mrf.mxu1  ;;  %v852_v34 = vmax.f32 %v707_v14, %v844_v19 }
 0x1f1   :  { %v748_v29 = vrot.slane %v741_v23, %v1449_v17  ;;  %v799_v30 = vrot.slane %v792_v24, %v1449_v17  ;;  %v693_v31 = vadd.f32 %v1441_v54, %v665_v25  ;;  %v666_v32 = vmax.f32 %v475_v27, %v628_v28 }
 0x1f2   :  { %v853_v35 = vmax.f32 %v708_v20, %v845_v26  ;;  %v479_v40 = vpop.f32.mrf.mxu0  ;;  %v632_v41 = vpop.f32.mrf.mxu1 }
 0x1f3   :  { %v755_v36 = vrot.slane %v748_v29, %v1449_v17  ;;  %v806_v37 = vrot.slane %v799_v30, %v1449_v17  ;;  %v709_v38 = vmax.f32 %v693_v31, 0.0  ;;  %v694_v39 = vadd.f32 %v1443_v58, %v666_v32 }
 0x1f4   :  { %v860_v42 = vcombine.low %v852_v34, %v853_v35  ;;  %v908_v43 = vcombine.high %v852_v34, %v853_v35  ;;  %v667_v44 = vmax.f32 %v479_v40, %v632_v41  ;;  %v481_v49 = vpop.f32.mrf.mxu0  ;;  %v634_v50 = vpop.f32.mrf.mxu1 }
 0x1f5   :  { %777 = vst.msk [vmem:[%s1639_s4] ss:$8 sm:$0x3] %vm1454_vm10, %v755_v36  ;;  %v782_v45 = vcombine.high %v755_v36, %v755_v36  ;;  %1169 = vst.msk [vmem:[%s1639_s4 + $0x2] ss:$8 sm:$0x3] %vm1454_vm10, %v806_v37  ;;  %v830_v46 = vcombine.high %v806_v37, %v806_v37  ;;  %v668_v55 = vmax.f32 %v481_v49, %v634_v50 }
 0x1f6   :  { %v960_v47 = vrot.slane %v709_v38, 1  ;;  %v710_v48 = vmax.f32 %v694_v39, 0.0  ;;  %v867_v51 = vrot.slane %v860_v42, %v1449_v17  ;;  %v915_v52 = vrot.slane %v908_v43, %v1449_v17 }
 0x1f7   :  { %v695_v53 = vadd.f32 %v1441_v54, %v667_v44  ;;  %1167 = vst.msk [vmem:[%s1639_s4 + $0x1] ss:$8 sm:$0x3] %vm1454_vm10, %v782_v45  ;;  %1171 = vst.msk [vmem:[%s1639_s4 + $0x3] ss:$8 sm:$0x3] %vm1454_vm10, %v830_v46  ;;  %v696_v61 = vadd.f32 %v1443_v58, %v668_v55 }
 0x1f8   :  { %v961_v56 = vrot.slane %v710_v48, 1  ;;  %v874_v57 = vrot.slane %v867_v51, %v1449_v17  ;;  %v922_v59 = vrot.slane %v915_v52, %v1449_v17  ;;  %v968_v62 = vmax.f32 %v709_v38, %v960_v47 }
 0x1f9   :  { %v711_v60 = vmax.f32 %v695_v53, 0.0  ;;  %v712_v3 = vmax.f32 %v696_v61, 0.0 }
 0x1fa   :  { %v969_v63 = vmax.f32 %v710_v48, %v961_v56  ;;  %1173 = vst.msk [vmem:[%s1639_s4 + $0x4] ss:$8 sm:$0x3] %vm1454_vm10, %v874_v57  ;;  %v898_v0 = vcombine.high %v874_v57, %v874_v57  ;;  %1177 = vst.msk [vmem:[%s1639_s4 + $0x6] ss:$8 sm:$0x3] %vm1454_vm10, %v922_v59  ;;  %v946_v1 = vcombine.high %v922_v59, %v922_v59  ;;  %v485_v4 = vpop.f32.mrf.mxu0  ;;  %v638_v5 = vpop.f32.mrf.mxu1 }
 0x1fb   :  { %v1076_v2 = vrot.slane %v711_v60, 1  ;;  %v669_v8 = vmax.f32 %v485_v4, %v638_v5  ;;  %v1077_v9 = vrot.slane %v712_v3, 1 }
 0x1fc   :  { %v976_v6 = vcombine.low %v968_v62, %v969_v63  ;;  %v1024_v7 = vcombine.high %v968_v62, %v969_v63  ;;  %1175 = vst.msk [vmem:[%s1639_s4 + $0x5] ss:$8 sm:$0x3] %vm1454_vm10, %v898_v0  ;;  %1179 = vst.msk [vmem:[%s1639_s4 + $0x7] ss:$8 sm:$0x3] %vm1454_vm10, %v946_v1  ;;  %v487_v10 = vpop.f32.mrf.mxu0  ;;  %v640_v11 = vpop.f32.mrf.mxu1 }
 0x1fd   :  { %v697_v14 = vadd.f32 %v1441_v54, %v669_v8  ;;  %v670_v15 = vmax.f32 %v487_v10, %v640_v11  ;;  %v1084_v16 = vmax.f32 %v711_v60, %v1076_v2  ;;  %v1085_v18 = vmax.f32 %v712_v3, %v1077_v9 }
 0x1fe   :  { %v983_v12 = vrot.slane %v976_v6, %v1449_v17  ;;  %v1031_v13 = vrot.slane %v1024_v7, %v1449_v17  ;;  %v491_v23 = vpop.f32.mrf.mxu0  ;;  %v644_v24 = vpop.f32.mrf.mxu1 }
 0x1ff   :  { %v713_v21 = vmax.f32 %v697_v14, 0.0  ;;  %v698_v22 = vadd.f32 %v1443_v58, %v670_v15  ;;  %v1092_v25 = vcombine.low %v1084_v16, %v1085_v18  ;;  %v671_v26 = vmax.f32 %v491_v23, %v644_v24 }
 0x200   :  { %v990_v19 = vrot.slane %v983_v12, %v1449_v17  ;;  %v1038_v20 = vrot.slane %v1031_v13, %v1449_v17  ;;  %v493_v31 = vpop.f32.mrf.mxu0  ;;  %v646_v32 = vpop.f32.mrf.mxu1 }
 0x201   :  { %v727_v29 = vrot.slane %v713_v21, 1  ;;  %v714_v30 = vmax.f32 %v698_v22, 0.0  ;;  %v1099_v34 = vrot.slane %v1092_v25, %v1449_v17  ;;  %v699_v35 = vadd.f32 %v1441_v54, %v671_v26 }
 0x202   :  { %1181 = vst.msk [vmem:[%s1639_s4 + $0x10] ss:$8 sm:$0x3] %vm1454_vm10, %v990_v19  ;;  %v1014_v27 = vcombine.high %v990_v19, %v990_v19  ;;  %1185 = vst.msk [vmem:[%s1639_s4 + $0x12] ss:$8 sm:$0x3] %vm1454_vm10, %v1038_v20  ;;  %v1062_v28 = vcombine.high %v1038_v20, %v1038_v20  ;;  %v672_v36 = vmax.f32 %v493_v31, %v646_v32 }
 0x203   :  { %v728_v37 = vrot.slane %v714_v30, 1  ;;  %v1106_v38 = vrot.slane %v1099_v34, %v1449_v17  ;;  %v715_v39 = vmax.f32 %v699_v35, 0.0  ;;  %v735_v41 = vmax.f32 %v713_v21, %v727_v29 }
 0x204   :  { %1183 = vst.msk [vmem:[%s1639_s4 + $0x11] ss:$8 sm:$0x3] %vm1454_vm10, %v1014_v27  ;;  %1187 = vst.msk [vmem:[%s1639_s4 + $0x13] ss:$8 sm:$0x3] %vm1454_vm10, %v1062_v28  ;;  %v700_v40 = vadd.f32 %v1443_v58, %v672_v36 }
 0x205   :  { %v736_v42 = vmax.f32 %v714_v30, %v728_v37  ;;  %1189 = vst.msk [vmem:[%s1639_s4 + $0x14] ss:$8 sm:$0x3] %vm1454_vm10, %v1106_v38  ;;  %v1130_v43 = vcombine.high %v1106_v38, %v1106_v38  ;;  %v846_v44 = vrot.slane %v715_v39, 1 }
 0x206   :  { %v716_v45 = vmax.f32 %v700_v40, 0.0  ;;  %v497_v46 = vpop.f32.mrf.mxu0  ;;  %v650_v47 = vpop.f32.mrf.mxu1 }
 0x207   :  { %v756_v48 = vcombine.low %v735_v41, %v736_v42  ;;  %v807_v49 = vcombine.high %v735_v41, %v736_v42  ;;  %v673_v50 = vmax.f32 %v497_v46, %v650_v47  ;;  %1191 = vst.msk [vmem:[%s1639_s4 + $0x15] ss:$8 sm:$0x3] %vm1454_vm10, %v1130_v43  ;;  %v854_v60 = vmax.f32 %v715_v39, %v846_v44 }
 0x208   :  { %v847_v51 = vrot.slane %v716_v45, 1  ;;  %v499_v52 = vpop.f32.mrf.mxu0  ;;  %v652_v53 = vpop.f32.mrf.mxu1 }
 0x209   :  { %v763_v55 = vrot.slane %v756_v48, %v1449_v17  ;;  %v814_v56 = vrot.slane %v807_v49, %v1449_v17  ;;  %v701_v57 = vadd.f32 %v1441_v54, %v673_v50  ;;  %v674_v59 = vmax.f32 %v499_v52, %v652_v53 }
 0x20a   :  { %v855_v61 = vmax.f32 %v716_v45, %v847_v51  ;;  %v503_v2 = vpop.f32.mrf.mxu0  ;;  %v656_v3 = vpop.f32.mrf.mxu1 }
 0x20b   :  { %v770_v62 = vrot.slane %v763_v55, %v1449_v17  ;;  %v821_v63 = vrot.slane %v814_v56, %v1449_v17  ;;  %v717_v0 = vmax.f32 %v701_v57, 0.0  ;;  %v702_v1 = vadd.f32 %v1443_v58, %v674_v59 }
 0x20c   :  { %v875_v4 = vcombine.low %v854_v60, %v855_v61  ;;  %v923_v5 = vcombine.high %v854_v60, %v855_v61  ;;  %v675_v6 = vmax.f32 %v503_v2, %v656_v3  ;;  %v505_v11 = vpop.f32.mrf.mxu0  ;;  %v658_v12 = vpop.f32.mrf.mxu1 }
 0x20d   :  { %1166 = vst.msk [vmem:[%s1639_s4 + $0x20] ss:$8 sm:$0x3] %vm1454_vm10, %v770_v62  ;;  %v783_v7 = vcombine.high %v770_v62, %v770_v62  ;;  %1170 = vst.msk [vmem:[%s1639_s4 + $0x22] ss:$8 sm:$0x3] %vm1454_vm10, %v821_v63  ;;  %v831_v8 = vcombine.high %v821_v63, %v821_v63  ;;  %v676_v16 = vmax.f32 %v505_v11, %v658_v12 }
 0x20e   :  { %v962_v9 = vrot.slane %v717_v0, 1  ;;  %v718_v10 = vmax.f32 %v702_v1, 0.0  ;;  %v882_v13 = vrot.slane %v875_v4, %v1449_v17  ;;  %v930_v14 = vrot.slane %v923_v5, %v1449_v17 }
 0x20f   :  { %v703_v15 = vadd.f32 %v1441_v54, %v675_v6  ;;  %1168 = vst.msk [vmem:[%s1639_s4 + $0x21] ss:$8 sm:$0x3] %vm1454_vm10, %v783_v7  ;;  %1172 = vst.msk [vmem:[%s1639_s4 + $0x23] ss:$8 sm:$0x3] %vm1454_vm10, %v831_v8  ;;  %v704_v54 = vadd.f32 %v1443_v58, %v676_v16 }
 0x210   :  { %v963_v18 = vrot.slane %v718_v10, 1  ;;  %v889_v19 = vrot.slane %v882_v13, %v1449_v17  ;;  %v937_v20 = vrot.slane %v930_v14, %v1449_v17  ;;  %v970_v22 = vmax.f32 %v717_v0, %v962_v9 }
 0x211   :  { %v719_v21 = vmax.f32 %v703_v15, 0.0  ;;  %v720_v27 = vmax.f32 %v704_v54, 0.0 }
 0x212   :  { %v971_v23 = vmax.f32 %v718_v10, %v963_v18  ;;  %1174 = vst.msk [vmem:[%s1639_s4 + $0x24] ss:$8 sm:$0x3] %vm1454_vm10, %v889_v19  ;;  %v899_v24 = vcombine.high %v889_v19, %v889_v19  ;;  %1178 = vst.msk [vmem:[%s1639_s4 + $0x26] ss:$8 sm:$0x3] %vm1454_vm10, %v937_v20  ;;  %v947_v25 = vcombine.high %v937_v20, %v937_v20 }
 0x213   :  { %v1078_v26 = vrot.slane %v719_v21, 1  ;;  %v1079_v29 = vrot.slane %v720_v27, 1 }
 0x214   :  { %v991_v28 = vcombine.low %v970_v22, %v971_v23  ;;  %v1039_v58 = vcombine.high %v970_v22, %v971_v23  ;;  %1176 = vst.msk [vmem:[%s1639_s4 + $0x25] ss:$8 sm:$0x3] %vm1454_vm10, %v899_v24  ;;  %1180 = vst.msk [vmem:[%s1639_s4 + $0x27] ss:$8 sm:$0x3] %vm1454_vm10, %v947_v25 }
 0x215   :  { %v1086_v32 = vmax.f32 %v719_v21, %v1078_v26  ;;  %v1087_v34 = vmax.f32 %v720_v27, %v1079_v29 }
 0x216   :  { %v998_v30 = vrot.slane %v991_v28, %v1449_v17  ;;  %v1046_v31 = vrot.slane %v1039_v58, %v1449_v17 }
 0x217   :  { %v1107_v37 = vcombine.low %v1086_v32, %v1087_v34 }
 0x218   :  { %v1005_v35 = vrot.slane %v998_v30, %v1449_v17  ;;  %v1053_v36 = vrot.slane %v1046_v31, %v1449_v17 }
 0x219   :  { %v1114_v40 = vrot.slane %v1107_v37, %v1449_v17 }
 0x21a   :  { %1182 = vst.msk [vmem:[%s1639_s4 + $0x30] ss:$8 sm:$0x3] %vm1454_vm10, %v1005_v35  ;;  %v1015_v38 = vcombine.high %v1005_v35, %v1005_v35  ;;  %1186 = vst.msk [vmem:[%s1639_s4 + $0x32] ss:$8 sm:$0x3] %vm1454_vm10, %v1053_v36  ;;  %v1063_v39 = vcombine.high %v1053_v36, %v1053_v36 }
 0x21b   :  { %v1121_v41 = vrot.slane %v1114_v40, %v1449_v17 }
 0x21c   :  { %1184 = vst.msk [vmem:[%s1639_s4 + $0x31] ss:$8 sm:$0x3] %vm1454_vm10, %v1015_v38  ;;  %1188 = vst.msk [vmem:[%s1639_s4 + $0x33] ss:$8 sm:$0x3] %vm1454_vm10, %v1063_v39 }
 0x21d   :  { %1190 = vst.msk [vmem:[%s1639_s4 + $0x34] ss:$8 sm:$0x3] %vm1454_vm10, %v1121_v41  ;;  %v1131_v42 = vcombine.high %v1121_v41, %v1121_v41 }
 0x21f   :  { %1192 = vst.msk [vmem:[%s1639_s4 + $0x35] ss:$8 sm:$0x3] %vm1454_vm10, %v1131_v42 }
 0x220   :  { %1144 = vsyncpa [#allocation5], 1 }
 0x221   :  { %1145 = vsyncpa [#allocation7], 1 }

// kernel: cnn_forward.5
= control target key start
LH: loop header
LB: loop body
LE: loop exit
PB: predicated region body
PF: predicated region fallthrough
CT: control target
= control target key end

     0   :  { %v1062_v30 = vmov 1983009808   ;;  %v230_v32 = vlaneseq  ;;  %s1700_s0 = inlined_call_operand.vmem [shape: f32[2,1568], index: 0, kind: input, shape index: {}]   ;;  %s1701_s1 = inlined_call_operand.vmem [shape: f32[1568,128], index: 1, kind: input, shape index: {}]   ;;  %s1702_s2 = inlined_call_operand.vmem [shape: f32[1,128], index: 2, kind: input, shape index: {}]   ;;  %s1703_s3 = inlined_call_operand.hbm [shape: f32[2,128], index: 3, kind: output, shape index: {}]  }
   0x1   :  { %v50_v0 = vld [vmem:[%s1701_s1 + $0xf8] sm:$0xff]  ;;  %v49_v4 = vld [vmem:[%s1701_s1 + $0xf0] sm:$0xff]  ;;  %v48_v8 = vld [vmem:[%s1701_s1 + $0xe8] sm:$0xff]  ;;  %v228_v31 = vunpack.c.l.s4 %v1062_v30 }
   0x2   :  { %v82_v1 = vld [vmem:[%s1701_s1 + $0x1f8] sm:$0xff]  ;;  %807 = vmatprep.subr.mxu0 %v50_v0  ;;  %v81_v5 = vld [vmem:[%s1701_s1 + $0x1f0] sm:$0xff]  ;;  %v80_v9 = vld [vmem:[%s1701_s1 + $0x1e8] sm:$0xff]  ;;  %v231_v42 = vshrl.u32 %v230_v32, 7 }
   0x3   :  { %v34_v2 = vld [vmem:[%s1701_s1 + $0x78] sm:$0xff]  ;;  %842 = vmatprep.subr.mxu1 %v82_v1  ;;  %v33_v6 = vld [vmem:[%s1701_s1 + $0x70] sm:$0xff]  ;;  %v32_v10 = vld [vmem:[%s1701_s1 + $0x68] sm:$0xff]  ;;  %v229_v41 = vunpack.c.0.s8 %v228_v31 }
   0x4   :  { %v66_v3 = vld [vmem:[%s1701_s1 + $0x178] sm:$0xff]  ;;  %808 = vmatpush3.msra.mxu0 %v34_v2  ;;  %v65_v7 = vld [vmem:[%s1701_s1 + $0x170] sm:$0xff]  ;;  %v64_v11 = vld [vmem:[%s1701_s1 + $0x168] sm:$0xff] }
   0x5   :  { %843 = vmatpush3.msra.mxu1 %v66_v3  ;;  %809 = vmatprep.subr.mxu0 %v49_v4  ;;  %v47_v12 = vld [vmem:[%s1701_s1 + $0xe0] sm:$0xff]  ;;  %v46_v16 = vld [vmem:[%s1701_s1 + $0xd8] sm:$0xff]  ;;  %v45_v20 = vld [vmem:[%s1701_s1 + $0xd0] sm:$0xff]  ;;  %v1224_v51 = vsub.s32 %v229_v41, %v231_v42 }
   0x6   :  { %844 = vmatprep.subr.mxu1 %v81_v5  ;;  %810 = vmatpush3.msra.mxu0 %v33_v6  ;;  %v79_v13 = vld [vmem:[%s1701_s1 + $0x1e0] sm:$0xff]  ;;  %v78_v17 = vld [vmem:[%s1701_s1 + $0x1d8] sm:$0xff]  ;;  %v77_v21 = vld [vmem:[%s1701_s1 + $0x1d0] sm:$0xff] }
   0x7   :  { %845 = vmatpush3.msra.mxu1 %v65_v7  ;;  %811 = vmatprep.subr.mxu0 %v48_v8  ;;  %v31_v14 = vld [vmem:[%s1701_s1 + $0x60] sm:$0xff]  ;;  %v30_v18 = vld [vmem:[%s1701_s1 + $0x58] sm:$0xff]  ;;  %v29_v22 = vld [vmem:[%s1701_s1 + $0x50] sm:$0xff] }
   0x8   :  { %846 = vmatprep.subr.mxu1 %v80_v9  ;;  %v63_v15 = vld [vmem:[%s1701_s1 + $0x160] sm:$0xff]  ;;  %812 = vmatpush3.msra.mxu0 %v32_v10  ;;  %v62_v19 = vld [vmem:[%s1701_s1 + $0x158] sm:$0xff]  ;;  %v61_v23 = vld [vmem:[%s1701_s1 + $0x150] sm:$0xff] }
   0x9   :  { %847 = vmatpush3.msra.mxu1 %v64_v11  ;;  %813 = vmatprep.subr.mxu0 %v47_v12  ;;  %v44_v24 = vld [vmem:[%s1701_s1 + $0xc8] sm:$0xff]  ;;  %v43_v28 = vld [vmem:[%s1701_s1 + $0xc0] sm:$0xff]  ;;  %v42_v35 = vld [vmem:[%s1701_s1 + $0xb8] sm:$0xff] }
   0xa   :  { %848 = vmatprep.subr.mxu1 %v79_v13  ;;  %814 = vmatpush3.msra.mxu0 %v31_v14  ;;  %v76_v25 = vld [vmem:[%s1701_s1 + $0x1c8] sm:$0xff]  ;;  %v75_v29 = vld [vmem:[%s1701_s1 + $0x1c0] sm:$0xff]  ;;  %v74_v36 = vld [vmem:[%s1701_s1 + $0x1b8] sm:$0xff] }
   0xb   :  { %849 = vmatpush3.msra.mxu1 %v63_v15  ;;  %815 = vmatprep.subr.mxu0 %v46_v16  ;;  %v28_v26 = vld [vmem:[%s1701_s1 + $0x48] sm:$0xff]  ;;  %v27_v33 = vld [vmem:[%s1701_s1 + $0x40] sm:$0xff]  ;;  %v26_v37 = vld [vmem:[%s1701_s1 + $0x38] sm:$0xff] }
   0xc   :  { %850 = vmatprep.subr.mxu1 %v78_v17  ;;  %816 = vmatpush3.msra.mxu0 %v30_v18  ;;  %v60_v27 = vld [vmem:[%s1701_s1 + $0x148] sm:$0xff]  ;;  %v59_v34 = vld [vmem:[%s1701_s1 + $0x140] sm:$0xff]  ;;  %v58_v38 = vld [vmem:[%s1701_s1 + $0x138] sm:$0xff] }
   0xd   :  { %851 = vmatpush3.msra.mxu1 %v62_v19  ;;  %817 = vmatprep.subr.mxu0 %v45_v20  ;;  %v41_v39 = vld [vmem:[%s1701_s1 + $0xb0] sm:$0xff]  ;;  %v40_v45 = vld [vmem:[%s1701_s1 + $0xa8] sm:$0xff]  ;;  %v39_v49 = vld [vmem:[%s1701_s1 + $0xa0] sm:$0xff] }
   0xe   :  { %852 = vmatprep.subr.mxu1 %v77_v21  ;;  %818 = vmatpush3.msra.mxu0 %v29_v22  ;;  %v73_v40 = vld [vmem:[%s1701_s1 + $0x1b0] sm:$0xff]  ;;  %v72_v46 = vld [vmem:[%s1701_s1 + $0x1a8] sm:$0xff]  ;;  %v71_v50 = vld [vmem:[%s1701_s1 + $0x1a0] sm:$0xff] }
   0xf   :  { %853 = vmatpush3.msra.mxu1 %v61_v23  ;;  %819 = vmatprep.subr.mxu0 %v44_v24  ;;  %v25_v43 = vld [vmem:[%s1701_s1 + $0x30] sm:$0xff]  ;;  %v24_v47 = vld [vmem:[%s1701_s1 + $0x28] sm:$0xff]  ;;  %v23_v52 = vld [vmem:[%s1701_s1 + $0x20] sm:$0xff] }
  0x10   :  { %854 = vmatprep.subr.mxu1 %v76_v25  ;;  %820 = vmatpush3.msra.mxu0 %v28_v26  ;;  %v57_v44 = vld [vmem:[%s1701_s1 + $0x130] sm:$0xff]  ;;  %v56_v48 = vld [vmem:[%s1701_s1 + $0x128] sm:$0xff]  ;;  %v55_v53 = vld [vmem:[%s1701_s1 + $0x120] sm:$0xff] }
  0x11   :  { %855 = vmatpush3.msra.mxu1 %v60_v27  ;;  %821 = vmatprep.subr.mxu0 %v43_v28  ;;  %v15_v54 = vld [vmem:[%s1700_s0] sm:$0xff]  ;;  %v38_v55 = vld [vmem:[%s1701_s1 + $0x98] sm:$0xff]  ;;  %v37_v60 = vld [vmem:[%s1701_s1 + $0x90] sm:$0xff] }
  0x12   :  { %856 = vmatprep.subr.mxu1 %v75_v29  ;;  %822 = vmatpush3.msra.mxu0 %v27_v33  ;;  %v70_v56 = vld [vmem:[%s1701_s1 + $0x198] sm:$0xff]  ;;  %v226_v57 = vcombine.high %v15_v54, %v15_v54  ;;  %v69_v61 = vld [vmem:[%s1701_s1 + $0x190] sm:$0xff]  ;;  %v233_v62 = vrot.slane %v15_v54, %v1224_v51  ;;  %v36_v1 = vld [vmem:[%s1701_s1 + $0x88] sm:$0xff] }
  0x13   :  { %857 = vmatpush3.msra.mxu1 %v59_v34  ;;  %823 = vmatprep.subr.mxu0 %v42_v35  ;;  %v22_v58 = vld [vmem:[%s1701_s1 + $0x18] sm:$0xff]  ;;  %v21_v63 = vld [vmem:[%s1701_s1 + $0x10] sm:$0xff]  ;;  %v68_v2 = vld [vmem:[%s1701_s1 + $0x188] sm:$0xff] }
  0x14   :  { %858 = vmatprep.subr.mxu1 %v74_v36  ;;  %824 = vmatpush3.msra.mxu0 %v26_v37  ;;  %v54_v59 = vld [vmem:[%s1701_s1 + $0x118] sm:$0xff]  ;;  %v53_v0 = vld [vmem:[%s1701_s1 + $0x110] sm:$0xff]  ;;  %v240_v3 = vrot.slane %v226_v57, %v1224_v51  ;;  %v20_v4 = vld [vmem:[%s1701_s1 + $0x8] sm:$0xff]  ;;  %v241_v8 = vcombine.high %v233_v62, %v233_v62 }
  0x15   :  { %859 = vmatpush3.msra.mxu1 %v58_v38  ;;  %825 = vmatprep.subr.mxu0 %v41_v39  ;;  %v52_v5 = vld [vmem:[%s1701_s1 + $0x108] sm:$0xff]  ;;  %v35_v6 = vld [vmem:[%s1701_s1 + $0x80] sm:$0xff]  ;;  %v114_v12 = vld [vmem:[%s1701_s1 + $0x2f8] sm:$0xff] }
  0x16   :  { %860 = vmatprep.subr.mxu1 %v73_v40  ;;  %826 = vmatpush3.msra.mxu0 %v25_v43  ;;  %v67_v7 = vld [vmem:[%s1701_s1 + $0x180] sm:$0xff]  ;;  %v242_v11 = vcombine.high %v240_v3, %v240_v3  ;;  %v146_v13 = vld [vmem:[%s1701_s1 + $0x3f8] sm:$0xff]  ;;  %v113_v16 = vld [vmem:[%s1701_s1 + $0x2f0] sm:$0xff] }
  0x17   :  { %861 = vmatpush3.msra.mxu1 %v57_v44  ;;  %827 = vmatprep.subr.mxu0 %v40_v45  ;;  %v19_v9 = vld [vmem:[%s1701_s1] sm:$0xff]  ;;  %v98_v14 = vld [vmem:[%s1701_s1 + $0x278] sm:$0xff]  ;;  %v145_v17 = vld [vmem:[%s1701_s1 + $0x3f0] sm:$0xff] }
  0x18   :  { %862 = vmatprep.subr.mxu1 %v72_v46  ;;  %828 = vmatpush3.msra.mxu0 %v24_v47  ;;  %v51_v10 = vld [vmem:[%s1701_s1 + $0x100] sm:$0xff]  ;;  %v130_v15 = vld [vmem:[%s1701_s1 + $0x378] sm:$0xff]  ;;  %v97_v18 = vld [vmem:[%s1701_s1 + $0x270] sm:$0xff] }
  0x19   :  { %863 = vmatpush3.msra.mxu1 %v56_v48  ;;  %829 = vmatprep.subr.mxu0 %v39_v49  ;;  %v129_v19 = vld [vmem:[%s1701_s1 + $0x370] sm:$0xff]  ;;  %v112_v20 = vld [vmem:[%s1701_s1 + $0x2e8] sm:$0xff]  ;;  %v111_v24 = vld [vmem:[%s1701_s1 + $0x2e0] sm:$0xff] }
  0x1a   :  { %864 = vmatprep.subr.mxu1 %v71_v50  ;;  %830 = vmatpush3.msra.mxu0 %v23_v52  ;;  %v144_v21 = vld [vmem:[%s1701_s1 + $0x3e8] sm:$0xff]  ;;  %v143_v25 = vld [vmem:[%s1701_s1 + $0x3e0] sm:$0xff]  ;;  %v110_v28 = vld [vmem:[%s1701_s1 + $0x2d8] sm:$0xff] }
  0x1b   :  { %865 = vmatpush3.msra.mxu1 %v55_v53  ;;  %831 = vmatprep.subr.mxu0 %v38_v55  ;;  %v96_v22 = vld [vmem:[%s1701_s1 + $0x268] sm:$0xff]  ;;  %v95_v26 = vld [vmem:[%s1701_s1 + $0x260] sm:$0xff]  ;;  %v142_v29 = vld [vmem:[%s1701_s1 + $0x3d8] sm:$0xff] }
  0x1c   :  { %866 = vmatprep.subr.mxu1 %v70_v56  ;;  %832 = vmatpush3.msra.mxu0 %v22_v58  ;;  %v128_v23 = vld [vmem:[%s1701_s1 + $0x368] sm:$0xff]  ;;  %v127_v27 = vld [vmem:[%s1701_s1 + $0x360] sm:$0xff]  ;;  %v94_v30 = vld [vmem:[%s1701_s1 + $0x258] sm:$0xff] }
  0x1d   :  { %867 = vmatpush3.msra.mxu1 %v54_v59  ;;  %833 = vmatprep.subr.mxu0 %v37_v60  ;;  %v126_v31 = vld [vmem:[%s1701_s1 + $0x358] sm:$0xff]  ;;  %v109_v32 = vld [vmem:[%s1701_s1 + $0x2d0] sm:$0xff]  ;;  %v108_v36 = vld [vmem:[%s1701_s1 + $0x2c8] sm:$0xff] }
  0x1e   :  { %868 = vmatprep.subr.mxu1 %v69_v61  ;;  %834 = vmatpush3.msra.mxu0 %v21_v63  ;;  %v141_v33 = vld [vmem:[%s1701_s1 + $0x3d0] sm:$0xff]  ;;  %v140_v37 = vld [vmem:[%s1701_s1 + $0x3c8] sm:$0xff]  ;;  %v107_v40 = vld [vmem:[%s1701_s1 + $0x2c0] sm:$0xff] }
  0x1f   :  { %869 = vmatpush3.msra.mxu1 %v53_v0  ;;  %835 = vmatprep.subr.mxu0 %v36_v1  ;;  %v93_v34 = vld [vmem:[%s1701_s1 + $0x250] sm:$0xff]  ;;  %v92_v38 = vld [vmem:[%s1701_s1 + $0x248] sm:$0xff]  ;;  %v139_v41 = vld [vmem:[%s1701_s1 + $0x3c0] sm:$0xff] }
  0x20   :  { %870 = vmatprep.subr.mxu1 %v68_v2  ;;  %836 = vmatpush3.msra.mxu0 %v20_v4  ;;  %v125_v35 = vld [vmem:[%s1701_s1 + $0x350] sm:$0xff]  ;;  %v124_v39 = vld [vmem:[%s1701_s1 + $0x348] sm:$0xff]  ;;  %v91_v42 = vld [vmem:[%s1701_s1 + $0x240] sm:$0xff] }
  0x21   :  { %871 = vmatpush3.msra.mxu1 %v52_v5  ;;  %837 = vmatprep.subr.mxu0 %v35_v6  ;;  %v123_v43 = vld [vmem:[%s1701_s1 + $0x340] sm:$0xff]  ;;  %v106_v44 = vld [vmem:[%s1701_s1 + $0x2b8] sm:$0xff]  ;;  %v105_v48 = vld [vmem:[%s1701_s1 + $0x2b0] sm:$0xff] }
  0x22   :  { %872 = vmatprep.subr.mxu1 %v67_v7  ;;  %838 = vmatpush3.msra.mxu0 %v19_v9  ;;  %v138_v45 = vld [vmem:[%s1701_s1 + $0x3b8] sm:$0xff]  ;;  %v137_v49 = vld [vmem:[%s1701_s1 + $0x3b0] sm:$0xff]  ;;  %v104_v53 = vld [vmem:[%s1701_s1 + $0x2a8] sm:$0xff] }
  0x23   :  { %363 = vmatprep.mubr.f32.mxu0 %v241_v8  ;;  %873 = vmatpush3.msra.mxu1 %v51_v10  ;;  %v90_v46 = vld [vmem:[%s1701_s1 + $0x238] sm:$0xff]  ;;  %v89_v50 = vld [vmem:[%s1701_s1 + $0x230] sm:$0xff]  ;;  %v136_v54 = vld [vmem:[%s1701_s1 + $0x3a8] sm:$0xff] }
  0x24   :  { %364 = vmatmul.mubr.f32.vlgmr.msra.gmra.mxu0 %v233_v62  ;;  %433 = vmatprep.mubr.f32.mxu1 %v242_v11  ;;  %v122_v47 = vld [vmem:[%s1701_s1 + $0x338] sm:$0xff]  ;;  %v121_v52 = vld [vmem:[%s1701_s1 + $0x330] sm:$0xff]  ;;  %v88_v55 = vld [vmem:[%s1701_s1 + $0x228] sm:$0xff] }
  0x25   :  { %877 = vmatprep.subr.mxu0 %v114_v12  ;;  %912 = vmatprep.subr.mxu1 %v146_v13  ;;  %v120_v56 = vld [vmem:[%s1701_s1 + $0x328] sm:$0xff]  ;;  %v103_v58 = vld [vmem:[%s1701_s1 + $0x2a0] sm:$0xff]  ;;  %v102_v62 = vld [vmem:[%s1701_s1 + $0x298] sm:$0xff] }
  0x26   :  { %434 = vmatmul.mubr.f32.vlgmr.msra.gmra.mxu1 %v240_v3  ;;  %878 = vmatpush3.msra.mxu0 %v98_v14  ;;  %v16_v57 = vld [vmem:[%s1700_s0 + $0x8] sm:$0xff]  ;;  %v135_v59 = vld [vmem:[%s1701_s1 + $0x3a0] sm:$0xff]  ;;  %v134_v63 = vld [vmem:[%s1701_s1 + $0x398] sm:$0xff] }
  0x27   :  { %913 = vmatpush3.msra.mxu1 %v130_v15  ;;  %879 = vmatprep.subr.mxu0 %v113_v16  ;;  %v87_v60 = vld [vmem:[%s1701_s1 + $0x220] sm:$0xff]  ;;  %v243_v0 = vcombine.high %v16_v57, %v16_v57  ;;  %v86_v1 = vld [vmem:[%s1701_s1 + $0x218] sm:$0xff]  ;;  %v101_v3 = vld [vmem:[%s1701_s1 + $0x290] sm:$0xff]  ;;  %v250_v5 = vrot.slane %v16_v57, %v1224_v51 }
  0x28   :  { %914 = vmatprep.subr.mxu1 %v145_v17  ;;  %880 = vmatpush3.msra.mxu0 %v97_v18  ;;  %v119_v61 = vld [vmem:[%s1701_s1 + $0x320] sm:$0xff]  ;;  %v118_v2 = vld [vmem:[%s1701_s1 + $0x318] sm:$0xff]  ;;  %v133_v4 = vld [vmem:[%s1701_s1 + $0x390] sm:$0xff] }
  0x29   :  { %915 = vmatpush3.msra.mxu1 %v129_v19  ;;  %881 = vmatprep.subr.mxu0 %v112_v20  ;;  %v85_v6 = vld [vmem:[%s1701_s1 + $0x210] sm:$0xff]  ;;  %v100_v8 = vld [vmem:[%s1701_s1 + $0x288] sm:$0xff]  ;;  %v257_v10 = vrot.slane %v243_v0, %v1224_v51  ;;  %v99_v13 = vld [vmem:[%s1701_s1 + $0x280] sm:$0xff]  ;;  %v258_v15 = vcombine.high %v250_v5, %v250_v5 }
  0x2a   :  { %916 = vmatprep.subr.mxu1 %v144_v21  ;;  %882 = vmatpush3.msra.mxu0 %v96_v22  ;;  %v117_v7 = vld [vmem:[%s1701_s1 + $0x310] sm:$0xff]  ;;  %v132_v9 = vld [vmem:[%s1701_s1 + $0x388] sm:$0xff]  ;;  %v131_v14 = vld [vmem:[%s1701_s1 + $0x380] sm:$0xff] }
  0x2b   :  { %917 = vmatpush3.msra.mxu1 %v128_v23  ;;  %883 = vmatprep.subr.mxu0 %v111_v24  ;;  %v84_v11 = vld [vmem:[%s1701_s1 + $0x208] sm:$0xff]  ;;  %v83_v16 = vld [vmem:[%s1701_s1 + $0x200] sm:$0xff]  ;;  %v259_v18 = vcombine.high %v257_v10, %v257_v10  ;;  %v178_v19 = vld [vmem:[%s1701_s1 + $0x4f8] sm:$0xff] }
  0x2c   :  { %918 = vmatprep.subr.mxu1 %v143_v25  ;;  %884 = vmatpush3.msra.mxu0 %v95_v26  ;;  %v116_v12 = vld [vmem:[%s1701_s1 + $0x308] sm:$0xff]  ;;  %v115_v17 = vld [vmem:[%s1701_s1 + $0x300] sm:$0xff]  ;;  %v210_v20 = vld [vmem:[%s1701_s1 + $0x5f8] sm:$0xff] }
  0x2d   :  { %919 = vmatpush3.msra.mxu1 %v127_v27  ;;  %885 = vmatprep.subr.mxu0 %v110_v28  ;;  %v162_v21 = vld [vmem:[%s1701_s1 + $0x478] sm:$0xff] }
  0x2e   :  { %920 = vmatprep.subr.mxu1 %v142_v29  ;;  %886 = vmatpush3.msra.mxu0 %v94_v30  ;;  %v194_v22 = vld [vmem:[%s1701_s1 + $0x578] sm:$0xff] }
  0x2f   :  { %921 = vmatpush3.msra.mxu1 %v126_v31  ;;  %887 = vmatprep.subr.mxu0 %v109_v32 }
  0x30   :  { %922 = vmatprep.subr.mxu1 %v141_v33  ;;  %888 = vmatpush3.msra.mxu0 %v93_v34 }
  0x31   :  { %923 = vmatpush3.msra.mxu1 %v125_v35  ;;  %889 = vmatprep.subr.mxu0 %v108_v36 }
  0x32   :  { %924 = vmatprep.subr.mxu1 %v140_v37  ;;  %890 = vmatpush3.msra.mxu0 %v92_v38 }
  0x33   :  { %925 = vmatpush3.msra.mxu1 %v124_v39  ;;  %891 = vmatprep.subr.mxu0 %v107_v40 }
  0x34   :  { %926 = vmatprep.subr.mxu1 %v139_v41  ;;  %892 = vmatpush3.msra.mxu0 %v91_v42 }
  0x35   :  { %927 = vmatpush3.msra.mxu1 %v123_v43  ;;  %893 = vmatprep.subr.mxu0 %v106_v44 }
  0x36   :  { %928 = vmatprep.subr.mxu1 %v138_v45  ;;  %894 = vmatpush3.msra.mxu0 %v90_v46 }
  0x37   :  { %929 = vmatpush3.msra.mxu1 %v122_v47  ;;  %895 = vmatprep.subr.mxu0 %v105_v48 }
  0x38   :  { %930 = vmatprep.subr.mxu1 %v137_v49  ;;  %896 = vmatpush3.msra.mxu0 %v89_v50 }
  0x39   :  { %931 = vmatpush3.msra.mxu1 %v121_v52  ;;  %897 = vmatprep.subr.mxu0 %v104_v53 }
  0x3a   :  { %932 = vmatprep.subr.mxu1 %v136_v54  ;;  %898 = vmatpush3.msra.mxu0 %v88_v55 }
  0x3b   :  { %933 = vmatpush3.msra.mxu1 %v120_v56  ;;  %899 = vmatprep.subr.mxu0 %v103_v58 }
  0x3c   :  { %934 = vmatprep.subr.mxu1 %v135_v59  ;;  %900 = vmatpush3.msra.mxu0 %v87_v60 }
  0x3d   :  { %935 = vmatpush3.msra.mxu1 %v119_v61  ;;  %901 = vmatprep.subr.mxu0 %v102_v62 }
  0x3e   :  { %936 = vmatprep.subr.mxu1 %v134_v63  ;;  %902 = vmatpush3.msra.mxu0 %v86_v1 }
  0x3f   :  { %937 = vmatpush3.msra.mxu1 %v118_v2  ;;  %903 = vmatprep.subr.mxu0 %v101_v3 }
  0x40   :  { %938 = vmatprep.subr.mxu1 %v133_v4  ;;  %904 = vmatpush3.msra.mxu0 %v85_v6 }
  0x41   :  { %939 = vmatpush3.msra.mxu1 %v117_v7  ;;  %905 = vmatprep.subr.mxu0 %v100_v8 }
  0x42   :  { %940 = vmatprep.subr.mxu1 %v132_v9  ;;  %906 = vmatpush3.msra.mxu0 %v84_v11 }
  0x43   :  { %941 = vmatpush3.msra.mxu1 %v116_v12  ;;  %907 = vmatprep.subr.mxu0 %v99_v13 }
  0x44   :  { %942 = vmatprep.subr.mxu1 %v131_v14  ;;  %908 = vmatpush3.msra.mxu0 %v83_v16 }
  0x45   :  { %503 = vmatprep.mubr.f32.mxu0 %v258_v15  ;;  %943 = vmatpush3.msra.mxu1 %v115_v17 }
  0x46   :  { %504 = vmatmul.mubr.f32.vlgmr.msra.gmra.mxu0 %v250_v5 }
  0x47   :  { %8 = vsyncpa [#allocation3], 0  ;;  %573 = vmatprep.mubr.f32.mxu1 %v259_v18  ;;  %947 = vmatprep.subr.mxu0 %v178_v19  ;;  %v177_v23 = vld [vmem:[%s1701_s1 + $0x4f0] sm:$0xff]  ;;  %v176_v27 = vld [vmem:[%s1701_s1 + $0x4e8] sm:$0xff]  ;;  %vm1064_vm0 = vmmov 0   ;;  %vm296_vm1 = vcmask 261120  }
  0x48   :  { %v209_v24 = vld [vmem:[%s1701_s1 + $0x5f0] sm:$0xff]  ;;  %982 = vmatprep.subr.mxu1 %v210_v20  ;;  %574 = vmatmul.mubr.f32.vlgmr.msra.gmra.mxu1 %v257_v10  ;;  %v208_v28 = vld [vmem:[%s1701_s1 + $0x5e8] sm:$0xff]  ;;  %v175_v31 = vld [vmem:[%s1701_s1 + $0x4e0] sm:$0xff] }
  0x49   :  { %v161_v25 = vld [vmem:[%s1701_s1 + $0x470] sm:$0xff]  ;;  %948 = vmatpush3.msra.mxu0 %v162_v21  ;;  %983 = vmatpush3.msra.mxu1 %v194_v22  ;;  %v160_v29 = vld [vmem:[%s1701_s1 + $0x468] sm:$0xff]  ;;  %v207_v32 = vld [vmem:[%s1701_s1 + $0x5e0] sm:$0xff] }
  0x4a   :  { %v193_v26 = vld [vmem:[%s1701_s1 + $0x570] sm:$0xff]  ;;  %949 = vmatprep.subr.mxu0 %v177_v23  ;;  %984 = vmatprep.subr.mxu1 %v209_v24  ;;  %v192_v30 = vld [vmem:[%s1701_s1 + $0x568] sm:$0xff]  ;;  %v159_v33 = vld [vmem:[%s1701_s1 + $0x460] sm:$0xff] }
  0x4b   :  { %950 = vmatpush3.msra.mxu0 %v161_v25  ;;  %985 = vmatpush3.msra.mxu1 %v193_v26  ;;  %v191_v34 = vld [vmem:[%s1701_s1 + $0x560] sm:$0xff]  ;;  %v174_v35 = vld [vmem:[%s1701_s1 + $0x4d8] sm:$0xff]  ;;  %v173_v39 = vld [vmem:[%s1701_s1 + $0x4d0] sm:$0xff]  ;;  %v1063_v26 = vmov 0.0  }
  0x4c   :  { %951 = vmatprep.subr.mxu0 %v176_v27  ;;  %986 = vmatprep.subr.mxu1 %v208_v28  ;;  %v206_v36 = vld [vmem:[%s1701_s1 + $0x5d8] sm:$0xff]  ;;  %v205_v40 = vld [vmem:[%s1701_s1 + $0x5d0] sm:$0xff]  ;;  %v172_v43 = vld [vmem:[%s1701_s1 + $0x4c8] sm:$0xff] }
  0x4d   :  { %952 = vmatpush3.msra.mxu0 %v160_v29  ;;  %987 = vmatpush3.msra.mxu1 %v192_v30  ;;  %v158_v37 = vld [vmem:[%s1701_s1 + $0x458] sm:$0xff]  ;;  %v157_v41 = vld [vmem:[%s1701_s1 + $0x450] sm:$0xff]  ;;  %v204_v44 = vld [vmem:[%s1701_s1 + $0x5c8] sm:$0xff] }
  0x4e   :  { %953 = vmatprep.subr.mxu0 %v175_v31  ;;  %988 = vmatprep.subr.mxu1 %v207_v32  ;;  %v190_v38 = vld [vmem:[%s1701_s1 + $0x558] sm:$0xff]  ;;  %v189_v42 = vld [vmem:[%s1701_s1 + $0x550] sm:$0xff]  ;;  %v156_v45 = vld [vmem:[%s1701_s1 + $0x448] sm:$0xff] }
  0x4f   :  { %954 = vmatpush3.msra.mxu0 %v159_v33  ;;  %989 = vmatpush3.msra.mxu1 %v191_v34  ;;  %v188_v46 = vld [vmem:[%s1701_s1 + $0x548] sm:$0xff]  ;;  %v171_v47 = vld [vmem:[%s1701_s1 + $0x4c0] sm:$0xff]  ;;  %v170_v52 = vld [vmem:[%s1701_s1 + $0x4b8] sm:$0xff] }
  0x50   :  { %955 = vmatprep.subr.mxu0 %v174_v35  ;;  %990 = vmatprep.subr.mxu1 %v206_v36  ;;  %v203_v48 = vld [vmem:[%s1701_s1 + $0x5c0] sm:$0xff]  ;;  %v202_v53 = vld [vmem:[%s1701_s1 + $0x5b8] sm:$0xff]  ;;  %v169_v56 = vld [vmem:[%s1701_s1 + $0x4b0] sm:$0xff] }
  0x51   :  { %956 = vmatpush3.msra.mxu0 %v158_v37  ;;  %991 = vmatpush3.msra.mxu1 %v190_v38  ;;  %v155_v49 = vld [vmem:[%s1701_s1 + $0x440] sm:$0xff]  ;;  %v154_v54 = vld [vmem:[%s1701_s1 + $0x438] sm:$0xff]  ;;  %v201_v57 = vld [vmem:[%s1701_s1 + $0x5b0] sm:$0xff] }
  0x52   :  { %957 = vmatprep.subr.mxu0 %v173_v39  ;;  %992 = vmatprep.subr.mxu1 %v205_v40  ;;  %v187_v50 = vld [vmem:[%s1701_s1 + $0x540] sm:$0xff]  ;;  %v186_v55 = vld [vmem:[%s1701_s1 + $0x538] sm:$0xff]  ;;  %v153_v58 = vld [vmem:[%s1701_s1 + $0x430] sm:$0xff] }
  0x53   :  { %958 = vmatpush3.msra.mxu0 %v157_v41  ;;  %993 = vmatpush3.msra.mxu1 %v189_v42  ;;  %v185_v59 = vld [vmem:[%s1701_s1 + $0x530] sm:$0xff]  ;;  %v168_v60 = vld [vmem:[%s1701_s1 + $0x4a8] sm:$0xff]  ;;  %v167_v1 = vld [vmem:[%s1701_s1 + $0x4a0] sm:$0xff] }
  0x54   :  { %959 = vmatprep.subr.mxu0 %v172_v43  ;;  %994 = vmatprep.subr.mxu1 %v204_v44  ;;  %v200_v61 = vld [vmem:[%s1701_s1 + $0x5a8] sm:$0xff]  ;;  %v17_v62 = vld [vmem:[%s1700_s0 + $0x10] sm:$0xff]  ;;  %v199_v2 = vld [vmem:[%s1701_s1 + $0x5a0] sm:$0xff] }
  0x55   :  { %960 = vmatpush3.msra.mxu0 %v156_v45  ;;  %995 = vmatpush3.msra.mxu1 %v188_v46  ;;  %v152_v63 = vld [vmem:[%s1701_s1 + $0x428] sm:$0xff]  ;;  %v151_v3 = vld [vmem:[%s1701_s1 + $0x420] sm:$0xff]  ;;  %v260_v5 = vcombine.high %v17_v62, %v17_v62  ;;  %v166_v6 = vld [vmem:[%s1701_s1 + $0x498] sm:$0xff]  ;;  %v267_v12 = vrot.slane %v17_v62, %v1224_v51 }
  0x56   :  { %961 = vmatprep.subr.mxu0 %v171_v47  ;;  %996 = vmatprep.subr.mxu1 %v203_v48  ;;  %v184_v0 = vld [vmem:[%s1701_s1 + $0x528] sm:$0xff]  ;;  %v183_v4 = vld [vmem:[%s1701_s1 + $0x520] sm:$0xff]  ;;  %v198_v7 = vld [vmem:[%s1701_s1 + $0x598] sm:$0xff] }
  0x57   :  { %962 = vmatpush3.msra.mxu0 %v155_v49  ;;  %997 = vmatpush3.msra.mxu1 %v187_v50  ;;  %v150_v8 = vld [vmem:[%s1701_s1 + $0x418] sm:$0xff]  ;;  %v165_v10 = vld [vmem:[%s1701_s1 + $0x490] sm:$0xff]  ;;  %v274_v15 = vrot.slane %v260_v5, %v1224_v51  ;;  %v164_v16 = vld [vmem:[%s1701_s1 + $0x488] sm:$0xff]  ;;  %v275_v21 = vcombine.high %v267_v12, %v267_v12 }
  0x58   :  { %963 = vmatprep.subr.mxu0 %v170_v52  ;;  %998 = vmatprep.subr.mxu1 %v202_v53  ;;  %v182_v9 = vld [vmem:[%s1701_s1 + $0x518] sm:$0xff]  ;;  %v197_v11 = vld [vmem:[%s1701_s1 + $0x590] sm:$0xff]  ;;  %v196_v17 = vld [vmem:[%s1701_s1 + $0x588] sm:$0xff] }
  0x59   :  { %964 = vmatpush3.msra.mxu0 %v154_v54  ;;  %999 = vmatpush3.msra.mxu1 %v186_v55  ;;  %v149_v13 = vld [vmem:[%s1701_s1 + $0x410] sm:$0xff]  ;;  %v148_v18 = vld [vmem:[%s1701_s1 + $0x408] sm:$0xff]  ;;  %v163_v19 = vld [vmem:[%s1701_s1 + $0x480] sm:$0xff]  ;;  %v276_v23 = vcombine.high %v274_v15, %v274_v15 }
  0x5a   :  { %965 = vmatprep.subr.mxu0 %v169_v56  ;;  %1000 = vmatprep.subr.mxu1 %v201_v57  ;;  %v181_v14 = vld [vmem:[%s1701_s1 + $0x510] sm:$0xff]  ;;  %v180_v51 = vld [vmem:[%s1701_s1 + $0x508] sm:$0xff]  ;;  %v195_v20 = vld [vmem:[%s1701_s1 + $0x580] sm:$0xff] }
  0x5b   :  { %966 = vmatpush3.msra.mxu0 %v153_v58  ;;  %1001 = vmatpush3.msra.mxu1 %v185_v59  ;;  %v147_v22 = vld [vmem:[%s1701_s1 + $0x400] sm:$0xff]  ;;  %v214_v25 = vld [vmem:[%s1701_s1 + $0x618] sm:$0xff]  ;;  %v213_v27 = vld [vmem:[%s1701_s1 + $0x610] sm:$0xff] }
  0x5c   :  { %967 = vmatprep.subr.mxu0 %v168_v60  ;;  %1002 = vmatprep.subr.mxu1 %v200_v61  ;;  %v179_v24 = vld [vmem:[%s1701_s1 + $0x500] sm:$0xff]  ;;  %v212_v28 = vld [vmem:[%s1701_s1 + $0x608] sm:$0xff]  ;;  %v805_v30 = vld.sshfl [vmem:[%s1700_s0 + $0x18] sm:$0x3 pattern:$0x76325410] }
  0x5d   :  { %968 = vmatpush3.msra.mxu0 %v152_v63  ;;  %1003 = vmatpush3.msra.mxu1 %v184_v0  ;;  %v211_v29 = vld [vmem:[%s1701_s1 + $0x600] sm:$0xff]  ;;  %s1065_s0 = smov [#allocation2]  }
  0x5e   :  { %969 = vmatprep.subr.mxu0 %v167_v1  ;;  %1004 = vmatprep.subr.mxu1 %v199_v2  ;;  %v804_v36 = vld [vmem:[%s1702_s2] ss:$0 sm:$0xff]  ;;  %s796_s1 = sshll.u32 %s1065_s0, 4  ;;  %s797_s1 = int_to_ptr.vmem [resolvable:$true] %s796_s1 }
  0x5f   :  { %970 = vmatpush3.msra.mxu0 %v151_v3  ;;  %1005 = vmatpush3.msra.mxu1 %v183_v4  ;;  %s1040_s2 = scalar_lea.vmem %s797_s1, 32  ;;  %p1045_p1 = scmp.lt.s32.totalorder %s797_s1, %s797_s1 }
  0x60   :  { %971 = vmatprep.subr.mxu0 %v166_v6  ;;  %1006 = vmatprep.subr.mxu1 %v198_v7  ;;  %p1041_p0 = scmp.ne.s32.totalorder %s797_s1, %s1040_s2  ;;  %p1046_p2 = scmp.lt.s32.totalorder %s1040_s2, %s1040_s2 }
  0x61   :  { %972 = vmatpush3.msra.mxu0 %v150_v8  ;;  %1007 = vmatpush3.msra.mxu1 %v182_v9 }
  0x62   :  { %973 = vmatprep.subr.mxu0 %v165_v10  ;;  %1008 = vmatprep.subr.mxu1 %v197_v11  ;;  %p1047_p3 = por %p1046_p2, %p1045_p1 }
  0x63   :  { %974 = vmatpush3.msra.mxu0 %v149_v13  ;;  %1009 = vmatpush3.msra.mxu1 %v181_v14 }
  0x64   :  { %975 = vmatprep.subr.mxu0 %v164_v16  ;;  %1010 = vmatprep.subr.mxu1 %v196_v17  ;;  %p1048_p4 = pnand %p1047_p3, %p1041_p0 }
  0x65   :  { %976 = vmatpush3.msra.mxu0 %v148_v18  ;;  %1011 = vmatpush3.msra.mxu1 %v180_v51 }
  0x66   :  { %977 = vmatprep.subr.mxu0 %v163_v19  ;;  %1012 = vmatprep.subr.mxu1 %v195_v20 }
  0x67   :  { %978 = vmatpush3.msra.mxu0 %v147_v22  ;;  %643 = vmatprep.mubr.f32.mxu0 %v275_v21 }
  0x68   :  { %1013 = vmatpush3.msra.mxu1 %v179_v24  ;;  %713 = vmatprep.mubr.f32.mxu1 %v276_v23 }
  0x69   :  { %644 = vmatmul.mubr.f32.vlgmr.msra.gmra.mxu0 %v267_v12  ;;  %714 = vmatmul.mubr.f32.vlgmr.msra.gmra.mxu1 %v274_v15 }
  0x6a   :  { %1022 = vmatprep.subr.mxu0 %v1063_v26  ;;  %1030 = vmatprep.mubr.msk.f32.mxu0 %vm1064_vm0, %v1063_v26 }
  0x6b   :  { %1023 = vmatpush3.msra.mxu0 %v214_v25 }
  0x6c   :  { %1024 = vmatprep.subr.mxu0 %v1063_v26 }
  0x6d   :  { %1025 = vmatpush3.msra.mxu0 %v213_v27 }
  0x6e   :  { %1026 = vmatprep.subr.mxu0 %v1063_v26 }
  0x6f   :  { %1027 = vmatpush3.msra.mxu0 %v212_v28 }
  0x70   :  { %1028 = vmatprep.subr.mxu0 %v1063_v26 }
  0x71   :  { %1029 = vmatpush3.msra.mxu0 %v211_v29 }
  0x72   :  { %1031 = vmatmul.mubr.msk.f32.vlgmr.msra.gmra.mxu0 %vm296_vm1, %v805_v30 }
  0xe4   :  { %v839_v31 = vpop.f32.mrf.mxu0 }
  0xe6   :  { %v874_v32 = vpop.f32.mrf.mxu1  ;;  %v840_v33 = vpop.f32.mrf.mxu0 }
  0xe7   :  { %v841_v35 = vadd.f32 %v840_v33, %v839_v31 }
  0xe8   :  { %v875_v37 = vpop.f32.mrf.mxu1 }
  0xe9   :  { %v366_v40 = vadd.f32 %v841_v35, %v804_v36  ;;  %v876_v41 = vadd.f32 %v875_v37, %v874_v32 }
  0xeb   :  { %v436_v44 = vadd.f32 %v876_v41, %v366_v40 }
 0x106   :  { %v909_v34 = vpop.f32.mrf.mxu0 }
 0x108   :  { %v944_v38 = vpop.f32.mrf.mxu1  ;;  %v910_v39 = vpop.f32.mrf.mxu0 }
 0x109   :  { %v911_v42 = vadd.f32 %v910_v39, %v909_v34 }
 0x10a   :  { %v945_v43 = vpop.f32.mrf.mxu1 }
 0x10b   :  { %v506_v45 = vadd.f32 %v911_v42, %v436_v44  ;;  %v946_v46 = vadd.f32 %v945_v43, %v944_v38 }
 0x10d   :  { %v576_v52 = vadd.f32 %v946_v46, %v506_v45 }
 0x129   :  { %v979_v47 = vpop.f32.mrf.mxu0  ;;  %v1014_v48 = vpop.f32.mrf.mxu1 }
 0x12b   :  { %v980_v49 = vpop.f32.mrf.mxu0  ;;  %v1015_v50 = vpop.f32.mrf.mxu1 }
 0x12c   :  { %v981_v53 = vadd.f32 %v980_v49, %v979_v47  ;;  %v1016_v55 = vadd.f32 %v1015_v50, %v1014_v48 }
 0x12e   :  { %v646_v54 = vadd.f32 %v981_v53, %v576_v52 }
 0x130   :  { %v716_v56 = vadd.f32 %v1016_v55, %v646_v54 }
 0x132   :  { %v785_v57 = vpop.f32.mrf.mxu0 }
 0x133   :  { %v786_v58 = vadd.f32 %v785_v57, %v716_v56 }
 0x134   :  { %v1032_v59 = vpop.f32.mrf.mxu0 }
 0x135   :  { %789 = vst [vmem:[#allocation2] sm:$0x3] %v786_v58 }
 0x136   :  { %1051 = shalt.err (!%p1048_p4)
}
 0x137   :  { %799 = dma.vmem_to_hbm [thread:$0]  %s797_s1, 32, %s1703_s3, [#allocation3]  }
 0x138   :  { %1060 = dma.done.wait [#allocation3], 32  }
 0x139   :  { %1061 = vsyncadd [#allocation3], 4294967264 }
 0x13a   :  { %803 = vsyncpa [#allocation3], 1 }

// kernel: cnn_forward.4
= control target key start
LH: loop header
LB: loop body
LE: loop exit
PB: predicated region body
PF: predicated region fallthrough
CT: control target
= control target key end

     0   :  { %vm42_vm0 = vcmask 1041408   ;;  %v2848_v3 = vmov 0.0   ;;  %vm19_vm1 = vcmask 261120   ;;  %s2849_s25 = smov 32   ;;  %vm78_vm2 = vcmask 1043456   ;;  %s2850_s26 = smov 64   ;;  %s5701_s0 = inlined_call_operand.vmem [shape: f32[2,14,224], index: 0, kind: input, shape index: {}]   ;;  %s5702_s1 = inlined_call_operand.vmem [shape: f32[1440,224], index: 1, kind: input, shape index: {}]   ;;  %s5703_s2 = inlined_call_operand.vmem [shape: f32[1440,224], index: 2, kind: input, shape index: {}]   ;;  %s5704_s3 = inlined_call_operand.vmem [shape: f32[1,224], index: 3, kind: input, shape index: {}]   ;;  %s5705_s4 = inlined_call_operand.vmem [shape: f32[2,7,224], index: 4, kind: output, shape index: {}]  }
   0x1   :  { %v34_v0 = vld [vmem:[%s5701_s0] sm:$0xff]  ;;  %v36_v1 = vld [vmem:[%s5701_s0 + $0x10] sm:$0x3f]  ;;  %v2887_v2 = vld [vmem:[%s5701_s0 + $0x8] sm:$0xff]  ;;  %17 = vst [vmem:[#allocation2] sm:$0xff] %v2848_v3  ;;  %vm32_vm3 = vcmask 257024  }
   0x2   :  { %18 = vst [vmem:[#allocation2 + $0x8] sm:$0xff] %v2848_v3  ;;  %21 = vst [vmem:[#allocation2 + $0x18] sm:$0xff] %v2848_v3  ;;  %v43_v4 = vrot.slane %v34_v0, 6  ;;  %v45_v5 = vrot.slane %v36_v1, 6  ;;  %v44_v6 = vrot.slane %v2887_v2, 6  ;;  %v732_v9 = vld [vmem:[%s5702_s1 + $0xf8] sm:$0xff] }
   0x3   :  { %24 = vst [vmem:[#allocation2 + $0x30] sm:$0xff] %v2848_v3  ;;  %25 = vst [vmem:[#allocation2 + $0x38] sm:$0xff] %v2848_v3  ;;  %v37_v7 = vld [vmem:[%s5701_s0 + $0x18] sm:$0x3f]  ;;  %1073 = vmatprep.subr.mxu0 %v732_v9  ;;  %v731_v11 = vld [vmem:[%s5702_s1 + $0xf0] sm:$0xff]  ;;  %vm63_vm4 = vcmask 1047810  }
   0x4   :  { %27 = vst [vmem:[#allocation2 + $0x48] sm:$0xff] %v2848_v3  ;;  %30 = vst [vmem:[#allocation2 + $0x60] sm:$0xf] %v2848_v3  ;;  %v47_v8 = vrot.slane %v37_v7, 6  ;;  %49 = vrot.lane.b32.xlu0 %v43_v4, %s2849_s25  ;;  %v46_v10 = vsel %vm42_vm0, %v43_v4, %v45_v5  ;;  %v730_v12 = vld [vmem:[%s5702_s1 + $0xe8] sm:$0xff]  ;;  %v2766_v13 = vld [vmem:[%s5701_s0 + $0x20] sm:$0xff]  ;;  %1074 = vmatpush1.msra.mxu0 %v731_v11 }
   0x5   :  { %31 = vst [vmem:[#allocation2 + $0x68] sm:$0xf] %v2848_v3  ;;  %116 = vst [vmem:[#allocation3 + $0x10] sm:$0xff] %v2848_v3  ;;  %53 = vrot.lane.b32.xlu1 %v46_v10, %s2849_s25  ;;  %v729_v14 = vld [vmem:[%s5702_s1 + $0xe0] sm:$0xff]  ;;  %v728_v15 = vld [vmem:[%s5702_s1 + $0xd8] sm:$0xff]  ;;  %1075 = vmatprep.subr.mxu0 %v730_v12  ;;  %v79_v22 = vrot.slane %v2766_v13, 4 }
   0x6   :  { %118 = vst [vmem:[#allocation3 + $0x20] sm:$0xff] %v2848_v3  ;;  %120 = vst [vmem:[#allocation3 + $0x30] sm:$0xff] %v2848_v3  ;;  %v48_v16 = vsel %vm42_vm0, %v44_v6, %v47_v8  ;;  %v2768_v17 = vld [vmem:[%s5701_s0 + $0x30] sm:$0x3f]  ;;  %v2767_v18 = vld [vmem:[%s5701_s0 + $0x28] sm:$0xff]  ;;  %1076 = vmatpush1.msra.mxu0 %v729_v14  ;;  %vm66_vm5 = vcmask 1047808  }
   0x7   :  { %126 = vst [vmem:[#allocation3 + $0x60] sm:$0xff] %v2848_v3  ;;  %127 = vst [vmem:[#allocation3 + $0x68] sm:$0xff] %v2848_v3  ;;  %v727_v19 = vld [vmem:[%s5702_s1 + $0xd0] sm:$0xff]  ;;  %v2769_v20 = vld [vmem:[%s5701_s0 + $0x38] sm:$0x3f]  ;;  %1077 = vmatprep.subr.mxu0 %v728_v15  ;;  %v81_v24 = vrot.slane %v2768_v17, 4 }
   0x8   :  { %128 = vst [vmem:[#allocation3 + $0x70] sm:$0xff] %v2848_v3  ;;  %129 = vst [vmem:[#allocation3 + $0x78] sm:$0xff] %v2848_v3  ;;  %v726_v21 = vld [vmem:[%s5702_s1 + $0xc8] sm:$0xff]  ;;  %51 = vrot.lane.b32.xlu0 %v44_v6, %s2849_s25  ;;  %v725_v23 = vld [vmem:[%s5702_s1 + $0xc0] sm:$0xff]  ;;  %v80_v25 = vrot.slane %v2767_v18, 4  ;;  %1078 = vmatpush1.msra.mxu0 %v727_v19  ;;  %v83_v27 = vrot.slane %v2769_v20, 4 }
   0x9   :  { %130 = vst [vmem:[#allocation3 + $0x80] sm:$0xff] %v2848_v3  ;;  %131 = vst [vmem:[#allocation3 + $0x88] sm:$0xff] %v2848_v3  ;;  %55 = vrot.lane.b32.xlu1 %v48_v16, %s2849_s25  ;;  %v724_v26 = vld [vmem:[%s5702_s1 + $0xb8] sm:$0xff]  ;;  %1079 = vmatprep.subr.mxu0 %v726_v21  ;;  %v723_v28 = vld [vmem:[%s5702_s1 + $0xb0] sm:$0xff]  ;;  %v82_v31 = vsel %vm78_vm2, %v79_v22, %v81_v24  ;;  %vm173_vm6 = vcmask 259072   ;;  %vm106_vm7 = vcmask 1047812  }
   0xa   :  { %132 = vst [vmem:[#allocation3 + $0x90] sm:$0xff] %v2848_v3  ;;  %133 = vst [vmem:[#allocation3 + $0x98] sm:$0xff] %v2848_v3  ;;  %1080 = vmatpush1.msra.mxu0 %v725_v23  ;;  %v722_v29 = vld [vmem:[%s5702_s1 + $0xa8] sm:$0xff]  ;;  %v721_v30 = vld [vmem:[%s5702_s1 + $0xa0] sm:$0xff]  ;;  %v84_v33 = vsel %vm78_vm2, %v80_v25, %v83_v27  ;;  %vm187_vm8 = vcmask 1046528   ;;  %vm111_vm9 = vcmask 1041664  }
   0xb   :  { %134 = vst [vmem:[#allocation3 + $0xa0] sm:$0xff] %v2848_v3  ;;  %135 = vst [vmem:[#allocation3 + $0xa8] sm:$0xff] %v2848_v3  ;;  %1081 = vmatprep.subr.mxu0 %v724_v26  ;;  %v720_v32 = vld [vmem:[%s5702_s1 + $0x98] sm:$0xff]  ;;  %v719_v34 = vld [vmem:[%s5702_s1 + $0x90] sm:$0xff]  ;;  %vm240_vm10 = vcmask 1045504   ;;  %vm300_vm11 = vcmask 1044480  }
   0xc   :  { %136 = vst [vmem:[#allocation3 + $0xb0] sm:$0xff] %v2848_v3  ;;  %140 = vst [vmem:[#allocation3 + $0xd0] sm:$0xff] %v2848_v3  ;;  %85 = vrot.lane.b32.xlu0 %v79_v22, %s2849_s25  ;;  %1082 = vmatpush1.msra.mxu0 %v723_v28  ;;  %v718_v35 = vld [vmem:[%s5702_s1 + $0x88] sm:$0xff]  ;;  %v717_v36 = vld [vmem:[%s5702_s1 + $0x80] sm:$0xff]  ;;  %s2851_s13 = smov 96   ;;  %vm564_vm12 = vcmask 1042432  }
   0xd   :  { %142 = vst [vmem:[#allocation3 + $0xe0] sm:$0xff] %v2848_v3  ;;  %144 = vst [vmem:[#allocation3 + $0xf0] sm:$0xff] %v2848_v3  ;;  %87 = vrot.lane.b32.xlu1 %v80_v25, %s2849_s25  ;;  %1083 = vmatprep.subr.mxu0 %v722_v29  ;;  %v716_v37 = vld [vmem:[%s5702_s1 + $0x78] sm:$0xff]  ;;  %v715_v38 = vld [vmem:[%s5702_s1 + $0x70] sm:$0xff]  ;;  %vm223_vm13 = vcmask 1045760   ;;  %vm221_vm14 = vcmask 523264  }
   0xe   :  { %150 = vst [vmem:[#allocation3 + $0x120] sm:$0xff] %v2848_v3  ;;  %151 = vst [vmem:[#allocation3 + $0x128] sm:$0xff] %v2848_v3  ;;  %1084 = vmatpush1.msra.mxu0 %v721_v30  ;;  %v714_v39 = vld [vmem:[%s5702_s1 + $0x68] sm:$0xff]  ;;  %v713_v40 = vld [vmem:[%s5702_s1 + $0x60] sm:$0xff]  ;;  %vm275_vm15 = vcmask 785408  }
   0xf   :  { %152 = vst [vmem:[#allocation3 + $0x130] sm:$0xff] %v2848_v3  ;;  %153 = vst [vmem:[#allocation3 + $0x138] sm:$0xff] %v2848_v3  ;;  %1085 = vmatprep.subr.mxu0 %v720_v32  ;;  %v712_v41 = vld [vmem:[%s5702_s1 + $0x58] sm:$0xff]  ;;  %v711_v42 = vld [vmem:[%s5702_s1 + $0x50] sm:$0xff] }
  0x10   :  { %154 = vst [vmem:[#allocation3 + $0x140] sm:$0xff] %v2848_v3  ;;  %155 = vst [vmem:[#allocation3 + $0x148] sm:$0xff] %v2848_v3  ;;  %89 = vrot.lane.b32.xlu0 %v82_v31, %s2849_s25  ;;  %1086 = vmatpush1.msra.mxu0 %v719_v34  ;;  %v710_v43 = vld [vmem:[%s5702_s1 + $0x48] sm:$0xff]  ;;  %v709_v44 = vld [vmem:[%s5702_s1 + $0x40] sm:$0xff] }
  0x11   :  { %156 = vst [vmem:[#allocation3 + $0x150] sm:$0xff] %v2848_v3  ;;  %157 = vst [vmem:[#allocation3 + $0x158] sm:$0xff] %v2848_v3  ;;  %91 = vrot.lane.b32.xlu1 %v84_v33, %s2849_s25  ;;  %1087 = vmatprep.subr.mxu0 %v718_v35  ;;  %v708_v45 = vld [vmem:[%s5702_s1 + $0x38] sm:$0xff]  ;;  %v707_v46 = vld [vmem:[%s5702_s1 + $0x30] sm:$0xff] }
  0x12   :  { %158 = vst [vmem:[#allocation3 + $0x160] sm:$0xff] %v2848_v3  ;;  %159 = vst [vmem:[#allocation3 + $0x168] sm:$0xff] %v2848_v3  ;;  %1088 = vmatpush1.msra.mxu0 %v717_v36  ;;  %v706_v47 = vld [vmem:[%s5702_s1 + $0x28] sm:$0xff]  ;;  %v705_v48 = vld [vmem:[%s5702_s1 + $0x20] sm:$0xff] }
  0x13   :  { %160 = vst [vmem:[#allocation3 + $0x170] sm:$0xff] %v2848_v3  ;;  %20 = vst.msk [vmem:[#allocation2 + $0x10] sm:$0xff] %vm19_vm1, %v2848_v3  ;;  %1089 = vmatprep.subr.mxu0 %v716_v37  ;;  %v704_v49 = vld [vmem:[%s5702_s1 + $0x18] sm:$0xff]  ;;  %v703_v50 = vld [vmem:[%s5702_s1 + $0x10] sm:$0xff] }
  0x14   :  { %23 = vst.msk [vmem:[#allocation2 + $0x28] sm:$0xff] %vm19_vm1, %v2848_v3  ;;  %26 = vst.msk [vmem:[#allocation2 + $0x40] sm:$0xff] %vm19_vm1, %v2848_v3  ;;  %93 = vrot.lane.b32.xlu0 %v81_v24, %s2849_s25  ;;  %1090 = vmatpush1.msra.mxu0 %v715_v38  ;;  %v702_v51 = vld [vmem:[%s5702_s1 + $0x8] sm:$0xff]  ;;  %v701_v52 = vld [vmem:[%s5702_s1] sm:$0xff] }
  0x15   :  { %29 = vst.msk [vmem:[#allocation2 + $0x58] sm:$0xff] %vm19_vm1, %v2848_v3  ;;  %125 = vst.msk [vmem:[#allocation3 + $0x58] sm:$0xff] %vm19_vm1, %v2848_v3  ;;  %95 = vrot.lane.b32.xlu1 %v83_v27, %s2849_s25  ;;  %1091 = vmatprep.subr.mxu0 %v714_v39  ;;  %v764_v53 = vld [vmem:[%s5702_s1 + $0x1f8] sm:$0xff]  ;;  %v763_v54 = vld [vmem:[%s5702_s1 + $0x1f0] sm:$0xff] }
  0x16   :  { %137 = vst.msk [vmem:[#allocation3 + $0xb8] sm:$0xff] %vm19_vm1, %v2848_v3  ;;  %149 = vst.msk [vmem:[#allocation3 + $0x118] sm:$0xff] %vm19_vm1, %v2848_v3  ;;  %1092 = vmatpush1.msra.mxu0 %v713_v40  ;;  %v762_v55 = vld [vmem:[%s5702_s1 + $0x1e8] sm:$0xff]  ;;  %v761_v56 = vld [vmem:[%s5702_s1 + $0x1e0] sm:$0xff] }
  0x17   :  { %161 = vst.msk [vmem:[#allocation3 + $0x178] sm:$0xff] %vm19_vm1, %v2848_v3  ;;  %1093 = vmatprep.subr.mxu0 %v712_v41  ;;  %v760_v57 = vld [vmem:[%s5702_s1 + $0x1d8] sm:$0xff]  ;;  %v759_v58 = vld [vmem:[%s5702_s1 + $0x1d0] sm:$0xff]  ;;  %v758_v59 = vld [vmem:[%s5702_s1 + $0x1c8] sm:$0xff] }
  0x18   :  { %1094 = vmatpush1.msra.mxu0 %v711_v42  ;;  %33 = vst.msk [vmem:[#allocation2 + $0x70] sm:$0xf] %vm32_vm3, %v2848_v3  ;;  %v757_v60 = vld [vmem:[%s5702_s1 + $0x1c0] sm:$0xff]  ;;  %v756_v61 = vld [vmem:[%s5702_s1 + $0x1b8] sm:$0xff]  ;;  %v755_v62 = vld [vmem:[%s5702_s1 + $0x1b0] sm:$0xff]  ;;  %vm280_vm3 = vcmask 783360  }
  0x19   :  { %1095 = vmatprep.subr.mxu0 %v710_v43  ;;  %v754_v63 = vld [vmem:[%s5702_s1 + $0x1a8] sm:$0xff]  ;;  %v753_v0 = vld [vmem:[%s5702_s1 + $0x1a0] sm:$0xff]  ;;  %v752_v1 = vld [vmem:[%s5702_s1 + $0x198] sm:$0xff] }
  0x1a   :  { %1096 = vmatpush1.msra.mxu0 %v709_v44  ;;  %v751_v2 = vld [vmem:[%s5702_s1 + $0x190] sm:$0xff]  ;;  %v750_v3 = vld [vmem:[%s5702_s1 + $0x188] sm:$0xff]  ;;  %v749_v4 = vld [vmem:[%s5702_s1 + $0x180] sm:$0xff] }
  0x1b   :  { %1097 = vmatprep.subr.mxu0 %v708_v45  ;;  %v748_v5 = vld [vmem:[%s5702_s1 + $0x178] sm:$0xff]  ;;  %v747_v6 = vld [vmem:[%s5702_s1 + $0x170] sm:$0xff]  ;;  %v746_v7 = vld [vmem:[%s5702_s1 + $0x168] sm:$0xff] }
  0x1c   :  { %1098 = vmatpush1.msra.mxu0 %v707_v46  ;;  %v745_v8 = vld [vmem:[%s5702_s1 + $0x160] sm:$0xff]  ;;  %v744_v9 = vld [vmem:[%s5702_s1 + $0x158] sm:$0xff]  ;;  %v743_v10 = vld [vmem:[%s5702_s1 + $0x150] sm:$0xff] }
  0x1d   :  { %1099 = vmatprep.subr.mxu0 %v706_v47  ;;  %v742_v11 = vld [vmem:[%s5702_s1 + $0x148] sm:$0xff]  ;;  %v741_v12 = vld [vmem:[%s5702_s1 + $0x140] sm:$0xff]  ;;  %v740_v13 = vld [vmem:[%s5702_s1 + $0x138] sm:$0xff] }
  0x1e   :  { %1100 = vmatpush1.msra.mxu0 %v705_v48  ;;  %v739_v14 = vld [vmem:[%s5702_s1 + $0x130] sm:$0xff]  ;;  %v738_v15 = vld [vmem:[%s5702_s1 + $0x128] sm:$0xff]  ;;  %v737_v16 = vld [vmem:[%s5702_s1 + $0x120] sm:$0xff] }
  0x1f   :  { %1101 = vmatprep.subr.mxu0 %v704_v49  ;;  %v736_v17 = vld [vmem:[%s5702_s1 + $0x118] sm:$0xff]  ;;  %v735_v18 = vld [vmem:[%s5702_s1 + $0x110] sm:$0xff]  ;;  %v734_v19 = vld [vmem:[%s5702_s1 + $0x108] sm:$0xff] }
  0x20   :  { %1102 = vmatpush1.msra.mxu0 %v703_v50  ;;  %v733_v20 = vld [vmem:[%s5702_s1 + $0x100] sm:$0xff]  ;;  %v796_v21 = vld [vmem:[%s5702_s1 + $0x2f8] sm:$0xff]  ;;  %v795_v22 = vld [vmem:[%s5702_s1 + $0x2f0] sm:$0xff] }
  0x21   :  { %1103 = vmatprep.subr.mxu0 %v702_v51  ;;  %1162 = vmatprep.subr.mxu1 %v796_v21  ;;  %v794_v23 = vld [vmem:[%s5702_s1 + $0x2e8] sm:$0xff]  ;;  %v793_v24 = vld [vmem:[%s5702_s1 + $0x2e0] sm:$0xff]  ;;  %v792_v25 = vld [vmem:[%s5702_s1 + $0x2d8] sm:$0xff] }
  0x22   :  { %1104 = vmatpush1.msra.mxu0 %v701_v52  ;;  %1163 = vmatpush1.msra.mxu1 %v795_v22  ;;  %v791_v26 = vld [vmem:[%s5702_s1 + $0x2d0] sm:$0xff]  ;;  %v790_v27 = vld [vmem:[%s5702_s1 + $0x2c8] sm:$0xff]  ;;  %v789_v28 = vld [vmem:[%s5702_s1 + $0x2c0] sm:$0xff] }
  0x23   :  { %1105 = vmatprep.subr.mxu0 %v764_v53  ;;  %1164 = vmatprep.subr.mxu1 %v794_v23  ;;  %v788_v29 = vld [vmem:[%s5702_s1 + $0x2b8] sm:$0xff]  ;;  %v787_v30 = vld [vmem:[%s5702_s1 + $0x2b0] sm:$0xff]  ;;  %v786_v31 = vld [vmem:[%s5702_s1 + $0x2a8] sm:$0xff] }
  0x24   :  { %1106 = vmatpush2.msra.mxu0 %v763_v54  ;;  %1165 = vmatpush1.msra.mxu1 %v793_v24  ;;  %v785_v32 = vld [vmem:[%s5702_s1 + $0x2a0] sm:$0xff]  ;;  %v784_v33 = vld [vmem:[%s5702_s1 + $0x298] sm:$0xff]  ;;  %v783_v34 = vld [vmem:[%s5702_s1 + $0x290] sm:$0xff] }
  0x25   :  { %1107 = vmatprep.subr.mxu0 %v762_v55  ;;  %1166 = vmatprep.subr.mxu1 %v792_v25  ;;  %v782_v35 = vld [vmem:[%s5702_s1 + $0x288] sm:$0xff]  ;;  %v781_v36 = vld [vmem:[%s5702_s1 + $0x280] sm:$0xff]  ;;  %v780_v37 = vld [vmem:[%s5702_s1 + $0x278] sm:$0xff] }
  0x26   :  { %1108 = vmatpush2.msra.mxu0 %v761_v56  ;;  %1167 = vmatpush1.msra.mxu1 %v791_v26  ;;  %v779_v38 = vld [vmem:[%s5702_s1 + $0x270] sm:$0xff]  ;;  %v860_v39 = vld [vmem:[%s5702_s1 + $0x4f8] sm:$0xff]  ;;  %v778_v40 = vld [vmem:[%s5702_s1 + $0x268] sm:$0xff] }
  0x27   :  { %1109 = vmatprep.subr.mxu0 %v760_v57  ;;  %1168 = vmatprep.subr.mxu1 %v790_v27  ;;  %v777_v41 = vld [vmem:[%s5702_s1 + $0x260] sm:$0xff]  ;;  %v776_v42 = vld [vmem:[%s5702_s1 + $0x258] sm:$0xff]  ;;  %v775_v43 = vld [vmem:[%s5702_s1 + $0x250] sm:$0xff] }
  0x28   :  { %1110 = vmatpush2.msra.mxu0 %v759_v58  ;;  %1169 = vmatpush1.msra.mxu1 %v789_v28  ;;  %v774_v44 = vld [vmem:[%s5702_s1 + $0x248] sm:$0xff]  ;;  %v773_v45 = vld [vmem:[%s5702_s1 + $0x240] sm:$0xff]  ;;  %v772_v46 = vld [vmem:[%s5702_s1 + $0x238] sm:$0xff] }
  0x29   :  { %1111 = vmatprep.subr.mxu0 %v758_v59  ;;  %1170 = vmatprep.subr.mxu1 %v788_v29  ;;  %v771_v47 = vld [vmem:[%s5702_s1 + $0x230] sm:$0xff]  ;;  %v770_v48 = vld [vmem:[%s5702_s1 + $0x228] sm:$0xff]  ;;  %v769_v49 = vld [vmem:[%s5702_s1 + $0x220] sm:$0xff] }
  0x2a   :  { %1112 = vmatpush2.msra.mxu0 %v757_v60  ;;  %1171 = vmatpush1.msra.mxu1 %v787_v30  ;;  %v768_v50 = vld [vmem:[%s5702_s1 + $0x218] sm:$0xff]  ;;  %v767_v51 = vld [vmem:[%s5702_s1 + $0x210] sm:$0xff]  ;;  %v766_v52 = vld [vmem:[%s5702_s1 + $0x208] sm:$0xff] }
  0x2b   :  { %1113 = vmatprep.subr.mxu0 %v756_v61  ;;  %1172 = vmatprep.subr.mxu1 %v786_v31  ;;  %v765_v53 = vld [vmem:[%s5702_s1 + $0x200] sm:$0xff]  ;;  %v828_v54 = vld [vmem:[%s5702_s1 + $0x3f8] sm:$0xff]  ;;  %v827_v55 = vld [vmem:[%s5702_s1 + $0x3f0] sm:$0xff] }
  0x2c   :  { %1114 = vmatpush2.msra.mxu0 %v755_v62  ;;  %1173 = vmatpush1.msra.mxu1 %v785_v32  ;;  %v826_v56 = vld [vmem:[%s5702_s1 + $0x3e8] sm:$0xff]  ;;  %v164_v57 = vld [vmem:[#allocation2 + $0x10] sm:$0xff]  ;;  %v825_v58 = vld [vmem:[%s5702_s1 + $0x3e0] sm:$0xff] }
  0x2d   :  { %1115 = vmatprep.subr.mxu0 %v754_v63  ;;  %1174 = vmatprep.subr.mxu1 %v784_v33  ;;  %170 = vst.msk [vmem:[#allocation3 + $0x10] sm:$0xff] %vm19_vm1, %v164_v57  ;;  %v824_v59 = vld [vmem:[%s5702_s1 + $0x3d8] sm:$0xff]  ;;  %v823_v60 = vld [vmem:[%s5702_s1 + $0x3d0] sm:$0xff]  ;;  %v822_v61 = vld [vmem:[%s5702_s1 + $0x3c8] sm:$0xff] }
  0x2e   :  { %1116 = vmatpush2.msra.mxu0 %v753_v0  ;;  %1175 = vmatpush1.msra.mxu1 %v783_v34  ;;  %v821_v62 = vld [vmem:[%s5702_s1 + $0x3c0] sm:$0xff]  ;;  %v820_v63 = vld [vmem:[%s5702_s1 + $0x3b8] sm:$0xff]  ;;  %v819_v0 = vld [vmem:[%s5702_s1 + $0x3b0] sm:$0xff] }
  0x2f   :  { %1117 = vmatprep.subr.mxu0 %v752_v1  ;;  %1176 = vmatprep.subr.mxu1 %v782_v35  ;;  %v818_v1 = vld [vmem:[%s5702_s1 + $0x3a8] sm:$0xff]  ;;  %v348_v21 = vld [vmem:[#allocation2 + $0x10] sm:$0xf0]  ;;  %v354_v22 = vld [vmem:[#allocation2 + $0x40] sm:$0x3] }
  0x30   :  { %1118 = vmatpush2.msra.mxu0 %v751_v2  ;;  %1177 = vmatpush1.msra.mxu1 %v781_v36  ;;  %v817_v2 = vld [vmem:[%s5702_s1 + $0x3a0] sm:$0xff]  ;;  %v370_v23 = vrot.slane %v348_v21, 4  ;;  %v377_v24 = vrot.slane %v354_v22, 4  ;;  %v616_v26 = vld [vmem:[#allocation2 + $0x70] sm:$0xf]  ;;  %v806_v30 = vld [vmem:[%s5702_s1 + $0x348] sm:$0xff] }
  0x31   :  { %1119 = vmatprep.subr.mxu0 %v750_v3  ;;  %1178 = vmatprep.subr.mxu1 %v780_v37  ;;  %v816_v3 = vld [vmem:[%s5702_s1 + $0x398] sm:$0xff]  ;;  %v610_v25 = vld [vmem:[#allocation2 + $0x40] sm:$0xc0]  ;;  %v639_v29 = vrot.slane %v616_v26, 6  ;;  %v803_v37 = vld [vmem:[%s5702_s1 + $0x330] sm:$0xff] }
  0x32   :  { %1120 = vmatpush2.msra.mxu0 %v749_v4  ;;  %1179 = vmatpush1.msra.mxu1 %v779_v38  ;;  %v815_v4 = vld [vmem:[%s5702_s1 + $0x390] sm:$0xff]  ;;  %v632_v28 = vrot.slane %v610_v25, 6  ;;  %v805_v31 = vld [vmem:[%s5702_s1 + $0x340] sm:$0xff]  ;;  %v804_v36 = vld [vmem:[%s5702_s1 + $0x338] sm:$0xff] }
  0x33   :  { %1121 = vmatprep.subr.mxu0 %v748_v5  ;;  %1180 = vmatprep.subr.mxu1 %v778_v40  ;;  %v814_v5 = vld [vmem:[%s5702_s1 + $0x388] sm:$0xff]  ;;  %v3353_v38 = vld [vmem:[#allocation2 + $0x30] sm:$0x3]  ;;  %v857_v22 = vld [vmem:[%s5702_s1 + $0x4e0] sm:$0xff] }
  0x34   :  { %1122 = vmatpush2.msra.mxu0 %v747_v6  ;;  %1181 = vmatpush1.msra.mxu1 %v777_v41  ;;  %v813_v6 = vld [vmem:[%s5702_s1 + $0x380] sm:$0xff]  ;;  %v856_v26 = vld [vmem:[%s5702_s1 + $0x4d8] sm:$0xff] }
  0x35   :  { %1123 = vmatprep.subr.mxu0 %v746_v7  ;;  %1182 = vmatprep.subr.mxu1 %v776_v42  ;;  %v812_v7 = vld [vmem:[%s5702_s1 + $0x378] sm:$0xff] }
  0x36   :  { %1124 = vmatpush2.msra.mxu0 %v745_v8  ;;  %1183 = vmatpush1.msra.mxu1 %v775_v43  ;;  %v811_v8 = vld [vmem:[%s5702_s1 + $0x370] sm:$0xff] }
  0x37   :  { %1125 = vmatprep.subr.mxu0 %v744_v9  ;;  %1184 = vmatprep.subr.mxu1 %v774_v44  ;;  %v810_v9 = vld [vmem:[%s5702_s1 + $0x368] sm:$0xff] }
  0x38   :  { %1126 = vmatpush2.msra.mxu0 %v743_v10  ;;  %1185 = vmatpush1.msra.mxu1 %v773_v45  ;;  %v809_v10 = vld [vmem:[%s5702_s1 + $0x360] sm:$0xff]  ;;  %v802_v44 = vld [vmem:[%s5702_s1 + $0x328] sm:$0xff] }
  0x39   :  { %1127 = vmatprep.subr.mxu0 %v742_v11  ;;  %1186 = vmatprep.subr.mxu1 %v772_v46  ;;  %v801_v45 = vld [vmem:[%s5702_s1 + $0x320] sm:$0xff] }
  0x3a   :  { %1128 = vmatpush2.msra.mxu0 %v741_v12  ;;  %1187 = vmatpush1.msra.mxu1 %v771_v47  ;;  %v3324_v12 = vld [vmem:[#allocation2 + $0x28] sm:$0xff] }
  0x3b   :  { %1129 = vmatprep.subr.mxu0 %v740_v13  ;;  %1188 = vmatprep.subr.mxu1 %v770_v48  ;;  %v3326_v13 = vld [vmem:[#allocation2 + $0x58] sm:$0xff] }
  0x3c   :  { %1130 = vmatpush2.msra.mxu0 %v739_v14  ;;  %1189 = vmatpush1.msra.mxu1 %v769_v49  ;;  %v808_v14 = vld [vmem:[%s5702_s1 + $0x358] sm:$0xff] }
  0x3d   :  { %1131 = vmatprep.subr.mxu0 %v738_v15  ;;  %1190 = vmatprep.subr.mxu1 %v768_v50  ;;  %v373_v50 = vrot.slane %v3353_v38, 4  ;;  %v854_v38 = vld [vmem:[%s5702_s1 + $0x4c8] sm:$0xff] }
  0x3e   :  { %1132 = vmatpush2.msra.mxu0 %v737_v16  ;;  %1191 = vmatpush1.msra.mxu1 %v767_v51  ;;  %v807_v16 = vld [vmem:[%s5702_s1 + $0x350] sm:$0xff] }
  0x3f   :  { %1133 = vmatprep.subr.mxu0 %v736_v17  ;;  %1192 = vmatprep.subr.mxu1 %v766_v52  ;;  %v371_v17 = vrot.slane %v3324_v12, 4 }
  0x40   :  { %1134 = vmatpush2.msra.mxu0 %v735_v18  ;;  %1193 = vmatpush1.msra.mxu1 %v765_v53  ;;  %v633_v18 = vrot.slane %v3326_v13, 6 }
  0x41   :  { %1135 = vmatprep.subr.mxu0 %v734_v19  ;;  %1194 = vmatprep.subr.mxu1 %v828_v54  ;;  %v353_v19 = vld [vmem:[#allocation2 + $0x38] sm:$0x3]  ;;  %v372_v34 = vsel %vm78_vm2, %v370_v23, %v371_v17  ;;  %v378_v35 = vsel %vm78_vm2, %v371_v17, %v377_v24 }
  0x42   :  { %1136 = vmatpush2.msra.mxu0 %v733_v20  ;;  %1195 = vmatpush2.msra.mxu1 %v827_v55  ;;  %v167_v20 = vld [vmem:[#allocation2 + $0x28] sm:$0x3f]  ;;  %387 = vst.msk [vmem:[#allocation3 + $0x58] sm:$0xff] %vm19_vm1, %v372_v34  ;;  %v634_v41 = vsel %vm42_vm0, %v632_v28, %v633_v18  ;;  %v640_v42 = vsel %vm42_vm0, %v633_v18, %v639_v29 }
  0x43   :  { %1251 = vmatprep.subr.mxu0 %v860_v39  ;;  %1196 = vmatprep.subr.mxu1 %v826_v56  ;;  %174 = vst.msk [vmem:[#allocation3 + $0x70] sm:$0x3f] %vm173_vm6, %v167_v20  ;;  %v375_v39 = vrot.slane %v353_v19, 4  ;;  %390 = vst.msk [vmem:[#allocation3 + $0xb8] sm:$0x3f] %vm173_vm6, %v378_v35 }
  0x44   :  { %1197 = vmatpush2.msra.mxu1 %v825_v58  ;;  %649 = vst.msk [vmem:[#allocation3 + $0x118] sm:$0xff] %vm19_vm1, %v634_v41 }
  0x45   :  { %1198 = vmatprep.subr.mxu1 %v824_v59  ;;  %652 = vst.msk [vmem:[#allocation3 + $0x178] sm:$0x3f] %vm173_vm6, %v640_v42 }
  0x46   :  { %1199 = vmatpush2.msra.mxu1 %v823_v60 }
  0x47   :  { %1200 = vmatprep.subr.mxu1 %v822_v61  ;;  %v859_v61 = vld [vmem:[%s5702_s1 + $0x4f0] sm:$0xff] }
  0x48   :  { %1201 = vmatpush2.msra.mxu1 %v821_v62  ;;  %v800_v62 = vld [vmem:[%s5702_s1 + $0x318] sm:$0xff] }
  0x49   :  { %1202 = vmatprep.subr.mxu1 %v820_v63 }
  0x4a   :  { %1203 = vmatpush2.msra.mxu1 %v819_v0 }
  0x4b   :  { %1204 = vmatprep.subr.mxu1 %v818_v1  ;;  %v3388_v1 = vld [vmem:[#allocation2 + $0x10] sm:$0xfc] }
  0x4c   :  { %1205 = vmatpush2.msra.mxu1 %v817_v2  ;;  %v858_v2 = vld [vmem:[%s5702_s1 + $0x4e8] sm:$0xff] }
  0x4d   :  { %1206 = vmatprep.subr.mxu1 %v816_v3  ;;  %v393_v3 = vld [vmem:[#allocation2 + $0x40] sm:$0xfc] }
  0x4e   :  { %1207 = vmatpush2.msra.mxu1 %v815_v4  ;;  %v410_v4 = vrot.slane %v3326_v13, 2 }
  0x4f   :  { %1208 = vmatprep.subr.mxu1 %v814_v5  ;;  %v799_v5 = vld [vmem:[%s5702_s1 + $0x310] sm:$0xff] }
  0x50   :  { %1209 = vmatpush2.msra.mxu1 %v813_v6  ;;  %423 = vst.msk [vmem:[#allocation3 + $0x130] sm:$0x3f] %vm173_vm6, %v410_v4  ;;  %vm277_vm6 = vcmask 1046016  }
  0x51   :  { %1210 = vmatprep.subr.mxu1 %v812_v7 }
  0x52   :  { %1211 = vmatpush2.msra.mxu1 %v811_v8 }
  0x53   :  { %1212 = vmatprep.subr.mxu1 %v810_v9 }
  0x54   :  { %1213 = vmatpush2.msra.mxu1 %v809_v10 }
  0x55   :  { %1214 = vmatprep.subr.mxu1 %v808_v14 }
  0x56   :  { %1215 = vmatpush2.msra.mxu1 %v807_v16 }
  0x57   :  { %1216 = vmatprep.subr.mxu1 %v806_v30 }
  0x58   :  { %1217 = vmatpush2.msra.mxu1 %v805_v31 }
  0x59   :  { %1218 = vmatprep.subr.mxu1 %v804_v36  ;;  %v248_v36 = vrot.slane %v3324_v12, 2 }
  0x5a   :  { %1219 = vmatpush2.msra.mxu1 %v803_v37 }
  0x5b   :  { %1220 = vmatprep.subr.mxu1 %v802_v44  ;;  %v852_v44 = vld [vmem:[%s5702_s1 + $0x4b8] sm:$0xff] }
  0x5c   :  { %1221 = vmatpush2.msra.mxu1 %v801_v45 }
  0x5d   :  { %1222 = vmatprep.subr.mxu1 %v800_v62 }
  0x5e   :  { %1223 = vmatpush2.msra.mxu1 %v799_v5 }
  0x76   :  { %v50_v11 = vpop.permute.xlu0 %49 }
  0x77   :  { %64 = vst.msk [vmem:[#allocation2] sm:$0xfc] %vm63_vm4, %v50_v11  ;;  %v54_v15 = vpop.permute.xlu1 %53  ;;  %vm342_vm4 = vcmask 1046272  }
  0x78   :  { %67 = vst.msk [vmem:[#allocation2 + $0x18] sm:$0xff] %vm66_vm5, %v54_v15 }
  0x7a   :  { %v52_v27 = vpop.permute.xlu0 %51 }
  0x7b   :  { %v57_v32 = vsel %vm19_vm1, %v50_v11, %v52_v27  ;;  %v56_v33 = vpop.permute.xlu1 %55  ;;  %v409_v11 = vrot.slane %v393_v3, 2 }
  0x7c   :  { %65 = vst [vmem:[#allocation2 + $0x8] sm:$0xfc] %v57_v32  ;;  %v3356_v40 = vsel %vm19_vm1, %v54_v15, %v56_v33  ;;  %v247_v32 = vrot.slane %v3388_v1, 2  ;;  %v855_v33 = vld [vmem:[%s5702_s1 + $0x4d0] sm:$0xff]  ;;  %v849_v1 = vld [vmem:[%s5702_s1 + $0x4a0] sm:$0xff] }
  0x7d   :  { %68 = vst [vmem:[#allocation2 + $0x20] sm:$0xff] %v3356_v40  ;;  %v368_v43 = vrot.slane %v3356_v40, 4  ;;  %v411_v27 = vsel %vm240_vm10, %v409_v11, %v410_v4  ;;  %v798_v4 = vld [vmem:[%s5702_s1 + $0x308] sm:$0xff] }
  0x7e   :  { %v162_v46 = vld [vmem:[#allocation2] sm:$0xff]  ;;  %v86_v48 = vpop.permute.xlu0 %85  ;;  %420 = vst.msk [vmem:[#allocation3 + $0xd0] sm:$0xff] %vm19_vm1, %v411_v27  ;;  %1224 = vmatprep.subr.mxu1 %v798_v4  ;;  %v177_v27 = vld [vmem:[#allocation2 + $0x10] sm:$0xfe] }
  0x7f   :  { %v346_v47 = vld [vmem:[#allocation2] sm:$0xf0]  ;;  %168 = vst [vmem:[#allocation3] sm:$0xff] %v162_v46  ;;  %v165_v52 = vld [vmem:[#allocation2 + $0x18] sm:$0x3f]  ;;  %v88_v55 = vpop.permute.xlu1 %87  ;;  %v376_v56 = vsel %vm78_vm2, %v368_v43, %v375_v39 }
  0x80   :  { %v175_v49 = vld [vmem:[#allocation2] sm:$0xfe]  ;;  %v364_v51 = vrot.slane %v346_v47, 4  ;;  %v3373_v53 = vld [vmem:[#allocation2 + $0x18] sm:$0xff]  ;;  %107 = vst.msk [vmem:[#allocation2 + $0x30] sm:$0xf0] %vm106_vm7, %v86_v48  ;;  %v97_v60 = vsel %vm19_vm1, %v86_v48, %v88_v55 }
  0x81   :  { %v178_v54 = vld [vmem:[#allocation2 + $0x18] sm:$0x7f]  ;;  %v365_v57 = vrot.slane %v3373_v53, 4  ;;  %171 = vst [vmem:[#allocation3 + $0x60] sm:$0x3f] %v165_v52  ;;  %v188_v58 = vrot.slane %v175_v49, 1 }
  0x82   :  { %v189_v59 = vrot.slane %v178_v54, 1  ;;  %389 = vst [vmem:[#allocation3 + $0xb0] sm:$0x3f] %v376_v56  ;;  %108 = vst [vmem:[#allocation2 + $0x38] sm:$0xf0] %v97_v60  ;;  %v90_v63 = vpop.permute.xlu0 %89  ;;  %v249_v56 = vsel %vm240_vm10, %v247_v32, %v248_v36  ;;  %v924_v32 = vld [vmem:[%s5702_s1 + $0x6f8] sm:$0xff] }
  0x83   :  { %v366_v6 = vsel %vm78_vm2, %v364_v51, %v365_v57  ;;  %v347_v7 = vld [vmem:[#allocation2 + $0x8] sm:$0xf0]  ;;  %109 = vst.msk [vmem:[#allocation2 + $0x48] sm:$0xff] %vm66_vm5, %v90_v63  ;;  %v92_v8 = vpop.permute.xlu1 %91  ;;  %v374_v14 = vsel %vm78_vm2, %v365_v57, %v373_v50  ;;  %v282_v57 = vld [vmem:[#allocation2] sm:$0xf8] }
  0x84   :  { %v190_v0 = vsel %vm187_vm8, %v188_v58, %v189_v59  ;;  %v176_v9 = vld [vmem:[#allocation2 + $0x8] sm:$0xfe]  ;;  %385 = vst [vmem:[#allocation3 + $0x48] sm:$0xff] %v366_v6  ;;  %v367_v15 = vrot.slane %v347_v7, 4  ;;  %v3402_v16 = vsel %vm19_vm1, %v90_v63, %v92_v8  ;;  %v179_v17 = vld [vmem:[#allocation2 + $0x20] sm:$0x7f] }
  0x85   :  { %197 = vrot.lane.b32.xlu0 %v190_v0, %s2849_s25  ;;  %v163_v10 = vld [vmem:[#allocation2 + $0x8] sm:$0xff]  ;;  %v191_v18 = vrot.slane %v176_v9, 1  ;;  %v166_v19 = vld [vmem:[#allocation2 + $0x20] sm:$0x3f]  ;;  %388 = vst [vmem:[#allocation3 + $0xa8] sm:$0x3f] %v374_v14 }
  0x86   :  { %169 = vst [vmem:[#allocation3 + $0x8] sm:$0xff] %v163_v10  ;;  %1137 = vmatprep.mubr.f32.mxu0 %v163_v10  ;;  %v192_v20 = vrot.slane %v179_v17, 1  ;;  %172 = vst [vmem:[#allocation3 + $0x68] sm:$0x3f] %v166_v19  ;;  %v407_v21 = vrot.slane %v3402_v16, 2  ;;  %v94_v23 = vpop.permute.xlu0 %93  ;;  %v369_v28 = vsel %vm78_vm2, %v367_v15, %v368_v43  ;;  %v853_v43 = vld [vmem:[%s5702_s1 + $0x4c0] sm:$0xff] }
  0x87   :  { %1138 = vmatmul.mubr.f32.vlgmr.msra.gmra.mxu0 %v162_v46  ;;  %v424_v24 = vld [vmem:[#allocation2 + $0x30] sm:$0xf8]  ;;  %112 = vst.msk [vmem:[#allocation2 + $0x60] sm:$0x3] %vm111_vm9, %v94_v23  ;;  %v96_v31 = vpop.permute.xlu1 %95  ;;  %386 = vst [vmem:[#allocation3 + $0x50] sm:$0xff] %v369_v28  ;;  %v630_v48 = vrot.slane %v3402_v16, 6 }
  0x88   :  { %v391_v25 = vld [vmem:[#allocation2 + $0x30] sm:$0xfc]  ;;  %1252 = vmatpush1.msra.mxu0 %v859_v61  ;;  %v193_v30 = vsel %vm187_vm8, %v191_v18, %v192_v20  ;;  %422 = vst [vmem:[#allocation3 + $0x128] sm:$0x3f] %v407_v21  ;;  %v99_v35 = vsel %vm19_vm1, %v94_v23, %v96_v31  ;;  %v442_v39 = vrot.slane %v424_v24, 3  ;;  %v665_v61 = vld [vmem:[#allocation3 + $0x60] sm:$0xff] }
  0x89   :  { %v608_v29 = vld [vmem:[#allocation2 + $0x30] sm:$0xc0]  ;;  %203 = vrot.lane.b32.xlu0 %v189_v59, %s2849_s25  ;;  %1253 = vmatprep.subr.mxu0 %v858_v2  ;;  %v609_v34 = vld [vmem:[#allocation2 + $0x38] sm:$0xc0]  ;;  %113 = vst [vmem:[#allocation2 + $0x68] sm:$0x3] %v99_v35 }
  0x8a   :  { %199 = vrot.lane.b32.xlu1 %v193_v30, %s2849_s25  ;;  %v392_v37 = vld [vmem:[#allocation2 + $0x38] sm:$0xfc]  ;;  %1254 = vmatpush1.msra.mxu0 %v857_v22  ;;  %v403_v41 = vrot.slane %v391_v25, 2  ;;  %v626_v45 = vrot.slane %v608_v29, 6  ;;  %v3436_v46 = vld [vmem:[#allocation2 + $0x48] sm:$0xff]  ;;  %v629_v47 = vrot.slane %v609_v34, 6 }
  0x8b   :  { %v406_v42 = vrot.slane %v392_v37, 2  ;;  %1255 = vmatprep.subr.mxu0 %v856_v26  ;;  %v425_v49 = vld [vmem:[#allocation2 + $0x38] sm:$0xf8]  ;;  %v627_v50 = vrot.slane %v3436_v46, 6  ;;  %v443_v51 = vrot.slane %v3436_v46, 3  ;;  %v404_v52 = vrot.slane %v3436_v46, 2 }
  0x8c   :  { %1256 = vmatpush1.msra.mxu0 %v855_v33  ;;  %v851_v58 = vld [vmem:[%s5702_s1 + $0x4b0] sm:$0xff]  ;;  %v445_v62 = vrot.slane %v425_v49, 3  ;;  %v446_v63 = vrot.slane %v3402_v16, 3  ;;  %v850_v0 = vld [vmem:[%s5702_s1 + $0x4a8] sm:$0xff]  ;;  %v631_v6 = vsel %vm42_vm0, %v629_v47, %v630_v48  ;;  %v301_v9 = vrot.slane %v282_v57, 3  ;;  %v848_v10 = vld [vmem:[%s5702_s1 + $0x498] sm:$0xff] }
  0x8d   :  { %v408_v54 = vsel %vm240_vm10, %v406_v42, %v407_v21  ;;  %1257 = vmatprep.subr.mxu0 %v854_v38  ;;  %v666_v55 = vld [vmem:[#allocation3 + $0x68] sm:$0xff]  ;;  %v444_v59 = vsel %vm300_vm11, %v442_v39, %v443_v51  ;;  %v405_v60 = vsel %vm240_vm10, %v403_v41, %v404_v52  ;;  %421 = vst [vmem:[#allocation3 + $0x120] sm:$0x3f] %v404_v52  ;;  %648 = vst [vmem:[#allocation3 + $0x110] sm:$0xff] %v631_v6  ;;  %v847_v22 = vld [vmem:[%s5702_s1 + $0x490] sm:$0xff] }
  0x8e   :  { %205 = vrot.lane.b32.xlu1 %v192_v20, %s2849_s25  ;;  %419 = vst [vmem:[#allocation3 + $0xc8] sm:$0xff] %v408_v54  ;;  %1258 = vmatpush1.msra.mxu0 %v853_v43  ;;  %v614_v2 = vld [vmem:[#allocation2 + $0x60] sm:$0xf]  ;;  %418 = vst [vmem:[#allocation3 + $0xc0] sm:$0xff] %v405_v60  ;;  %v628_v5 = vsel %vm42_vm0, %v626_v45, %v627_v50  ;;  %v302_v14 = vrot.slane %v3373_v53, 3  ;;  %v447_v20 = vsel %vm300_vm11, %v445_v62, %v446_v63  ;;  %v846_v24 = vld [vmem:[%s5702_s1 + $0x488] sm:$0xff] }
  0x8f   :  { %1143 = vmatprep.mubr.f32.mxu0 %v666_v55  ;;  %1259 = vmatprep.subr.mxu0 %v852_v44  ;;  %v430_v3 = vld [vmem:[#allocation2 + $0x60] sm:$0x1]  ;;  %v635_v7 = vrot.slane %v614_v2, 6  ;;  %647 = vst [vmem:[#allocation3 + $0x108] sm:$0xff] %v628_v5  ;;  %v229_v23 = vld [vmem:[#allocation2 + $0x8] sm:$0xfc] }
  0x90   :  { %457 = vrot.lane.b32.xlu0 %v444_v59, %s2849_s25  ;;  %1144 = vmatmul.mubr.f32.gmra.mxu0 %v665_v61  ;;  %v451_v8 = vrot.slane %v430_v3, 3  ;;  %v615_v11 = vld [vmem:[#allocation2 + $0x68] sm:$0xf]  ;;  %v690_v17 = vld [vmem:[#allocation3 + $0x128] sm:$0xff]  ;;  %v303_v33 = vsel %vm300_vm11, %v301_v9, %v302_v14  ;;  %v244_v35 = vrot.slane %v229_v23, 2  ;;  %v844_v37 = vld [vmem:[%s5702_s1 + $0x478] sm:$0xff] }
  0x91   :  { %1149 = vmatprep.mubr.f32.mxu0 %v408_v54  ;;  %1260 = vmatpush1.msra.mxu0 %v851_v58  ;;  %v431_v15 = vld [vmem:[#allocation2 + $0x68] sm:$0x1]  ;;  %v637_v18 = vrot.slane %v615_v11, 6  ;;  %v797_v25 = vld [vmem:[%s5702_s1 + $0x300] sm:$0xff]  ;;  %v636_v26 = vsel %vm42_vm0, %v627_v50, %v635_v7  ;;  %v283_v30 = vld [vmem:[#allocation2 + $0x8] sm:$0xf8] }
  0x92   :  { %254 = vrot.lane.b32.xlu1 %v249_v56, %s2850_s26  ;;  %1261 = vmatprep.subr.mxu0 %v850_v0  ;;  %v452_v19 = vsel %vm300_vm11, %v443_v51, %v451_v8  ;;  %v453_v21 = vrot.slane %v431_v15, 3  ;;  %v3485_v28 = vld [vmem:[#allocation2 + $0x28] sm:$0x7f]  ;;  %v845_v29 = vld [vmem:[%s5702_s1 + $0x480] sm:$0xff]  ;;  %650 = vst [vmem:[#allocation3 + $0x168] sm:$0x3f] %v636_v26 }
  0x93   :  { %1262 = vmatpush1.msra.mxu0 %v849_v1  ;;  %1225 = vmatpush2.msra.mxu1 %v797_v25  ;;  %v638_v38 = vsel %vm42_vm0, %v630_v48, %v637_v18  ;;  %v843_v39 = vld [vmem:[%s5702_s1 + $0x470] sm:$0xff]  ;;  %v245_v41 = vrot.slane %v3356_v40, 2  ;;  %v304_v42 = vrot.slane %v283_v30, 3  ;;  %v194_v43 = vrot.slane %v177_v27, 1  ;;  %v842_v45 = vld [vmem:[%s5702_s1 + $0x468] sm:$0xff]  ;;  %v841_v48 = vld [vmem:[%s5702_s1 + $0x460] sm:$0xff] }
  0x94   :  { %463 = vrot.lane.b32.xlu0 %v452_v19, %s2849_s25  ;;  %1150 = vmatmul.mubr.f32.gmra.mxu0 %v405_v60  ;;  %v689_v31 = vld [vmem:[#allocation3 + $0x120] sm:$0xff]  ;;  %v454_v34 = vsel %vm300_vm11, %v446_v63, %v453_v21  ;;  %651 = vst [vmem:[#allocation3 + $0x170] sm:$0x3f] %v638_v38  ;;  %v195_v44 = vrot.slane %v3485_v28, 1  ;;  %v228_v47 = vld [vmem:[#allocation2] sm:$0xfc] }
  0x95   :  { %1155 = vmatprep.mubr.f32.mxu0 %v690_v17  ;;  %1263 = vmatprep.subr.mxu0 %v848_v10  ;;  %v246_v49 = vsel %vm240_vm10, %v244_v35, %v245_v41  ;;  %v305_v50 = vrot.slane %v3356_v40, 3  ;;  %v840_v51 = vld [vmem:[%s5702_s1 + $0x458] sm:$0xff]  ;;  %v839_v52 = vld [vmem:[%s5702_s1 + $0x450] sm:$0xff]  ;;  %v241_v56 = vrot.slane %v228_v47, 2  ;;  %v242_v57 = vrot.slane %v3373_v53, 2  ;;  %v838_v58 = vld [vmem:[%s5702_s1 + $0x448] sm:$0xff] }
  0x96   :  { %459 = vrot.lane.b32.xlu1 %v447_v20, %s2849_s25  ;;  %1264 = vmatpush1.msra.mxu0 %v847_v22  ;;  %v196_v55 = vsel %vm187_vm8, %v194_v43, %v195_v44  ;;  %v837_v59 = vld [vmem:[%s5702_s1 + $0x440] sm:$0xff]  ;;  %v836_v60 = vld [vmem:[%s5702_s1 + $0x438] sm:$0xff]  ;;  %v288_v61 = vld [vmem:[#allocation2 + $0x30] sm:$0x1]  ;;  %v510_v6 = vrot.slane %v3326_v13, 4  ;;  %v566_v11 = vrot.slane %v3436_v46, 5 }
  0x97   :  { %1265 = vmatprep.subr.mxu0 %v846_v24  ;;  %1340 = vmatprep.subr.mxu1 %v924_v32  ;;  %v306_v54 = vsel %vm300_vm11, %v304_v42, %v305_v50  ;;  %v487_v62 = vld [vmem:[#allocation2 + $0x40] sm:$0xf0]  ;;  %v835_v63 = vld [vmem:[%s5702_s1 + $0x430] sm:$0xff]  ;;  %v243_v0 = vsel %vm240_vm10, %v241_v56, %v242_v57  ;;  %v834_v1 = vld [vmem:[%s5702_s1 + $0x428] sm:$0xff]  ;;  %v310_v4 = vrot.slane %v288_v61, 3  ;;  %vm338_vm0 = vcmask 1048320  }
  0x98   :  { %316 = vrot.lane.b32.xlu0 %v303_v33, %s2851_s13  ;;  %1156 = vmatmul.mubr.f32.gmra.mxu0 %v689_v31  ;;  %v546_v2 = vld [vmem:[#allocation2 + $0x30] sm:$0xe0]  ;;  %v833_v3 = vld [vmem:[%s5702_s1 + $0x420] sm:$0xff]  ;;  %v509_v5 = vrot.slane %v487_v62, 4  ;;  %v832_v7 = vld [vmem:[%s5702_s1 + $0x418] sm:$0xff] }
  0x99   :  { %1266 = vmatpush1.msra.mxu0 %v845_v29  ;;  %v493_v8 = vld [vmem:[#allocation2 + $0x70] sm:$0x3]  ;;  %v565_v10 = vrot.slane %v546_v2, 5  ;;  %v830_v15 = vld [vmem:[%s5702_s1 + $0x408] sm:$0xff]  ;;  %v829_v17 = vld [vmem:[%s5702_s1 + $0x400] sm:$0xff]  ;;  %v311_v18 = vsel %vm300_vm11, %v302_v14, %v310_v4  ;;  %v507_v29 = vrot.slane %v3402_v16, 4 }
  0x9a   :  { %465 = vrot.lane.b32.xlu1 %v454_v34, %s2849_s25  ;;  %1267 = vmatprep.subr.mxu0 %v844_v37  ;;  %v831_v9 = vld [vmem:[%s5702_s1 + $0x410] sm:$0xff]  ;;  %v511_v19 = vsel %vm78_vm2, %v509_v5, %v510_v6  ;;  %v516_v20 = vrot.slane %v493_v8, 4  ;;  %v892_v21 = vld [vmem:[%s5702_s1 + $0x5f8] sm:$0xff]  ;;  %v890_v23 = vld [vmem:[%s5702_s1 + $0x5e8] sm:$0xff]  ;;  %v449_v2 = vrot.slane %v3326_v13, 3 }
  0x9b   :  { %1268 = vmatpush1.msra.mxu0 %v843_v39  ;;  %v891_v22 = vld [vmem:[%s5702_s1 + $0x5f0] sm:$0xff]  ;;  %v567_v14 = vsel %vm564_vm12, %v565_v10, %v566_v11  ;;  %v289_v24 = vld [vmem:[#allocation2 + $0x38] sm:$0x1]  ;;  %v889_v25 = vld [vmem:[%s5702_s1 + $0x5e0] sm:$0xff] }
  0x9c   :  { %252 = vrot.lane.b32.xlu0 %v246_v49, %s2850_s26  ;;  %1269 = vmatprep.subr.mxu0 %v842_v45  ;;  %v517_v26 = vsel %vm78_vm2, %v510_v6, %v516_v20  ;;  %v888_v30 = vld [vmem:[%s5702_s1 + $0x5d8] sm:$0xff]  ;;  %v492_v31 = vld [vmem:[#allocation2 + $0x68] sm:$0x3]  ;;  %v887_v32 = vld [vmem:[%s5702_s1 + $0x5d0] sm:$0xff]  ;;  %v312_v33 = vrot.slane %v289_v24, 3 }
  0x9d   :  { %1270 = vmatpush1.msra.mxu0 %v841_v48  ;;  %v886_v34 = vld [vmem:[%s5702_s1 + $0x5c8] sm:$0xff]  ;;  %v547_v35 = vld [vmem:[#allocation2 + $0x38] sm:$0xe0]  ;;  %v885_v37 = vld [vmem:[%s5702_s1 + $0x5c0] sm:$0xff]  ;;  %v514_v39 = vrot.slane %v492_v31, 4  ;;  %v569_v48 = vrot.slane %v3402_v16, 5 }
  0x9e   :  { %318 = vrot.lane.b32.xlu1 %v306_v54, %s2851_s13  ;;  %1271 = vmatprep.subr.mxu0 %v840_v51  ;;  %v552_v42 = vld [vmem:[#allocation2 + $0x60] sm:$0x7]  ;;  %v883_v43 = vld [vmem:[%s5702_s1 + $0x5b0] sm:$0xff]  ;;  %v313_v45 = vsel %vm300_vm11, %v305_v50, %v312_v33  ;;  %v568_v47 = vrot.slane %v547_v35, 5  ;;  %v882_v49 = vld [vmem:[%s5702_s1 + $0x5a8] sm:$0xff] }
  0x9f   :  { %1272 = vmatpush1.msra.mxu0 %v839_v52  ;;  %v553_v51 = vld [vmem:[#allocation2 + $0x68] sm:$0x7]  ;;  %v881_v52 = vld [vmem:[%s5702_s1 + $0x5a0] sm:$0xff]  ;;  %v515_v40 = vsel %vm78_vm2, %v507_v29, %v514_v39  ;;  %v574_v54 = vrot.slane %v552_v42, 5  ;;  %v880_v16 = vld [vmem:[%s5702_s1 + $0x598] sm:$0xff] }
  0xa0   :  { %201 = vrot.lane.b32.xlu0 %v196_v55, %s2849_s25  ;;  %1273 = vmatprep.subr.mxu0 %v838_v58  ;;  %v879_v50 = vld [vmem:[%s5702_s1 + $0x590] sm:$0xff]  ;;  %v570_v55 = vsel %vm564_vm12, %v568_v47, %v569_v48  ;;  %v576_v56 = vrot.slane %v553_v51, 5  ;;  %v878_v58 = vld [vmem:[%s5702_s1 + $0x588] sm:$0xff]  ;;  %v876_v62 = vld [vmem:[%s5702_s1 + $0x578] sm:$0xff] }
  0xa1   :  { %1274 = vmatpush1.msra.mxu0 %v837_v59  ;;  %v426_v59 = vld [vmem:[#allocation2 + $0x40] sm:$0xf8]  ;;  %v575_v61 = vsel %vm564_vm12, %v566_v11, %v574_v54  ;;  %v874_v4 = vld [vmem:[%s5702_s1 + $0x568] sm:$0xff]  ;;  %v485_v5 = vld [vmem:[#allocation2 + $0x30] sm:$0xf0] }
  0xa2   :  { %250 = vrot.lane.b32.xlu1 %v243_v0, %s2850_s26  ;;  %1275 = vmatprep.subr.mxu0 %v836_v60  ;;  %v877_v60 = vld [vmem:[%s5702_s1 + $0x580] sm:$0xff]  ;;  %v577_v0 = vsel %vm564_vm12, %v569_v48, %v576_v56  ;;  %v503_v11 = vrot.slane %v485_v5, 4  ;;  %v867_v53 = vld [vmem:[%s5702_s1 + $0x530] sm:$0xff]  ;;  %v862_v33 = vld [vmem:[%s5702_s1 + $0x508] sm:$0xff] }
  0xa3   :  { %1276 = vmatpush1.msra.mxu0 %v835_v63  ;;  %v875_v63 = vld [vmem:[%s5702_s1 + $0x570] sm:$0xff]  ;;  %v873_v6 = vld [vmem:[%s5702_s1 + $0x560] sm:$0xff]  ;;  %v920_v54 = vld [vmem:[%s5702_s1 + $0x6d8] sm:$0xff] }
  0xa4   :  { %258 = vrot.lane.b32.xlu0 %v245_v41, %s2850_s26  ;;  %1277 = vmatprep.subr.mxu0 %v834_v1  ;;  %v884_v41 = vld [vmem:[%s5702_s1 + $0x5b8] sm:$0xff]  ;;  %v448_v1 = vrot.slane %v426_v59, 3  ;;  %v491_v28 = vld [vmem:[#allocation2 + $0x60] sm:$0x3]  ;;  %v923_v47 = vld [vmem:[%s5702_s1 + $0x6f0] sm:$0xff] }
  0xa5   :  { %1278 = vmatpush1.msra.mxu0 %v833_v3  ;;  %v432_v3 = vld [vmem:[#allocation2 + $0x70] sm:$0x1]  ;;  %v290_v20 = vld [vmem:[#allocation2 + $0x40] sm:$0x1]  ;;  %v916_v59 = vld [vmem:[%s5702_s1 + $0x6b8] sm:$0xff] }
  0xa6   :  { %260 = vrot.lane.b32.xlu1 %v248_v36, %s2850_s26  ;;  %1279 = vmatprep.subr.mxu0 %v832_v7  ;;  %v486_v36 = vld [vmem:[#allocation2 + $0x38] sm:$0xf0]  ;;  %v455_v8 = vrot.slane %v432_v3, 3  ;;  %v450_v10 = vsel %vm300_vm11, %v448_v1, %v449_v2  ;;  %v865_v24 = vld [vmem:[%s5702_s1 + $0x520] sm:$0xff] }
  0xa7   :  { %1280 = vmatpush1.msra.mxu0 %v831_v9  ;;  %v506_v27 = vrot.slane %v486_v36, 4  ;;  %v872_v7 = vld [vmem:[%s5702_s1 + $0x558] sm:$0xff]  ;;  %v871_v9 = vld [vmem:[%s5702_s1 + $0x550] sm:$0xff] }
  0xa8   :  { %322 = vrot.lane.b32.xlu0 %v311_v18, %s2851_s13  ;;  %1281 = vmatprep.subr.mxu0 %v830_v15  ;;  %v504_v15 = vrot.slane %v3436_v46, 4  ;;  %v869_v18 = vld [vmem:[%s5702_s1 + $0x540] sm:$0xff]  ;;  %v868_v46 = vld [vmem:[%s5702_s1 + $0x538] sm:$0xff] }
  0xa9   :  { %1282 = vmatpush1.msra.mxu0 %v829_v17  ;;  %v508_v38 = vsel %vm78_vm2, %v506_v27, %v507_v29  ;;  %v870_v17 = vld [vmem:[%s5702_s1 + $0x548] sm:$0xff]  ;;  %v863_v27 = vld [vmem:[%s5702_s1 + $0x510] sm:$0xff]  ;;  %v912_v5 = vld [vmem:[%s5702_s1 + $0x698] sm:$0xff] }
  0xaa   :  { %522 = vrot.lane.b32.xlu1 %v511_v19, %s2850_s26  ;;  %1283 = vmatprep.subr.mxu0 %v892_v21  ;;  %v456_v19 = vsel %vm300_vm11, %v449_v2, %v455_v8  ;;  %v512_v21 = vrot.slane %v491_v28, 4  ;;  %v913_v2 = vld [vmem:[%s5702_s1 + $0x6a0] sm:$0xff] }
  0xab   :  { %1284 = vmatpush2.msra.mxu0 %v891_v22  ;;  %v308_v22 = vrot.slane %v3324_v12, 3  ;;  %v554_v12 = vld [vmem:[#allocation2 + $0x70] sm:$0x7] }
  0xac   :  { %580 = vrot.lane.b32.xlu0 %v567_v14, %s2851_s13  ;;  %1285 = vmatprep.subr.mxu0 %v890_v23  ;;  %v866_v14 = vld [vmem:[%s5702_s1 + $0x528] sm:$0xff]  ;;  %v548_v23 = vld [vmem:[#allocation2 + $0x40] sm:$0xe0]  ;;  %v513_v29 = vsel %vm78_vm2, %v504_v15, %v512_v21 }
  0xad   :  { %1286 = vmatpush2.msra.mxu0 %v889_v25  ;;  %v314_v25 = vrot.slane %v290_v20, 3  ;;  %v571_v31 = vrot.slane %v548_v23, 5  ;;  %v905_v20 = vld [vmem:[%s5702_s1 + $0x660] sm:$0xff]  ;;  %v902_v23 = vld [vmem:[%s5702_s1 + $0x648] sm:$0xff] }
  0xae   :  { %528 = vrot.lane.b32.xlu1 %v517_v26, %s2850_s26  ;;  %1287 = vmatprep.subr.mxu0 %v888_v30  ;;  %v864_v26 = vld [vmem:[%s5702_s1 + $0x518] sm:$0xff] }
  0xaf   :  { %1288 = vmatpush2.msra.mxu0 %v887_v32  ;;  %v572_v32 = vrot.slane %v3326_v13, 5  ;;  %v315_v35 = vsel %vm300_vm11, %v308_v22, %v314_v25  ;;  %v988_v13 = vld [vmem:[%s5702_s1 + $0x8f8] sm:$0xff] }
  0xb0   :  { %520 = vrot.lane.b32.xlu0 %v508_v38, %s2850_s26  ;;  %1289 = vmatprep.subr.mxu0 %v886_v34  ;;  %v861_v34 = vld [vmem:[%s5702_s1 + $0x500] sm:$0xff] }
  0xb1   :  { %1290 = vmatpush2.msra.mxu0 %v885_v37  ;;  %v578_v37 = vrot.slane %v554_v12, 5  ;;  %v573_v38 = vsel %vm564_vm12, %v571_v31, %v572_v32  ;;  %v898_v31 = vld [vmem:[%s5702_s1 + $0x628] sm:$0xff] }
  0xb2   :  { %324 = vrot.lane.b32.xlu1 %v313_v45, %s2851_s13  ;;  %1291 = vmatprep.subr.mxu0 %v884_v41 }
  0xb3   :  { %1292 = vmatpush2.msra.mxu0 %v883_v43  ;;  %v579_v39 = vsel %vm564_vm12, %v572_v32, %v578_v37  ;;  %v987_v37 = vld [vmem:[%s5702_s1 + $0x8f0] sm:$0xff] }
  0xb4   :  { %526 = vrot.lane.b32.xlu0 %v515_v40, %s2850_s26  ;;  %1293 = vmatprep.subr.mxu0 %v882_v49  ;;  %v922_v49 = vld [vmem:[%s5702_s1 + $0x6e8] sm:$0xff] }
  0xb5   :  { %1294 = vmatpush2.msra.mxu0 %v881_v52  ;;  %v921_v52 = vld [vmem:[%s5702_s1 + $0x6e0] sm:$0xff] }
  0xb6   :  { %582 = vrot.lane.b32.xlu1 %v570_v55, %s2851_s13  ;;  %1295 = vmatprep.subr.mxu0 %v880_v16  ;;  %v918_v55 = vld [vmem:[%s5702_s1 + $0x6c8] sm:$0xff] }
  0xb7   :  { %1296 = vmatpush2.msra.mxu0 %v879_v50  ;;  %v919_v50 = vld [vmem:[%s5702_s1 + $0x6d0] sm:$0xff] }
  0xb8   :  { %586 = vrot.lane.b32.xlu0 %v575_v61, %s2851_s13  ;;  %1297 = vmatprep.subr.mxu0 %v878_v58  ;;  %v917_v58 = vld [vmem:[%s5702_s1 + $0x6c0] sm:$0xff]  ;;  %v915_v61 = vld [vmem:[%s5702_s1 + $0x6b0] sm:$0xff] }
  0xb9   :  { %1298 = vmatpush2.msra.mxu0 %v877_v60 }
  0xba   :  { %588 = vrot.lane.b32.xlu1 %v577_v0, %s2851_s13  ;;  %1299 = vmatprep.subr.mxu0 %v876_v62  ;;  %v914_v62 = vld [vmem:[%s5702_s1 + $0x6a8] sm:$0xff] }
  0xbb   :  { %1300 = vmatpush2.msra.mxu0 %v875_v63 }
  0xbc   :  { %207 = vrot.lane.b32.xlu0 %v195_v44, %s2849_s25  ;;  %1301 = vmatprep.subr.mxu0 %v874_v4  ;;  %v284_v44 = vld [vmem:[#allocation2 + $0x10] sm:$0xf8] }
  0xbd   :  { %1302 = vmatpush2.msra.mxu0 %v873_v6  ;;  %v307_v36 = vrot.slane %v284_v44, 3  ;;  %v911_v6 = vld [vmem:[%s5702_s1 + $0x690] sm:$0xff] }
  0xbe   :  { %256 = vrot.lane.b32.xlu1 %v242_v57, %s2850_s26  ;;  %1303 = vmatprep.subr.mxu0 %v872_v7  ;;  %v505_v57 = vsel %vm78_vm2, %v503_v11, %v504_v15  ;;  %v909_v11 = vld [vmem:[%s5702_s1 + $0x680] sm:$0xff]  ;;  %v907_v44 = vld [vmem:[%s5702_s1 + $0x670] sm:$0xff]  ;;  %vm272_vm2 = vcmask 1048064  }
  0xbf   :  { %1304 = vmatpush2.msra.mxu0 %v871_v9  ;;  %v309_v30 = vsel %vm300_vm11, %v307_v36, %v308_v22  ;;  %v910_v9 = vld [vmem:[%s5702_s1 + $0x688] sm:$0xff]  ;;  %v903_v36 = vld [vmem:[%s5702_s1 + $0x650] sm:$0xff] }
  0xc0   :  { %461 = vrot.lane.b32.xlu0 %v450_v10, %s2849_s25  ;;  %1305 = vmatprep.subr.mxu0 %v870_v17  ;;  %v908_v17 = vld [vmem:[%s5702_s1 + $0x678] sm:$0xff] }
  0xc1   :  { %1306 = vmatpush2.msra.mxu0 %v869_v18 }
  0xc2   :  { %518 = vrot.lane.b32.xlu1 %v505_v57, %s2850_s26  ;;  %1307 = vmatprep.subr.mxu0 %v868_v46  ;;  %v906_v46 = vld [vmem:[%s5702_s1 + $0x668] sm:$0xff]  ;;  %v904_v57 = vld [vmem:[%s5702_s1 + $0x658] sm:$0xff] }
  0xc3   :  { %1308 = vmatpush2.msra.mxu0 %v867_v53 }
  0xc4   :  { %467 = vrot.lane.b32.xlu0 %v456_v19, %s2849_s25  ;;  %1309 = vmatprep.subr.mxu0 %v866_v14 }
  0xc5   :  { %1310 = vmatpush2.msra.mxu0 %v865_v24 }
  0xc6   :  { %524 = vrot.lane.b32.xlu1 %v513_v29, %s2850_s26  ;;  %1311 = vmatprep.subr.mxu0 %v864_v26  ;;  %v901_v26 = vld [vmem:[%s5702_s1 + $0x640] sm:$0xff]  ;;  %v899_v29 = vld [vmem:[%s5702_s1 + $0x630] sm:$0xff] }
  0xc7   :  { %1312 = vmatpush2.msra.mxu0 %v863_v27  ;;  %v900_v27 = vld [vmem:[%s5702_s1 + $0x638] sm:$0xff] }
  0xc8   :  { %320 = vrot.lane.b32.xlu0 %v309_v30, %s2851_s13  ;;  %1313 = vmatprep.subr.mxu0 %v862_v33  ;;  %v897_v33 = vld [vmem:[%s5702_s1 + $0x620] sm:$0xff] }
  0xc9   :  { %1314 = vmatpush2.msra.mxu0 %v861_v34 }
  0xca   :  { %326 = vrot.lane.b32.xlu1 %v315_v35, %s2851_s13  ;;  %1429 = vmatprep.subr.mxu0 %v988_v13  ;;  %v896_v35 = vld [vmem:[%s5702_s1 + $0x618] sm:$0xff]  ;;  %v895_v13 = vld [vmem:[%s5702_s1 + $0x610] sm:$0xff] }
  0xcc   :  { %584 = vrot.lane.b32.xlu0 %v573_v38, %s2851_s13 }
  0xce   :  { %590 = vrot.lane.b32.xlu1 %v579_v39, %s2851_s13 }
  0xf7   :  { %v198_v41 = vpop.permute.xlu0 %197 }
  0xf8   :  { %219 = vst.msk [vmem:[#allocation3 + $0x10] sm:$0xff] %vm66_vm5, %v198_v41 }
  0xfb   :  { %v204_v42 = vpop.permute.xlu0 %203 }
  0xfc   :  { %224 = vst.msk [vmem:[#allocation3 + $0x70] sm:$0x3f] %vm223_vm13, %v204_v42  ;;  %v3732_v43 = vpop.permute.xlu1 %199 }
  0xfd   :  { %v209_v45 = vsel %vm19_vm1, %v198_v41, %v3732_v43  ;;  %v986_v41 = vld [vmem:[%s5702_s1 + $0x8e8] sm:$0xff] }
  0xfe   :  { %220 = vst [vmem:[#allocation3 + $0x18] sm:$0xff] %v209_v45  ;;  %1226 = vmatprep.mubr.f32.mxu1 %v209_v45  ;;  %v893_v45 = vld [vmem:[%s5702_s1 + $0x600] sm:$0xff] }
  0xff   :  { %v655_v48 = vld [vmem:[#allocation3 + $0x10] sm:$0xff] }
 0x100   :  { %v3742_v51 = vpop.permute.xlu1 %205  ;;  %1227 = vmatmul.mubr.f32.vlgmr.msra.gmra.mxu1 %v655_v48  ;;  %v984_v48 = vld [vmem:[%s5702_s1 + $0x8d8] sm:$0xff] }
 0x101   :  { %v211_v40 = vsel %vm19_vm1, %v204_v42, %v3742_v51  ;;  %1341 = vmatpush1.msra.mxu1 %v923_v47  ;;  %v894_v42 = vld [vmem:[%s5702_s1 + $0x608] sm:$0xff] }
 0x102   :  { %225 = vst [vmem:[#allocation3 + $0x78] sm:$0x3f] %v211_v40  ;;  %v458_v16 = vpop.permute.xlu0 %457  ;;  %1342 = vmatprep.subr.mxu1 %v922_v49  ;;  %v956_v49 = vld [vmem:[%s5702_s1 + $0x7f8] sm:$0xff]  ;;  %v955_v40 = vld [vmem:[%s5702_s1 + $0x7f0] sm:$0xff] }
 0x103   :  { %479 = vst.msk [vmem:[#allocation3 + $0xd0] sm:$0xff] %vm66_vm5, %v458_v16  ;;  %1343 = vmatpush1.msra.mxu1 %v921_v52  ;;  %v667_v4 = vld [vmem:[#allocation3 + $0x70] sm:$0xff]  ;;  %v983_v52 = vld [vmem:[%s5702_s1 + $0x8d0] sm:$0xff]  ;;  %vm226_vm5 = vcmask 521216  }
 0x104   :  { %v255_v56 = vpop.permute.xlu1 %254  ;;  %1344 = vmatprep.subr.mxu1 %v920_v54 }
 0x105   :  { %1345 = vmatpush1.msra.mxu1 %v919_v50  ;;  %v954_v50 = vld [vmem:[%s5702_s1 + $0x7e8] sm:$0xff] }
 0x106   :  { %v464_v60 = vpop.permute.xlu0 %463  ;;  %1346 = vmatprep.subr.mxu1 %v918_v55  ;;  %v981_v55 = vld [vmem:[%s5702_s1 + $0x8c0] sm:$0xff] }
 0x107   :  { %482 = vst.msk [vmem:[#allocation3 + $0x130] sm:$0x3f] %vm223_vm13, %v464_v60  ;;  %1347 = vmatpush1.msra.mxu1 %v917_v58 }
 0x108   :  { %v3772_v63 = vpop.permute.xlu1 %459  ;;  %1348 = vmatprep.subr.mxu1 %v916_v59  ;;  %v980_v59 = vld [vmem:[%s5702_s1 + $0x8b8] sm:$0xff] }
 0x109   :  { %v469_v0 = vsel %vm19_vm1, %v458_v16, %v3772_v63  ;;  %v668_v1 = vld [vmem:[#allocation3 + $0x78] sm:$0xff]  ;;  %1349 = vmatpush1.msra.mxu1 %v915_v61  ;;  %v982_v16 = vld [vmem:[%s5702_s1 + $0x8c8] sm:$0xff] }
 0x10a   :  { %480 = vst [vmem:[#allocation3 + $0xd8] sm:$0xff] %v469_v0  ;;  %v317_v3 = vpop.permute.xlu0 %316  ;;  %1232 = vmatprep.mubr.f32.mxu1 %v668_v1  ;;  %1350 = vmatprep.subr.mxu1 %v914_v62  ;;  %v679_v8 = vld [vmem:[#allocation3 + $0xd0] sm:$0xff]  ;;  %v979_v62 = vld [vmem:[%s5702_s1 + $0x8b0] sm:$0xff] }
 0x10b   :  { %1233 = vmatmul.mubr.f32.gmra.mxu1 %v667_v4 }
 0x10c   :  { %v3785_v7 = vpop.permute.xlu1 %465  ;;  %1351 = vmatpush1.msra.mxu1 %v913_v2  ;;  %1238 = vmatprep.mubr.f32.mxu1 %v469_v0  ;;  %v951_v0 = vld [vmem:[%s5702_s1 + $0x7d0] sm:$0xff]  ;;  %v978_v2 = vld [vmem:[%s5702_s1 + $0x8a8] sm:$0xff] }
 0x10d   :  { %v471_v10 = vsel %vm19_vm1, %v464_v60, %v3785_v7  ;;  %1352 = vmatprep.subr.mxu1 %v912_v5  ;;  %v952_v60 = vld [vmem:[%s5702_s1 + $0x7d8] sm:$0xff]  ;;  %v977_v5 = vld [vmem:[%s5702_s1 + $0x8a0] sm:$0xff] }
 0x10e   :  { %483 = vst [vmem:[#allocation3 + $0x138] sm:$0x3f] %v471_v10  ;;  %v253_v15 = vpop.permute.xlu0 %252  ;;  %1353 = vmatpush1.msra.mxu1 %v911_v6  ;;  %v691_v14 = vld [vmem:[#allocation3 + $0x130] sm:$0xff]  ;;  %v949_v6 = vld [vmem:[%s5702_s1 + $0x7c0] sm:$0xff]  ;;  %v948_v10 = vld [vmem:[%s5702_s1 + $0x7b8] sm:$0xff] }
 0x10f   :  { %v263_v28 = vsel %vm221_vm14, %v253_v15, %v255_v56  ;;  %1239 = vmatmul.mubr.f32.gmra.mxu1 %v679_v8  ;;  %1354 = vmatprep.subr.mxu1 %v910_v9  ;;  %v953_v56 = vld [vmem:[%s5702_s1 + $0x7e0] sm:$0xff]  ;;  %v976_v9 = vld [vmem:[%s5702_s1 + $0x898] sm:$0xff] }
 0x110   :  { %276 = vst.msk [vmem:[#allocation3 + $0x30] sm:$0xff] %vm275_vm15, %v263_v28  ;;  %v3803_v18 = vpop.permute.xlu1 %318  ;;  %1355 = vmatpush1.msra.mxu1 %v909_v11 }
 0x111   :  { %339 = vst.msk [vmem:[#allocation3 + $0x30] sm:$0xff] %vm338_vm0, %v317_v3  ;;  %v328_v19 = vsel %vm275_vm15, %v317_v3, %v3803_v18  ;;  %1356 = vmatprep.subr.mxu1 %v908_v17  ;;  %v950_v3 = vld [vmem:[%s5702_s1 + $0x7c8] sm:$0xff]  ;;  %v947_v17 = vld [vmem:[%s5702_s1 + $0x7b0] sm:$0xff] }
 0x112   :  { %340 = vst [vmem:[#allocation3 + $0x38] sm:$0xff] %v328_v19  ;;  %v202_v53 = vpop.permute.xlu0 %201  ;;  %1357 = vmatpush1.msra.mxu1 %v907_v44  ;;  %v974_v44 = vld [vmem:[%s5702_s1 + $0x888] sm:$0xff] }
 0x113   :  { %v210_v21 = vsel %vm19_vm1, %v3732_v43, %v202_v53  ;;  %1358 = vmatprep.subr.mxu1 %v906_v46  ;;  %v985_v43 = vld [vmem:[%s5702_s1 + $0x8e0] sm:$0xff]  ;;  %v946_v46 = vld [vmem:[%s5702_s1 + $0x7a8] sm:$0xff] }
 0x114   :  { %222 = vst.msk [vmem:[#allocation3 + $0x20] sm:$0xff] %vm221_vm14, %v210_v21  ;;  %v251_v22 = vpop.permute.xlu1 %250  ;;  %1359 = vmatpush1.msra.mxu1 %v905_v20  ;;  %v973_v20 = vld [vmem:[%s5702_s1 + $0x880] sm:$0xff]  ;;  %v972_v21 = vld [vmem:[%s5702_s1 + $0x878] sm:$0xff] }
 0x115   :  { %v262_v24 = vsel %vm221_vm14, %v251_v22, %v253_v15  ;;  %273 = vst.msk [vmem:[#allocation3 + $0x20] sm:$0xff] %vm272_vm2, %v251_v22  ;;  %v692_v25 = vld [vmem:[#allocation3 + $0x138] sm:$0xff]  ;;  %1360 = vmatprep.subr.mxu1 %v904_v57  ;;  %v945_v53 = vld [vmem:[%s5702_s1 + $0x7a0] sm:$0xff] }
 0x116   :  { %274 = vst [vmem:[#allocation3 + $0x28] sm:$0xff] %v262_v24  ;;  %v3831_v12 = vpop.permute.xlu0 %258  ;;  %1244 = vmatprep.mubr.f32.mxu1 %v692_v25  ;;  %1361 = vmatpush1.msra.mxu1 %v903_v36  ;;  %v975_v15 = vld [vmem:[%s5702_s1 + $0x890] sm:$0xff]  ;;  %v944_v36 = vld [vmem:[%s5702_s1 + $0x798] sm:$0xff]  ;;  %v942_v25 = vld [vmem:[%s5702_s1 + $0x788] sm:$0xff] }
 0x117   :  { %1245 = vmatmul.mubr.f32.gmra.mxu1 %v691_v14  ;;  %1362 = vmatprep.subr.mxu1 %v902_v23  ;;  %v971_v22 = vld [vmem:[%s5702_s1 + $0x870] sm:$0xff] }
 0x118   :  { %v261_v30 = vpop.permute.xlu1 %260  ;;  %1404 = vmatprep.mubr.f32.mxu1 %v328_v19  ;;  %1363 = vmatpush1.msra.mxu1 %v901_v26  ;;  %v943_v14 = vld [vmem:[%s5702_s1 + $0x790] sm:$0xff] }
 0x119   :  { %v265_v32 = vsel %vm221_vm14, %v3831_v12, %v261_v30  ;;  %1315 = vmatprep.mubr.f32.mxu0 %v262_v24  ;;  %1364 = vmatprep.subr.mxu1 %v900_v27  ;;  %v970_v24 = vld [vmem:[%s5702_s1 + $0x868] sm:$0xff]  ;;  %v969_v27 = vld [vmem:[%s5702_s1 + $0x860] sm:$0xff] }
 0x11a   :  { %v323_v34 = vpop.permute.xlu0 %322  ;;  %281 = vst.msk [vmem:[#allocation3 + $0x90] sm:$0x3f] %vm280_vm3, %v265_v32  ;;  %1365 = vmatpush1.msra.mxu1 %v899_v29  ;;  %v941_v29 = vld [vmem:[%s5702_s1 + $0x780] sm:$0xff]  ;;  %v940_v32 = vld [vmem:[%s5702_s1 + $0x778] sm:$0xff] }
 0x11b   :  { %343 = vst.msk [vmem:[#allocation3 + $0x90] sm:$0x3f] %vm342_vm4, %v323_v34  ;;  %1366 = vmatprep.subr.mxu1 %v898_v31  ;;  %v968_v31 = vld [vmem:[%s5702_s1 + $0x858] sm:$0xff] }
 0x11c   :  { %v523_v38 = vpop.permute.xlu1 %522  ;;  %v657_v39 = vld [vmem:[#allocation3 + $0x20] sm:$0xff]  ;;  %1367 = vmatpush1.msra.mxu1 %v897_v33 }
 0x11d   :  { %1316 = vmatmul.mubr.f32.vlgmr.msra.gmra.mxu0 %v657_v39  ;;  %1368 = vmatprep.subr.mxu1 %v896_v35  ;;  %v939_v35 = vld [vmem:[%s5702_s1 + $0x770] sm:$0xff]  ;;  %v965_v39 = vld [vmem:[%s5702_s1 + $0x840] sm:$0xff] }
 0x11e   :  { %v581_v47 = vpop.permute.xlu0 %580  ;;  %1430 = vmatpush1.msra.mxu0 %v987_v37  ;;  %1369 = vmatpush1.msra.mxu1 %v895_v13  ;;  %v966_v13 = vld [vmem:[%s5702_s1 + $0x848] sm:$0xff] }
 0x11f   :  { %1431 = vmatprep.subr.mxu0 %v986_v41  ;;  %1370 = vmatprep.subr.mxu1 %v894_v42  ;;  %v937_v41 = vld [vmem:[%s5702_s1 + $0x760] sm:$0xff] }
 0x120   :  { %v529_v54 = vpop.permute.xlu1 %528  ;;  %1432 = vmatpush1.msra.mxu0 %v985_v43  ;;  %1371 = vmatpush1.msra.mxu1 %v893_v45  ;;  %v964_v43 = vld [vmem:[%s5702_s1 + $0x838] sm:$0xff] }
 0x121   :  { %1433 = vmatprep.subr.mxu0 %v984_v48  ;;  %1372 = vmatprep.subr.mxu1 %v956_v49  ;;  %v935_v48 = vld [vmem:[%s5702_s1 + $0x750] sm:$0xff] }
 0x122   :  { %v3894_v58 = vpop.permute.xlu0 %520  ;;  %1434 = vmatpush1.msra.mxu0 %v983_v52  ;;  %1373 = vmatpush2.msra.mxu1 %v955_v40  ;;  %v962_v52 = vld [vmem:[%s5702_s1 + $0x828] sm:$0xff] }
 0x123   :  { %v531_v61 = vsel %vm221_vm14, %v3894_v58, %v523_v38  ;;  %1435 = vmatprep.subr.mxu0 %v982_v16  ;;  %1374 = vmatprep.subr.mxu1 %v954_v50  ;;  %v933_v16 = vld [vmem:[%s5702_s1 + $0x740] sm:$0xff] }
 0x124   :  { %542 = vst.msk [vmem:[#allocation3 + $0xf0] sm:$0xff] %vm275_vm15, %v531_v61  ;;  %v3911_v1 = vpop.permute.xlu1 %324  ;;  %1436 = vmatpush1.msra.mxu0 %v981_v55  ;;  %1375 = vmatpush2.msra.mxu1 %v953_v56  ;;  %v960_v55 = vld [vmem:[%s5702_s1 + $0x818] sm:$0xff]  ;;  %v958_v61 = vld [vmem:[%s5702_s1 + $0x808] sm:$0xff] }
 0x125   :  { %602 = vst.msk [vmem:[#allocation3 + $0xf0] sm:$0xff] %vm338_vm0, %v581_v47  ;;  %v330_v4 = vsel %vm275_vm15, %v323_v34, %v3911_v1  ;;  %1437 = vmatprep.subr.mxu0 %v980_v59  ;;  %1376 = vmatprep.subr.mxu1 %v952_v60  ;;  %v967_v34 = vld [vmem:[%s5702_s1 + $0x850] sm:$0xff]  ;;  %v932_v56 = vld [vmem:[%s5702_s1 + $0x738] sm:$0xff] }
 0x126   :  { %344 = vst [vmem:[#allocation3 + $0x98] sm:$0x3f] %v330_v4  ;;  %v3928_v8 = vpop.permute.xlu0 %526  ;;  %1438 = vmatpush1.msra.mxu0 %v979_v62  ;;  %1377 = vmatpush2.msra.mxu1 %v951_v0  ;;  %v959_v59 = vld [vmem:[%s5702_s1 + $0x810] sm:$0xff]  ;;  %v957_v0 = vld [vmem:[%s5702_s1 + $0x800] sm:$0xff]  ;;  %v1020_v4 = vld [vmem:[%s5702_s1 + $0x9f8] sm:$0xff] }
 0x127   :  { %v533_v11 = vsel %vm221_vm14, %v3928_v8, %v529_v54  ;;  %1439 = vmatprep.subr.mxu0 %v978_v2  ;;  %1378 = vmatprep.subr.mxu1 %v950_v3  ;;  %v961_v54 = vld [vmem:[%s5702_s1 + $0x820] sm:$0xff] }
 0x128   :  { %545 = vst.msk [vmem:[#allocation3 + $0x150] sm:$0x3f] %vm280_vm3, %v533_v11  ;;  %v3945_v28 = vpop.permute.xlu1 %582  ;;  %1440 = vmatpush1.msra.mxu0 %v977_v5  ;;  %1379 = vmatpush2.msra.mxu1 %v949_v6  ;;  %v931_v5 = vld [vmem:[%s5702_s1 + $0x730] sm:$0xff] }
 0x129   :  { %v3955_v19 = vsel %vm275_vm15, %v581_v47, %v3945_v28  ;;  %1441 = vmatprep.subr.mxu0 %v976_v9  ;;  %1380 = vmatprep.subr.mxu1 %v948_v10  ;;  %v963_v47 = vld [vmem:[%s5702_s1 + $0x830] sm:$0xff]  ;;  %v930_v9 = vld [vmem:[%s5702_s1 + $0x728] sm:$0xff] }
 0x12a   :  { %603 = vst [vmem:[#allocation3 + $0xf8] sm:$0xff] %v3955_v19  ;;  %v587_v57 = vpop.permute.xlu0 %586  ;;  %1442 = vmatpush1.msra.mxu0 %v975_v15  ;;  %1381 = vmatpush2.msra.mxu1 %v947_v17  ;;  %v929_v15 = vld [vmem:[%s5702_s1 + $0x720] sm:$0xff] }
 0x12b   :  { %605 = vst.msk [vmem:[#allocation3 + $0x150] sm:$0x3f] %vm342_vm4, %v587_v57  ;;  %1443 = vmatprep.subr.mxu0 %v974_v44  ;;  %1382 = vmatprep.subr.mxu1 %v946_v46  ;;  %v1017_v17 = vld [vmem:[%s5702_s1 + $0x9e0] sm:$0xff] }
 0x12c   :  { %v3977_v23 = vpop.permute.xlu1 %588  ;;  %1444 = vmatpush1.msra.mxu0 %v973_v20  ;;  %1383 = vmatpush2.msra.mxu1 %v945_v53  ;;  %v928_v20 = vld [vmem:[%s5702_s1 + $0x718] sm:$0xff] }
 0x12d   :  { %v594_v26 = vsel %vm275_vm15, %v587_v57, %v3977_v23  ;;  %1445 = vmatprep.subr.mxu0 %v972_v21  ;;  %1384 = vmatprep.subr.mxu1 %v944_v36  ;;  %v927_v57 = vld [vmem:[%s5702_s1 + $0x710] sm:$0xff]  ;;  %v926_v36 = vld [vmem:[%s5702_s1 + $0x708] sm:$0xff] }
 0x12e   :  { %606 = vst [vmem:[#allocation3 + $0x158] sm:$0x3f] %v594_v26  ;;  %v208_v30 = vpop.permute.xlu0 %207  ;;  %1446 = vmatpush1.msra.mxu0 %v971_v22  ;;  %1385 = vmatpush2.msra.mxu1 %v943_v14  ;;  %v1015_v14 = vld [vmem:[%s5702_s1 + $0x9d0] sm:$0xff]  ;;  %v925_v26 = vld [vmem:[%s5702_s1 + $0x700] sm:$0xff] }
 0x12f   :  { %v212_v33 = vsel %vm19_vm1, %v3742_v51, %v208_v30  ;;  %1447 = vmatprep.subr.mxu0 %v970_v24  ;;  %1386 = vmatprep.subr.mxu1 %v942_v25  ;;  %v938_v51 = vld [vmem:[%s5702_s1 + $0x768] sm:$0xff]  ;;  %v1052_v30 = vld [vmem:[%s5702_s1 + $0xaf8] sm:$0xff] }
 0x130   :  { %227 = vst.msk [vmem:[#allocation3 + $0x80] sm:$0x3f] %vm226_vm5, %v212_v33  ;;  %v257_v37 = vpop.permute.xlu1 %256  ;;  %1448 = vmatpush1.msra.mxu0 %v969_v27  ;;  %1387 = vmatpush2.msra.mxu1 %v941_v29  ;;  %v1014_v25 = vld [vmem:[%s5702_s1 + $0x9c8] sm:$0xff]  ;;  %v2796_v27 = vld [vmem:[#allocation3 + $0x48] sm:$0xff]  ;;  %v1012_v29 = vld [vmem:[%s5702_s1 + $0x9b8] sm:$0xff] }
 0x131   :  { %v264_v38 = vsel %vm221_vm14, %v257_v37, %v3831_v12  ;;  %278 = vst.msk [vmem:[#allocation3 + $0x80] sm:$0x3f] %vm277_vm6, %v257_v37  ;;  %1449 = vmatprep.subr.mxu0 %v968_v31  ;;  %1388 = vmatprep.subr.mxu1 %v940_v32  ;;  %v936_v12 = vld [vmem:[%s5702_s1 + $0x758] sm:$0xff]  ;;  %v659_v31 = vld [vmem:[#allocation3 + $0x30] sm:$0xff]  ;;  %v1011_v32 = vld [vmem:[%s5702_s1 + $0x9b0] sm:$0xff] }
 0x132   :  { %279 = vst [vmem:[#allocation3 + $0x88] sm:$0x3f] %v264_v38  ;;  %v462_v42 = vpop.permute.xlu0 %461  ;;  %1450 = vmatpush1.msra.mxu0 %v967_v34  ;;  %1389 = vmatpush2.msra.mxu1 %v939_v35  ;;  %v1051_v33 = vld [vmem:[%s5702_s1 + $0xaf0] sm:$0xff]  ;;  %v1010_v34 = vld [vmem:[%s5702_s1 + $0x9a8] sm:$0xff]  ;;  %v1008_v38 = vld [vmem:[%s5702_s1 + $0x998] sm:$0xff] }
 0x133   :  { %v470_v45 = vsel %vm19_vm1, %v3772_v63, %v462_v42  ;;  %1451 = vmatprep.subr.mxu0 %v966_v13  ;;  %1390 = vmatprep.subr.mxu1 %v938_v51  ;;  %v934_v63 = vld [vmem:[%s5702_s1 + $0x748] sm:$0xff]  ;;  %v672_v35 = vld [vmem:[#allocation3 + $0x98] sm:$0xff]  ;;  %v1009_v13 = vld [vmem:[%s5702_s1 + $0x9a0] sm:$0xff] }
 0x134   :  { %481 = vst.msk [vmem:[#allocation3 + $0xe0] sm:$0xff] %vm221_vm14, %v470_v45  ;;  %v519_v49 = vpop.permute.xlu1 %518  ;;  %1452 = vmatpush1.msra.mxu0 %v965_v39  ;;  %1391 = vmatpush2.msra.mxu1 %v937_v41  ;;  %v1050_v37 = vld [vmem:[%s5702_s1 + $0xae8] sm:$0xff]  ;;  %v1049_v51 = vld [vmem:[%s5702_s1 + $0xae0] sm:$0xff]  ;;  %v1048_v39 = vld [vmem:[%s5702_s1 + $0xad8] sm:$0xff] }
 0x135   :  { %v530_v40 = vsel %vm221_vm14, %v519_v49, %v3894_v58  ;;  %540 = vst.msk [vmem:[#allocation3 + $0xe0] sm:$0xff] %vm272_vm2, %v519_v49  ;;  %1453 = vmatprep.subr.mxu0 %v964_v43  ;;  %1392 = vmatprep.subr.mxu1 %v936_v12  ;;  %v1007_v41 = vld [vmem:[%s5702_s1 + $0x990] sm:$0xff]  ;;  %v671_v42 = vld [vmem:[#allocation3 + $0x90] sm:$0xff]  ;;  %v1004_v49 = vld [vmem:[%s5702_s1 + $0x978] sm:$0xff] }
 0x136   :  { %541 = vst [vmem:[#allocation3 + $0xe8] sm:$0xff] %v530_v40  ;;  %v468_v50 = vpop.permute.xlu0 %467  ;;  %1454 = vmatpush1.msra.mxu0 %v963_v47  ;;  %1393 = vmatpush2.msra.mxu1 %v935_v48  ;;  %v1047_v43 = vld [vmem:[%s5702_s1 + $0xad0] sm:$0xff]  ;;  %v1006_v12 = vld [vmem:[%s5702_s1 + $0x988] sm:$0xff]  ;;  %v1005_v47 = vld [vmem:[%s5702_s1 + $0x980] sm:$0xff] }
 0x137   :  { %v472_v58 = vsel %vm19_vm1, %v3785_v7, %v468_v50  ;;  %1455 = vmatprep.subr.mxu0 %v962_v52  ;;  %1394 = vmatprep.subr.mxu1 %v934_v63  ;;  %v1046_v45 = vld [vmem:[%s5702_s1 + $0xac8] sm:$0xff]  ;;  %v1045_v48 = vld [vmem:[%s5702_s1 + $0xac0] sm:$0xff]  ;;  %v1044_v52 = vld [vmem:[%s5702_s1 + $0xab8] sm:$0xff] }
 0x138   :  { %484 = vst.msk [vmem:[#allocation3 + $0x140] sm:$0x3f] %vm226_vm5, %v472_v58  ;;  %v525_v60 = vpop.permute.xlu1 %524  ;;  %1456 = vmatpush1.msra.mxu0 %v961_v54  ;;  %1395 = vmatpush2.msra.mxu1 %v933_v16  ;;  %v669_v3 = vld [vmem:[#allocation3 + $0x80] sm:$0xff]  ;;  %v683_v63 = vld [vmem:[#allocation3 + $0xf0] sm:$0xff]  ;;  %v696_v16 = vld [vmem:[#allocation3 + $0x158] sm:$0xff] }
 0x139   :  { %v532_v62 = vsel %vm221_vm14, %v525_v60, %v3928_v8  ;;  %543 = vst.msk [vmem:[#allocation3 + $0x140] sm:$0x3f] %vm277_vm6, %v525_v60  ;;  %v670_v7 = vld [vmem:[#allocation3 + $0x88] sm:$0xff]  ;;  %1457 = vmatprep.subr.mxu0 %v960_v55  ;;  %1396 = vmatprep.subr.mxu1 %v932_v56  ;;  %v1019_v8 = vld [vmem:[%s5702_s1 + $0x9f0] sm:$0xff]  ;;  %v1002_v54 = vld [vmem:[%s5702_s1 + $0x968] sm:$0xff] }
 0x13a   :  { %544 = vst [vmem:[#allocation3 + $0x148] sm:$0x3f] %v532_v62  ;;  %v321_v2 = vpop.permute.xlu0 %320  ;;  %1321 = vmatprep.mubr.f32.mxu0 %v670_v7  ;;  %1458 = vmatpush1.msra.mxu0 %v959_v59  ;;  %v1042_v50 = vld [vmem:[%s5702_s1 + $0xaa8] sm:$0xff]  ;;  %v1001_v55 = vld [vmem:[%s5702_s1 + $0x960] sm:$0xff]  ;;  %v1000_v58 = vld [vmem:[%s5702_s1 + $0x958] sm:$0xff] }
 0x13b   :  { %v4082_v6 = vsel %vm275_vm15, %v3803_v18, %v321_v2  ;;  %1322 = vmatmul.mubr.f32.gmra.mxu0 %v669_v3  ;;  %1459 = vmatprep.subr.mxu0 %v958_v61  ;;  %v1018_v18 = vld [vmem:[%s5702_s1 + $0x9e8] sm:$0xff]  ;;  %v1041_v56 = vld [vmem:[%s5702_s1 + $0xaa0] sm:$0xff]  ;;  %v1040_v59 = vld [vmem:[%s5702_s1 + $0xa98] sm:$0xff] }
 0x13c   :  { %341 = vst [vmem:[#allocation3 + $0x40] sm:$0xff] %v4082_v6  ;;  %v327_v10 = vpop.permute.xlu1 %326  ;;  %1460 = vmatpush1.msra.mxu0 %v957_v0  ;;  %1327 = vmatprep.mubr.f32.mxu0 %v530_v40  ;;  %v681_v46 = vld [vmem:[#allocation3 + $0xe0] sm:$0xff]  ;;  %v1043_v40 = vld [vmem:[%s5702_s1 + $0xab0] sm:$0xff]  ;;  %v695_v62 = vld [vmem:[#allocation3 + $0x150] sm:$0xff] }
 0x13d   :  { %v331_v11 = vsel %vm275_vm15, %v3911_v1, %v327_v10  ;;  %1461 = vmatprep.subr.mxu0 %v1020_v4  ;;  %1397 = vmatpush2.msra.mxu1 %v931_v5  ;;  %v1016_v1 = vld [vmem:[%s5702_s1 + $0x9d8] sm:$0xff]  ;;  %v999_v60 = vld [vmem:[%s5702_s1 + $0x950] sm:$0xff]  ;;  %v998_v7 = vld [vmem:[%s5702_s1 + $0x948] sm:$0xff] }
 0x13e   :  { %345 = vst [vmem:[#allocation3 + $0xa0] sm:$0x3f] %v331_v11  ;;  %v585_v44 = vpop.permute.xlu0 %584  ;;  %1462 = vmatpush2.msra.mxu0 %v1019_v8  ;;  %1398 = vmatprep.subr.mxu1 %v930_v9  ;;  %v1039_v61 = vld [vmem:[%s5702_s1 + $0xa90] sm:$0xff]  ;;  %v1038_v0 = vld [vmem:[%s5702_s1 + $0xa88] sm:$0xff]  ;;  %v997_v2 = vld [vmem:[%s5702_s1 + $0x940] sm:$0xff] }
 0x13f   :  { %v4110_v53 = vsel %vm275_vm15, %v3945_v28, %v585_v44  ;;  %1328 = vmatmul.mubr.f32.gmra.mxu0 %v681_v46  ;;  %1463 = vmatprep.subr.mxu0 %v1018_v18  ;;  %v1037_v3 = vld [vmem:[%s5702_s1 + $0xa80] sm:$0xff]  ;;  %v996_v4 = vld [vmem:[%s5702_s1 + $0x938] sm:$0xff]  ;;  %v995_v8 = vld [vmem:[%s5702_s1 + $0x930] sm:$0xff] }
 0x140   :  { %604 = vst [vmem:[#allocation3 + $0x100] sm:$0xff] %v4110_v53  ;;  %v591_v21 = vpop.permute.xlu1 %590  ;;  %1399 = vmatpush2.msra.mxu1 %v929_v15  ;;  %1464 = vmatpush2.msra.mxu0 %v1017_v17  ;;  %v693_v24 = vld [vmem:[#allocation3 + $0x140] sm:$0xff]  ;;  %v1035_v9 = vld [vmem:[%s5702_s1 + $0xa70] sm:$0xff]  ;;  %v994_v10 = vld [vmem:[%s5702_s1 + $0x928] sm:$0xff] }
 0x141   :  { %v595_v22 = vsel %vm275_vm15, %v3977_v23, %v591_v21  ;;  %v694_v28 = vld [vmem:[#allocation3 + $0x148] sm:$0xff]  ;;  %1400 = vmatprep.subr.mxu1 %v928_v20  ;;  %1465 = vmatprep.subr.mxu0 %v1016_v1  ;;  %v1036_v5 = vld [vmem:[%s5702_s1 + $0xa78] sm:$0xff]  ;;  %v1034_v18 = vld [vmem:[%s5702_s1 + $0xa68] sm:$0xff] }
 0x142   :  { %607 = vst [vmem:[#allocation3 + $0x160] sm:$0x3f] %v595_v22  ;;  %1333 = vmatprep.mubr.f32.mxu0 %v694_v28  ;;  %1401 = vmatpush2.msra.mxu1 %v927_v57  ;;  %v1013_v23 = vld [vmem:[%s5702_s1 + $0x9c0] sm:$0xff]  ;;  %v992_v17 = vld [vmem:[%s5702_s1 + $0x918] sm:$0xff]  ;;  %v991_v46 = vld [vmem:[%s5702_s1 + $0x910] sm:$0xff] }
 0x143   :  { %1334 = vmatmul.mubr.f32.gmra.mxu0 %v693_v24  ;;  %1402 = vmatprep.subr.mxu1 %v926_v36  ;;  %v993_v11 = vld [vmem:[%s5702_s1 + $0x920] sm:$0xff]  ;;  %v1032_v44 = vld [vmem:[%s5702_s1 + $0xa58] sm:$0xff]  ;;  %v1031_v20 = vld [vmem:[%s5702_s1 + $0xa50] sm:$0xff] }
 0x144   :  { %1466 = vmatpush2.msra.mxu0 %v1015_v14  ;;  %1493 = vmatprep.mubr.f32.mxu0 %v2796_v27  ;;  %v1033_v15 = vld [vmem:[%s5702_s1 + $0xa60] sm:$0xff]  ;;  %v990_v1 = vld [vmem:[%s5702_s1 + $0x908] sm:$0xff]  ;;  %v1028_v22 = vld [vmem:[%s5702_s1 + $0xa38] sm:$0xff] }
 0x145   :  { %1467 = vmatprep.subr.mxu0 %v1014_v25  ;;  %1403 = vmatpush2.msra.mxu1 %v925_v26  ;;  %v1030_v57 = vld [vmem:[%s5702_s1 + $0xa48] sm:$0xff]  ;;  %v989_v21 = vld [vmem:[%s5702_s1 + $0x900] sm:$0xff]  ;;  %v1702_v28 = vld [vmem:[%s5703_s2 + $0x2f8] sm:$0xff] }
 0x146   :  { %1468 = vmatpush2.msra.mxu0 %v1013_v23  ;;  %1405 = vmatmul.mubr.f32.vlgmr.msra.gmra.mxu1 %v659_v31  ;;  %v1029_v36 = vld [vmem:[%s5702_s1 + $0xa40] sm:$0xff]  ;;  %v1027_v14 = vld [vmem:[%s5702_s1 + $0xa30] sm:$0xff]  ;;  %v1026_v26 = vld [vmem:[%s5702_s1 + $0xa28] sm:$0xff] }
 0x147   :  { %1469 = vmatprep.subr.mxu0 %v1012_v29  ;;  %1518 = vmatprep.subr.mxu1 %v1052_v30  ;;  %v1701_v24 = vld [vmem:[%s5703_s2 + $0x2f0] sm:$0xff]  ;;  %v674_v25 = vld [vmem:[#allocation3 + $0xa8] sm:$0xff]  ;;  %v1700_v23 = vld [vmem:[%s5703_s2 + $0x2e8] sm:$0xff] }
 0x148   :  { %1410 = vmatprep.mubr.f32.mxu1 %v672_v35  ;;  %1470 = vmatpush2.msra.mxu0 %v1011_v32  ;;  %v1025_v27 = vld [vmem:[%s5702_s1 + $0xa20] sm:$0xff]  ;;  %v1024_v29 = vld [vmem:[%s5702_s1 + $0xa18] sm:$0xff]  ;;  %v1023_v32 = vld [vmem:[%s5702_s1 + $0xa10] sm:$0xff] }
 0x149   :  { %1519 = vmatpush1.msra.mxu1 %v1051_v33  ;;  %1471 = vmatprep.subr.mxu0 %v1010_v34  ;;  %v1698_v30 = vld [vmem:[%s5703_s2 + $0x2d8] sm:$0xff]  ;;  %v1697_v33 = vld [vmem:[%s5703_s2 + $0x2d0] sm:$0xff]  ;;  %v1022_v34 = vld [vmem:[%s5702_s1 + $0xa08] sm:$0xff] }
 0x14a   :  { %1520 = vmatprep.subr.mxu1 %v1050_v37  ;;  %1472 = vmatpush2.msra.mxu0 %v1009_v13  ;;  %v673_v31 = vld [vmem:[#allocation3 + $0xa0] sm:$0xff]  ;;  %v1696_v35 = vld [vmem:[%s5703_s2 + $0x2c8] sm:$0xff]  ;;  %v2797_v37 = vld [vmem:[#allocation3 + $0x108] sm:$0xff] }
 0x14b   :  { %1521 = vmatpush1.msra.mxu1 %v1049_v51  ;;  %1473 = vmatprep.subr.mxu0 %v1008_v38  ;;  %v1021_v13 = vld [vmem:[%s5702_s1 + $0xa00] sm:$0xff]  ;;  %v1060_v38 = vld [vmem:[%s5702_s1 + $0xb38] sm:$0xff] }
 0x14c   :  { %1411 = vmatmul.mubr.f32.gmra.mxu1 %v671_v42  ;;  %1522 = vmatprep.subr.mxu1 %v1048_v39  ;;  %v1695_v51 = vld [vmem:[%s5703_s2 + $0x2c0] sm:$0xff]  ;;  %v1694_v39 = vld [vmem:[%s5703_s2 + $0x2b8] sm:$0xff]  ;;  %v1693_v42 = vld [vmem:[%s5703_s2 + $0x2b0] sm:$0xff] }
 0x14d   :  { %1416 = vmatprep.mubr.f32.mxu1 %v3955_v19  ;;  %1474 = vmatpush2.msra.mxu0 %v1007_v41  ;;  %v1003_v19 = vld [vmem:[%s5702_s1 + $0x970] sm:$0xff] }
 0x14e   :  { %1523 = vmatpush1.msra.mxu1 %v1047_v43  ;;  %1475 = vmatprep.subr.mxu0 %v1006_v12  ;;  %v1059_v41 = vld [vmem:[%s5702_s1 + $0xb30] sm:$0xff]  ;;  %v698_v43 = vld [vmem:[#allocation3 + $0x168] sm:$0xff]  ;;  %v1058_v12 = vld [vmem:[%s5702_s1 + $0xb28] sm:$0xff] }
 0x14f   :  { %1524 = vmatprep.subr.mxu1 %v1046_v45  ;;  %1476 = vmatpush2.msra.mxu0 %v1005_v47  ;;  %v1692_v45 = vld [vmem:[%s5703_s2 + $0x2a8] sm:$0xff]  ;;  %v1057_v47 = vld [vmem:[%s5702_s1 + $0xb20] sm:$0xff] }
 0x150   :  { %1525 = vmatpush1.msra.mxu1 %v1045_v48  ;;  %1477 = vmatprep.subr.mxu0 %v1004_v49  ;;  %v1056_v48 = vld [vmem:[%s5702_s1 + $0xb18] sm:$0xff] }
 0x151   :  { %1417 = vmatmul.mubr.f32.gmra.mxu1 %v683_v63  ;;  %1526 = vmatprep.subr.mxu1 %v1044_v52  ;;  %v1690_v49 = vld [vmem:[%s5703_s2 + $0x298] sm:$0xff]  ;;  %v1055_v52 = vld [vmem:[%s5702_s1 + $0xb10] sm:$0xff] }
 0x152   :  { %1422 = vmatprep.mubr.f32.mxu1 %v696_v16  ;;  %1478 = vmatpush2.msra.mxu0 %v1003_v19  ;;  %v697_v19 = vld [vmem:[#allocation3 + $0x160] sm:$0xff]  ;;  %v1689_v63 = vld [vmem:[%s5703_s2 + $0x290] sm:$0xff]  ;;  %v1053_v16 = vld [vmem:[%s5702_s1 + $0xb00] sm:$0xff] }
 0x153   :  { %1527 = vmatpush1.msra.mxu1 %v1043_v40  ;;  %1479 = vmatprep.subr.mxu0 %v1002_v54  ;;  %v1054_v40 = vld [vmem:[%s5702_s1 + $0xb08] sm:$0xff] }
 0x154   :  { %1528 = vmatprep.subr.mxu1 %v1042_v50  ;;  %1480 = vmatpush2.msra.mxu0 %v1001_v55  ;;  %v1688_v54 = vld [vmem:[%s5703_s2 + $0x288] sm:$0xff]  ;;  %v664_v50 = vld [vmem:[#allocation3 + $0x58] sm:$0xff] }
 0x155   :  { %1529 = vmatpush1.msra.mxu1 %v1041_v56  ;;  %1481 = vmatprep.subr.mxu0 %v1000_v58  ;;  %v2798_v55 = vld [vmem:[#allocation3 + $0x18] sm:$0xff]  ;;  %v1687_v56 = vld [vmem:[%s5703_s2 + $0x280] sm:$0xff]  ;;  %v1638_v58 = vld [vmem:[%s5703_s2 + $0xf8] sm:$0xff] }
 0x156   :  { %1423 = vmatmul.mubr.f32.gmra.mxu1 %v695_v62  ;;  %1530 = vmatprep.subr.mxu1 %v1040_v59  ;;  %v1686_v59 = vld [vmem:[%s5703_s2 + $0x278] sm:$0xff]  ;;  %v2799_v62 = vld [vmem:[#allocation3 + $0x50] sm:$0xff] }
 0x157   :  { %1482 = vmatpush2.msra.mxu0 %v999_v60  ;;  %1531 = vmatpush1.msra.mxu1 %v1039_v61  ;;  %v1637_v60 = vld [vmem:[%s5703_s2 + $0xf0] sm:$0xff] }
 0x158   :  { %1483 = vmatprep.subr.mxu0 %v998_v7  ;;  %1532 = vmatprep.subr.mxu1 %v1038_v0  ;;  %v1685_v61 = vld [vmem:[%s5703_s2 + $0x270] sm:$0xff]  ;;  %v1636_v7 = vld [vmem:[%s5703_s2 + $0xe8] sm:$0xff] }
 0x159   :  { %1484 = vmatpush2.msra.mxu0 %v997_v2  ;;  %1533 = vmatpush1.msra.mxu1 %v1037_v3  ;;  %v1684_v0 = vld [vmem:[%s5703_s2 + $0x268] sm:$0xff]  ;;  %v676_v2 = vld [vmem:[#allocation3 + $0xb8] sm:$0xff]  ;;  %v1635_v3 = vld [vmem:[%s5703_s2 + $0xe0] sm:$0xff] }
 0x15a   :  { %1485 = vmatprep.subr.mxu0 %v996_v4  ;;  %1534 = vmatprep.subr.mxu1 %v1036_v5  ;;  %v1683_v4 = vld [vmem:[%s5703_s2 + $0x260] sm:$0xff]  ;;  %v1634_v5 = vld [vmem:[%s5703_s2 + $0xd8] sm:$0xff] }
 0x15b   :  { %1486 = vmatpush2.msra.mxu0 %v995_v8  ;;  %1535 = vmatpush1.msra.mxu1 %v1035_v9  ;;  %v1682_v8 = vld [vmem:[%s5703_s2 + $0x258] sm:$0xff]  ;;  %v675_v9 = vld [vmem:[#allocation3 + $0xb0] sm:$0xff] }
 0x15c   :  { %1487 = vmatprep.subr.mxu0 %v994_v10  ;;  %1536 = vmatprep.subr.mxu1 %v1034_v18  ;;  %v1633_v10 = vld [vmem:[%s5703_s2 + $0xd0] sm:$0xff] }
 0x15d   :  { %1488 = vmatpush2.msra.mxu0 %v993_v11  ;;  %1537 = vmatpush1.msra.mxu1 %v1033_v15  ;;  %v1681_v18 = vld [vmem:[%s5703_s2 + $0x250] sm:$0xff]  ;;  %v1632_v11 = vld [vmem:[%s5703_s2 + $0xc8] sm:$0xff] }
 0x15e   :  { %1489 = vmatprep.subr.mxu0 %v992_v17  ;;  %1538 = vmatprep.subr.mxu1 %v1032_v44  ;;  %v1680_v15 = vld [vmem:[%s5703_s2 + $0x248] sm:$0xff]  ;;  %v688_v17 = vld [vmem:[#allocation3 + $0x118] sm:$0xff]  ;;  %v1631_v44 = vld [vmem:[%s5703_s2 + $0xc0] sm:$0xff] }
 0x15f   :  { %1490 = vmatpush2.msra.mxu0 %v991_v46  ;;  %1539 = vmatpush1.msra.mxu1 %v1031_v20  ;;  %v1679_v46 = vld [vmem:[%s5703_s2 + $0x240] sm:$0xff]  ;;  %v1630_v20 = vld [vmem:[%s5703_s2 + $0xb8] sm:$0xff] }
 0x160   :  { %1491 = vmatprep.subr.mxu0 %v990_v1  ;;  %1540 = vmatprep.subr.mxu1 %v1030_v57  ;;  %v1678_v1 = vld [vmem:[%s5703_s2 + $0x238] sm:$0xff]  ;;  %v1629_v57 = vld [vmem:[%s5703_s2 + $0xb0] sm:$0xff] }
 0x161   :  { %1492 = vmatpush2.msra.mxu0 %v989_v21  ;;  %1541 = vmatpush1.msra.mxu1 %v1029_v36  ;;  %v1677_v21 = vld [vmem:[%s5703_s2 + $0x230] sm:$0xff]  ;;  %v2800_v36 = vld [vmem:[#allocation3 + $0x110] sm:$0xff] }
 0x162   :  { %1494 = vmatmul.mubr.f32.vlgmr.msra.gmra.mxu0 %v4082_v6  ;;  %1542 = vmatprep.subr.mxu1 %v1028_v22  ;;  %v1699_v6 = vld [vmem:[%s5703_s2 + $0x2e0] sm:$0xff]  ;;  %v1628_v22 = vld [vmem:[%s5703_s2 + $0xa8] sm:$0xff] }
 0x163   :  { %2056 = vmatprep.subr.mxu0 %v1702_v28  ;;  %1499 = vmatprep.mubr.f32.mxu0 %v674_v25  ;;  %v1676_v28 = vld [vmem:[%s5703_s2 + $0x228] sm:$0xff]  ;;  %v1675_v25 = vld [vmem:[%s5703_s2 + $0x220] sm:$0xff] }
 0x164   :  { %1543 = vmatpush1.msra.mxu1 %v1027_v14  ;;  %2057 = vmatpush1.msra.mxu0 %v1701_v24  ;;  %v700_v14 = vld [vmem:[#allocation3 + $0x178] sm:$0xff]  ;;  %v1627_v24 = vld [vmem:[%s5703_s2 + $0xa0] sm:$0xff] }
 0x165   :  { %1544 = vmatprep.subr.mxu1 %v1026_v26  ;;  %2058 = vmatprep.subr.mxu0 %v1700_v23  ;;  %v1626_v26 = vld [vmem:[%s5703_s2 + $0x98] sm:$0xff] }
 0x166   :  { %1545 = vmatpush1.msra.mxu1 %v1025_v27  ;;  %2059 = vmatpush1.msra.mxu0 %v1699_v6  ;;  %v1674_v23 = vld [vmem:[%s5703_s2 + $0x218] sm:$0xff]  ;;  %v699_v27 = vld [vmem:[#allocation3 + $0x170] sm:$0xff]  ;;  %v1625_v6 = vld [vmem:[%s5703_s2 + $0x90] sm:$0xff] }
 0x167   :  { %1500 = vmatmul.mubr.f32.gmra.mxu0 %v673_v31  ;;  %1546 = vmatprep.subr.mxu1 %v1024_v29  ;;  %v1673_v29 = vld [vmem:[%s5703_s2 + $0x210] sm:$0xff]  ;;  %v1672_v31 = vld [vmem:[%s5703_s2 + $0x208] sm:$0xff] }
 0x168   :  { %2060 = vmatprep.subr.mxu0 %v1698_v30  ;;  %1505 = vmatprep.mubr.f32.mxu0 %v2797_v37  ;;  %v1624_v30 = vld [vmem:[%s5703_s2 + $0x88] sm:$0xff]  ;;  %v1734_v37 = vld [vmem:[%s5703_s2 + $0x3f8] sm:$0xff] }
 0x169   :  { %1547 = vmatpush1.msra.mxu1 %v1023_v32  ;;  %2061 = vmatpush1.msra.mxu0 %v1697_v33  ;;  %v1623_v32 = vld [vmem:[%s5703_s2 + $0x80] sm:$0xff] }
 0x16a   :  { %1548 = vmatprep.subr.mxu1 %v1022_v34  ;;  %2062 = vmatprep.subr.mxu0 %v1696_v35  ;;  %v2801_v33 = vld [vmem:[#allocation3 + $0x8] sm:$0xff]  ;;  %v1622_v35 = vld [vmem:[%s5703_s2 + $0x78] sm:$0xff] }
 0x16b   :  { %1549 = vmatpush1.msra.mxu1 %v1021_v13  ;;  %2063 = vmatpush1.msra.mxu0 %v1695_v51  ;;  %v1671_v34 = vld [vmem:[%s5703_s2 + $0x200] sm:$0xff]  ;;  %v1621_v13 = vld [vmem:[%s5703_s2 + $0x70] sm:$0xff] }
 0x16c   :  { %1506 = vmatmul.mubr.f32.gmra.mxu0 %v4110_v53  ;;  %1574 = vmatprep.subr.mxu1 %v1060_v38  ;;  %v1691_v53 = vld [vmem:[%s5703_s2 + $0x2a0] sm:$0xff]  ;;  %v1733_v51 = vld [vmem:[%s5703_s2 + $0x3f0] sm:$0xff]  ;;  %v1620_v38 = vld [vmem:[%s5703_s2 + $0x68] sm:$0xff] }
 0x16d   :  { %2064 = vmatprep.subr.mxu0 %v1694_v39  ;;  %1511 = vmatprep.mubr.f32.mxu0 %v698_v43  ;;  %v1732_v39 = vld [vmem:[%s5703_s2 + $0x3e8] sm:$0xff]  ;;  %v1618_v43 = vld [vmem:[%s5703_s2 + $0x58] sm:$0xff] }
 0x16e   :  { %1575 = vmatpush2.msra.mxu1 %v1059_v41  ;;  %2065 = vmatpush1.msra.mxu0 %v1693_v42  ;;  %v1619_v41 = vld [vmem:[%s5703_s2 + $0x60] sm:$0xff] }
 0x16f   :  { %1576 = vmatprep.subr.mxu1 %v1058_v12  ;;  %2066 = vmatprep.subr.mxu0 %v1692_v45  ;;  %v1731_v42 = vld [vmem:[%s5703_s2 + $0x3e0] sm:$0xff]  ;;  %v1730_v12 = vld [vmem:[%s5703_s2 + $0x3d8] sm:$0xff]  ;;  %v1617_v45 = vld [vmem:[%s5703_s2 + $0x50] sm:$0xff] }
 0x170   :  { %1577 = vmatpush2.msra.mxu1 %v1057_v47  ;;  %2067 = vmatpush1.msra.mxu0 %v1691_v53  ;;  %v1729_v47 = vld [vmem:[%s5703_s2 + $0x3d0] sm:$0xff]  ;;  %v1616_v53 = vld [vmem:[%s5703_s2 + $0x48] sm:$0xff] }
 0x171   :  { %1512 = vmatmul.mubr.f32.gmra.mxu0 %v697_v19  ;;  %1578 = vmatprep.subr.mxu1 %v1056_v48  ;;  %v1728_v48 = vld [vmem:[%s5703_s2 + $0x3c8] sm:$0xff]  ;;  %v1614_v19 = vld [vmem:[%s5703_s2 + $0x38] sm:$0xff] }
 0x172   :  { %2068 = vmatprep.subr.mxu0 %v1690_v49  ;;  %1579 = vmatpush2.msra.mxu1 %v1055_v52  ;;  %v1615_v49 = vld [vmem:[%s5703_s2 + $0x40] sm:$0xff] }
 0x173   :  { %2069 = vmatpush1.msra.mxu0 %v1689_v63  ;;  %2120 = vmatprep.mubr.f32.mxu0 %v2798_v55  ;;  %v1727_v52 = vld [vmem:[%s5703_s2 + $0x3c0] sm:$0xff]  ;;  %v1726_v63 = vld [vmem:[%s5703_s2 + $0x3b8] sm:$0xff] }
 0x174   :  { %1580 = vmatprep.subr.mxu1 %v1054_v40  ;;  %2070 = vmatprep.subr.mxu0 %v1688_v54  ;;  %v1613_v40 = vld [vmem:[%s5703_s2 + $0x30] sm:$0xff]  ;;  %v1611_v55 = vld [vmem:[%s5703_s2 + $0x20] sm:$0xff] }
 0x175   :  { %1581 = vmatpush2.msra.mxu1 %v1053_v16  ;;  %2770 = vmatprep.mubr.msk.f32.mxu1 %vm19_vm1, %v664_v50  ;;  %v1725_v54 = vld [vmem:[%s5703_s2 + $0x3b0] sm:$0xff]  ;;  %v1612_v16 = vld [vmem:[%s5703_s2 + $0x28] sm:$0xff] }
 0x176   :  { %2071 = vmatpush1.msra.mxu0 %v1687_v56  ;;  %1583 = vmatmul.mubr.f32.vlgmr.msra.gmra.mxu1 %v2799_v62  ;;  %v1724_v50 = vld [vmem:[%s5703_s2 + $0x3a8] sm:$0xff]  ;;  %v1723_v56 = vld [vmem:[%s5703_s2 + $0x3a0] sm:$0xff] }
 0x177   :  { %1967 = vmatprep.subr.mxu1 %v1638_v58  ;;  %2072 = vmatprep.subr.mxu0 %v1686_v59  ;;  %v1610_v58 = vld [vmem:[%s5703_s2 + $0x18] sm:$0xff]  ;;  %v1608_v62 = vld [vmem:[%s5703_s2 + $0x8] sm:$0xff] }
 0x178   :  { %1968 = vmatpush1.msra.mxu1 %v1637_v60  ;;  %2073 = vmatpush1.msra.mxu0 %v1685_v61  ;;  %v1722_v59 = vld [vmem:[%s5703_s2 + $0x398] sm:$0xff]  ;;  %v1609_v60 = vld [vmem:[%s5703_s2 + $0x10] sm:$0xff] }
 0x179   :  { %1969 = vmatprep.subr.mxu1 %v1636_v7  ;;  %2074 = vmatprep.subr.mxu0 %v1684_v0  ;;  %v1721_v61 = vld [vmem:[%s5703_s2 + $0x390] sm:$0xff]  ;;  %v1720_v7 = vld [vmem:[%s5703_s2 + $0x388] sm:$0xff]  ;;  %v1607_v0 = vld [vmem:[%s5703_s2] sm:$0xff] }
 0x17a   :  { %2771 = vmatprep.mubr.msk.f32.mxu1 %vm19_vm1, %v676_v2  ;;  %1970 = vmatpush1.msra.mxu1 %v1635_v3  ;;  %v1719_v2 = vld [vmem:[%s5703_s2 + $0x380] sm:$0xff]  ;;  %v1670_v3 = vld [vmem:[%s5703_s2 + $0x1f8] sm:$0xff] }
 0x17b   :  { %2075 = vmatpush1.msra.mxu0 %v1683_v4  ;;  %1589 = vmatmul.mubr.f32.gmra.mxu1 %v675_v9  ;;  %v1718_v4 = vld [vmem:[%s5703_s2 + $0x378] sm:$0xff]  ;;  %v1668_v9 = vld [vmem:[%s5703_s2 + $0x1e8] sm:$0xff] }
 0x17c   :  { %1971 = vmatprep.subr.mxu1 %v1634_v5  ;;  %2076 = vmatprep.subr.mxu0 %v1682_v8  ;;  %v1669_v5 = vld [vmem:[%s5703_s2 + $0x1f0] sm:$0xff] }
 0x17d   :  { %1972 = vmatpush1.msra.mxu1 %v1633_v10  ;;  %2077 = vmatpush1.msra.mxu0 %v1681_v18  ;;  %v1717_v8 = vld [vmem:[%s5703_s2 + $0x370] sm:$0xff]  ;;  %v1716_v10 = vld [vmem:[%s5703_s2 + $0x368] sm:$0xff]  ;;  %v1667_v18 = vld [vmem:[%s5703_s2 + $0x1e0] sm:$0xff] }
 0x17e   :  { %1973 = vmatprep.subr.mxu1 %v1632_v11  ;;  %2078 = vmatprep.subr.mxu0 %v1680_v15  ;;  %v1715_v11 = vld [vmem:[%s5703_s2 + $0x360] sm:$0xff]  ;;  %v1666_v15 = vld [vmem:[%s5703_s2 + $0x1d8] sm:$0xff] }
 0x17f   :  { %2772 = vmatprep.mubr.msk.f32.mxu1 %vm19_vm1, %v688_v17  ;;  %1974 = vmatpush1.msra.mxu1 %v1631_v44  ;;  %v1714_v17 = vld [vmem:[%s5703_s2 + $0x358] sm:$0xff]  ;;  %v1665_v44 = vld [vmem:[%s5703_s2 + $0x1d0] sm:$0xff] }
 0x180   :  { %2079 = vmatpush1.msra.mxu0 %v1679_v46  ;;  %1595 = vmatmul.mubr.f32.gmra.mxu1 %v2800_v36  ;;  %v1713_v46 = vld [vmem:[%s5703_s2 + $0x350] sm:$0xff]  ;;  %v1662_v36 = vld [vmem:[%s5703_s2 + $0x1b8] sm:$0xff] }
 0x181   :  { %1975 = vmatprep.subr.mxu1 %v1630_v20  ;;  %2080 = vmatprep.subr.mxu0 %v1678_v1  ;;  %v1664_v20 = vld [vmem:[%s5703_s2 + $0x1c8] sm:$0xff] }
 0x182   :  { %1976 = vmatpush1.msra.mxu1 %v1629_v57  ;;  %2081 = vmatpush1.msra.mxu0 %v1677_v21  ;;  %v1712_v1 = vld [vmem:[%s5703_s2 + $0x348] sm:$0xff]  ;;  %v1663_v57 = vld [vmem:[%s5703_s2 + $0x1c0] sm:$0xff] }
 0x183   :  { %1977 = vmatprep.subr.mxu1 %v1628_v22  ;;  %2082 = vmatprep.subr.mxu0 %v1676_v28  ;;  %v1711_v21 = vld [vmem:[%s5703_s2 + $0x340] sm:$0xff]  ;;  %v1710_v22 = vld [vmem:[%s5703_s2 + $0x338] sm:$0xff]  ;;  %v1661_v28 = vld [vmem:[%s5703_s2 + $0x1b0] sm:$0xff] }
 0x184   :  { %2773 = vmatprep.mubr.msk.f32.mxu1 %vm19_vm1, %v700_v14  ;;  %1978 = vmatpush1.msra.mxu1 %v1627_v24  ;;  %v1709_v14 = vld [vmem:[%s5703_s2 + $0x330] sm:$0xff]  ;;  %v1660_v24 = vld [vmem:[%s5703_s2 + $0x1a8] sm:$0xff] }
 0x185   :  { %2083 = vmatpush1.msra.mxu0 %v1675_v25  ;;  %1601 = vmatmul.mubr.f32.gmra.mxu1 %v699_v27  ;;  %v1708_v25 = vld [vmem:[%s5703_s2 + $0x328] sm:$0xff]  ;;  %v1658_v27 = vld [vmem:[%s5703_s2 + $0x198] sm:$0xff] }
 0x186   :  { %1979 = vmatprep.subr.mxu1 %v1626_v26  ;;  %2084 = vmatprep.subr.mxu0 %v1674_v23  ;;  %v1659_v26 = vld [vmem:[%s5703_s2 + $0x1a0] sm:$0xff] }
 0x187   :  { %1980 = vmatpush1.msra.mxu1 %v1625_v6  ;;  %2031 = vmatprep.mubr.f32.mxu1 %v2801_v33  ;;  %v1707_v23 = vld [vmem:[%s5703_s2 + $0x320] sm:$0xff]  ;;  %v1706_v6 = vld [vmem:[%s5703_s2 + $0x318] sm:$0xff] }
 0x188   :  { %2085 = vmatpush1.msra.mxu0 %v1673_v29  ;;  %1981 = vmatprep.subr.mxu1 %v1624_v30  ;;  %v1657_v29 = vld [vmem:[%s5703_s2 + $0x190] sm:$0xff]  ;;  %v1655_v33 = vld [vmem:[%s5703_s2 + $0x180] sm:$0xff] }
 0x189   :  { %2086 = vmatprep.subr.mxu0 %v1672_v31  ;;  %1982 = vmatpush1.msra.mxu1 %v1623_v32  ;;  %v1705_v30 = vld [vmem:[%s5703_s2 + $0x310] sm:$0xff]  ;;  %v1656_v31 = vld [vmem:[%s5703_s2 + $0x188] sm:$0xff] }
 0x18a   :  { %2087 = vmatpush1.msra.mxu0 %v1671_v34  ;;  %1983 = vmatprep.subr.mxu1 %v1622_v35  ;;  %v1704_v32 = vld [vmem:[%s5703_s2 + $0x308] sm:$0xff]  ;;  %v1703_v34 = vld [vmem:[%s5703_s2 + $0x300] sm:$0xff]  ;;  %v1654_v35 = vld [vmem:[%s5703_s2 + $0x178] sm:$0xff] }
 0x18b   :  { %2088 = vmatprep.subr.mxu0 %v1734_v37  ;;  %1984 = vmatpush1.msra.mxu1 %v1621_v13  ;;  %v1830_v37 = vld [vmem:[%s5703_s2 + $0x6f8] sm:$0xff]  ;;  %v1653_v13 = vld [vmem:[%s5703_s2 + $0x170] sm:$0xff] }
 0x18c   :  { %2089 = vmatpush2.msra.mxu0 %v1733_v51  ;;  %1985 = vmatprep.subr.mxu1 %v1620_v38  ;;  %v1829_v51 = vld [vmem:[%s5703_s2 + $0x6f0] sm:$0xff]  ;;  %v1652_v38 = vld [vmem:[%s5703_s2 + $0x168] sm:$0xff] }
 0x18d   :  { %2090 = vmatprep.subr.mxu0 %v1732_v39  ;;  %1986 = vmatpush1.msra.mxu1 %v1619_v41  ;;  %v2802_v39 = vld [vmem:[#allocation3 + $0x10] sm:$0xff] }
 0x18e   :  { %2091 = vmatpush2.msra.mxu0 %v1731_v42  ;;  %1987 = vmatprep.subr.mxu1 %v1618_v43  ;;  %v1828_v41 = vld [vmem:[%s5703_s2 + $0x6e8] sm:$0xff]  ;;  %v1651_v42 = vld [vmem:[%s5703_s2 + $0x160] sm:$0xff]  ;;  %v2803_v43 = vld [vmem:[#allocation3 + $0x78] sm:$0xff] }
 0x18f   :  { %2092 = vmatprep.subr.mxu0 %v1730_v12  ;;  %1988 = vmatpush1.msra.mxu1 %v1617_v45  ;;  %v1827_v12 = vld [vmem:[%s5703_s2 + $0x6e0] sm:$0xff]  ;;  %v1650_v45 = vld [vmem:[%s5703_s2 + $0x158] sm:$0xff] }
 0x190   :  { %2093 = vmatpush2.msra.mxu0 %v1729_v47  ;;  %1989 = vmatprep.subr.mxu1 %v1616_v53  ;;  %v1826_v47 = vld [vmem:[%s5703_s2 + $0x6d8] sm:$0xff]  ;;  %v1649_v53 = vld [vmem:[%s5703_s2 + $0x150] sm:$0xff] }
 0x191   :  { %2094 = vmatprep.subr.mxu0 %v1728_v48  ;;  %1990 = vmatpush1.msra.mxu1 %v1615_v49  ;;  %v1825_v48 = vld [vmem:[%s5703_s2 + $0x6d0] sm:$0xff]  ;;  %v1648_v49 = vld [vmem:[%s5703_s2 + $0x148] sm:$0xff] }
 0x192   :  { %2095 = vmatpush2.msra.mxu0 %v1727_v52  ;;  %1991 = vmatprep.subr.mxu1 %v1614_v19  ;;  %v2804_v52 = vld [vmem:[#allocation3 + $0x70] sm:$0xff] }
 0x193   :  { %2096 = vmatprep.subr.mxu0 %v1726_v63  ;;  %1992 = vmatpush1.msra.mxu1 %v1613_v40  ;;  %v1824_v19 = vld [vmem:[%s5703_s2 + $0x6c8] sm:$0xff]  ;;  %v1647_v63 = vld [vmem:[%s5703_s2 + $0x140] sm:$0xff]  ;;  %v2805_v40 = vld [vmem:[#allocation3 + $0xd8] sm:$0xff] }
 0x194   :  { %2097 = vmatpush2.msra.mxu0 %v1725_v54  ;;  %1993 = vmatprep.subr.mxu1 %v1612_v16  ;;  %v1823_v54 = vld [vmem:[%s5703_s2 + $0x6c0] sm:$0xff]  ;;  %v1646_v16 = vld [vmem:[%s5703_s2 + $0x138] sm:$0xff] }
 0x195   :  { %2098 = vmatprep.subr.mxu0 %v1724_v50  ;;  %1994 = vmatpush1.msra.mxu1 %v1611_v55  ;;  %v1822_v50 = vld [vmem:[%s5703_s2 + $0x6b8] sm:$0xff]  ;;  %v1645_v55 = vld [vmem:[%s5703_s2 + $0x130] sm:$0xff] }
 0x196   :  { %2099 = vmatpush2.msra.mxu0 %v1723_v56  ;;  %1995 = vmatprep.subr.mxu1 %v1610_v58  ;;  %v1821_v56 = vld [vmem:[%s5703_s2 + $0x6b0] sm:$0xff]  ;;  %v1644_v58 = vld [vmem:[%s5703_s2 + $0x128] sm:$0xff] }
 0x197   :  { %2100 = vmatprep.subr.mxu0 %v1722_v59  ;;  %1996 = vmatpush1.msra.mxu1 %v1609_v60  ;;  %v2806_v59 = vld [vmem:[#allocation3 + $0xd0] sm:$0xff] }
 0x198   :  { %2101 = vmatpush2.msra.mxu0 %v1721_v61  ;;  %1997 = vmatprep.subr.mxu1 %v1608_v62  ;;  %v1820_v60 = vld [vmem:[%s5703_s2 + $0x6a8] sm:$0xff]  ;;  %v1643_v61 = vld [vmem:[%s5703_s2 + $0x120] sm:$0xff]  ;;  %v2807_v62 = vld [vmem:[#allocation3 + $0x138] sm:$0xff] }
 0x199   :  { %2102 = vmatprep.subr.mxu0 %v1720_v7  ;;  %1998 = vmatpush1.msra.mxu1 %v1607_v0  ;;  %v1819_v7 = vld [vmem:[%s5703_s2 + $0x6a0] sm:$0xff]  ;;  %v1642_v0 = vld [vmem:[%s5703_s2 + $0x118] sm:$0xff] }
 0x19a   :  { %2103 = vmatpush2.msra.mxu0 %v1719_v2  ;;  %1999 = vmatprep.subr.mxu1 %v1670_v3  ;;  %v1818_v2 = vld [vmem:[%s5703_s2 + $0x698] sm:$0xff]  ;;  %v1641_v3 = vld [vmem:[%s5703_s2 + $0x110] sm:$0xff] }
 0x19b   :  { %2104 = vmatprep.subr.mxu0 %v1718_v4  ;;  %2000 = vmatpush2.msra.mxu1 %v1669_v5  ;;  %v1817_v4 = vld [vmem:[%s5703_s2 + $0x690] sm:$0xff]  ;;  %v1640_v5 = vld [vmem:[%s5703_s2 + $0x108] sm:$0xff] }
 0x19c   :  { %2105 = vmatpush2.msra.mxu0 %v1717_v8  ;;  %2001 = vmatprep.subr.mxu1 %v1668_v9  ;;  %v2808_v8 = vld [vmem:[#allocation3 + $0x130] sm:$0xff] }
 0x19d   :  { %2106 = vmatprep.subr.mxu0 %v1716_v10  ;;  %2002 = vmatpush2.msra.mxu1 %v1667_v18  ;;  %v1816_v9 = vld [vmem:[%s5703_s2 + $0x688] sm:$0xff]  ;;  %v1639_v10 = vld [vmem:[%s5703_s2 + $0x100] sm:$0xff] }
 0x19e   :  { %2107 = vmatpush2.msra.mxu0 %v1715_v11  ;;  %2003 = vmatprep.subr.mxu1 %v1666_v15  ;;  %v1815_v18 = vld [vmem:[%s5703_s2 + $0x680] sm:$0xff]  ;;  %v2809_v11 = vld [vmem:[#allocation3 + $0x38] sm:$0xff]  ;;  %v1766_v15 = vld [vmem:[%s5703_s2 + $0x4f8] sm:$0xff] }
 0x19f   :  { %2108 = vmatprep.subr.mxu0 %v1714_v17  ;;  %2004 = vmatpush2.msra.mxu1 %v1665_v44  ;;  %v1814_v17 = vld [vmem:[%s5703_s2 + $0x678] sm:$0xff]  ;;  %v1765_v44 = vld [vmem:[%s5703_s2 + $0x4f0] sm:$0xff] }
 0x1a0   :  { %2109 = vmatpush2.msra.mxu0 %v1713_v46  ;;  %2005 = vmatprep.subr.mxu1 %v1664_v20  ;;  %v2810_v46 = vld [vmem:[#allocation3] sm:$0xff]  ;;  %v1813_v20 = vld [vmem:[%s5703_s2 + $0x670] sm:$0xff] }
 0x1a1   :  { %2110 = vmatprep.subr.mxu0 %v1712_v1  ;;  %2006 = vmatpush2.msra.mxu1 %v1663_v57  ;;  %v1764_v1 = vld [vmem:[%s5703_s2 + $0x4e8] sm:$0xff] }
 0x1a2   :  { %2111 = vmatpush2.msra.mxu0 %v1711_v21  ;;  %2007 = vmatprep.subr.mxu1 %v1662_v36  ;;  %v1812_v57 = vld [vmem:[%s5703_s2 + $0x668] sm:$0xff]  ;;  %v1763_v21 = vld [vmem:[%s5703_s2 + $0x4e0] sm:$0xff] }
 0x1a3   :  { %2112 = vmatprep.subr.mxu0 %v1710_v22  ;;  %2008 = vmatpush2.msra.mxu1 %v1661_v28  ;;  %v2811_v36 = vld [vmem:[#allocation3 + $0x68] sm:$0xff]  ;;  %v1762_v28 = vld [vmem:[%s5703_s2 + $0x4d8] sm:$0xff] }
 0x1a4   :  { %2113 = vmatpush2.msra.mxu0 %v1709_v14  ;;  %2009 = vmatprep.subr.mxu1 %v1660_v24  ;;  %v1811_v22 = vld [vmem:[%s5703_s2 + $0x660] sm:$0xff]  ;;  %v1810_v14 = vld [vmem:[%s5703_s2 + $0x658] sm:$0xff]  ;;  %v1761_v24 = vld [vmem:[%s5703_s2 + $0x4d0] sm:$0xff] }
 0x1a5   :  { %2114 = vmatprep.subr.mxu0 %v1708_v25  ;;  %2010 = vmatpush2.msra.mxu1 %v1659_v26  ;;  %v4797_v25 = vpop.f32.mrf.mxu0  ;;  %v2812_v26 = vld [vmem:[#allocation3 + $0x60] sm:$0xff] }
 0x1a6   :  { %2115 = vmatpush2.msra.mxu0 %v1707_v23  ;;  %2011 = vmatprep.subr.mxu1 %v1658_v27  ;;  %v1809_v23 = vld [vmem:[%s5703_s2 + $0x650] sm:$0xff]  ;;  %v1760_v27 = vld [vmem:[%s5703_s2 + $0x4c8] sm:$0xff] }
 0x1a7   :  { %2116 = vmatprep.subr.mxu0 %v1706_v6  ;;  %2012 = vmatpush2.msra.mxu1 %v1657_v29  ;;  %v1808_v6 = vld [vmem:[%s5703_s2 + $0x648] sm:$0xff]  ;;  %v1759_v29 = vld [vmem:[%s5703_s2 + $0x4c0] sm:$0xff] }
 0x1a8   :  { %2117 = vmatpush2.msra.mxu0 %v1705_v30  ;;  %2013 = vmatprep.subr.mxu1 %v1656_v31  ;;  %v2813_v30 = vld [vmem:[#allocation3 + $0xc8] sm:$0xff] }
 0x1a9   :  { %2118 = vmatprep.subr.mxu0 %v1704_v32  ;;  %2014 = vmatpush2.msra.mxu1 %v1655_v33  ;;  %v1807_v31 = vld [vmem:[%s5703_s2 + $0x640] sm:$0xff]  ;;  %v1758_v33 = vld [vmem:[%s5703_s2 + $0x4b8] sm:$0xff] }
 0x1aa   :  { %2119 = vmatpush2.msra.mxu0 %v1703_v34  ;;  %2015 = vmatprep.subr.mxu1 %v1654_v35  ;;  %v1806_v34 = vld [vmem:[%s5703_s2 + $0x638] sm:$0xff]  ;;  %v4822_v35 = vpop.f32.mrf.mxu0 }
 0x1ab   :  { %2121 = vmatmul.mubr.f32.vlgmr.msra.gmra.mxu0 %v2802_v39  ;;  %2234 = vmatprep.subr.mxu0 %v1830_v37  ;;  %v1757_v37 = vld [vmem:[%s5703_s2 + $0x4b0] sm:$0xff] }
 0x1ac   :  { %2016 = vmatpush2.msra.mxu1 %v1653_v13  ;;  %2126 = vmatprep.mubr.f32.mxu0 %v2803_v43  ;;  %v2814_v13 = vld [vmem:[#allocation3 + $0xc0] sm:$0xff]  ;;  %v4833_v39 = vpop.f32.mrf.mxu0 }
 0x1ad   :  { %2235 = vmatpush1.msra.mxu0 %v1829_v51  ;;  %2017 = vmatprep.subr.mxu1 %v1652_v38  ;;  %v1805_v51 = vld [vmem:[%s5703_s2 + $0x630] sm:$0xff]  ;;  %v1756_v38 = vld [vmem:[%s5703_s2 + $0x4a8] sm:$0xff] }
 0x1ae   :  { %2236 = vmatprep.subr.mxu0 %v1828_v41  ;;  %2018 = vmatpush2.msra.mxu1 %v1651_v42  ;;  %v1804_v41 = vld [vmem:[%s5703_s2 + $0x628] sm:$0xff]  ;;  %v1755_v42 = vld [vmem:[%s5703_s2 + $0x4a0] sm:$0xff] }
 0x1af   :  { %2237 = vmatpush1.msra.mxu0 %v1827_v12  ;;  %2019 = vmatprep.subr.mxu1 %v1650_v45  ;;  %v2815_v12 = vld [vmem:[#allocation3 + $0x128] sm:$0xff] }
 0x1b0   :  { %2127 = vmatmul.mubr.f32.gmra.mxu0 %v2804_v52  ;;  %2238 = vmatprep.subr.mxu0 %v1826_v47  ;;  %v1803_v45 = vld [vmem:[%s5703_s2 + $0x620] sm:$0xff]  ;;  %v1754_v47 = vld [vmem:[%s5703_s2 + $0x498] sm:$0xff]  ;;  %v4857_v52 = vpop.f32.mrf.mxu0 }
 0x1b1   :  { %2020 = vmatpush2.msra.mxu1 %v1649_v53  ;;  %2132 = vmatprep.mubr.f32.mxu0 %v2805_v40  ;;  %v1802_v53 = vld [vmem:[%s5703_s2 + $0x618] sm:$0xff]  ;;  %v1752_v40 = vld [vmem:[%s5703_s2 + $0x488] sm:$0xff] }
 0x1b2   :  { %2239 = vmatpush1.msra.mxu0 %v1825_v48  ;;  %2021 = vmatprep.subr.mxu1 %v1648_v49  ;;  %v1753_v49 = vld [vmem:[%s5703_s2 + $0x490] sm:$0xff] }
 0x1b3   :  { %2240 = vmatprep.subr.mxu0 %v1824_v19  ;;  %2022 = vmatpush2.msra.mxu1 %v1647_v63  ;;  %v2816_v19 = vld [vmem:[#allocation3 + $0x120] sm:$0xff]  ;;  %v1801_v63 = vld [vmem:[%s5703_s2 + $0x610] sm:$0xff] }
 0x1b4   :  { %2241 = vmatpush1.msra.mxu0 %v1823_v54  ;;  %2023 = vmatprep.subr.mxu1 %v1646_v16  ;;  %v1800_v16 = vld [vmem:[%s5703_s2 + $0x608] sm:$0xff] }
 0x1b5   :  { %2133 = vmatmul.mubr.f32.gmra.mxu0 %v2806_v59  ;;  %2242 = vmatprep.subr.mxu0 %v1822_v50  ;;  %v1751_v50 = vld [vmem:[%s5703_s2 + $0x480] sm:$0xff]  ;;  %v1750_v59 = vld [vmem:[%s5703_s2 + $0x478] sm:$0xff] }
 0x1b6   :  { %2024 = vmatpush2.msra.mxu1 %v1645_v55  ;;  %2138 = vmatprep.mubr.f32.mxu0 %v2807_v62  ;;  %v4873_v55 = vpop.f32.mrf.mxu0  ;;  %v1861_v62 = vld [vmem:[%s5703_s2 + $0x7f0] sm:$0xff] }
 0x1b7   :  { %2243 = vmatpush1.msra.mxu0 %v1821_v56  ;;  %2025 = vmatprep.subr.mxu1 %v1644_v58  ;;  %v2817_v56 = vld [vmem:[#allocation3 + $0x28] sm:$0xff] }
 0x1b8   :  { %2244 = vmatprep.subr.mxu0 %v1820_v60  ;;  %2026 = vmatpush2.msra.mxu1 %v1643_v61  ;;  %v1799_v58 = vld [vmem:[%s5703_s2 + $0x600] sm:$0xff]  ;;  %v1862_v60 = vld [vmem:[%s5703_s2 + $0x7f8] sm:$0xff]  ;;  %v1749_v61 = vld [vmem:[%s5703_s2 + $0x470] sm:$0xff] }
 0x1b9   :  { %2245 = vmatpush1.msra.mxu0 %v1819_v7  ;;  %2027 = vmatprep.subr.mxu1 %v1642_v0  ;;  %v1748_v7 = vld [vmem:[%s5703_s2 + $0x468] sm:$0xff] }
 0x1ba   :  { %2139 = vmatmul.mubr.f32.gmra.mxu0 %v2808_v8  ;;  %2246 = vmatprep.subr.mxu0 %v1818_v2  ;;  %v1860_v2 = vld [vmem:[%s5703_s2 + $0x7e8] sm:$0xff]  ;;  %v1746_v8 = vld [vmem:[%s5703_s2 + $0x458] sm:$0xff] }
 0x1bb   :  { %2028 = vmatpush2.msra.mxu1 %v1641_v3  ;;  %2247 = vmatpush1.msra.mxu0 %v1817_v4  ;;  %v1747_v3 = vld [vmem:[%s5703_s2 + $0x460] sm:$0xff]  ;;  %v4901_v4 = vpop.f32.mrf.mxu0 }
 0x1bc   :  { %2298 = vmatprep.mubr.f32.mxu0 %v2809_v11  ;;  %2029 = vmatprep.subr.mxu1 %v1640_v5  ;;  %v1859_v5 = vld [vmem:[%s5703_s2 + $0x7e0] sm:$0xff]  ;;  %v1857_v11 = vld [vmem:[%s5703_s2 + $0x7d0] sm:$0xff] }
 0x1bd   :  { %2248 = vmatprep.subr.mxu0 %v1816_v9  ;;  %2030 = vmatpush2.msra.mxu1 %v1639_v10  ;;  %v1858_v9 = vld [vmem:[%s5703_s2 + $0x7d8] sm:$0xff]  ;;  %v1745_v10 = vld [vmem:[%s5703_s2 + $0x450] sm:$0xff] }
 0x1be   :  { %2249 = vmatpush1.msra.mxu0 %v1815_v18  ;;  %2032 = vmatmul.mubr.f32.vlgmr.msra.gmra.mxu1 %v2810_v46  ;;  %v4915_v18 = vpop.f32.mrf.mxu0  ;;  %v1743_v46 = vld [vmem:[%s5703_s2 + $0x440] sm:$0xff] }
 0x1bf   :  { %2145 = vmatprep.subr.mxu1 %v1766_v15  ;;  %2250 = vmatprep.subr.mxu0 %v1814_v17  ;;  %v1744_v15 = vld [vmem:[%s5703_s2 + $0x448] sm:$0xff] }
 0x1c0   :  { %2037 = vmatprep.mubr.f32.mxu1 %v2811_v36  ;;  %2146 = vmatpush1.msra.mxu1 %v1765_v44  ;;  %v4814_v32 = vpop.f32.mrf.mxu1  ;;  %v1856_v44 = vld [vmem:[%s5703_s2 + $0x7c8] sm:$0xff]  ;;  %v1741_v36 = vld [vmem:[%s5703_s2 + $0x430] sm:$0xff] }
 0x1c1   :  { %2251 = vmatpush1.msra.mxu0 %v1813_v20  ;;  %2147 = vmatprep.subr.mxu1 %v1764_v1  ;;  %v1855_v20 = vld [vmem:[%s5703_s2 + $0x7c0] sm:$0xff]  ;;  %v1742_v1 = vld [vmem:[%s5703_s2 + $0x438] sm:$0xff] }
 0x1c2   :  { %2252 = vmatprep.subr.mxu0 %v1812_v57  ;;  %2148 = vmatpush1.msra.mxu1 %v1763_v21  ;;  %v4841_v43 = vpop.f32.mrf.mxu1  ;;  %v1854_v21 = vld [vmem:[%s5703_s2 + $0x7b8] sm:$0xff] }
 0x1c3   :  { %2253 = vmatpush1.msra.mxu0 %v1811_v22  ;;  %2038 = vmatmul.mubr.f32.gmra.mxu1 %v2812_v26  ;;  %v1159_v22 = vpop.f32.mrf.mxu0  ;;  %v1852_v26 = vld [vmem:[%s5703_s2 + $0x7a8] sm:$0xff] }
 0x1c4   :  { %2149 = vmatprep.subr.mxu1 %v1762_v28  ;;  %2254 = vmatprep.subr.mxu0 %v1810_v14  ;;  %v1853_v28 = vld [vmem:[%s5703_s2 + $0x7b0] sm:$0xff]  ;;  %v1740_v14 = vld [vmem:[%s5703_s2 + $0x428] sm:$0xff] }
 0x1c5   :  { %2043 = vmatprep.mubr.f32.mxu1 %v2813_v30  ;;  %2150 = vmatpush1.msra.mxu1 %v1761_v24  ;;  %v1850_v30 = vld [vmem:[%s5703_s2 + $0x798] sm:$0xff] }
 0x1c6   :  { %2255 = vmatpush1.msra.mxu0 %v1809_v23  ;;  %2151 = vmatprep.subr.mxu1 %v1760_v27  ;;  %v1739_v23 = vld [vmem:[%s5703_s2 + $0x420] sm:$0xff] }
 0x1c7   :  { %2256 = vmatprep.subr.mxu0 %v1808_v6  ;;  %2152 = vmatpush1.msra.mxu1 %v1759_v29  ;;  %v1851_v6 = vld [vmem:[%s5703_s2 + $0x7a0] sm:$0xff]  ;;  %v1738_v29 = vld [vmem:[%s5703_s2 + $0x418] sm:$0xff] }
 0x1c8   :  { %2257 = vmatpush1.msra.mxu0 %v1807_v31  ;;  %2044 = vmatmul.mubr.f32.gmra.mxu1 %v2814_v13  ;;  %v1737_v31 = vld [vmem:[%s5703_s2 + $0x410] sm:$0xff]  ;;  %v1735_v13 = vld [vmem:[%s5703_s2 + $0x400] sm:$0xff] }
 0x1c9   :  { %2153 = vmatprep.subr.mxu1 %v1758_v33  ;;  %2258 = vmatprep.subr.mxu0 %v1806_v34  ;;  %v1849_v33 = vld [vmem:[%s5703_s2 + $0x790] sm:$0xff]  ;;  %v1736_v34 = vld [vmem:[%s5703_s2 + $0x408] sm:$0xff] }
 0x1ca   :  { %2049 = vmatprep.mubr.f32.mxu1 %v2815_v12  ;;  %2154 = vmatpush1.msra.mxu1 %v1757_v37  ;;  %v1848_v37 = vld [vmem:[%s5703_s2 + $0x788] sm:$0xff]  ;;  %v1845_v12 = vld [vmem:[%s5703_s2 + $0x770] sm:$0xff] }
 0x1cb   :  { %2259 = vmatpush1.msra.mxu0 %v1805_v51  ;;  %2155 = vmatprep.subr.mxu1 %v1756_v38  ;;  %v4852_v48 = vpop.f32.mrf.mxu1  ;;  %v1847_v51 = vld [vmem:[%s5703_s2 + $0x780] sm:$0xff]  ;;  %v1798_v38 = vld [vmem:[%s5703_s2 + $0x5f8] sm:$0xff] }
 0x1cc   :  { %2260 = vmatprep.subr.mxu0 %v1804_v41  ;;  %2156 = vmatpush1.msra.mxu1 %v1755_v42  ;;  %v1846_v41 = vld [vmem:[%s5703_s2 + $0x778] sm:$0xff]  ;;  %v1797_v42 = vld [vmem:[%s5703_s2 + $0x5f0] sm:$0xff] }
 0x1cd   :  { %2261 = vmatpush1.msra.mxu0 %v1803_v45  ;;  %2050 = vmatmul.mubr.f32.gmra.mxu1 %v2816_v19  ;;  %v4865_v54 = vpop.f32.mrf.mxu1  ;;  %v1796_v45 = vld [vmem:[%s5703_s2 + $0x5e8] sm:$0xff]  ;;  %v1794_v19 = vld [vmem:[%s5703_s2 + $0x5d8] sm:$0xff] }
 0x1ce   :  { %2157 = vmatprep.subr.mxu1 %v1754_v47  ;;  %2262 = vmatprep.subr.mxu0 %v1802_v53  ;;  %v1844_v47 = vld [vmem:[%s5703_s2 + $0x768] sm:$0xff]  ;;  %v1795_v53 = vld [vmem:[%s5703_s2 + $0x5e0] sm:$0xff] }
 0x1cf   :  { %2158 = vmatpush1.msra.mxu1 %v1753_v49  ;;  %2209 = vmatprep.mubr.f32.mxu1 %v2817_v56  ;;  %v4893_v0 = vpop.f32.mrf.mxu1  ;;  %v1843_v49 = vld [vmem:[%s5703_s2 + $0x760] sm:$0xff]  ;;  %v1840_v56 = vld [vmem:[%s5703_s2 + $0x748] sm:$0xff] }
 0x1d0   :  { %2263 = vmatpush1.msra.mxu0 %v1801_v63  ;;  %2159 = vmatprep.subr.mxu1 %v1752_v40  ;;  %v1842_v63 = vld [vmem:[%s5703_s2 + $0x758] sm:$0xff]  ;;  %v1793_v40 = vld [vmem:[%s5703_s2 + $0x5d0] sm:$0xff] }
 0x1d1   :  { %2264 = vmatprep.subr.mxu0 %v1800_v16  ;;  %2160 = vmatpush1.msra.mxu1 %v1751_v50  ;;  %v4923_v17 = vpop.f32.mrf.mxu1  ;;  %v1841_v16 = vld [vmem:[%s5703_s2 + $0x750] sm:$0xff]  ;;  %v1792_v50 = vld [vmem:[%s5703_s2 + $0x5c8] sm:$0xff] }
 0x1d2   :  { %2265 = vmatpush1.msra.mxu0 %v1799_v58  ;;  %2161 = vmatprep.subr.mxu1 %v1750_v59  ;;  %v1791_v58 = vld [vmem:[%s5703_s2 + $0x5c0] sm:$0xff] }
 0x1d3   :  { %2266 = vmatprep.subr.mxu0 %v1862_v60  ;;  %2162 = vmatpush1.msra.mxu1 %v1749_v61  ;;  %v1839_v59 = vld [vmem:[%s5703_s2 + $0x740] sm:$0xff]  ;;  %v1790_v60 = vld [vmem:[%s5703_s2 + $0x5b8] sm:$0xff] }
 0x1d4   :  { %2267 = vmatpush2.msra.mxu0 %v1861_v62  ;;  %2163 = vmatprep.subr.mxu1 %v1748_v7  ;;  %v1838_v61 = vld [vmem:[%s5703_s2 + $0x738] sm:$0xff]  ;;  %v1789_v62 = vld [vmem:[%s5703_s2 + $0x5b0] sm:$0xff] }
 0x1d5   :  { %2268 = vmatprep.subr.mxu0 %v1860_v2  ;;  %2164 = vmatpush1.msra.mxu1 %v1747_v3  ;;  %v1837_v7 = vld [vmem:[%s5703_s2 + $0x730] sm:$0xff]  ;;  %v1788_v2 = vld [vmem:[%s5703_s2 + $0x5a8] sm:$0xff] }
 0x1d6   :  { %2269 = vmatpush2.msra.mxu0 %v1859_v5  ;;  %2165 = vmatprep.subr.mxu1 %v1746_v8  ;;  %v1836_v3 = vld [vmem:[%s5703_s2 + $0x728] sm:$0xff]  ;;  %v1787_v5 = vld [vmem:[%s5703_s2 + $0x5a0] sm:$0xff] }
 0x1d7   :  { %2270 = vmatprep.subr.mxu0 %v1858_v9  ;;  %2166 = vmatpush1.msra.mxu1 %v1745_v10  ;;  %v4937_v57 = vpop.f32.mrf.mxu1  ;;  %v1835_v8 = vld [vmem:[%s5703_s2 + $0x720] sm:$0xff]  ;;  %v1786_v9 = vld [vmem:[%s5703_s2 + $0x598] sm:$0xff] }
 0x1d8   :  { %2271 = vmatpush2.msra.mxu0 %v1857_v11  ;;  %2167 = vmatprep.subr.mxu1 %v1744_v15  ;;  %v1834_v10 = vld [vmem:[%s5703_s2 + $0x718] sm:$0xff]  ;;  %v1785_v11 = vld [vmem:[%s5703_s2 + $0x590] sm:$0xff] }
 0x1d9   :  { %2272 = vmatprep.subr.mxu0 %v1856_v44  ;;  %2168 = vmatpush1.msra.mxu1 %v1743_v46  ;;  %v1248_v24 = vpop.f32.mrf.mxu1  ;;  %v1833_v15 = vld [vmem:[%s5703_s2 + $0x710] sm:$0xff]  ;;  %v1784_v44 = vld [vmem:[%s5703_s2 + $0x588] sm:$0xff] }
 0x1da   :  { %2273 = vmatpush2.msra.mxu0 %v1855_v20  ;;  %2169 = vmatprep.subr.mxu1 %v1742_v1  ;;  %v4957_v27 = vadd.f32 %v1248_v24, %v1159_v22  ;;  %v1832_v46 = vld [vmem:[%s5703_s2 + $0x708] sm:$0xff]  ;;  %v1783_v20 = vld [vmem:[%s5703_s2 + $0x580] sm:$0xff]  ;;  %v1781_v22 = vld [vmem:[%s5703_s2 + $0x570] sm:$0xff] }
 0x1db   :  { %2274 = vmatprep.subr.mxu0 %v1854_v21  ;;  %2170 = vmatpush1.msra.mxu1 %v1741_v36  ;;  %v1831_v1 = vld [vmem:[%s5703_s2 + $0x700] sm:$0xff]  ;;  %v1782_v21 = vld [vmem:[%s5703_s2 + $0x578] sm:$0xff]  ;;  %v2818_v24 = vld [vmem:[#allocation3 + $0x30] sm:$0xff] }
 0x1dc   :  { %2275 = vmatpush2.msra.mxu0 %v1853_v28  ;;  %2171 = vmatprep.subr.mxu1 %v1740_v14  ;;  %v1958_v36 = vld [vmem:[%s5703_s2 + $0xaf8] sm:$0xff]  ;;  %v1957_v28 = vld [vmem:[%s5703_s2 + $0xaf0] sm:$0xff]  ;;  %v1780_v14 = vld [vmem:[%s5703_s2 + $0x568] sm:$0xff] }
 0x1dd   :  { %2276 = vmatprep.subr.mxu0 %v1852_v26  ;;  %2172 = vmatpush1.msra.mxu1 %v1739_v23  ;;  %v1956_v26 = vld [vmem:[%s5703_s2 + $0xae8] sm:$0xff]  ;;  %v1779_v23 = vld [vmem:[%s5703_s2 + $0x560] sm:$0xff] }
 0x1de   :  { %2277 = vmatpush2.msra.mxu0 %v1851_v6  ;;  %2173 = vmatprep.subr.mxu1 %v1738_v29  ;;  %v2819_v6 = vld [vmem:[#allocation3 + $0x98] sm:$0xff]  ;;  %v1955_v29 = vld [vmem:[%s5703_s2 + $0xae0] sm:$0xff] }
 0x1df   :  { %2278 = vmatprep.subr.mxu0 %v1850_v30  ;;  %2174 = vmatpush1.msra.mxu1 %v1737_v31  ;;  %v1778_v30 = vld [vmem:[%s5703_s2 + $0x558] sm:$0xff] }
 0x1e0   :  { %2279 = vmatpush2.msra.mxu0 %v1849_v33  ;;  %2175 = vmatprep.subr.mxu1 %v1736_v34  ;;  %v1954_v31 = vld [vmem:[%s5703_s2 + $0xad8] sm:$0xff]  ;;  %v1777_v33 = vld [vmem:[%s5703_s2 + $0x550] sm:$0xff] }
 0x1e1   :  { %2280 = vmatprep.subr.mxu0 %v1848_v37  ;;  %2176 = vmatpush1.msra.mxu1 %v1735_v13  ;;  %v1953_v34 = vld [vmem:[%s5703_s2 + $0xad0] sm:$0xff]  ;;  %v1776_v37 = vld [vmem:[%s5703_s2 + $0x548] sm:$0xff] }
 0x1e2   :  { %2281 = vmatpush2.msra.mxu0 %v1847_v51  ;;  %2177 = vmatprep.subr.mxu1 %v1798_v38  ;;  %v2820_v13 = vld [vmem:[#allocation3 + $0x90] sm:$0xff]  ;;  %v1775_v38 = vld [vmem:[%s5703_s2 + $0x540] sm:$0xff] }
 0x1e3   :  { %2282 = vmatprep.subr.mxu0 %v1846_v41  ;;  %2178 = vmatpush2.msra.mxu1 %v1797_v42  ;;  %v1952_v51 = vld [vmem:[%s5703_s2 + $0xac8] sm:$0xff]  ;;  %v2821_v41 = vld [vmem:[#allocation3 + $0xf8] sm:$0xff]  ;;  %v1951_v42 = vld [vmem:[%s5703_s2 + $0xac0] sm:$0xff] }
 0x1e4   :  { %2283 = vmatpush2.msra.mxu0 %v1845_v12  ;;  %2179 = vmatprep.subr.mxu1 %v1796_v45  ;;  %v1774_v12 = vld [vmem:[%s5703_s2 + $0x538] sm:$0xff] }
 0x1e5   :  { %2284 = vmatprep.subr.mxu0 %v1844_v47  ;;  %2180 = vmatpush2.msra.mxu1 %v1795_v53  ;;  %v1950_v45 = vld [vmem:[%s5703_s2 + $0xab8] sm:$0xff]  ;;  %v1773_v47 = vld [vmem:[%s5703_s2 + $0x530] sm:$0xff]  ;;  %v1317_v53 = vpop.f32.mrf.mxu0 }
 0x1e6   :  { %2285 = vmatpush2.msra.mxu0 %v1843_v49  ;;  %2181 = vmatprep.subr.mxu1 %v1794_v19  ;;  %v1949_v49 = vld [vmem:[%s5703_s2 + $0xab0] sm:$0xff]  ;;  %v1772_v19 = vld [vmem:[%s5703_s2 + $0x528] sm:$0xff] }
 0x1e7   :  { %2286 = vmatprep.subr.mxu0 %v1842_v63  ;;  %2182 = vmatpush2.msra.mxu1 %v1793_v40  ;;  %v2822_v63 = vld [vmem:[#allocation3 + $0xf0] sm:$0xff] }
 0x1e8   :  { %2287 = vmatpush2.msra.mxu0 %v1841_v16  ;;  %2183 = vmatprep.subr.mxu1 %v1792_v50  ;;  %v1948_v40 = vld [vmem:[%s5703_s2 + $0xaa8] sm:$0xff]  ;;  %v1771_v16 = vld [vmem:[%s5703_s2 + $0x520] sm:$0xff]  ;;  %v2823_v50 = vld [vmem:[#allocation3 + $0x158] sm:$0xff] }
 0x1e9   :  { %2288 = vmatprep.subr.mxu0 %v1840_v56  ;;  %2184 = vmatpush2.msra.mxu1 %v1791_v58  ;;  %v1947_v56 = vld [vmem:[%s5703_s2 + $0xaa0] sm:$0xff]  ;;  %v1770_v58 = vld [vmem:[%s5703_s2 + $0x518] sm:$0xff] }
 0x1ea   :  { %2289 = vmatpush2.msra.mxu0 %v1839_v59  ;;  %2185 = vmatprep.subr.mxu1 %v1790_v60  ;;  %v1946_v59 = vld [vmem:[%s5703_s2 + $0xa98] sm:$0xff]  ;;  %v5160_v60 = vpop.f32.mrf.mxu0 }
 0x1eb   :  { %2290 = vmatprep.subr.mxu0 %v1838_v61  ;;  %2186 = vmatpush2.msra.mxu1 %v1789_v62  ;;  %v1769_v61 = vld [vmem:[%s5703_s2 + $0x510] sm:$0xff] }
 0x1ec   :  { %2291 = vmatpush2.msra.mxu0 %v1837_v7  ;;  %2187 = vmatprep.subr.mxu1 %v1788_v2  ;;  %v1945_v62 = vld [vmem:[%s5703_s2 + $0xa90] sm:$0xff]  ;;  %v1768_v7 = vld [vmem:[%s5703_s2 + $0x508] sm:$0xff] }
 0x1ed   :  { %2292 = vmatprep.subr.mxu0 %v1836_v3  ;;  %2188 = vmatpush2.msra.mxu1 %v1787_v5  ;;  %v1944_v2 = vld [vmem:[%s5703_s2 + $0xa88] sm:$0xff]  ;;  %v1767_v5 = vld [vmem:[%s5703_s2 + $0x500] sm:$0xff] }
 0x1ee   :  { %2293 = vmatpush2.msra.mxu0 %v1835_v8  ;;  %2189 = vmatprep.subr.mxu1 %v1786_v9  ;;  %v2824_v3 = vld [vmem:[#allocation3 + $0x150] sm:$0xff]  ;;  %v1943_v8 = vld [vmem:[%s5703_s2 + $0xa80] sm:$0xff] }
 0x1ef   :  { %2294 = vmatprep.subr.mxu0 %v1834_v10  ;;  %2190 = vmatpush2.msra.mxu1 %v1785_v11  ;;  %v1229_v10 = vadd.f32 %v4814_v32, %v4797_v25  ;;  %v1894_v11 = vld [vmem:[%s5703_s2 + $0x8f8] sm:$0xff]  ;;  %v1941_v25 = vld [vmem:[%s5703_s2 + $0xa70] sm:$0xff] }
 0x1f0   :  { %2295 = vmatpush2.msra.mxu0 %v1833_v15  ;;  %2191 = vmatprep.subr.mxu1 %v1784_v44  ;;  %v1942_v15 = vld [vmem:[%s5703_s2 + $0xa78] sm:$0xff] }
 0x1f1   :  { %2296 = vmatprep.subr.mxu0 %v1832_v46  ;;  %2192 = vmatpush2.msra.mxu1 %v1783_v20  ;;  %v1318_v44 = vadd.f32 %v1317_v53, %v1229_v10  ;;  %v1893_v46 = vld [vmem:[%s5703_s2 + $0x8f0] sm:$0xff]  ;;  %v2825_v32 = vld [vmem:[#allocation3 + $0x20] sm:$0xff]  ;;  %v1892_v20 = vld [vmem:[%s5703_s2 + $0x8e8] sm:$0xff] }
 0x1f2   :  { %2297 = vmatpush2.msra.mxu0 %v1831_v1  ;;  %2193 = vmatprep.subr.mxu1 %v1782_v21  ;;  %v1940_v1 = vld [vmem:[%s5703_s2 + $0xa68] sm:$0xff]  ;;  %v2831_v10 = vld [vmem:[#allocation3 + $0x140] sm:$0xff] }
 0x1f3   :  { %2299 = vmatmul.mubr.f32.vlgmr.msra.gmra.mxu0 %v2818_v24  ;;  %2412 = vmatprep.subr.mxu0 %v1958_v36 }
 0x1f4   :  { %2194 = vmatpush2.msra.mxu1 %v1781_v22  ;;  %2304 = vmatprep.mubr.f32.mxu0 %v2819_v6  ;;  %v2826_v22 = vld [vmem:[#allocation3 + $0x88] sm:$0xff]  ;;  %v1235_v6 = vadd.f32 %v4852_v48, %v4833_v39  ;;  %v1888_v39 = vld [vmem:[%s5703_s2 + $0x8c8] sm:$0xff] }
 0x1f5   :  { %2413 = vmatpush1.msra.mxu0 %v1957_v28  ;;  %2195 = vmatprep.subr.mxu1 %v1780_v14  ;;  %v1891_v28 = vld [vmem:[%s5703_s2 + $0x8e0] sm:$0xff]  ;;  %v1936_v48 = vld [vmem:[%s5703_s2 + $0xa48] sm:$0xff] }
 0x1f6   :  { %2414 = vmatprep.subr.mxu0 %v1956_v26  ;;  %2196 = vmatpush2.msra.mxu1 %v1779_v23  ;;  %v1939_v14 = vld [vmem:[%s5703_s2 + $0xa60] sm:$0xff]  ;;  %v1890_v26 = vld [vmem:[%s5703_s2 + $0x8d8] sm:$0xff] }
 0x1f7   :  { %2415 = vmatpush1.msra.mxu0 %v1955_v29  ;;  %2197 = vmatprep.subr.mxu1 %v1778_v30  ;;  %v1938_v29 = vld [vmem:[%s5703_s2 + $0xa58] sm:$0xff]  ;;  %v1889_v30 = vld [vmem:[%s5703_s2 + $0x8d0] sm:$0xff] }
 0x1f8   :  { %2305 = vmatmul.mubr.f32.gmra.mxu0 %v2820_v13  ;;  %2416 = vmatprep.subr.mxu0 %v1954_v31  ;;  %v1937_v31 = vld [vmem:[%s5703_s2 + $0xa50] sm:$0xff]  ;;  %v2828_v13 = vld [vmem:[#allocation3 + $0xe8] sm:$0xff] }
 0x1f9   :  { %2198 = vmatpush2.msra.mxu1 %v1777_v33  ;;  %2310 = vmatprep.mubr.f32.mxu0 %v2821_v41 }
 0x1fa   :  { %2417 = vmatpush1.msra.mxu0 %v1953_v34  ;;  %2199 = vmatprep.subr.mxu1 %v1776_v37  ;;  %v2827_v34 = vld [vmem:[#allocation3 + $0x80] sm:$0xff] }
 0x1fb   :  { %2418 = vmatprep.subr.mxu0 %v1952_v51  ;;  %2200 = vmatpush2.msra.mxu1 %v1775_v38  ;;  %v1323_v9 = vpop.f32.mrf.mxu0  ;;  %v1887_v51 = vld [vmem:[%s5703_s2 + $0x8c0] sm:$0xff] }
 0x1fc   :  { %2419 = vmatpush1.msra.mxu0 %v1951_v42  ;;  %2201 = vmatprep.subr.mxu1 %v1774_v12  ;;  %v1324_v37 = vadd.f32 %v1323_v9, %v1235_v6  ;;  %v1935_v38 = vld [vmem:[%s5703_s2 + $0xa40] sm:$0xff]  ;;  %v1886_v42 = vld [vmem:[%s5703_s2 + $0x8b8] sm:$0xff]  ;;  %v1929_v9 = vld [vmem:[%s5703_s2 + $0xa10] sm:$0xff] }
 0x1fd   :  { %2311 = vmatmul.mubr.f32.gmra.mxu0 %v2822_v63  ;;  %2420 = vmatprep.subr.mxu0 %v1950_v45  ;;  %v5200_v21 = vpop.f32.mrf.mxu0  ;;  %v1241_v45 = vadd.f32 %v4893_v0, %v4873_v55  ;;  %v1933_v55 = vld [vmem:[%s5703_s2 + $0xa30] sm:$0xff]  ;;  %v2829_v0 = vld [vmem:[#allocation3 + $0xe0] sm:$0xff]  ;;  %v1884_v63 = vld [vmem:[%s5703_s2 + $0x8a8] sm:$0xff] }
 0x1fe   :  { %2202 = vmatpush2.msra.mxu1 %v1773_v47  ;;  %2316 = vmatprep.mubr.f32.mxu0 %v2823_v50  ;;  %v1934_v47 = vld [vmem:[%s5703_s2 + $0xa38] sm:$0xff]  ;;  %v2830_v50 = vld [vmem:[#allocation3 + $0x148] sm:$0xff] }
 0x1ff   :  { %2421 = vmatpush1.msra.mxu0 %v1949_v49  ;;  %2203 = vmatprep.subr.mxu1 %v1772_v19  ;;  %v1329_v33 = vpop.f32.mrf.mxu0  ;;  %v1885_v19 = vld [vmem:[%s5703_s2 + $0x8b0] sm:$0xff]  ;;  %v1963_v6 = vld [vmem:[%s5703_s2 + $0xb20] sm:$0xff] }
 0x200   :  { %2422 = vmatprep.subr.mxu0 %v1948_v40  ;;  %2204 = vmatpush2.msra.mxu1 %v1771_v16  ;;  %v1932_v40 = vld [vmem:[%s5703_s2 + $0xa28] sm:$0xff]  ;;  %v1330_v16 = vadd.f32 %v1329_v33, %v1241_v45  ;;  %v1961_v33 = vld [vmem:[%s5703_s2 + $0xb10] sm:$0xff] }
 0x201   :  { %2423 = vmatpush1.msra.mxu0 %v1947_v56  ;;  %2205 = vmatprep.subr.mxu1 %v1770_v58  ;;  %v5248_v53 = vpop.f32.mrf.mxu0  ;;  %v1883_v56 = vld [vmem:[%s5703_s2 + $0x8a0] sm:$0xff]  ;;  %v2834_v45 = vld [vmem:[#allocation3 + $0x50] sm:$0xff] }
 0x202   :  { %2317 = vmatmul.mubr.f32.gmra.mxu0 %v2824_v3  ;;  %2424 = vmatprep.subr.mxu0 %v1946_v59  ;;  %v1931_v58 = vld [vmem:[%s5703_s2 + $0xa20] sm:$0xff]  ;;  %v1930_v3 = vld [vmem:[%s5703_s2 + $0xa18] sm:$0xff] }
 0x203   :  { %2206 = vmatpush2.msra.mxu1 %v1769_v61  ;;  %2425 = vmatpush1.msra.mxu0 %v1945_v62  ;;  %v1882_v61 = vld [vmem:[%s5703_s2 + $0x898] sm:$0xff]  ;;  %v1335_v62 = vpop.f32.mrf.mxu0 }
 0x204   :  { %2207 = vmatprep.subr.mxu1 %v1768_v7  ;;  %2426 = vmatprep.subr.mxu0 %v1944_v2  ;;  %v1247_v2 = vadd.f32 %v4937_v57, %v4915_v18  ;;  %v1880_v18 = vld [vmem:[%s5703_s2 + $0x888] sm:$0xff] }
 0x205   :  { %2208 = vmatpush2.msra.mxu1 %v1767_v5  ;;  %2427 = vmatpush1.msra.mxu0 %v1943_v8  ;;  %v1881_v5 = vld [vmem:[%s5703_s2 + $0x890] sm:$0xff]  ;;  %v1928_v57 = vld [vmem:[%s5703_s2 + $0xa08] sm:$0xff] }
 0x206   :  { %2210 = vmatmul.mubr.f32.vlgmr.msra.gmra.mxu1 %v2825_v32  ;;  %2323 = vmatprep.subr.mxu1 %v1894_v11  ;;  %v1406_v36 = vpop.f32.mrf.mxu1  ;;  %v1336_v11 = vadd.f32 %v1335_v62, %v1247_v2  ;;  %v1878_v32 = vld [vmem:[%s5703_s2 + $0x878] sm:$0xff]  ;;  %v2839_v2 = vld [vmem:[#allocation3 + $0x178] sm:$0xff] }
 0x207   :  { %2428 = vmatprep.subr.mxu0 %v1942_v15  ;;  %2215 = vmatprep.mubr.f32.mxu1 %v2826_v22  ;;  %v5208_v24 = vadd.f32 %v1406_v36, %v1318_v44  ;;  %v1879_v15 = vld [vmem:[%s5703_s2 + $0x880] sm:$0xff]  ;;  %v1877_v36 = vld [vmem:[%s5703_s2 + $0x870] sm:$0xff]  ;;  %v1922_v62 = vld [vmem:[%s5703_s2 + $0x9d8] sm:$0xff] }
 0x208   :  { %2324 = vmatpush1.msra.mxu1 %v1893_v46  ;;  %2429 = vmatpush1.msra.mxu0 %v1941_v25  ;;  %v5213_v23 = vpop.f32.mrf.mxu1  ;;  %v1927_v44 = vld [vmem:[%s5703_s2 + $0xa00] sm:$0xff]  ;;  %v1965_v22 = vld [vmem:[%s5703_s2 + $0xb30] sm:$0xff] }
 0x209   :  { %2325 = vmatprep.subr.mxu1 %v1892_v20  ;;  %2430 = vmatprep.subr.mxu0 %v1940_v1  ;;  %v2832_v25 = vld [vmem:[#allocation3 + $0x48] sm:$0xff]  ;;  %v1966_v20 = vld [vmem:[%s5703_s2 + $0xb38] sm:$0xff] }
 0x20a   :  { %2326 = vmatpush1.msra.mxu1 %v1891_v28  ;;  %2431 = vmatpush1.msra.mxu0 %v1939_v14  ;;  %v1876_v28 = vld [vmem:[%s5703_s2 + $0x868] sm:$0xff] }
 0x20b   :  { %2216 = vmatmul.mubr.f32.gmra.mxu1 %v2827_v34  ;;  %2327 = vmatprep.subr.mxu1 %v1890_v26  ;;  %v1964_v14 = vld [vmem:[%s5703_s2 + $0xb28] sm:$0xff]  ;;  %v1875_v26 = vld [vmem:[%s5703_s2 + $0x860] sm:$0xff] }
 0x20c   :  { %2432 = vmatprep.subr.mxu0 %v1938_v29  ;;  %2221 = vmatprep.mubr.f32.mxu1 %v2828_v13  ;;  %v1412_v41 = vpop.f32.mrf.mxu1  ;;  %v1874_v29 = vld [vmem:[%s5703_s2 + $0x858] sm:$0xff]  ;;  %v1872_v34 = vld [vmem:[%s5703_s2 + $0x848] sm:$0xff] }
 0x20d   :  { %2328 = vmatpush1.msra.mxu1 %v1889_v30  ;;  %2433 = vmatpush1.msra.mxu0 %v1937_v31  ;;  %v5241_v12 = vadd.f32 %v1412_v41, %v1324_v37  ;;  %v1962_v30 = vld [vmem:[%s5703_s2 + $0xb18] sm:$0xff]  ;;  %v1873_v31 = vld [vmem:[%s5703_s2 + $0x850] sm:$0xff]  ;;  %v1959_v37 = vld [vmem:[%s5703_s2 + $0xb00] sm:$0xff] }
 0x20e   :  { %2329 = vmatprep.subr.mxu1 %v1888_v39  ;;  %2434 = vmatprep.subr.mxu0 %v1936_v48  ;;  %v5250_v49 = vpop.f32.mrf.mxu1  ;;  %v1960_v39 = vld [vmem:[%s5703_s2 + $0xb08] sm:$0xff]  ;;  %v1871_v48 = vld [vmem:[%s5703_s2 + $0x840] sm:$0xff]  ;;  %v1870_v13 = vld [vmem:[%s5703_s2 + $0x838] sm:$0xff] }
 0x20f   :  { %2330 = vmatpush1.msra.mxu1 %v1887_v51  ;;  %2435 = vmatpush1.msra.mxu0 %v1935_v38  ;;  %v1869_v51 = vld [vmem:[%s5703_s2 + $0x830] sm:$0xff]  ;;  %v1868_v38 = vld [vmem:[%s5703_s2 + $0x828] sm:$0xff] }
 0x210   :  { %2222 = vmatmul.mubr.f32.gmra.mxu1 %v2829_v0  ;;  %2331 = vmatprep.subr.mxu1 %v1886_v42  ;;  %v2833_v41 = vld [vmem:[#allocation3 + $0x58] sm:$0xff]  ;;  %v1867_v42 = vld [vmem:[%s5703_s2 + $0x820] sm:$0xff]  ;;  %v1864_v0 = vld [vmem:[%s5703_s2 + $0x808] sm:$0xff] }
 0x211   :  { %2436 = vmatprep.subr.mxu0 %v1934_v47  ;;  %2227 = vmatprep.mubr.f32.mxu1 %v2830_v50  ;;  %v1418_v59 = vpop.f32.mrf.mxu1  ;;  %v1866_v47 = vld [vmem:[%s5703_s2 + $0x818] sm:$0xff]  ;;  %v2837_v50 = vld [vmem:[#allocation3 + $0x118] sm:$0xff] }
 0x212   :  { %2332 = vmatpush1.msra.mxu1 %v1885_v19  ;;  %2437 = vmatpush1.msra.mxu0 %v1933_v55  ;;  %v5273_v7 = vadd.f32 %v1418_v59, %v1330_v16  ;;  %v2835_v19 = vld [vmem:[#allocation3 + $0xb8] sm:$0xff]  ;;  %v1926_v16 = vld [vmem:[%s5703_s2 + $0x9f8] sm:$0xff]  ;;  %v1923_v59 = vld [vmem:[%s5703_s2 + $0x9e0] sm:$0xff] }
 0x213   :  { %2333 = vmatprep.subr.mxu1 %v1884_v63  ;;  %2438 = vmatprep.subr.mxu0 %v1932_v40  ;;  %v5283_v8 = vpop.f32.mrf.mxu1  ;;  %v1865_v55 = vld [vmem:[%s5703_s2 + $0x810] sm:$0xff]  ;;  %v1863_v63 = vld [vmem:[%s5703_s2 + $0x800] sm:$0xff]  ;;  %v2836_v40 = vld [vmem:[#allocation3 + $0xb0] sm:$0xff] }
 0x214   :  { %2334 = vmatpush1.msra.mxu1 %v1883_v56  ;;  %2439 = vmatpush1.msra.mxu0 %v1931_v58  ;;  %v1925_v56 = vld [vmem:[%s5703_s2 + $0x9f0] sm:$0xff]  ;;  %v1924_v58 = vld [vmem:[%s5703_s2 + $0x9e8] sm:$0xff] }
 0x215   :  { %2228 = vmatmul.mubr.f32.gmra.mxu1 %v2831_v10  ;;  %2335 = vmatprep.subr.mxu1 %v1882_v61  ;;  %v2838_v61 = vld [vmem:[#allocation3 + $0x110] sm:$0xff] }
 0x216   :  { %2440 = vmatprep.subr.mxu0 %v1930_v3  ;;  %2336 = vmatpush1.msra.mxu1 %v1881_v5  ;;  %v1424_v46 = vpop.f32.mrf.mxu1  ;;  %v1921_v3 = vld [vmem:[%s5703_s2 + $0x9d0] sm:$0xff]  ;;  %v1920_v5 = vld [vmem:[%s5703_s2 + $0x9c8] sm:$0xff] }
 0x217   :  { %2387 = vmatprep.mubr.f32.mxu1 %v2832_v25  ;;  %2441 = vmatpush1.msra.mxu0 %v1929_v9  ;;  %v5306_v1 = vadd.f32 %v1424_v46, %v1336_v11  ;;  %v1919_v9 = vld [vmem:[%s5703_s2 + $0x9c0] sm:$0xff]  ;;  %v2840_v10 = vld [vmem:[#allocation3 + $0x170] sm:$0xff]  ;;  %v1913_v46 = vld [vmem:[%s5703_s2 + $0x990] sm:$0xff] }
 0x218   :  { %2337 = vmatprep.subr.mxu1 %v1880_v18  ;;  %2442 = vmatprep.subr.mxu0 %v1928_v57  ;;  %v1918_v18 = vld [vmem:[%s5703_s2 + $0x9b8] sm:$0xff]  ;;  %v1917_v57 = vld [vmem:[%s5703_s2 + $0x9b0] sm:$0xff]  ;;  %v1916_v11 = vld [vmem:[%s5703_s2 + $0x9a8] sm:$0xff] }
 0x219   :  { %2338 = vmatpush1.msra.mxu1 %v1879_v15  ;;  %2443 = vmatpush1.msra.mxu0 %v1927_v44  ;;  %v1915_v15 = vld [vmem:[%s5703_s2 + $0x9a0] sm:$0xff]  ;;  %v1914_v44 = vld [vmem:[%s5703_s2 + $0x998] sm:$0xff]  ;;  %v1912_v25 = vld [vmem:[%s5703_s2 + $0x988] sm:$0xff] }
 0x21a   :  { %2339 = vmatprep.subr.mxu1 %v1878_v32  ;;  %2468 = vmatprep.subr.mxu0 %v1966_v20  ;;  %v1911_v32 = vld [vmem:[%s5703_s2 + $0x980] sm:$0xff]  ;;  %v1910_v20 = vld [vmem:[%s5703_s2 + $0x978] sm:$0xff] }
 0x21b   :  { %2340 = vmatpush1.msra.mxu1 %v1877_v36  ;;  %2469 = vmatpush2.msra.mxu0 %v1965_v22  ;;  %v1909_v36 = vld [vmem:[%s5703_s2 + $0x970] sm:$0xff]  ;;  %v1908_v22 = vld [vmem:[%s5703_s2 + $0x968] sm:$0xff] }
 0x21c   :  { %2341 = vmatprep.subr.mxu1 %v1876_v28  ;;  %2470 = vmatprep.subr.mxu0 %v1964_v14  ;;  %v1907_v28 = vld [vmem:[%s5703_s2 + $0x960] sm:$0xff]  ;;  %v1906_v14 = vld [vmem:[%s5703_s2 + $0x958] sm:$0xff] }
 0x21d   :  { %2342 = vmatpush1.msra.mxu1 %v1875_v26  ;;  %2471 = vmatpush2.msra.mxu0 %v1963_v6  ;;  %v1905_v26 = vld [vmem:[%s5703_s2 + $0x950] sm:$0xff]  ;;  %v1904_v6 = vld [vmem:[%s5703_s2 + $0x948] sm:$0xff] }
 0x21e   :  { %2343 = vmatprep.subr.mxu1 %v1874_v29  ;;  %2472 = vmatprep.subr.mxu0 %v1962_v30  ;;  %v1903_v29 = vld [vmem:[%s5703_s2 + $0x940] sm:$0xff]  ;;  %v1902_v30 = vld [vmem:[%s5703_s2 + $0x938] sm:$0xff] }
 0x21f   :  { %2344 = vmatpush1.msra.mxu1 %v1873_v31  ;;  %2473 = vmatpush2.msra.mxu0 %v1961_v33  ;;  %v1901_v31 = vld [vmem:[%s5703_s2 + $0x930] sm:$0xff]  ;;  %v1900_v33 = vld [vmem:[%s5703_s2 + $0x928] sm:$0xff] }
 0x220   :  { %2345 = vmatprep.subr.mxu1 %v1872_v34  ;;  %2474 = vmatprep.subr.mxu0 %v1960_v39  ;;  %v1899_v34 = vld [vmem:[%s5703_s2 + $0x920] sm:$0xff]  ;;  %v1898_v39 = vld [vmem:[%s5703_s2 + $0x918] sm:$0xff] }
 0x221   :  { %2346 = vmatpush1.msra.mxu1 %v1871_v48  ;;  %2475 = vmatpush2.msra.mxu0 %v1959_v37  ;;  %v1897_v48 = vld [vmem:[%s5703_s2 + $0x910] sm:$0xff]  ;;  %v1896_v37 = vld [vmem:[%s5703_s2 + $0x908] sm:$0xff] }
 0x222   :  { %2774 = vmatprep.mubr.msk.f32.mxu0 %vm19_vm1, %v2833_v41  ;;  %2347 = vmatprep.subr.mxu1 %v1870_v13  ;;  %v1895_v13 = vld [vmem:[%s5703_s2 + $0x900] sm:$0xff]  ;;  %v2843_v41 = vld [vmem:[#allocation3 + $0xa0] sm:$0xff] }
 0x223   :  { %2477 = vmatmul.mubr.f32.vlgmr.msra.gmra.mxu0 %v2834_v45  ;;  %2348 = vmatpush1.msra.mxu1 %v1869_v51  ;;  %v2841_v51 = vld [vmem:[#allocation3 + $0x40] sm:$0xff] }
 0x224   :  { %2349 = vmatprep.subr.mxu1 %v1868_v38  ;;  %2775 = vmatprep.mubr.msk.f32.mxu0 %vm19_vm1, %v2835_v19  ;;  %v2842_v38 = vld [vmem:[#allocation3 + $0xa8] sm:$0xff]  ;;  %v2845_v45 = vld [vmem:[#allocation3 + $0x100] sm:$0xff] }
 0x225   :  { %2350 = vmatpush1.msra.mxu1 %v1867_v42  ;;  %v2844_v42 = vld [vmem:[#allocation3 + $0x108] sm:$0xff]  ;;  %v2847_v19 = vld [vmem:[#allocation3 + $0x160] sm:$0xff] }
 0x226   :  { %2351 = vmatprep.subr.mxu1 %v1866_v47  ;;  %v2846_v47 = vld [vmem:[#allocation3 + $0x168] sm:$0xff] }
 0x227   :  { %2483 = vmatmul.mubr.f32.gmra.mxu0 %v2836_v40  ;;  %2352 = vmatpush1.msra.mxu1 %v1865_v55  ;;  %v1337_v55 = vpop.f32.mrf.mxu0 }
 0x228   :  { %2353 = vmatprep.subr.mxu1 %v1864_v0  ;;  %2776 = vmatprep.mubr.msk.f32.mxu0 %vm19_vm1, %v2837_v50 }
 0x229   :  { %2354 = vmatpush1.msra.mxu1 %v1863_v63  ;;  %v5474_v0 = vpop.f32.mrf.mxu0 }
 0x22a   :  { %2355 = vmatprep.subr.mxu1 %v1926_v16  ;;  %v1426_v16 = vpop.f32.mrf.mxu1 }
 0x22b   :  { %2489 = vmatmul.mubr.f32.gmra.mxu0 %v2838_v61  ;;  %2356 = vmatpush2.msra.mxu1 %v1925_v56  ;;  %v5476_v63 = vpop.f32.mrf.mxu0 }
 0x22c   :  { %2357 = vmatprep.subr.mxu1 %v1924_v58  ;;  %2777 = vmatprep.mubr.msk.f32.mxu0 %vm19_vm1, %v2839_v2 }
 0x22d   :  { %2358 = vmatpush2.msra.mxu1 %v1923_v59  ;;  %v5478_v40 = vpop.f32.mrf.mxu0 }
 0x22e   :  { %2359 = vmatprep.subr.mxu1 %v1922_v62 }
 0x22f   :  { %2495 = vmatmul.mubr.f32.gmra.mxu0 %v2840_v10  ;;  %2360 = vmatpush2.msra.mxu1 %v1921_v3  ;;  %v5482_v56 = vpop.f32.mrf.mxu0 }
 0x230   :  { %2361 = vmatprep.subr.mxu1 %v1920_v5 }
 0x231   :  { %2362 = vmatpush2.msra.mxu1 %v1919_v9  ;;  %v5486_v59 = vpop.f32.mrf.mxu0 }
 0x232   :  { %2363 = vmatprep.subr.mxu1 %v1918_v18 }
 0x233   :  { %2364 = vmatpush2.msra.mxu1 %v1917_v57  ;;  %v5490_v62 = vpop.f32.mrf.mxu0 }
 0x234   :  { %2365 = vmatprep.subr.mxu1 %v1916_v11 }
 0x235   :  { %2366 = vmatpush2.msra.mxu1 %v1915_v15  ;;  %v5494_v3 = vpop.f32.mrf.mxu0 }
 0x236   :  { %2367 = vmatprep.subr.mxu1 %v1914_v44  ;;  %v5480_v50 = vpop.f32.mrf.mxu1 }
 0x237   :  { %2368 = vmatpush2.msra.mxu1 %v1913_v46  ;;  %v5498_v9 = vpop.f32.mrf.mxu0 }
 0x238   :  { %2369 = vmatprep.subr.mxu1 %v1912_v25  ;;  %v5484_v58 = vpop.f32.mrf.mxu1 }
 0x239   :  { %2370 = vmatpush2.msra.mxu1 %v1911_v32 }
 0x23a   :  { %2371 = vmatprep.subr.mxu1 %v1910_v20 }
 0x23b   :  { %2372 = vmatpush2.msra.mxu1 %v1909_v36  ;;  %v5488_v61 = vpop.f32.mrf.mxu1 }
 0x23c   :  { %2373 = vmatprep.subr.mxu1 %v1908_v22 }
 0x23d   :  { %2374 = vmatpush2.msra.mxu1 %v1907_v28  ;;  %v5492_v2 = vpop.f32.mrf.mxu1 }
 0x23e   :  { %2375 = vmatprep.subr.mxu1 %v1906_v14 }
 0x23f   :  { %2376 = vmatpush2.msra.mxu1 %v1905_v26 }
 0x240   :  { %2377 = vmatprep.subr.mxu1 %v1904_v6  ;;  %v5496_v5 = vpop.f32.mrf.mxu1 }
 0x241   :  { %2378 = vmatpush2.msra.mxu1 %v1903_v29  ;;  %5707 = vst [vmem:[#allocation4_spill] sm:$0xff] %v5496_v5 }
 0x242   :  { %2379 = vmatprep.subr.mxu1 %v1902_v30  ;;  %v5500_v18 = vpop.f32.mrf.mxu1 }
 0x243   :  { %2380 = vmatpush2.msra.mxu1 %v1901_v31  ;;  %5708 = vst [vmem:[#allocation5_spill] sm:$0xff] %v5500_v18  ;;  %v1231_v18 = vadd.f32 %v4841_v43, %v4822_v35 }
 0x244   :  { %2381 = vmatprep.subr.mxu1 %v1900_v33 }
 0x245   :  { %2382 = vmatpush2.msra.mxu1 %v1899_v34  ;;  %v5502_v11 = vpop.f32.mrf.mxu1 }
 0x246   :  { %2383 = vmatprep.subr.mxu1 %v1898_v39  ;;  %5709 = vst [vmem:[#allocation6_spill] sm:$0xff] %v5502_v11 }
 0x247   :  { %2384 = vmatpush2.msra.mxu1 %v1897_v48  ;;  %v5504_v44 = vpop.f32.mrf.mxu1 }
 0x248   :  { %2385 = vmatprep.subr.mxu1 %v1896_v37  ;;  %5710 = vst [vmem:[#allocation7_spill] sm:$0xff] %v5504_v44 }
 0x249   :  { %2386 = vmatpush2.msra.mxu1 %v1895_v13 }
 0x24a   :  { %2388 = vmatmul.mubr.f32.vlgmr.msra.gmra.mxu1 %v2841_v51 }
 0x24b   :  { %2393 = vmatprep.mubr.f32.mxu1 %v2842_v38 }
 0x24e   :  { %2394 = vmatmul.mubr.f32.gmra.mxu1 %v2843_v41 }
 0x24f   :  { %2399 = vmatprep.mubr.f32.mxu1 %v2844_v42 }
 0x252   :  { %2400 = vmatmul.mubr.f32.gmra.mxu1 %v2845_v45 }
 0x253   :  { %2405 = vmatprep.mubr.f32.mxu1 %v2846_v47 }
 0x256   :  { %2406 = vmatmul.mubr.f32.gmra.mxu1 %v2847_v19 }
 0x26b   :  { %v2122_v10 = vpop.f32.mrf.mxu0 }
 0x26d   :  { %v2124_v57 = vpop.f32.mrf.mxu0 }
 0x270   :  { %v2128_v15 = vpop.f32.mrf.mxu0 }
 0x272   :  { %v2130_v25 = vpop.f32.mrf.mxu0 }
 0x275   :  { %v5506_v20 = vpop.f32.mrf.mxu0 }
 0x277   :  { %v5508_v22 = vpop.f32.mrf.mxu0 }
 0x27a   :  { %v5510_v14 = vpop.f32.mrf.mxu0 }
 0x27b   :  { %5711 = vst [vmem:[#allocation8_spill] sm:$0xff] %v5510_v14 }
 0x27c   :  { %v5514_v6 = vpop.f32.mrf.mxu0 }
 0x27d   :  { %5712 = vst [vmem:[#allocation9_spill] sm:$0xff] %v5514_v6 }
 0x27e   :  { %v2033_v46 = vpop.f32.mrf.mxu1 }
 0x27f   :  { %v2123_v14 = vadd.f32 %v2122_v10, %v2033_v46 }
 0x280   :  { %v2035_v32 = vpop.f32.mrf.mxu1 }
 0x281   :  { %v2125_v43 = vadd.f32 %v2124_v57, %v2035_v32 }
 0x283   :  { %v2039_v36 = vpop.f32.mrf.mxu1 }
 0x285   :  { %v2041_v28 = vpop.f32.mrf.mxu1 }
 0x288   :  { %v5512_v26 = vpop.f32.mrf.mxu1 }
 0x28a   :  { %v5516_v30 = vpop.f32.mrf.mxu1 }
 0x28d   :  { %v5518_v33 = vpop.f32.mrf.mxu1 }
 0x28e   :  { %5713 = vst [vmem:[#allocation10_spill] sm:$0xff] %v5518_v33 }
 0x28f   :  { %v5522_v39 = vpop.f32.mrf.mxu1 }
 0x290   :  { %5714 = vst [vmem:[#allocation11_spill] sm:$0xff] %v5522_v39  ;;  %v1237_v39 = vadd.f32 %v4865_v54, %v4857_v52 }
 0x292   :  { %v1326_v33 = vadd.f32 %v5200_v21, %v1237_v39 }
 0x294   :  { %v1415_v54 = vadd.f32 %v5250_v49, %v1326_v33 }
 0x296   :  { %v1504_v10 = vadd.f32 %v5482_v56, %v1415_v54 }
 0x2b3   :  { %v2300_v29 = vpop.f32.mrf.mxu0 }
 0x2b5   :  { %v2302_v31 = vpop.f32.mrf.mxu0 }
 0x2b8   :  { %v5520_v34 = vpop.f32.mrf.mxu0 }
 0x2ba   :  { %v5524_v37 = vpop.f32.mrf.mxu0 }
 0x2bb   :  { %5715 = vst [vmem:[#allocation12_spill] sm:$0xff] %v5524_v37  ;;  %v5721_v37 = vlaneseq }
 0x2bd   :  { %v5526_v51 = vpop.f32.mrf.mxu0  ;;  %v5548_v52 = vshrl.u32 %v5721_v37, 7  ;;  %vm5608_vm1 = vcmp.lt.s32.totalorder %v5721_v37, 224 }
 0x2be   :  { %5716 = vst [vmem:[#allocation13_spill] sm:$0xff] %v5526_v51  ;;  %v1243_v51 = vadd.f32 %v4923_v17, %v4901_v4 }
 0x2bf   :  { %v5528_v41 = vpop.f32.mrf.mxu0  ;;  %v2517_v56 = vsub.s32 1, %v5548_v52 }
 0x2c0   :  { %5717 = vst [vmem:[#allocation14_spill] sm:$0xff] %v5528_v41  ;;  %v1320_v41 = vadd.f32 %v5160_v60, %v1231_v18  ;;  %v1496_v60 = vadd.f32 %v5474_v0, %v5208_v24  ;;  %v1508_v18 = vadd.f32 %v5486_v59, %v5273_v7  ;;  %v2513_v24 = vsub.s32 0, %v5548_v52  ;;  %v2509_v7 = vld [vmem:[%s5704_s3] sm:$0x3] }
 0x2c1   :  { %v1514_v0 = vadd.f32 %v5494_v3, %v5306_v1  ;;  %v1593_v3 = vadd.f32 %v5492_v2, %v1504_v10  ;;  %v5582_v33 = vrot.slane %v2509_v7, %v2517_v56 }
 0x2c2   :  { %v5530_v45 = vpop.f32.mrf.mxu0  ;;  %v1409_v35 = vadd.f32 %v5213_v23, %v1320_v41  ;;  %v1502_v23 = vadd.f32 %v5478_v40, %v5241_v12  ;;  %v1585_v12 = vadd.f32 %v5480_v50, %v1496_v60  ;;  %v2135_v50 = vadd.f32 %v5506_v20, %v5512_v26  ;;  %v5722_v26 = vld [vmem:[#allocation12_spill] sm:$0xff] }
 0x2c3   :  { %5718 = vst [vmem:[#allocation15_spill] sm:$0xff] %v5530_v45  ;;  %v5725_v41 = vld [vmem:[#allocation8_spill] sm:$0xff] }
 0x2c4   :  { %v5532_v19 = vpop.f32.mrf.mxu0  ;;  %v1498_v21 = vadd.f32 %v5476_v63, %v1409_v35  ;;  %v1591_v1 = vadd.f32 %v5488_v61, %v1502_v23 }
 0x2c5   :  { %5719 = vst [vmem:[#allocation16_spill] sm:$0xff] %v5532_v19  ;;  %v1332_v19 = vadd.f32 %v5248_v53, %v1243_v51  ;;  %v2129_v53 = vadd.f32 %v2128_v15, %v2039_v36  ;;  %v5577_v36 = vrot.slane %v2509_v7, %v2513_v24  ;;  %v5730_v24 = vld [vmem:[#allocation5_spill] sm:$0xff] }
 0x2c6   :  { %v2211_v48 = vpop.f32.mrf.mxu1 }
 0x2c7   :  { %v2212_v6 = vadd.f32 %v2211_v48, %v2123_v14  ;;  %v1421_v4 = vadd.f32 %v5283_v8, %v1332_v19  ;;  %v5727_v19 = vld [vmem:[#allocation9_spill] sm:$0xff] }
 0x2c8   :  { %v2213_v13 = vpop.f32.mrf.mxu1 }
 0x2c9   :  { %v1510_v49 = vadd.f32 %v5490_v62, %v1421_v4 }
 0x2cb   :  { %v2217_v38 = vpop.f32.mrf.mxu1 }
 0x2cc   :  { %v2218_v57 = vadd.f32 %v2217_v38, %v2129_v53  ;;  %v5724_v38 = vld [vmem:[#allocation10_spill] sm:$0xff]  ;;  %v5729_v53 = vld [vmem:[#allocation13_spill] sm:$0xff] }
 0x2cd   :  { %v2219_v42 = vpop.f32.mrf.mxu1 }
 0x2ce   :  { %v2307_v14 = vadd.f32 %v5520_v34, %v2218_v57  ;;  %v2141_v34 = vadd.f32 %v5725_v41, %v5724_v38 }
 0x2d0   :  { %v2223_v47 = vpop.f32.mrf.mxu1 }
 0x2d2   :  { %v5534_v11 = vpop.f32.mrf.mxu1 }
 0x2d3   :  { %5720 = vst [vmem:[#allocation17_spill] sm:$0xff] %v5534_v11  ;;  %v1338_v11 = vadd.f32 %v1337_v55, %v4957_v27  ;;  %v2214_v27 = vadd.f32 %v2213_v13, %v2125_v43  ;;  %v5723_v13 = vld [vmem:[#allocation4_spill] sm:$0xff] }
 0x2d4   :  { %v1597_v51 = vadd.f32 %v5723_v13, %v1508_v18 }
 0x2d5   :  { %v2229_v5 = vpop.f32.mrf.mxu1  ;;  %v1427_v17 = vadd.f32 %v1426_v16, %v1338_v11  ;;  %v2131_v16 = vadd.f32 %v2130_v25, %v2041_v28  ;;  %v2301_v11 = vadd.f32 %v2300_v29, %v2212_v6  ;;  %v2303_v46 = vadd.f32 %v2302_v31, %v2214_v27 }
 0x2d6   :  { %v1587_v25 = vadd.f32 %v5484_v58, %v1498_v21  ;;  %v2137_v6 = vadd.f32 %v5508_v22, %v5516_v30  ;;  %v2224_v29 = vadd.f32 %v2223_v47, %v2135_v50  ;;  %v2852_v31 = vmov 1966171168  }
 0x2d7   :  { %v2231_v8 = vpop.f32.mrf.mxu1  ;;  %v5565_v63 = vadd.f32 %v5498_v9, %v1427_v17  ;;  %v2220_v59 = vadd.f32 %v2219_v42, %v2131_v16  ;;  %v2559_v58 = vunpack.c.l.s4 %v2852_v31  ;;  %v5726_v42 = vld [vmem:[#allocation11_spill] sm:$0xff] }
 0x2d8   :  { %v2143_v22 = vadd.f32 %v5727_v19, %v5726_v42  ;;  %v2313_v27 = vadd.f32 %v5729_v53, %v2224_v29  ;;  %v5734_v29 = vld [vmem:[#allocation16_spill] sm:$0xff] }
 0x2d9   :  { %v2560_v21 = vunpack.c.0.s8 %v2559_v58 }
 0x2da   :  { %v5728_v30 = vld [vmem:[#allocation17_spill] sm:$0xff]  ;;  %v2232_v60 = vadd.f32 %v2231_v8, %v2143_v22 }
 0x2db   :  { %v2226_v47 = vadd.f32 %v5728_v30, %v2137_v6  ;;  %v5599_v50 = vsub.s32 %v2560_v21, %v5548_v52 }
 0x2dc   :  { %v2321_v31 = vadd.f32 %v5734_v29, %v2232_v60 }
 0x2e3   :  { %v2478_v44 = vpop.f32.mrf.mxu0 }
 0x2e5   :  { %v2480_v45 = vpop.f32.mrf.mxu0 }
 0x2e7   :  { %v2484_v55 = vpop.f32.mrf.mxu0 }
 0x2e9   :  { %v2486_v62 = vpop.f32.mrf.mxu0 }
 0x2eb   :  { %v2490_v2 = vpop.f32.mrf.mxu0 }
 0x2ed   :  { %v2492_v10 = vpop.f32.mrf.mxu0 }
 0x30a   :  { %v2389_v40 = vpop.f32.mrf.mxu1 }
 0x30b   :  { %v2390_v15 = vadd.f32 %v2389_v40, %v2301_v11  ;;  %v5731_v40 = vld [vmem:[#allocation6_spill] sm:$0xff] }
 0x30c   :  { %v2391_v9 = vpop.f32.mrf.mxu1  ;;  %v1603_v7 = vadd.f32 %v5731_v40, %v1514_v0 }
 0x30d   :  { %v2479_v32 = vadd.f32 %v2478_v44, %v2390_v15  ;;  %v2392_v28 = vadd.f32 %v2391_v9, %v2303_v46  ;;  %v2309_v44 = vadd.f32 %v5722_v26, %v2220_v59  ;;  %v5732_v59 = vld [vmem:[#allocation14_spill] sm:$0xff] }
 0x30e   :  { %v2395_v61 = vpop.f32.mrf.mxu1 }
 0x30f   :  { %v2501_v39 = vmax.f32 %v1585_v12, %v2479_v32  ;;  %v2481_v48 = vadd.f32 %v2480_v45, %v2392_v28  ;;  %v2396_v20 = vadd.f32 %v2395_v61, %v2307_v14  ;;  %v2230_v45 = vadd.f32 %v2229_v5, %v2141_v34 }
 0x310   :  { %v2397_v35 = vpop.f32.mrf.mxu1  ;;  %v1599_v12 = vadd.f32 %v5730_v24, %v1510_v49  ;;  %v2496_v49 = vpop.f32.mrf.mxu0 }
 0x311   :  { %v2521_v43 = vadd.f32 %v5577_v36, %v2501_v39  ;;  %v2502_v54 = vmax.f32 %v1587_v25, %v2481_v48  ;;  %v2485_v4 = vadd.f32 %v2484_v55, %v2396_v20  ;;  %v2398_v17 = vadd.f32 %v2397_v35, %v2309_v44  ;;  %v5735_v44 = vld [vmem:[#allocation7_spill] sm:$0xff] }
 0x312   :  { %v2401_v23 = vpop.f32.mrf.mxu1  ;;  %v2315_v55 = vadd.f32 %v5732_v59, %v2226_v47  ;;  %v1605_v13 = vadd.f32 %v5735_v44, %v5565_v63  ;;  %v2498_v42 = vpop.f32.mrf.mxu0 }
 0x313   :  { %v2529_v18 = vmax.f32 %v2521_v43, 0.0  ;;  %v2522_v16 = vadd.f32 %v5582_v33, %v2502_v54  ;;  %v2503_v57 = vmax.f32 %v1591_v1, %v2485_v4  ;;  %v2487_v11 = vadd.f32 %v2486_v62, %v2398_v17  ;;  %v5733_v1 = vld [vmem:[#allocation15_spill] sm:$0xff] }
 0x314   :  { %v2402_v56 = vadd.f32 %v2401_v23, %v2313_v27  ;;  %v2403_v15 = vpop.f32.mrf.mxu1  ;;  %v2319_v62 = vadd.f32 %v5733_v1, %v2230_v45 }
 0x315   :  { %v2541_v5 = vrot.slane %v2529_v18, 1  ;;  %v2530_v8 = vmax.f32 %v2522_v16, 0.0  ;;  %v2523_v46 = vadd.f32 %v5577_v36, %v2503_v57  ;;  %v2504_v25 = vmax.f32 %v1593_v3, %v2487_v11 }
 0x316   :  { %v2491_v9 = vadd.f32 %v2490_v2, %v2402_v56  ;;  %v2404_v32 = vadd.f32 %v2403_v15, %v2315_v55  ;;  %v2407_v28 = vpop.f32.mrf.mxu1 }
 0x317   :  { %v2542_v14 = vrot.slane %v2530_v8, 1  ;;  %v2531_v0 = vmax.f32 %v2523_v46, 0.0  ;;  %v2524_v6 = vadd.f32 %v5582_v33, %v2504_v25  ;;  %v2549_v58 = vmax.f32 %v2529_v18, %v2541_v5 }
 0x318   :  { %v2505_v61 = vmax.f32 %v1597_v51, %v2491_v9  ;;  %v2493_v39 = vadd.f32 %v2492_v10, %v2404_v32  ;;  %v2408_v48 = vadd.f32 %v2407_v28, %v2319_v62  ;;  %v2409_v3 = vpop.f32.mrf.mxu1 }
 0x319   :  { %v2550_v20 = vmax.f32 %v2530_v8, %v2542_v14  ;;  %v2660_v52 = vrot.slane %v2531_v0, 1  ;;  %v2532_v26 = vmax.f32 %v2524_v6, 0.0  ;;  %v2410_v2 = vadd.f32 %v2409_v3, %v2321_v31 }
 0x31a   :  { %v2525_v38 = vadd.f32 %v5577_v36, %v2505_v61  ;;  %v2506_v41 = vmax.f32 %v1599_v12, %v2493_v39  ;;  %v2497_v34 = vadd.f32 %v2496_v49, %v2408_v48 }
 0x31b   :  { %v2557_v51 = vcombine.low %v2549_v58, %v2550_v20  ;;  %v2608_v22 = vcombine.high %v2549_v58, %v2550_v20  ;;  %v2661_v30 = vrot.slane %v2532_v26, 1  ;;  %v2499_v54 = vadd.f32 %v2498_v42, %v2410_v2 }
 0x31c   :  { %v2533_v47 = vmax.f32 %v2525_v38, 0.0  ;;  %v2526_v35 = vadd.f32 %v5582_v33, %v2506_v41  ;;  %v2507_v43 = vmax.f32 %v1603_v7, %v2497_v34  ;;  %v2668_v17 = vmax.f32 %v2531_v0, %v2660_v52 }
 0x31d   :  { %v2564_v63 = vrot.slane %v2557_v51, %v5599_v50  ;;  %v2615_v4 = vrot.slane %v2608_v22, %v5599_v50  ;;  %v2669_v45 = vmax.f32 %v2532_v26, %v2661_v30  ;;  %v2508_v53 = vmax.f32 %v1605_v13, %v2499_v54 }
 0x31e   :  { %v2543_v60 = vrot.slane %v2533_v47, 1  ;;  %v2534_v21 = vmax.f32 %v2526_v35, 0.0  ;;  %v2527_v37 = vadd.f32 %v5577_v36, %v2507_v43 }
 0x31f   :  { %v2571_v27 = vrot.slane %v2564_v63, %v5599_v50  ;;  %v2622_v23 = vrot.slane %v2615_v4, %v5599_v50  ;;  %v2676_v10 = vcombine.low %v2668_v17, %v2669_v45  ;;  %v2724_v18 = vcombine.high %v2668_v17, %v2669_v45 }
 0x320   :  { %v2544_v16 = vrot.slane %v2534_v21, 1  ;;  %v2535_v57 = vmax.f32 %v2527_v37, 0.0  ;;  %v2528_v11 = vadd.f32 %v5582_v33, %v2508_v53  ;;  %v2551_v7 = vmax.f32 %v2533_v47, %v2543_v60 }
 0x321   :  { %2593 = vst.msk [vmem:[%s5705_s4] ss:$8 sm:$0x3] %vm5608_vm1, %v2571_v27  ;;  %v2598_v24 = vcombine.high %v2571_v27, %v2571_v27  ;;  %2781 = vst.msk [vmem:[%s5705_s4 + $0x2] ss:$8 sm:$0x3] %vm5608_vm1, %v2622_v23  ;;  %v2646_v36 = vcombine.high %v2622_v23, %v2622_v23  ;;  %v2683_v12 = vrot.slane %v2676_v10, %v5599_v50 }
 0x322   :  { %v2731_v40 = vrot.slane %v2724_v18, %v5599_v50  ;;  %v2552_v33 = vmax.f32 %v2534_v21, %v2544_v16  ;;  %v2662_v56 = vrot.slane %v2535_v57, 1  ;;  %v2536_v59 = vmax.f32 %v2528_v11, 0.0 }
 0x323   :  { %2779 = vst.msk [vmem:[%s5705_s4 + $0x1] ss:$8 sm:$0x3] %vm5608_vm1, %v2598_v24  ;;  %2783 = vst.msk [vmem:[%s5705_s4 + $0x3] ss:$8 sm:$0x3] %vm5608_vm1, %v2646_v36  ;;  %v2690_v55 = vrot.slane %v2683_v12, %v5599_v50 }
 0x324   :  { %v2738_v15 = vrot.slane %v2731_v40, %v5599_v50  ;;  %v2572_v5 = vcombine.low %v2551_v7, %v2552_v33  ;;  %v2623_v8 = vcombine.high %v2551_v7, %v2552_v33  ;;  %v2663_v46 = vrot.slane %v2536_v59, 1 }
 0x325   :  { %2785 = vst.msk [vmem:[%s5705_s4 + $0x4] ss:$8 sm:$0x3] %vm5608_vm1, %v2690_v55  ;;  %v2714_v25 = vcombine.high %v2690_v55, %v2690_v55  ;;  %v2670_v1 = vmax.f32 %v2535_v57, %v2662_v56 }
 0x326   :  { %2789 = vst.msk [vmem:[%s5705_s4 + $0x6] ss:$8 sm:$0x3] %vm5608_vm1, %v2738_v15  ;;  %v2579_v9 = vrot.slane %v2572_v5, %v5599_v50  ;;  %v2630_v32 = vrot.slane %v2623_v8, %v5599_v50  ;;  %v2671_v62 = vmax.f32 %v2536_v59, %v2663_v46 }
 0x327   :  { %2787 = vst.msk [vmem:[%s5705_s4 + $0x5] ss:$8 sm:$0x3] %vm5608_vm1, %v2714_v25 }
 0x328   :  { %v2586_v28 = vrot.slane %v2579_v9, %v5599_v50  ;;  %v2637_v49 = vrot.slane %v2630_v32, %v5599_v50  ;;  %v2691_v14 = vcombine.low %v2670_v1, %v2671_v62  ;;  %v2739_v0 = vcombine.high %v2670_v1, %v2671_v62 }
 0x32a   :  { %2778 = vst.msk [vmem:[%s5705_s4 + $0x10] ss:$8 sm:$0x3] %vm5608_vm1, %v2586_v28  ;;  %v2599_v6 = vcombine.high %v2586_v28, %v2586_v28  ;;  %2782 = vst.msk [vmem:[%s5705_s4 + $0x12] ss:$8 sm:$0x3] %vm5608_vm1, %v2637_v49  ;;  %v2647_v29 = vcombine.high %v2637_v49, %v2637_v49  ;;  %v2698_v31 = vrot.slane %v2691_v14, %v5599_v50 }
 0x32b   :  { %v2746_v58 = vrot.slane %v2739_v0, %v5599_v50 }
 0x32c   :  { %2780 = vst.msk [vmem:[%s5705_s4 + $0x11] ss:$8 sm:$0x3] %vm5608_vm1, %v2599_v6  ;;  %2784 = vst.msk [vmem:[%s5705_s4 + $0x13] ss:$8 sm:$0x3] %vm5608_vm1, %v2647_v29  ;;  %v2705_v61 = vrot.slane %v2698_v31, %v5599_v50 }
 0x32d   :  { %v2753_v39 = vrot.slane %v2746_v58, %v5599_v50 }
 0x32e   :  { %2786 = vst.msk [vmem:[%s5705_s4 + $0x14] ss:$8 sm:$0x3] %vm5608_vm1, %v2705_v61  ;;  %v2715_v48 = vcombine.high %v2705_v61, %v2705_v61 }
 0x32f   :  { %2790 = vst.msk [vmem:[%s5705_s4 + $0x16] ss:$8 sm:$0x3] %vm5608_vm1, %v2753_v39 }
 0x330   :  { %2788 = vst.msk [vmem:[%s5705_s4 + $0x15] ss:$8 sm:$0x3] %vm5608_vm1, %v2715_v48 }

</bundles_post_ra>
